<compile_context>
chip_gen: v5e
topology: v5e:2x2
jax: 0.10.0
libtpu: 0.0.40
codegen_flags: <defaults>
</compile_context>

<pallas_src>
import functools
import math

import jax
import jax.numpy as jnp
from jax import lax
from jax.experimental import pallas as pl
from jax.experimental.pallas import tpu as pltpu

EPS_BN = 1e-5
EPS_LN = 1e-5

# scaled-down model dims (full model: base 64 / d_model 768 / 12 layers / 12 heads)
RESNET_BASE = 8
D_MODEL = 128
N_HEAD = 4
N_LAYER = 2
VOCAB = 100
N_POS = 64
INTER = 64            # intermediate_layer width (full model 512)
NUM_CLASS = 12
NC_PAD = 128          # classifier output padded to one lane width (lane-dense store)
ACT_DTYPE = jnp.bfloat16   # trunk activation / patch dtype (f32 accumulation on MXU)


def _rup(x, m):
    return ((x + m - 1) // m) * m


# --------------------------------------------------------------------------------------
# Gridless fused matmul kernels (conv-as-im2col, visual embedder)
# --------------------------------------------------------------------------------------
def _mm_kernel(a_ref, b_ref, bias_ref, o_ref, *, act):
    r = jnp.dot(a_ref[...], b_ref[...], preferred_element_type=jnp.float32) + bias_ref[...]
    if act == "relu":
        r = jnp.maximum(r, 0.0)
    o_ref[...] = r.astype(o_ref.dtype)


def _mm_res_kernel(a_ref, b_ref, bias_ref, res_ref, o_ref, *, act):
    r = (jnp.dot(a_ref[...], b_ref[...], preferred_element_type=jnp.float32)
         + bias_ref[...] + res_ref[...].astype(jnp.float32))      # fused residual add
    if act == "relu":
        r = jnp.maximum(r, 0.0)
    o_ref[...] = r.astype(o_ref.dtype)


def _mm_dual_kernel(a_ref, w1_ref, b1_ref, wd_ref, bd_ref, o1_ref, od_ref, *, cin, c_off):
    # Fused "conv1 (3x3, stride s) + downsample (1x1, stride s)" of a strided basic
    # block: both read the same im2col patches; the 1x1 conv input is the center tap.
    a = a_ref[...]
    y1 = jnp.maximum(
        jnp.dot(a, w1_ref[...], preferred_element_type=jnp.float32) + b1_ref[...], 0.0)
    o1_ref[...] = y1.astype(o1_ref.dtype)
    yd = (jnp.dot(a[:, c_off:c_off + cin], wd_ref[...],
                  preferred_element_type=jnp.float32) + bd_ref[...])
    od_ref[...] = yd.astype(od_ref.dtype)


@functools.lru_cache(maxsize=None)
def _mm_call(M, K, N, act, has_res, out_dtype):
    kern = functools.partial(_mm_res_kernel if has_res else _mm_kernel, act=act)
    return pl.pallas_call(kern, out_shape=jax.ShapeDtypeStruct((M, N), out_dtype))


@functools.lru_cache(maxsize=None)
def _mm_dual_call(M, K, N1, Nd, cin, c_off, out_dtype):
    kern = functools.partial(_mm_dual_kernel, cin=cin, c_off=c_off)
    return pl.pallas_call(kern, out_shape=(jax.ShapeDtypeStruct((M, N1), out_dtype),
                                           jax.ShapeDtypeStruct((M, Nd), out_dtype)))


def _maxpool_kernel(ee_ref, eo_ref, oe_ref, oo_ref, o_ref, *, Ho, Wo):
    # 3x3 stride-2 max over four parity planes; all taps are unit-stride static slices.
    m = ee_ref[:, :Ho, :Wo, :]
    m = jnp.maximum(m, ee_ref[:, :Ho, 1:Wo + 1, :])
    m = jnp.maximum(m, ee_ref[:, 1:Ho + 1, :Wo, :])
    m = jnp.maximum(m, ee_ref[:, 1:Ho + 1, 1:Wo + 1, :])
    m = jnp.maximum(m, eo_ref[:, :Ho, :Wo, :])
    m = jnp.maximum(m, eo_ref[:, 1:Ho + 1, :Wo, :])
    m = jnp.maximum(m, oe_ref[:, :Ho, :Wo, :])
    m = jnp.maximum(m, oe_ref[:, :Ho, 1:Wo + 1, :])
    m = jnp.maximum(m, oo_ref[:, :Ho, :Wo, :])
    o_ref[...] = m


@functools.lru_cache(maxsize=None)
def _maxpool_call(B, Ho, Wo, C, dtype):
    kern = functools.partial(_maxpool_kernel, Ho=Ho, Wo=Wo)
    return pl.pallas_call(kern, out_shape=jax.ShapeDtypeStruct((B, Ho, Wo, C), dtype))


def _pool_linear_kernel(x_ref, w_ref, b_ref, o_ref):
    pooled = jnp.mean(x_ref[...].astype(jnp.float32), axis=1)   # avgpool(1,1) + flatten
    o_ref[...] = jnp.dot(pooled.astype(jnp.bfloat16), w_ref[...],
                         preferred_element_type=jnp.float32) + b_ref[...]


@functools.lru_cache(maxsize=None)
def _pool_linear_call(B, HW, C, D):
    return pl.pallas_call(_pool_linear_kernel,
                          out_shape=jax.ShapeDtypeStruct((B, D), jnp.float32))


# --------------------------------------------------------------------------------------
# ResNet18-style trunk (eval mode, BN folded, natural channel counts, bf16 activations)
# --------------------------------------------------------------------------------------
def im2col(x, k, stride, pad):
    # TODO(synk): the window gather stays in XLA glue; the matmul + epilogue run in Pallas.
    B, H, W, C = x.shape
    xp = jnp.pad(x, ((0, 0), (pad, pad), (pad, pad), (0, 0)))
    Ho = (H + 2 * pad - k) // stride + 1
    Wo = (W + 2 * pad - k) // stride + 1
    cols = [xp[:, i:i + stride * Ho:stride, j:j + stride * Wo:stride, :]
            for i in range(k) for j in range(k)]
    patches = jnp.concatenate(cols, axis=-1)          # feature order (kh, kw, cin), bf16
    return patches.reshape(B * Ho * Wo, k * k * C), Ho, Wo


def conv2d_bn(x, p, act="none", residual=None):
    B = x.shape[0]
    patches, Ho, Wo = im2col(x, p["k"], p["s"], p["p"])
    M, K = patches.shape
    N = p["w"].shape[1]
    if residual is None:
        y = _mm_call(M, K, N, act, False, ACT_DTYPE)(patches, p["w"], p["b"])
    else:
        res = residual.reshape(M, -1)
        y = _mm_call(M, K, N, act, True, ACT_DTYPE)(patches, p["w"], p["b"], res)
    return y.reshape(B, Ho, Wo, -1)


def conv2d_bn_dual(x, p1, pd):
    # conv1 (3x3, stride s, ReLU) and downsample (1x1, stride s) fused into one call.
    B, _, _, cin = x.shape
    patches, Ho, Wo = im2col(x, p1["k"], p1["s"], p1["p"])
    M, K = patches.shape
    c_off = (p1["k"] * p1["k"] // 2) * cin             # center tap of the 3x3 patch
    call = _mm_dual_call(M, K, p1["w"].shape[1], pd["w"].shape[1], cin, c_off, ACT_DTYPE)
    y1, yd = call(patches, p1["w"], p1["b"], pd["w"], pd["b"])
    return y1.reshape(B, Ho, Wo, -1), yd.reshape(B, Ho, Wo, -1)


def maxpool2d(x, k=3, stride=2, pad=1):
    # TODO(synk): parity-plane split stays in XLA glue (no data duplication); the 9-tap
    #             max reduction runs in a single Pallas kernel.
    B, H, W, C = x.shape
    xp = jnp.pad(x, ((0, 0), (pad, pad), (pad, pad), (0, 0)), constant_values=-jnp.inf)
    Ho = (H + 2 * pad - k) // stride + 1
    Wo = (W + 2 * pad - k) // stride + 1
    ee = xp[:, 0::2, 0::2, :]
    eo = xp[:, 0::2, 1::2, :]
    oe = xp[:, 1::2, 0::2, :]
    oo = xp[:, 1::2, 1::2, :]
    return _maxpool_call(B, Ho, Wo, C, x.dtype)(ee, eo, oe, oo)


def basic_block(x, blk):
    if "down" in blk:
        out1, idn = conv2d_bn_dual(x, blk["conv1"], blk["down"])
    else:
        out1 = conv2d_bn(x, blk["conv1"], act="relu")
        idn = x
    # conv2 with residual add + ReLU fused into its epilogue
    return conv2d_bn(out1, blk["conv2"], act="relu", residual=idn)


def resnet18_features(img_nchw, R):
    x = jnp.transpose(img_nchw, (0, 2, 3, 1)).astype(ACT_DTYPE)      # NCHW -> NHWC, bf16
    x = conv2d_bn(x, R["conv1"], act="relu")                         # 7x7 / s2
    x = maxpool2d(x, 3, 2, 1)
    for name in ("layer1", "layer2", "layer3", "layer4"):
        for blk in R[name]:
            x = basic_block(x, blk)
    return x                                                          # (B, Hf, Wf, 8*base)


def pool_and_embed(x, vis_w, vis_b):
    # adaptive avgpool(1,1) + flatten (fc = Identity in v0) + visual_embedder, fused.
    B, H, W, C = x.shape
    return _pool_linear_call(B, H * W, C, vis_w.shape[1])(
        x.reshape(B, H * W, C), vis_w, vis_b)


# --------------------------------------------------------------------------------------
# Fused GPT2 decoder + pooling + intermediate(+BN) + classifier kernel
# --------------------------------------------------------------------------------------
def _layernorm(x, g, b):
    mu = jnp.mean(x, axis=-1, keepdims=True)
    var = jnp.mean(jnp.square(x - mu), axis=-1, keepdims=True)
    return (x - mu) * lax.rsqrt(var + EPS_LN) * g + b


def _gelu_new(x):  # GPT2 gelu_new (tanh approximation), f32, tanh on the EUP
    return 0.5 * x * (1.0 + jnp.tanh(0.7978845608028654 * (x + 0.044715 * x * x * x)))


def _gpt2_kernel(emb_ref, wpe_ref, mask_ref,
                 ln1g_ref, ln1b_ref, attnw_ref, attnb_ref,
                 projw_ref, projb_ref, ln2g_ref, ln2b_ref,
                 fcw_ref, fcb_ref, mpw_ref, mpb_ref,
                 lnfg_ref, lnfb_ref,
                 interw_ref, interb_ref, clsw_ref, clsb_ref,
                 out_ref, h_ref, bias_ref,
                 *, B, Lp, L, D, H, dh):
    l = pl.program_id(0)
    BL = B * Lp

    @pl.when(l == 0)
    def _init():
        # hidden state and the (layer-invariant) causal+padding bias, computed once
        h_ref[...] = emb_ref[...] + wpe_ref[...][None, :, :]
        qpos = lax.broadcasted_iota(jnp.int32, (Lp, Lp), 0)
        kpos = lax.broadcasted_iota(jnp.int32, (Lp, Lp), 1)
        keep = jnp.logical_and((kpos <= qpos)[None, :, :],
                               mask_ref[...][:, None, :] > 0.5)
        bias_ref[...] = jnp.where(keep, 0.0, -1e9).astype(jnp.float32)

    h = h_ref[...]                                        # (B, Lp, D), f32, VMEM-resident
    bias = bias_ref[...]                                  # (B, Lp, Lp)

    x = _layernorm(h.reshape(BL, D), ln1g_ref[0], ln1b_ref[0])
    # one wide fused QKV projection: (BL, D) x (D, 3D) on the MXU
    qkv = jnp.dot(x.astype(jnp.bfloat16), attnw_ref[0],
                  preferred_element_type=jnp.float32) + attnb_ref[0]
    qkv = qkv.reshape(B, Lp, 3 * D)

    scale = 1.0 / math.sqrt(dh)
    outs = []
    # TODO(synk): at full model scale (H=12, L=64) switch this short head loop to one
    #             batched einsum over B*H (or lax.fori_loop) to bound vreg pressure.
    for hh in range(H):
        q = qkv[:, :, hh * dh:(hh + 1) * dh] * scale
        k = qkv[:, :, D + hh * dh:D + (hh + 1) * dh]
        v = qkv[:, :, 2 * D + hh * dh:2 * D + (hh + 1) * dh]
        s = jnp.einsum("bqd,bkd->bqk", q, k, preferred_element_type=jnp.float32) + bias
        s = s - jnp.max(s, axis=-1, keepdims=True)
        p = jnp.exp(s)
        p = p * pl.reciprocal(jnp.sum(p, axis=-1, keepdims=True), approx=True)
        outs.append(jnp.einsum("bqk,bkd->bqd", p, v, preferred_element_type=jnp.float32))
    # assemble all heads, then one (BL, D) x (D, D) c_proj matmul
    o_all = jnp.concatenate(outs, axis=-1).reshape(BL, D)
    attn_out = jnp.dot(o_all.astype(jnp.bfloat16), projw_ref[0],
                       preferred_element_type=jnp.float32) + projb_ref[0]
    h = h + attn_out.reshape(B, Lp, D)

    x2 = _layernorm(h.reshape(BL, D), ln2g_ref[0], ln2b_ref[0]).astype(jnp.bfloat16)
    m = jnp.dot(x2, fcw_ref[0], preferred_element_type=jnp.float32) + fcb_ref[0]
    m = _gelu_new(m)
    m = jnp.dot(m.astype(jnp.bfloat16), mpw_ref[0],
                preferred_element_type=jnp.float32) + mpb_ref[0]
    h = h + m.reshape(B, Lp, D)
    h_ref[...] = h

    @pl.when(l == pl.num_programs(0) - 1)
    def _finalize():
        hf = _layernorm(h.reshape(BL, D), lnfg_ref[...], lnfb_ref[...]).reshape(B, Lp, D)
        # adaptive_avg_pool1d over the full sequence (unmasked, matches the reference)
        pooled = jnp.mean(hf[:, :L, :], axis=1)
        t = jnp.dot(pooled.astype(jnp.bfloat16), interw_ref[...],     # intermediate + BN
                    preferred_element_type=jnp.float32) + interb_ref[...]
        logits = jnp.dot(t.astype(jnp.bfloat16), clsw_ref[...],       # classifier (padded)
                         preferred_element_type=jnp.float32) + clsb_ref[...]
        out_ref[...] = logits


@functools.lru_cache(maxsize=None)
def _gpt2_call(B, Lp, L, D, H, dh, n_layer, inter, nc_pad):
    kern = functools.partial(_gpt2_kernel, B=B, Lp=Lp, L=L, D=D, H=H, dh=dh)
    in_specs = [
        pl.BlockSpec((B, Lp, D), lambda l: (0, 0, 0)),                  # emb
        pl.BlockSpec((Lp, D), lambda l: (0, 0)),                        # wpe
        pl.BlockSpec((B, Lp), lambda l: (0, 0)),                        # attention mask
        pl.BlockSpec((1, 1, D), lambda l: (l, 0, 0)),                   # ln1 g
        pl.BlockSpec((1, 1, D), lambda l: (l, 0, 0)),                   # ln1 b
        pl.BlockSpec((1, D, 3 * D), lambda l: (l, 0, 0)),               # c_attn W (fused qkv)
        pl.BlockSpec((1, 1, 3 * D), lambda l: (l, 0, 0)),               # c_attn b
        pl.BlockSpec((1, D, D), lambda l: (l, 0, 0)),                   # c_proj W
        pl.BlockSpec((1, 1, D), lambda l: (l, 0, 0)),                   # c_proj b
        pl.BlockSpec((1, 1, D), lambda l: (l, 0, 0)),                   # ln2 g
        pl.BlockSpec((1, 1, D), lambda l: (l, 0, 0)),                   # ln2 b
        pl.BlockSpec((1, D, 4 * D), lambda l: (l, 0, 0)),               # mlp c_fc W
        pl.BlockSpec((1, 1, 4 * D), lambda l: (l, 0, 0)),               # mlp c_fc b
        pl.BlockSpec((1, 4 * D, D), lambda l: (l, 0, 0)),               # mlp c_proj W
        pl.BlockSpec((1, 1, D), lambda l: (l, 0, 0)),                   # mlp c_proj b
        pl.BlockSpec((1, D), lambda l: (0, 0)),                         # ln_f g
        pl.BlockSpec((1, D), lambda l: (0, 0)),                         # ln_f b
        pl.BlockSpec((D, inter), lambda l: (0, 0)),                     # intermediate W (BN folded)
        pl.BlockSpec((1, inter), lambda l: (0, 0)),                     # intermediate b (BN folded)
        pl.BlockSpec((inter, nc_pad), lambda l: (0, 0)),                # classifier W (padded)
        pl.BlockSpec((1, nc_pad), lambda l: (0, 0)),                    # classifier b (padded)
    ]
    # TODO(synk): at full scale (D=768, 12 layers) set vmem_limit_bytes explicitly and
    #             single-buffer the big MLP weights (pipeline_mode) for v7x's 64 MiB VMEM.
    return pl.pallas_call(
        kern,
        out_shape=jax.ShapeDtypeStruct((B, nc_pad), jnp.float32),
        grid_spec=pltpu.PrefetchScalarGridSpec(
            num_scalar_prefetch=0,
            grid=(n_layer,),
            in_specs=in_specs,
            out_specs=pl.BlockSpec((B, nc_pad), lambda l: (0, 0)),
            scratch_shapes=[pltpu.VMEM((B, Lp, D), jnp.float32),        # resident hidden state
                            pltpu.VMEM((B, Lp, Lp), jnp.float32)],      # cached attention bias
        ),
        compiler_params=pltpu.CompilerParams(dimension_semantics=("arbitrary",)),
    )


def gpt2_decode_and_classify(inputs_embeds, attn_mask, G, Hd):
    B, L, D = inputs_embeds.shape
    Lp = _rup(max(L, 8), 8)
    emb = jnp.pad(inputs_embeds, ((0, 0), (0, Lp - L), (0, 0)))
    mask = jnp.pad(attn_mask.astype(jnp.float32), ((0, 0), (0, Lp - L)))
    wpe = G["wpe"][:Lp]
    dh = D // N_HEAD
    call = _gpt2_call(B, Lp, L, D, N_HEAD, dh, N_LAYER, INTER, NC_PAD)
    logits_p = call(emb, wpe, mask,
                    G["ln1_g"], G["ln1_b"], G["attn_w"], G["attn_b"],
                    G["proj_w"], G["proj_b"], G["ln2_g"], G["ln2_b"],
                    G["fc_w"], G["fc_b"], G["mp_w"], G["mp_b"],
                    G["lnf_g"], G["lnf_b"],
                    Hd["inter_w"], Hd["inter_b"], Hd["cls_w"], Hd["cls_b"])
    return logits_p[:, :NUM_CLASS]


# --------------------------------------------------------------------------------------
# Parameter init (deterministic synthetic weights; BN folded; bf16 matmul weights)
# --------------------------------------------------------------------------------------
def init_params(key):
    keys = iter(jax.random.split(key, 512))

    def nrm(shape, std=0.02):
        return jax.random.normal(next(keys), shape, jnp.float32) * std

    def conv_bn(cin, cout, k, stride, pad):
        w = nrm((k, k, cin, cout), std=1.0 / (k * math.sqrt(cin)))
        gamma = 1.0 + nrm((cout,), 0.1)
        beta = nrm((cout,), 0.1)
        rmean = nrm((cout,), 0.1)
        rvar = 1.0 + jnp.abs(nrm((cout,), 0.1))
        s = gamma / jnp.sqrt(rvar + EPS_BN)
        wf = w * s                                   # fold BN (eval) into conv weight
        bf = beta - rmean * s
        return {"w": wf.reshape(k * k * cin, cout).astype(jnp.bfloat16),
                "b": bf.reshape(1, cout),
                "k": k, "s": stride, "p": pad}

    def block(cin, cout, stride):
        blk = {"conv1": conv_bn(cin, cout, 3, stride, 1),
               "conv2": conv_bn(cout, cout, 3, 1, 1)}
        if stride != 1 or cin != cout:
            blk["down"] = conv_bn(cin, cout, 1, stride, 0)
        return blk

    b = RESNET_BASE
    resnet = {
        "conv1": conv_bn(3, b, 7, 2, 3),
        "layer1": [block(b, b, 1), block(b, b, 1)],
        "layer2": [block(b, 2 * b, 2), block(2 * b, 2 * b, 1)],
        "layer3": [block(2 * b, 4 * b, 2), block(4 * b, 4 * b, 1)],
        "layer4": [block(4 * b, 8 * b, 2), block(8 * b, 8 * b, 1)],
    }

    D = D_MODEL
    stacks = {k: [] for k in ("ln1_g", "ln1_b", "attn_w", "attn_b", "proj_w", "proj_b",
                              "ln2_g", "ln2_b", "fc_w", "fc_b", "mp_w", "mp_b")}
    for _ in range(N_LAYER):
        stacks["ln1_g"].append(1.0 + nrm((1, D)))
        stacks["ln1_b"].append(nrm((1, D)))
        stacks["attn_w"].append(nrm((D, 3 * D)))               # c_attn [q|k|v], head-major dh
        stacks["attn_b"].append(nrm((3 * D,)).reshape(1, 3 * D))
        stacks["proj_w"].append(nrm((D, D)))
        stacks["proj_b"].append(nrm((1, D)))
        stacks["ln2_g"].append(1.0 + nrm((1, D)))
        stacks["ln2_b"].append(nrm((1, D)))
        stacks["fc_w"].append(nrm((D, 4 * D)))
        stacks["fc_b"].append(nrm((1, 4 * D)))
        stacks["mp_w"].append(nrm((4 * D, D)))
        stacks["mp_b"].append(nrm((1, D)))

    bf16_keys = {"attn_w", "proj_w", "fc_w", "mp_w"}
    gpt = {k: jnp.stack(v).astype(jnp.bfloat16 if k in bf16_keys else jnp.float32)
           for k, v in stacks.items()}
    gpt.update({"wte": nrm((VOCAB, D)), "wpe": nrm((N_POS, D)),
                "lnf_g": jnp.ones((1, D)), "lnf_b": jnp.zeros((1, D))})

    feat = 8 * b                                     # 64 real feature channels
    vis_w = nrm((feat, D))
    vis_b = nrm((1, D))

    inter_w = nrm((D, INTER))
    inter_b = nrm((INTER,))
    gamma = 1.0 + nrm((INTER,), 0.05)
    beta = nrm((INTER,), 0.05)
    rmean = nrm((INTER,), 0.05)
    rvar = 1.0 + jnp.abs(nrm((INTER,), 0.05))
    s = gamma / jnp.sqrt(rvar + EPS_BN)              # fold BatchNorm1d (eval) into the linear
    inter_w_f = inter_w * s
    inter_b_f = (inter_b * s + (beta - rmean * s)).reshape(1, INTER)

    cls_w = jnp.zeros((INTER, NC_PAD), jnp.float32).at[:, :NUM_CLASS].set(
        nrm((INTER, NUM_CLASS)))
    cls_b = jnp.zeros((1, NC_PAD), jnp.float32).at[:, :NUM_CLASS].set(
        nrm((NUM_CLASS,)).reshape(1, NUM_CLASS))

    heads = {"vis_w": vis_w.astype(jnp.bfloat16), "vis_b": vis_b,
             "inter_w": inter_w_f.astype(jnp.bfloat16), "inter_b": inter_b_f,
             "cls_w": cls_w.astype(jnp.bfloat16), "cls_b": cls_b}
    return {"resnet": resnet, "gpt": gpt, "heads": heads}


# --------------------------------------------------------------------------------------
# Full forward (v0, vis_pos_emb=None), eval-mode semantics
# --------------------------------------------------------------------------------------
def forward(params, input_ids, attention_mask, img):
    R, G, Hd = params["resnet"], params["gpt"], params["heads"]
    B = img.shape[0]

    # image branch: ResNet18 trunk -> avgpool -> (fc=Identity) -> visual_embedder
    feat_map = resnet18_features(img, R)
    vis = pool_and_embed(feat_map, Hd["vis_w"], Hd["vis_b"])            # (B, D)

    # question branch
    # TODO(synk): wte embedding lookup kept as a plain-JAX gather (not a FLOP hot path).
    q_emb = jnp.take(G["wte"], input_ids, axis=0)                       # (B, Lq, D)

    inputs_embeds = jnp.concatenate([q_emb, vis[:, None, :]], axis=1)   # (B, Lq+1, D)
    attn_mask = jnp.concatenate(
        [attention_mask.astype(jnp.float32), jnp.ones((B, 1), jnp.float32)], axis=1)

    # fused GPT2 decoder + seq-mean-pool + intermediate(+BN) + classifier
    return gpt2_decode_and_classify(inputs_embeds, attn_mask, G, Hd)


if __name__ == "__main__":
    key = jax.random.PRNGKey(0)
    pk, ik, mk = jax.random.split(key, 3)
    params = init_params(pk)

    B, Lq = 2, 8
    input_ids = jax.random.randint(ik, (B, Lq), 0, VOCAB, dtype=jnp.int32)
    attention_mask = jnp.ones((B, Lq), jnp.float32)
    img = jax.random.normal(mk, (B, 3, 32, 32), jnp.float32)            # PyTorch NCHW input

    fwd = jax.jit(functools.partial(forward, params))
    logits = jax.block_until_ready(fwd(input_ids, attention_mask, img))
    assert logits.shape == (B, NUM_CLASS)
    assert bool(jnp.all(jnp.isfinite(logits)))
    print("KERNEL_OK")
</pallas_src>

<mosaic_0001>
module attributes {stable_mosaic.version = 11 : i64} {
  func.func @_maxpool_kernel(%arg0: memref<2x9x9x8xbf16, #tpu.memory_space<vmem>>, %arg1: memref<2x9x9x8xbf16, #tpu.memory_space<vmem>>, %arg2: memref<2x9x9x8xbf16, #tpu.memory_space<vmem>>, %arg3: memref<2x9x9x8xbf16, #tpu.memory_space<vmem>>, %arg4: memref<2x8x8x8xbf16, #tpu.memory_space<vmem>>) attributes {dimension_semantics = [], scalar_prefetch = 0 : i64, scratch_operands = 0 : i64, tpu.core_type = #tpu.core_type<tc>} {
    %c0 = arith.constant 0 : index
    %c0_0 = arith.constant 0 : index
    %c0_1 = arith.constant 0 : index
    %c0_2 = arith.constant 0 : index
    %0 = vector.load %arg0[%c0, %c0_0, %c0_1, %c0_2] : memref<2x9x9x8xbf16, #tpu.memory_space<vmem>>, vector<2x8x8x8xbf16>
    %c0_3 = arith.constant 0 : index
    %c0_4 = arith.constant 0 : index
    %c1 = arith.constant 1 : index
    %c0_5 = arith.constant 0 : index
    %1 = vector.load %arg0[%c0_3, %c0_4, %c1, %c0_5] : memref<2x9x9x8xbf16, #tpu.memory_space<vmem>>, vector<2x8x8x8xbf16>
    %2 = arith.maximumf %0, %1 : vector<2x8x8x8xbf16>
    %c0_6 = arith.constant 0 : index
    %c1_7 = arith.constant 1 : index
    %c0_8 = arith.constant 0 : index
    %c0_9 = arith.constant 0 : index
    %3 = vector.load %arg0[%c0_6, %c1_7, %c0_8, %c0_9] : memref<2x9x9x8xbf16, #tpu.memory_space<vmem>>, vector<2x8x8x8xbf16>
    %4 = arith.maximumf %2, %3 : vector<2x8x8x8xbf16>
    %c0_10 = arith.constant 0 : index
    %c1_11 = arith.constant 1 : index
    %c1_12 = arith.constant 1 : index
    %c0_13 = arith.constant 0 : index
    %5 = vector.load %arg0[%c0_10, %c1_11, %c1_12, %c0_13] : memref<2x9x9x8xbf16, #tpu.memory_space<vmem>>, vector<2x8x8x8xbf16>
    %6 = arith.maximumf %4, %5 : vector<2x8x8x8xbf16>
    %c0_14 = arith.constant 0 : index
    %c0_15 = arith.constant 0 : index
    %c0_16 = arith.constant 0 : index
    %c0_17 = arith.constant 0 : index
    %7 = vector.load %arg1[%c0_14, %c0_15, %c0_16, %c0_17] : memref<2x9x9x8xbf16, #tpu.memory_space<vmem>>, vector<2x8x8x8xbf16>
    %8 = arith.maximumf %6, %7 : vector<2x8x8x8xbf16>
    %c0_18 = arith.constant 0 : index
    %c1_19 = arith.constant 1 : index
    %c0_20 = arith.constant 0 : index
    %c0_21 = arith.constant 0 : index
    %9 = vector.load %arg1[%c0_18, %c1_19, %c0_20, %c0_21] : memref<2x9x9x8xbf16, #tpu.memory_space<vmem>>, vector<2x8x8x8xbf16>
    %10 = arith.maximumf %8, %9 : vector<2x8x8x8xbf16>
    %c0_22 = arith.constant 0 : index
    %c0_23 = arith.constant 0 : index
    %c0_24 = arith.constant 0 : index
    %c0_25 = arith.constant 0 : index
    %11 = vector.load %arg2[%c0_22, %c0_23, %c0_24, %c0_25] : memref<2x9x9x8xbf16, #tpu.memory_space<vmem>>, vector<2x8x8x8xbf16>
    %12 = arith.maximumf %10, %11 : vector<2x8x8x8xbf16>
    %c0_26 = arith.constant 0 : index
    %c0_27 = arith.constant 0 : index
    %c1_28 = arith.constant 1 : index
    %c0_29 = arith.constant 0 : index
    %13 = vector.load %arg2[%c0_26, %c0_27, %c1_28, %c0_29] : memref<2x9x9x8xbf16, #tpu.memory_space<vmem>>, vector<2x8x8x8xbf16>
    %14 = arith.maximumf %12, %13 : vector<2x8x8x8xbf16>
    %c0_30 = arith.constant 0 : index
    %c0_31 = arith.constant 0 : index
    %c0_32 = arith.constant 0 : index
    %c0_33 = arith.constant 0 : index
    %15 = vector.load %arg3[%c0_30, %c0_31, %c0_32, %c0_33] : memref<2x9x9x8xbf16, #tpu.memory_space<vmem>>, vector<2x8x8x8xbf16>
    %16 = arith.maximumf %14, %15 : vector<2x8x8x8xbf16>
    %c0_34 = arith.constant 0 : index
    %c0_35 = arith.constant 0 : index
    %c0_36 = arith.constant 0 : index
    %c0_37 = arith.constant 0 : index
    %17 = vector.load %arg4[%c0_34, %c0_35, %c0_36, %c0_37] : memref<2x8x8x8xbf16, #tpu.memory_space<vmem>>, vector<2x8x8x8xbf16>
    tpu.vector_store %arg4[%c0_34, %c0_35, %c0_36, %c0_37], %16 {strides = array<i32>} : memref<2x8x8x8xbf16, #tpu.memory_space<vmem>>, vector<2x8x8x8xbf16>,
    return
  }
}

module attributes {stable_mosaic.version = 11 : i64} {
  func.func @_mm_kernel(%arg0: memref<512x147xbf16, #tpu.memory_space<vmem>>, %arg1: memref<147x8xbf16, #tpu.memory_space<vmem>>, %arg2: memref<1x8xf32, #tpu.memory_space<vmem>>, %arg3: memref<512x8xbf16, #tpu.memory_space<vmem>>) attributes {dimension_semantics = [], scalar_prefetch = 0 : i64, scratch_operands = 0 : i64, tpu.core_type = #tpu.core_type<tc>} {
    %c0 = arith.constant 0 : index
    %c0_0 = arith.constant 0 : index
    %0 = vector.load %arg0[%c0, %c0_0] : memref<512x147xbf16, #tpu.memory_space<vmem>>, vector<512x147xbf16>
    %c0_1 = arith.constant 0 : index
    %c0_2 = arith.constant 0 : index
    %1 = vector.load %arg1[%c0_1, %c0_2] : memref<147x8xbf16, #tpu.memory_space<vmem>>, vector<147x8xbf16>
    %cst = arith.constant dense<0.000000e+00> : vector<512x8xf32>
    %2 = tpu.matmul %0, %1, %cst {dimension_numbers = #tpu.dot_dimension_numbers<[1], [0], [0], [1], [0, 0, 1, 1], [], []>} : vector<512x147xbf16>, vector<147x8xbf16>, vector<512x8xf32> -> vector<512x8xf32>
    %c0_3 = arith.constant 0 : index
    %c0_4 = arith.constant 0 : index
    %3 = vector.load %arg2[%c0_3, %c0_4] : memref<1x8xf32, #tpu.memory_space<vmem>>, vector<1x8xf32>
    %4 = vector.broadcast %3 : vector<1x8xf32> to vector<512x8xf32>
    %5 = arith.addf %2, %4 : vector<512x8xf32>
    %cst_5 = arith.constant 0.000000e+00 : f32
    %6 = vector.broadcast %cst_5 : f32 to vector<512x8xf32>
    %7 = arith.maximumf %5, %6 : vector<512x8xf32>
    %8 = arith.truncf %7 : vector<512x8xf32> to vector<512x8xbf16>
    %c0_6 = arith.constant 0 : index
    %c0_7 = arith.constant 0 : index
    %9 = vector.load %arg3[%c0_6, %c0_7] : memref<512x8xbf16, #tpu.memory_space<vmem>>, vector<512x8xbf16>
    tpu.vector_store %arg3[%c0_6, %c0_7], %8 {strides = array<i32>} : memref<512x8xbf16, #tpu.memory_space<vmem>>, vector<512x8xbf16>,
    return
  }
}

module attributes {stable_mosaic.version = 11 : i64} {
  func.func @_mm_kernel(%arg0: memref<128x72xbf16, #tpu.memory_space<vmem>>, %arg1: memref<72x8xbf16, #tpu.memory_space<vmem>>, %arg2: memref<1x8xf32, #tpu.memory_space<vmem>>, %arg3: memref<128x8xbf16, #tpu.memory_space<vmem>>) attributes {dimension_semantics = [], scalar_prefetch = 0 : i64, scratch_operands = 0 : i64, tpu.core_type = #tpu.core_type<tc>} {
    %c0 = arith.constant 0 : index
    %c0_0 = arith.constant 0 : index
    %0 = vector.load %arg0[%c0, %c0_0] : memref<128x72xbf16, #tpu.memory_space<vmem>>, vector<128x72xbf16>
    %c0_1 = arith.constant 0 : index
    %c0_2 = arith.constant 0 : index
    %1 = vector.load %arg1[%c0_1, %c0_2] : memref<72x8xbf16, #tpu.memory_space<vmem>>, vector<72x8xbf16>
    %cst = arith.constant dense<0.000000e+00> : vector<128x8xf32>
    %2 = tpu.matmul %0, %1, %cst {dimension_numbers = #tpu.dot_dimension_numbers<[1], [0], [0], [1], [0, 0, 1, 1], [], []>} : vector<128x72xbf16>, vector<72x8xbf16>, vector<128x8xf32> -> vector<128x8xf32>
    %c0_3 = arith.constant 0 : index
    %c0_4 = arith.constant 0 : index
    %3 = vector.load %arg2[%c0_3, %c0_4] : memref<1x8xf32, #tpu.memory_space<vmem>>, vector<1x8xf32>
    %4 = vector.broadcast %3 : vector<1x8xf32> to vector<128x8xf32>
    %5 = arith.addf %2, %4 : vector<128x8xf32>
    %cst_5 = arith.constant 0.000000e+00 : f32
    %6 = vector.broadcast %cst_5 : f32 to vector<128x8xf32>
    %7 = arith.maximumf %5, %6 : vector<128x8xf32>
    %8 = arith.truncf %7 : vector<128x8xf32> to vector<128x8xbf16>
    %c0_6 = arith.constant 0 : index
    %c0_7 = arith.constant 0 : index
    %9 = vector.load %arg3[%c0_6, %c0_7] : memref<128x8xbf16, #tpu.memory_space<vmem>>, vector<128x8xbf16>
    tpu.vector_store %arg3[%c0_6, %c0_7], %8 {strides = array<i32>} : memref<128x8xbf16, #tpu.memory_space<vmem>>, vector<128x8xbf16>,
    return
  }
}

module attributes {stable_mosaic.version = 11 : i64} {
  func.func @_mm_res_kernel(%arg0: memref<128x72xbf16, #tpu.memory_space<vmem>>, %arg1: memref<72x8xbf16, #tpu.memory_space<vmem>>, %arg2: memref<1x8xf32, #tpu.memory_space<vmem>>, %arg3: memref<128x8xbf16, #tpu.memory_space<vmem>>, %arg4: memref<128x8xbf16, #tpu.memory_space<vmem>>) attributes {dimension_semantics = [], scalar_prefetch = 0 : i64, scratch_operands = 0 : i64, tpu.core_type = #tpu.core_type<tc>} {
    %c0 = arith.constant 0 : index
    %c0_0 = arith.constant 0 : index
    %0 = vector.load %arg0[%c0, %c0_0] : memref<128x72xbf16, #tpu.memory_space<vmem>>, vector<128x72xbf16>
    %c0_1 = arith.constant 0 : index
    %c0_2 = arith.constant 0 : index
    %1 = vector.load %arg1[%c0_1, %c0_2] : memref<72x8xbf16, #tpu.memory_space<vmem>>, vector<72x8xbf16>
    %cst = arith.constant dense<0.000000e+00> : vector<128x8xf32>
    %2 = tpu.matmul %0, %1, %cst {dimension_numbers = #tpu.dot_dimension_numbers<[1], [0], [0], [1], [0, 0, 1, 1], [], []>} : vector<128x72xbf16>, vector<72x8xbf16>, vector<128x8xf32> -> vector<128x8xf32>
    %c0_3 = arith.constant 0 : index
    %c0_4 = arith.constant 0 : index
    %3 = vector.load %arg2[%c0_3, %c0_4] : memref<1x8xf32, #tpu.memory_space<vmem>>, vector<1x8xf32>
    %4 = vector.broadcast %3 : vector<1x8xf32> to vector<128x8xf32>
    %5 = arith.addf %2, %4 : vector<128x8xf32>
    %c0_5 = arith.constant 0 : index
    %c0_6 = arith.constant 0 : index
    %6 = vector.load %arg3[%c0_5, %c0_6] : memref<128x8xbf16, #tpu.memory_space<vmem>>, vector<128x8xbf16>
    %7 = arith.extf %6 : vector<128x8xbf16> to vector<128x8xf32>
    %8 = arith.addf %5, %7 : vector<128x8xf32>
    %cst_7 = arith.constant 0.000000e+00 : f32
    %9 = vector.broadcast %cst_7 : f32 to vector<128x8xf32>
    %10 = arith.maximumf %8, %9 : vector<128x8xf32>
    %11 = arith.truncf %10 : vector<128x8xf32> to vector<128x8xbf16>
    %c0_8 = arith.constant 0 : index
    %c0_9 = arith.constant 0 : index
    %12 = vector.load %arg4[%c0_8, %c0_9] : memref<128x8xbf16, #tpu.memory_space<vmem>>, vector<128x8xbf16>
    tpu.vector_store %arg4[%c0_8, %c0_9], %11 {strides = array<i32>} : memref<128x8xbf16, #tpu.memory_space<vmem>>, vector<128x8xbf16>,
    return
  }
}

module attributes {stable_mosaic.version = 11 : i64} {
  func.func @_mm_dual_kernel(%arg0: memref<32x72xbf16, #tpu.memory_space<vmem>>, %arg1: memref<72x16xbf16, #tpu.memory_space<vmem>>, %arg2: memref<1x16xf32, #tpu.memory_space<vmem>>, %arg3: memref<8x16xbf16, #tpu.memory_space<vmem>>, %arg4: memref<1x16xf32, #tpu.memory_space<vmem>>, %arg5: memref<32x16xbf16, #tpu.memory_space<vmem>>, %arg6: memref<32x16xbf16, #tpu.memory_space<vmem>>) attributes {dimension_semantics = [], scalar_prefetch = 0 : i64, scratch_operands = 0 : i64, tpu.core_type = #tpu.core_type<tc>} {
    %c0 = arith.constant 0 : index
    %c0_0 = arith.constant 0 : index
    %0 = vector.load %arg0[%c0, %c0_0] : memref<32x72xbf16, #tpu.memory_space<vmem>>, vector<32x72xbf16>
    %c0_1 = arith.constant 0 : index
    %c0_2 = arith.constant 0 : index
    %1 = vector.load %arg1[%c0_1, %c0_2] : memref<72x16xbf16, #tpu.memory_space<vmem>>, vector<72x16xbf16>
    %cst = arith.constant dense<0.000000e+00> : vector<32x16xf32>
    %2 = tpu.matmul %0, %1, %cst {dimension_numbers = #tpu.dot_dimension_numbers<[1], [0], [0], [1], [0, 0, 1, 1], [], []>} : vector<32x72xbf16>, vector<72x16xbf16>, vector<32x16xf32> -> vector<32x16xf32>
    %c0_3 = arith.constant 0 : index
    %c0_4 = arith.constant 0 : index
    %3 = vector.load %arg2[%c0_3, %c0_4] : memref<1x16xf32, #tpu.memory_space<vmem>>, vector<1x16xf32>
    %4 = vector.broadcast %3 : vector<1x16xf32> to vector<32x16xf32>
    %5 = arith.addf %2, %4 : vector<32x16xf32>
    %cst_5 = arith.constant 0.000000e+00 : f32
    %6 = vector.broadcast %cst_5 : f32 to vector<32x16xf32>
    %7 = arith.maximumf %5, %6 : vector<32x16xf32>
    %8 = arith.truncf %7 : vector<32x16xf32> to vector<32x16xbf16>
    %c0_6 = arith.constant 0 : index
    %c0_7 = arith.constant 0 : index
    %9 = vector.load %arg5[%c0_6, %c0_7] : memref<32x16xbf16, #tpu.memory_space<vmem>>, vector<32x16xbf16>
    tpu.vector_store %arg5[%c0_6, %c0_7], %8 {strides = array<i32>} : memref<32x16xbf16, #tpu.memory_space<vmem>>, vector<32x16xbf16>,
    %10 = vector.extract_strided_slice %0 {offsets = [0, 32], sizes = [32, 8], strides = [1, 1]} : vector<32x72xbf16> to vector<32x8xbf16>
    %c0_8 = arith.constant 0 : index
    %c0_9 = arith.constant 0 : index
    %11 = vector.load %arg3[%c0_8, %c0_9] : memref<8x16xbf16, #tpu.memory_space<vmem>>, vector<8x16xbf16>
    %cst_10 = arith.constant dense<0.000000e+00> : vector<32x16xf32>
    %12 = tpu.matmul %10, %11, %cst_10 {dimension_numbers = #tpu.dot_dimension_numbers<[1], [0], [0], [1], [0, 0, 1, 1], [], []>} : vector<32x8xbf16>, vector<8x16xbf16>, vector<32x16xf32> -> vector<32x16xf32>
    %c0_11 = arith.constant 0 : index
    %c0_12 = arith.constant 0 : index
    %13 = vector.load %arg4[%c0_11, %c0_12] : memref<1x16xf32, #tpu.memory_space<vmem>>, vector<1x16xf32>
    %14 = vector.broadcast %13 : vector<1x16xf32> to vector<32x16xf32>
    %15 = arith.addf %12, %14 : vector<32x16xf32>
    %16 = arith.truncf %15 : vector<32x16xf32> to vector<32x16xbf16>
    %c0_13 = arith.constant 0 : index
    %c0_14 = arith.constant 0 : index
    %17 = vector.load %arg6[%c0_13, %c0_14] : memref<32x16xbf16, #tpu.memory_space<vmem>>, vector<32x16xbf16>
    tpu.vector_store %arg6[%c0_13, %c0_14], %16 {strides = array<i32>} : memref<32x16xbf16, #tpu.memory_space<vmem>>, vector<32x16xbf16>,
    return
  }
}

module attributes {stable_mosaic.version = 11 : i64} {
  func.func @_mm_kernel(%arg0: memref<32x144xbf16, #tpu.memory_space<vmem>>, %arg1: memref<144x16xbf16, #tpu.memory_space<vmem>>, %arg2: memref<1x16xf32, #tpu.memory_space<vmem>>, %arg3: memref<32x16xbf16, #tpu.memory_space<vmem>>) attributes {dimension_semantics = [], scalar_prefetch = 0 : i64, scratch_operands = 0 : i64, tpu.core_type = #tpu.core_type<tc>} {
    %c0 = arith.constant 0 : index
    %c0_0 = arith.constant 0 : index
    %0 = vector.load %arg0[%c0, %c0_0] : memref<32x144xbf16, #tpu.memory_space<vmem>>, vector<32x144xbf16>
    %c0_1 = arith.constant 0 : index
    %c0_2 = arith.constant 0 : index
    %1 = vector.load %arg1[%c0_1, %c0_2] : memref<144x16xbf16, #tpu.memory_space<vmem>>, vector<144x16xbf16>
    %cst = arith.constant dense<0.000000e+00> : vector<32x16xf32>
    %2 = tpu.matmul %0, %1, %cst {dimension_numbers = #tpu.dot_dimension_numbers<[1], [0], [0], [1], [0, 0, 1, 1], [], []>} : vector<32x144xbf16>, vector<144x16xbf16>, vector<32x16xf32> -> vector<32x16xf32>
    %c0_3 = arith.constant 0 : index
    %c0_4 = arith.constant 0 : index
    %3 = vector.load %arg2[%c0_3, %c0_4] : memref<1x16xf32, #tpu.memory_space<vmem>>, vector<1x16xf32>
    %4 = vector.broadcast %3 : vector<1x16xf32> to vector<32x16xf32>
    %5 = arith.addf %2, %4 : vector<32x16xf32>
    %cst_5 = arith.constant 0.000000e+00 : f32
    %6 = vector.broadcast %cst_5 : f32 to vector<32x16xf32>
    %7 = arith.maximumf %5, %6 : vector<32x16xf32>
    %8 = arith.truncf %7 : vector<32x16xf32> to vector<32x16xbf16>
    %c0_6 = arith.constant 0 : index
    %c0_7 = arith.constant 0 : index
    %9 = vector.load %arg3[%c0_6, %c0_7] : memref<32x16xbf16, #tpu.memory_space<vmem>>, vector<32x16xbf16>
    tpu.vector_store %arg3[%c0_6, %c0_7], %8 {strides = array<i32>} : memref<32x16xbf16, #tpu.memory_space<vmem>>, vector<32x16xbf16>,
    return
  }
}

module attributes {stable_mosaic.version = 11 : i64} {
  func.func @_mm_res_kernel(%arg0: memref<32x144xbf16, #tpu.memory_space<vmem>>, %arg1: memref<144x16xbf16, #tpu.memory_space<vmem>>, %arg2: memref<1x16xf32, #tpu.memory_space<vmem>>, %arg3: memref<32x16xbf16, #tpu.memory_space<vmem>>, %arg4: memref<32x16xbf16, #tpu.memory_space<vmem>>) attributes {dimension_semantics = [], scalar_prefetch = 0 : i64, scratch_operands = 0 : i64, tpu.core_type = #tpu.core_type<tc>} {
    %c0 = arith.constant 0 : index
    %c0_0 = arith.constant 0 : index
    %0 = vector.load %arg0[%c0, %c0_0] : memref<32x144xbf16, #tpu.memory_space<vmem>>, vector<32x144xbf16>
    %c0_1 = arith.constant 0 : index
    %c0_2 = arith.constant 0 : index
    %1 = vector.load %arg1[%c0_1, %c0_2] : memref<144x16xbf16, #tpu.memory_space<vmem>>, vector<144x16xbf16>
    %cst = arith.constant dense<0.000000e+00> : vector<32x16xf32>
    %2 = tpu.matmul %0, %1, %cst {dimension_numbers = #tpu.dot_dimension_numbers<[1], [0], [0], [1], [0, 0, 1, 1], [], []>} : vector<32x144xbf16>, vector<144x16xbf16>, vector<32x16xf32> -> vector<32x16xf32>
    %c0_3 = arith.constant 0 : index
    %c0_4 = arith.constant 0 : index
    %3 = vector.load %arg2[%c0_3, %c0_4] : memref<1x16xf32, #tpu.memory_space<vmem>>, vector<1x16xf32>
    %4 = vector.broadcast %3 : vector<1x16xf32> to vector<32x16xf32>
    %5 = arith.addf %2, %4 : vector<32x16xf32>
    %c0_5 = arith.constant 0 : index
    %c0_6 = arith.constant 0 : index
    %6 = vector.load %arg3[%c0_5, %c0_6] : memref<32x16xbf16, #tpu.memory_space<vmem>>, vector<32x16xbf16>
    %7 = arith.extf %6 : vector<32x16xbf16> to vector<32x16xf32>
    %8 = arith.addf %5, %7 : vector<32x16xf32>
    %cst_7 = arith.constant 0.000000e+00 : f32
    %9 = vector.broadcast %cst_7 : f32 to vector<32x16xf32>
    %10 = arith.maximumf %8, %9 : vector<32x16xf32>
    %11 = arith.truncf %10 : vector<32x16xf32> to vector<32x16xbf16>
    %c0_8 = arith.constant 0 : index
    %c0_9 = arith.constant 0 : index
    %12 = vector.load %arg4[%c0_8, %c0_9] : memref<32x16xbf16, #tpu.memory_space<vmem>>, vector<32x16xbf16>
    tpu.vector_store %arg4[%c0_8, %c0_9], %11 {strides = array<i32>} : memref<32x16xbf16, #tpu.memory_space<vmem>>, vector<32x16xbf16>,
    return
  }
}

module attributes {stable_mosaic.version = 11 : i64} {
  func.func @_mm_res_kernel(%arg0: memref<32x144xbf16, #tpu.memory_space<vmem>>, %arg1: memref<144x16xbf16, #tpu.memory_space<vmem>>, %arg2: memref<1x16xf32, #tpu.memory_space<vmem>>, %arg3: memref<32x16xbf16, #tpu.memory_space<vmem>>, %arg4: memref<32x16xbf16, #tpu.memory_space<vmem>>) attributes {dimension_semantics = [], scalar_prefetch = 0 : i64, scratch_operands = 0 : i64, tpu.core_type = #tpu.core_type<tc>} {
    %c0 = arith.constant 0 : index
    %c0_0 = arith.constant 0 : index
    %0 = vector.load %arg0[%c0, %c0_0] : memref<32x144xbf16, #tpu.memory_space<vmem>>, vector<32x144xbf16>
    %c0_1 = arith.constant 0 : index
    %c0_2 = arith.constant 0 : index
    %1 = vector.load %arg1[%c0_1, %c0_2] : memref<144x16xbf16, #tpu.memory_space<vmem>>, vector<144x16xbf16>
    %cst = arith.constant dense<0.000000e+00> : vector<32x16xf32>
    %2 = tpu.matmul %0, %1, %cst {dimension_numbers = #tpu.dot_dimension_numbers<[1], [0], [0], [1], [0, 0, 1, 1], [], []>} : vector<32x144xbf16>, vector<144x16xbf16>, vector<32x16xf32> -> vector<32x16xf32>
    %c0_3 = arith.constant 0 : index
    %c0_4 = arith.constant 0 : index
    %3 = vector.load %arg2[%c0_3, %c0_4] : memref<1x16xf32, #tpu.memory_space<vmem>>, vector<1x16xf32>
    %4 = vector.broadcast %3 : vector<1x16xf32> to vector<32x16xf32>
    %5 = arith.addf %2, %4 : vector<32x16xf32>
    %c0_5 = arith.constant 0 : index
    %c0_6 = arith.constant 0 : index
    %6 = vector.load %arg3[%c0_5, %c0_6] : memref<32x16xbf16, #tpu.memory_space<vmem>>, vector<32x16xbf16>
    %7 = arith.extf %6 : vector<32x16xbf16> to vector<32x16xf32>
    %8 = arith.addf %5, %7 : vector<32x16xf32>
    %cst_7 = arith.constant 0.000000e+00 : f32
    %9 = vector.broadcast %cst_7 : f32 to vector<32x16xf32>
    %10 = arith.maximumf %8, %9 : vector<32x16xf32>
    %11 = arith.truncf %10 : vector<32x16xf32> to vector<32x16xbf16>
    %c0_8 = arith.constant 0 : index
    %c0_9 = arith.constant 0 : index
    %12 = vector.load %arg4[%c0_8, %c0_9] : memref<32x16xbf16, #tpu.memory_space<vmem>>, vector<32x16xbf16>
    tpu.vector_store %arg4[%c0_8, %c0_9], %11 {strides = array<i32>} : memref<32x16xbf16, #tpu.memory_space<vmem>>, vector<32x16xbf16>,
    return
  }
}

module attributes {stable_mosaic.version = 11 : i64} {
  func.func @_mm_kernel(%arg0: memref<8x288xbf16, #tpu.memory_space<vmem>>, %arg1: memref<288x32xbf16, #tpu.memory_space<vmem>>, %arg2: memref<1x32xf32, #tpu.memory_space<vmem>>, %arg3: memref<8x32xbf16, #tpu.memory_space<vmem>>) attributes {dimension_semantics = [], scalar_prefetch = 0 : i64, scratch_operands = 0 : i64, tpu.core_type = #tpu.core_type<tc>} {
    %c0 = arith.constant 0 : index
    %c0_0 = arith.constant 0 : index
    %0 = vector.load %arg0[%c0, %c0_0] : memref<8x288xbf16, #tpu.memory_space<vmem>>, vector<8x288xbf16>
    %c0_1 = arith.constant 0 : index
    %c0_2 = arith.constant 0 : index
    %1 = vector.load %arg1[%c0_1, %c0_2] : memref<288x32xbf16, #tpu.memory_space<vmem>>, vector<288x32xbf16>
    %cst = arith.constant dense<0.000000e+00> : vector<8x32xf32>
    %2 = tpu.matmul %0, %1, %cst {dimension_numbers = #tpu.dot_dimension_numbers<[1], [0], [0], [1], [0, 0, 1, 1], [], []>} : vector<8x288xbf16>, vector<288x32xbf16>, vector<8x32xf32> -> vector<8x32xf32>
    %c0_3 = arith.constant 0 : index
    %c0_4 = arith.constant 0 : index
    %3 = vector.load %arg2[%c0_3, %c0_4] : memref<1x32xf32, #tpu.memory_space<vmem>>, vector<1x32xf32>
    %4 = vector.broadcast %3 : vector<1x32xf32> to vector<8x32xf32>
    %5 = arith.addf %2, %4 : vector<8x32xf32>
    %cst_5 = arith.constant 0.000000e+00 : f32
    %6 = vector.broadcast %cst_5 : f32 to vector<8x32xf32>
    %7 = arith.maximumf %5, %6 : vector<8x32xf32>
    %8 = arith.truncf %7 : vector<8x32xf32> to vector<8x32xbf16>
    %c0_6 = arith.constant 0 : index
    %c0_7 = arith.constant 0 : index
    %9 = vector.load %arg3[%c0_6, %c0_7] : memref<8x32xbf16, #tpu.memory_space<vmem>>, vector<8x32xbf16>
    tpu.vector_store %arg3[%c0_6, %c0_7], %8 {strides = array<i32>} : memref<8x32xbf16, #tpu.memory_space<vmem>>, vector<8x32xbf16>,
    return
  }
}

module attributes {stable_mosaic.version = 11 : i64} {
  func.func @_mm_res_kernel(%arg0: memref<8x288xbf16, #tpu.memory_space<vmem>>, %arg1: memref<288x32xbf16, #tpu.memory_space<vmem>>, %arg2: memref<1x32xf32, #tpu.memory_space<vmem>>, %arg3: memref<8x32xbf16, #tpu.memory_space<vmem>>, %arg4: memref<8x32xbf16, #tpu.memory_space<vmem>>) attributes {dimension_semantics = [], scalar_prefetch = 0 : i64, scratch_operands = 0 : i64, tpu.core_type = #tpu.core_type<tc>} {
    %c0 = arith.constant 0 : index
    %c0_0 = arith.constant 0 : index
    %0 = vector.load %arg0[%c0, %c0_0] : memref<8x288xbf16, #tpu.memory_space<vmem>>, vector<8x288xbf16>
    %c0_1 = arith.constant 0 : index
    %c0_2 = arith.constant 0 : index
    %1 = vector.load %arg1[%c0_1, %c0_2] : memref<288x32xbf16, #tpu.memory_space<vmem>>, vector<288x32xbf16>
    %cst = arith.constant dense<0.000000e+00> : vector<8x32xf32>
    %2 = tpu.matmul %0, %1, %cst {dimension_numbers = #tpu.dot_dimension_numbers<[1], [0], [0], [1], [0, 0, 1, 1], [], []>} : vector<8x288xbf16>, vector<288x32xbf16>, vector<8x32xf32> -> vector<8x32xf32>
    %c0_3 = arith.constant 0 : index
    %c0_4 = arith.constant 0 : index
    %3 = vector.load %arg2[%c0_3, %c0_4] : memref<1x32xf32, #tpu.memory_space<vmem>>, vector<1x32xf32>
    %4 = vector.broadcast %3 : vector<1x32xf32> to vector<8x32xf32>
    %5 = arith.addf %2, %4 : vector<8x32xf32>
    %c0_5 = arith.constant 0 : index
    %c0_6 = arith.constant 0 : index
    %6 = vector.load %arg3[%c0_5, %c0_6] : memref<8x32xbf16, #tpu.memory_space<vmem>>, vector<8x32xbf16>
    %7 = arith.extf %6 : vector<8x32xbf16> to vector<8x32xf32>
    %8 = arith.addf %5, %7 : vector<8x32xf32>
    %cst_7 = arith.constant 0.000000e+00 : f32
    %9 = vector.broadcast %cst_7 : f32 to vector<8x32xf32>
    %10 = arith.maximumf %8, %9 : vector<8x32xf32>
    %11 = arith.truncf %10 : vector<8x32xf32> to vector<8x32xbf16>
    %c0_8 = arith.constant 0 : index
    %c0_9 = arith.constant 0 : index
    %12 = vector.load %arg4[%c0_8, %c0_9] : memref<8x32xbf16, #tpu.memory_space<vmem>>, vector<8x32xbf16>
    tpu.vector_store %arg4[%c0_8, %c0_9], %11 {strides = array<i32>} : memref<8x32xbf16, #tpu.memory_space<vmem>>, vector<8x32xbf16>,
    return
  }
}

module attributes {stable_mosaic.version = 11 : i64} {
  func.func @_mm_dual_kernel(%arg0: memref<8x144xbf16, #tpu.memory_space<vmem>>, %arg1: memref<144x32xbf16, #tpu.memory_space<vmem>>, %arg2: memref<1x32xf32, #tpu.memory_space<vmem>>, %arg3: memref<16x32xbf16, #tpu.memory_space<vmem>>, %arg4: memref<1x32xf32, #tpu.memory_space<vmem>>, %arg5: memref<8x32xbf16, #tpu.memory_space<vmem>>, %arg6: memref<8x32xbf16, #tpu.memory_space<vmem>>) attributes {dimension_semantics = [], scalar_prefetch = 0 : i64, scratch_operands = 0 : i64, tpu.core_type = #tpu.core_type<tc>} {
    %c0 = arith.constant 0 : index
    %c0_0 = arith.constant 0 : index
    %0 = vector.load %arg0[%c0, %c0_0] : memref<8x144xbf16, #tpu.memory_space<vmem>>, vector<8x144xbf16>
    %c0_1 = arith.constant 0 : index
    %c0_2 = arith.constant 0 : index
    %1 = vector.load %arg1[%c0_1, %c0_2] : memref<144x32xbf16, #tpu.memory_space<vmem>>, vector<144x32xbf16>
    %cst = arith.constant dense<0.000000e+00> : vector<8x32xf32>
    %2 = tpu.matmul %0, %1, %cst {dimension_numbers = #tpu.dot_dimension_numbers<[1], [0], [0], [1], [0, 0, 1, 1], [], []>} : vector<8x144xbf16>, vector<144x32xbf16>, vector<8x32xf32> -> vector<8x32xf32>
    %c0_3 = arith.constant 0 : index
    %c0_4 = arith.constant 0 : index
    %3 = vector.load %arg2[%c0_3, %c0_4] : memref<1x32xf32, #tpu.memory_space<vmem>>, vector<1x32xf32>
    %4 = vector.broadcast %3 : vector<1x32xf32> to vector<8x32xf32>
    %5 = arith.addf %2, %4 : vector<8x32xf32>
    %cst_5 = arith.constant 0.000000e+00 : f32
    %6 = vector.broadcast %cst_5 : f32 to vector<8x32xf32>
    %7 = arith.maximumf %5, %6 : vector<8x32xf32>
    %8 = arith.truncf %7 : vector<8x32xf32> to vector<8x32xbf16>
    %c0_6 = arith.constant 0 : index
    %c0_7 = arith.constant 0 : index
    %9 = vector.load %arg5[%c0_6, %c0_7] : memref<8x32xbf16, #tpu.memory_space<vmem>>, vector<8x32xbf16>
    tpu.vector_store %arg5[%c0_6, %c0_7], %8 {strides = array<i32>} : memref<8x32xbf16, #tpu.memory_space<vmem>>, vector<8x32xbf16>,
    %10 = vector.extract_strided_slice %0 {offsets = [0, 64], sizes = [8, 16], strides = [1, 1]} : vector<8x144xbf16> to vector<8x16xbf16>
    %c0_8 = arith.constant 0 : index
    %c0_9 = arith.constant 0 : index
    %11 = vector.load %arg3[%c0_8, %c0_9] : memref<16x32xbf16, #tpu.memory_space<vmem>>, vector<16x32xbf16>
    %cst_10 = arith.constant dense<0.000000e+00> : vector<8x32xf32>
    %12 = tpu.matmul %10, %11, %cst_10 {dimension_numbers = #tpu.dot_dimension_numbers<[1], [0], [0], [1], [0, 0, 1, 1], [], []>} : vector<8x16xbf16>, vector<16x32xbf16>, vector<8x32xf32> -> vector<8x32xf32>
    %c0_11 = arith.constant 0 : index
    %c0_12 = arith.constant 0 : index
    %13 = vector.load %arg4[%c0_11, %c0_12] : memref<1x32xf32, #tpu.memory_space<vmem>>, vector<1x32xf32>
    %14 = vector.broadcast %13 : vector<1x32xf32> to vector<8x32xf32>
    %15 = arith.addf %12, %14 : vector<8x32xf32>
    %16 = arith.truncf %15 : vector<8x32xf32> to vector<8x32xbf16>
    %c0_13 = arith.constant 0 : index
    %c0_14 = arith.constant 0 : index
    %17 = vector.load %arg6[%c0_13, %c0_14] : memref<8x32xbf16, #tpu.memory_space<vmem>>, vector<8x32xbf16>
    tpu.vector_store %arg6[%c0_13, %c0_14], %16 {strides = array<i32>} : memref<8x32xbf16, #tpu.memory_space<vmem>>, vector<8x32xbf16>,
    return
  }
}

module attributes {stable_mosaic.version = 11 : i64} {
  func.func @_mm_dual_kernel(%arg0: memref<2x288xbf16, #tpu.memory_space<vmem>>, %arg1: memref<288x64xbf16, #tpu.memory_space<vmem>>, %arg2: memref<1x64xf32, #tpu.memory_space<vmem>>, %arg3: memref<32x64xbf16, #tpu.memory_space<vmem>>, %arg4: memref<1x64xf32, #tpu.memory_space<vmem>>, %arg5: memref<2x64xbf16, #tpu.memory_space<vmem>>, %arg6: memref<2x64xbf16, #tpu.memory_space<vmem>>) attributes {dimension_semantics = [], scalar_prefetch = 0 : i64, scratch_operands = 0 : i64, tpu.core_type = #tpu.core_type<tc>} {
    %c0 = arith.constant 0 : index
    %c0_0 = arith.constant 0 : index
    %0 = vector.load %arg0[%c0, %c0_0] : memref<2x288xbf16, #tpu.memory_space<vmem>>, vector<2x288xbf16>
    %c0_1 = arith.constant 0 : index
    %c0_2 = arith.constant 0 : index
    %1 = vector.load %arg1[%c0_1, %c0_2] : memref<288x64xbf16, #tpu.memory_space<vmem>>, vector<288x64xbf16>
    %cst = arith.constant dense<0.000000e+00> : vector<2x64xf32>
    %2 = tpu.matmul %0, %1, %cst {dimension_numbers = #tpu.dot_dimension_numbers<[1], [0], [0], [1], [0, 0, 1, 1], [], []>} : vector<2x288xbf16>, vector<288x64xbf16>, vector<2x64xf32> -> vector<2x64xf32>
    %c0_3 = arith.constant 0 : index
    %c0_4 = arith.constant 0 : index
    %3 = vector.load %arg2[%c0_3, %c0_4] : memref<1x64xf32, #tpu.memory_space<vmem>>, vector<1x64xf32>
    %4 = vector.broadcast %3 : vector<1x64xf32> to vector<2x64xf32>
    %5 = arith.addf %2, %4 : vector<2x64xf32>
    %cst_5 = arith.constant 0.000000e+00 : f32
    %6 = vector.broadcast %cst_5 : f32 to vector<2x64xf32>
    %7 = arith.maximumf %5, %6 : vector<2x64xf32>
    %8 = arith.truncf %7 : vector<2x64xf32> to vector<2x64xbf16>
    %c0_6 = arith.constant 0 : index
    %c0_7 = arith.constant 0 : index
    %9 = vector.load %arg5[%c0_6, %c0_7] : memref<2x64xbf16, #tpu.memory_space<vmem>>, vector<2x64xbf16>
    tpu.vector_store %arg5[%c0_6, %c0_7], %8 {strides = array<i32>} : memref<2x64xbf16, #tpu.memory_space<vmem>>, vector<2x64xbf16>,
    %10 = vector.extract_strided_slice %0 {offsets = [0, 128], sizes = [2, 32], strides = [1, 1]} : vector<2x288xbf16> to vector<2x32xbf16>
    %c0_8 = arith.constant 0 : index
    %c0_9 = arith.constant 0 : index
    %11 = vector.load %arg3[%c0_8, %c0_9] : memref<32x64xbf16, #tpu.memory_space<vmem>>, vector<32x64xbf16>
    %cst_10 = arith.constant dense<0.000000e+00> : vector<2x64xf32>
    %12 = tpu.matmul %10, %11, %cst_10 {dimension_numbers = #tpu.dot_dimension_numbers<[1], [0], [0], [1], [0, 0, 1, 1], [], []>} : vector<2x32xbf16>, vector<32x64xbf16>, vector<2x64xf32> -> vector<2x64xf32>
    %c0_11 = arith.constant 0 : index
    %c0_12 = arith.constant 0 : index
    %13 = vector.load %arg4[%c0_11, %c0_12] : memref<1x64xf32, #tpu.memory_space<vmem>>, vector<1x64xf32>
    %14 = vector.broadcast %13 : vector<1x64xf32> to vector<2x64xf32>
    %15 = arith.addf %12, %14 : vector<2x64xf32>
    %16 = arith.truncf %15 : vector<2x64xf32> to vector<2x64xbf16>
    %c0_13 = arith.constant 0 : index
    %c0_14 = arith.constant 0 : index
    %17 = vector.load %arg6[%c0_13, %c0_14] : memref<2x64xbf16, #tpu.memory_space<vmem>>, vector<2x64xbf16>
    tpu.vector_store %arg6[%c0_13, %c0_14], %16 {strides = array<i32>} : memref<2x64xbf16, #tpu.memory_space<vmem>>, vector<2x64xbf16>,
    return
  }
}

module attributes {stable_mosaic.version = 11 : i64} {
  func.func @_mm_res_kernel(%arg0: memref<2x576xbf16, #tpu.memory_space<vmem>>, %arg1: memref<576x64xbf16, #tpu.memory_space<vmem>>, %arg2: memref<1x64xf32, #tpu.memory_space<vmem>>, %arg3: memref<2x64xbf16, #tpu.memory_space<vmem>>, %arg4: memref<2x64xbf16, #tpu.memory_space<vmem>>) attributes {dimension_semantics = [], scalar_prefetch = 0 : i64, scratch_operands = 0 : i64, tpu.core_type = #tpu.core_type<tc>} {
    %c0 = arith.constant 0 : index
    %c0_0 = arith.constant 0 : index
    %0 = vector.load %arg0[%c0, %c0_0] : memref<2x576xbf16, #tpu.memory_space<vmem>>, vector<2x576xbf16>
    %c0_1 = arith.constant 0 : index
    %c0_2 = arith.constant 0 : index
    %1 = vector.load %arg1[%c0_1, %c0_2] : memref<576x64xbf16, #tpu.memory_space<vmem>>, vector<576x64xbf16>
    %cst = arith.constant dense<0.000000e+00> : vector<2x64xf32>
    %2 = tpu.matmul %0, %1, %cst {dimension_numbers = #tpu.dot_dimension_numbers<[1], [0], [0], [1], [0, 0, 1, 1], [], []>} : vector<2x576xbf16>, vector<576x64xbf16>, vector<2x64xf32> -> vector<2x64xf32>
    %c0_3 = arith.constant 0 : index
    %c0_4 = arith.constant 0 : index
    %3 = vector.load %arg2[%c0_3, %c0_4] : memref<1x64xf32, #tpu.memory_space<vmem>>, vector<1x64xf32>
    %4 = vector.broadcast %3 : vector<1x64xf32> to vector<2x64xf32>
    %5 = arith.addf %2, %4 : vector<2x64xf32>
    %c0_5 = arith.constant 0 : index
    %c0_6 = arith.constant 0 : index
    %6 = vector.load %arg3[%c0_5, %c0_6] : memref<2x64xbf16, #tpu.memory_space<vmem>>, vector<2x64xbf16>
    %7 = arith.extf %6 : vector<2x64xbf16> to vector<2x64xf32>
    %8 = arith.addf %5, %7 : vector<2x64xf32>
    %cst_7 = arith.constant 0.000000e+00 : f32
    %9 = vector.broadcast %cst_7 : f32 to vector<2x64xf32>
    %10 = arith.maximumf %8, %9 : vector<2x64xf32>
    %11 = arith.truncf %10 : vector<2x64xf32> to vector<2x64xbf16>
    %c0_8 = arith.constant 0 : index
    %c0_9 = arith.constant 0 : index
    %12 = vector.load %arg4[%c0_8, %c0_9] : memref<2x64xbf16, #tpu.memory_space<vmem>>, vector<2x64xbf16>
    tpu.vector_store %arg4[%c0_8, %c0_9], %11 {strides = array<i32>} : memref<2x64xbf16, #tpu.memory_space<vmem>>, vector<2x64xbf16>,
    return
  }
}

module attributes {stable_mosaic.version = 11 : i64} {
  func.func @_mm_kernel(%arg0: memref<2x576xbf16, #tpu.memory_space<vmem>>, %arg1: memref<576x64xbf16, #tpu.memory_space<vmem>>, %arg2: memref<1x64xf32, #tpu.memory_space<vmem>>, %arg3: memref<2x64xbf16, #tpu.memory_space<vmem>>) attributes {dimension_semantics = [], scalar_prefetch = 0 : i64, scratch_operands = 0 : i64, tpu.core_type = #tpu.core_type<tc>} {
    %c0 = arith.constant 0 : index
    %c0_0 = arith.constant 0 : index
    %0 = vector.load %arg0[%c0, %c0_0] : memref<2x576xbf16, #tpu.memory_space<vmem>>, vector<2x576xbf16>
    %c0_1 = arith.constant 0 : index
    %c0_2 = arith.constant 0 : index
    %1 = vector.load %arg1[%c0_1, %c0_2] : memref<576x64xbf16, #tpu.memory_space<vmem>>, vector<576x64xbf16>
    %cst = arith.constant dense<0.000000e+00> : vector<2x64xf32>
    %2 = tpu.matmul %0, %1, %cst {dimension_numbers = #tpu.dot_dimension_numbers<[1], [0], [0], [1], [0, 0, 1, 1], [], []>} : vector<2x576xbf16>, vector<576x64xbf16>, vector<2x64xf32> -> vector<2x64xf32>
    %c0_3 = arith.constant 0 : index
    %c0_4 = arith.constant 0 : index
    %3 = vector.load %arg2[%c0_3, %c0_4] : memref<1x64xf32, #tpu.memory_space<vmem>>, vector<1x64xf32>
    %4 = vector.broadcast %3 : vector<1x64xf32> to vector<2x64xf32>
    %5 = arith.addf %2, %4 : vector<2x64xf32>
    %cst_5 = arith.constant 0.000000e+00 : f32
    %6 = vector.broadcast %cst_5 : f32 to vector<2x64xf32>
    %7 = arith.maximumf %5, %6 : vector<2x64xf32>
    %8 = arith.truncf %7 : vector<2x64xf32> to vector<2x64xbf16>
    %c0_6 = arith.constant 0 : index
    %c0_7 = arith.constant 0 : index
    %9 = vector.load %arg3[%c0_6, %c0_7] : memref<2x64xbf16, #tpu.memory_space<vmem>>, vector<2x64xbf16>
    tpu.vector_store %arg3[%c0_6, %c0_7], %8 {strides = array<i32>} : memref<2x64xbf16, #tpu.memory_space<vmem>>, vector<2x64xbf16>,
    return
  }
}

module attributes {stable_mosaic.version = 11 : i64} {
  func.func @_pool_linear_kernel(%arg0: memref<2x1x64xbf16, #tpu.memory_space<vmem>>, %arg1: memref<64x128xbf16, #tpu.memory_space<vmem>>, %arg2: memref<1x128xf32, #tpu.memory_space<vmem>>, %arg3: memref<2x128xf32, #tpu.memory_space<vmem>>) attributes {dimension_semantics = [], scalar_prefetch = 0 : i64, scratch_operands = 0 : i64, tpu.core_type = #tpu.core_type<tc>} {
    %c0 = arith.constant 0 : index
    %c0_0 = arith.constant 0 : index
    %c0_1 = arith.constant 0 : index
    %0 = vector.load %arg0[%c0, %c0_0, %c0_1] : memref<2x1x64xbf16, #tpu.memory_space<vmem>>, vector<2x1x64xbf16>
    %1 = arith.extf %0 : vector<2x1x64xbf16> to vector<2x1x64xf32>
    %cst = arith.constant dense<0.000000e+00> : vector<2x64xf32>
    %2 = vector.multi_reduction <add>, %1, %cst [1] : vector<2x1x64xf32> to vector<2x64xf32>
    %cst_2 = arith.constant 1.000000e+00 : f32
    %3 = vector.broadcast %cst_2 : f32 to vector<2x64xf32>
    %4 = arith.divf %2, %3 : vector<2x64xf32>
    %5 = arith.truncf %4 : vector<2x64xf32> to vector<2x64xbf16>
    %c0_3 = arith.constant 0 : index
    %c0_4 = arith.constant 0 : index
    %6 = vector.load %arg1[%c0_3, %c0_4] : memref<64x128xbf16, #tpu.memory_space<vmem>>, vector<64x128xbf16>
    %cst_5 = arith.constant dense<0.000000e+00> : vector<2x128xf32>
    %7 = tpu.matmul %5, %6, %cst_5 {dimension_numbers = #tpu.dot_dimension_numbers<[1], [0], [0], [1], [0, 0, 1, 1], [], []>} : vector<2x64xbf16>, vector<64x128xbf16>, vector<2x128xf32> -> vector<2x128xf32>
    %c0_6 = arith.constant 0 : index
    %c0_7 = arith.constant 0 : index
    %8 = vector.load %arg2[%c0_6, %c0_7] : memref<1x128xf32, #tpu.memory_space<vmem>>, vector<1x128xf32>
    %9 = vector.broadcast %8 : vector<1x128xf32> to vector<2x128xf32>
    %10 = arith.addf %7, %9 : vector<2x128xf32>
    %c0_8 = arith.constant 0 : index
    %c0_9 = arith.constant 0 : index
    %11 = vector.load %arg3[%c0_8, %c0_9] : memref<2x128xf32, #tpu.memory_space<vmem>>, vector<2x128xf32>
    tpu.vector_store %arg3[%c0_8, %c0_9], %10 {strides = array<i32>} : memref<2x128xf32, #tpu.memory_space<vmem>>, vector<2x128xf32>,
    return
  }
}

module attributes {stable_mosaic.version = 11 : i64} {
  func.func @_gpt2_kernel(%arg0: i32, %arg1: memref<2x16x128xf32, #tpu.memory_space<vmem>>, %arg2: memref<16x128xf32, #tpu.memory_space<vmem>>, %arg3: memref<2x16xf32, #tpu.memory_space<vmem>>, %arg4: memref<1x1x128xf32, #tpu.memory_space<vmem>>, %arg5: memref<1x1x128xf32, #tpu.memory_space<vmem>>, %arg6: memref<1x128x384xbf16, #tpu.memory_space<vmem>>, %arg7: memref<1x1x384xf32, #tpu.memory_space<vmem>>, %arg8: memref<1x128x128xbf16, #tpu.memory_space<vmem>>, %arg9: memref<1x1x128xf32, #tpu.memory_space<vmem>>, %arg10: memref<1x1x128xf32, #tpu.memory_space<vmem>>, %arg11: memref<1x1x128xf32, #tpu.memory_space<vmem>>, %arg12: memref<1x128x512xbf16, #tpu.memory_space<vmem>>, %arg13: memref<1x1x512xf32, #tpu.memory_space<vmem>>, %arg14: memref<1x512x128xbf16, #tpu.memory_space<vmem>>, %arg15: memref<1x1x128xf32, #tpu.memory_space<vmem>>, %arg16: memref<1x128xf32, #tpu.memory_space<vmem>>, %arg17: memref<1x128xf32, #tpu.memory_space<vmem>>, %arg18: memref<128x64xbf16, #tpu.memory_space<vmem>>, %arg19: memref<1x64xf32, #tpu.memory_space<vmem>>, %arg20: memref<64x128xbf16, #tpu.memory_space<vmem>>, %arg21: memref<1x128xf32, #tpu.memory_space<vmem>>, %arg22: memref<2x128xf32, #tpu.memory_space<vmem>>, %arg23: memref<2x16x128xf32, #tpu.memory_space<vmem>>, %arg24: memref<2x16x16xf32, #tpu.memory_space<vmem>>) attributes {dimension_semantics = [#tpu.dimension_semantics<arbitrary>], iteration_bounds = array<i64: 2>, scalar_prefetch = 0 : i64, scratch_operands = 2 : i64, tpu.core_type = #tpu.core_type<tc>, window_params = [{pipeline_mode = #tpu.pipeline_mode<synchronous>, transform_indices = @transform_0, window_bounds = array<i64: 2, 16, 128>}, {pipeline_mode = #tpu.pipeline_mode<synchronous>, transform_indices = @transform_1, window_bounds = array<i64: 16, 128>}, {pipeline_mode = #tpu.pipeline_mode<synchronous>, transform_indices = @transform_2, window_bounds = array<i64: 2, 16>}, {transform_indices = @transform_3, window_bounds = array<i64: 1, 1, 128>}, {transform_indices = @transform_4, window_bounds = array<i64: 1, 1, 128>}, {transform_indices = @transform_5, window_bounds = array<i64: 1, 128, 384>}, {transform_indices = @transform_6, window_bounds = array<i64: 1, 1, 384>}, {transform_indices = @transform_7, window_bounds = array<i64: 1, 128, 128>}, {transform_indices = @transform_8, window_bounds = array<i64: 1, 1, 128>}, {transform_indices = @transform_9, window_bounds = array<i64: 1, 1, 128>}, {transform_indices = @transform_10, window_bounds = array<i64: 1, 1, 128>}, {transform_indices = @transform_11, window_bounds = array<i64: 1, 128, 512>}, {transform_indices = @transform_12, window_bounds = array<i64: 1, 1, 512>}, {transform_indices = @transform_13, window_bounds = array<i64: 1, 512, 128>}, {transform_indices = @transform_14, window_bounds = array<i64: 1, 1, 128>}, {pipeline_mode = #tpu.pipeline_mode<synchronous>, transform_indices = @transform_15, window_bounds = array<i64: 1, 128>}, {pipeline_mode = #tpu.pipeline_mode<synchronous>, transform_indices = @transform_16, window_bounds = array<i64: 1, 128>}, {pipeline_mode = #tpu.pipeline_mode<synchronous>, transform_indices = @transform_17, window_bounds = array<i64: 128, 64>}, {pipeline_mode = #tpu.pipeline_mode<synchronous>, transform_indices = @transform_18, window_bounds = array<i64: 1, 64>}, {pipeline_mode = #tpu.pipeline_mode<synchronous>, transform_indices = @transform_19, window_bounds = array<i64: 64, 128>}, {pipeline_mode = #tpu.pipeline_mode<synchronous>, transform_indices = @transform_20, window_bounds = array<i64: 1, 128>}, {pipeline_mode = #tpu.pipeline_mode<synchronous>, transform_indices = @transform_21, window_bounds = array<i64: 2, 128>}]} {
    %c0_i32 = arith.constant 0 : i32
    %0 = arith.cmpi eq, %arg0, %c0_i32 : i32
    %1 = arith.extui %0 : i1 to i32
    %c0_i32_0 = arith.constant 0 : i32
    %2 = arith.cmpi ne, %1, %c0_i32_0 : i32
    scf.if %2 {
      %c0_83 = arith.constant 0 : index
      %c0_84 = arith.constant 0 : index
      %c0_85 = arith.constant 0 : index
      %187 = vector.load %arg1[%c0_83, %c0_84, %c0_85] : memref<2x16x128xf32, #tpu.memory_space<vmem>>, vector<2x16x128xf32>
      %c0_86 = arith.constant 0 : index
      %c0_87 = arith.constant 0 : index
      %188 = vector.load %arg2[%c0_86, %c0_87] : memref<16x128xf32, #tpu.memory_space<vmem>>, vector<16x128xf32>
      %189 = vector.shape_cast %188 : vector<16x128xf32> to vector<1x16x128xf32>
      %190 = vector.broadcast %189 : vector<1x16x128xf32> to vector<2x16x128xf32>
      %191 = arith.addf %187, %190 : vector<2x16x128xf32>
      %c0_88 = arith.constant 0 : index
      %c0_89 = arith.constant 0 : index
      %c0_90 = arith.constant 0 : index
      %192 = vector.load %arg23[%c0_88, %c0_89, %c0_90] : memref<2x16x128xf32, #tpu.memory_space<vmem>>, vector<2x16x128xf32>
      tpu.vector_store %arg23[%c0_88, %c0_89, %c0_90], %191 {strides = array<i32>} : memref<2x16x128xf32, #tpu.memory_space<vmem>>, vector<2x16x128xf32>,
      %193 = tpu.iota {dimensions = array<i32: 0>} : vector<16x16xi32>
      %194 = tpu.iota {dimensions = array<i32: 1>} : vector<16x16xi32>
      %195 = arith.cmpi sle, %194, %193 : vector<16x16xi32>
      %196 = vector.shape_cast %195 : vector<16x16xi1> to vector<1x16x16xi1>
      %c0_91 = arith.constant 0 : index
      %c0_92 = arith.constant 0 : index
      %197 = vector.load %arg3[%c0_91, %c0_92] : memref<2x16xf32, #tpu.memory_space<vmem>>, vector<2x16xf32>
      %198 = vector.shape_cast %197 : vector<2x16xf32> to vector<2x1x16xf32>
      %cst_93 = arith.constant 5.000000e-01 : f32
      %199 = vector.broadcast %cst_93 : f32 to vector<2x1x16xf32>
      %200 = arith.cmpf ogt, %198, %199 : vector<2x1x16xf32>
      %201 = vector.broadcast %196 : vector<1x16x16xi1> to vector<2x16x16xi1>
      %202 = vector.broadcast %200 : vector<2x1x16xi1> to vector<2x16x16xi1>
      %203 = arith.andi %201, %202 : vector<2x16x16xi1>
      %cst_94 = arith.constant 0.000000e+00 : f32
      %cst_95 = arith.constant -1.000000e+09 : f32
      %204 = vector.broadcast %cst_94 : f32 to vector<2x16x16xf32>
      %205 = vector.broadcast %cst_95 : f32 to vector<2x16x16xf32>
      %206 = arith.select %203, %204, %205 : vector<2x16x16xi1>, vector<2x16x16xf32>
      %c0_96 = arith.constant 0 : index
      %c0_97 = arith.constant 0 : index
      %c0_98 = arith.constant 0 : index
      %207 = vector.load %arg24[%c0_96, %c0_97, %c0_98] : memref<2x16x16xf32, #tpu.memory_space<vmem>>, vector<2x16x16xf32>
      tpu.vector_store %arg24[%c0_96, %c0_97, %c0_98], %206 {strides = array<i32>} : memref<2x16x16xf32, #tpu.memory_space<vmem>>, vector<2x16x16xf32>,
    } else {
    }
    %c0 = arith.constant 0 : index
    %c0_1 = arith.constant 0 : index
    %c0_2 = arith.constant 0 : index
    %3 = vector.load %arg23[%c0, %c0_1, %c0_2] : memref<2x16x128xf32, #tpu.memory_space<vmem>>, vector<2x16x128xf32>
    %c0_3 = arith.constant 0 : index
    %c0_4 = arith.constant 0 : index
    %c0_5 = arith.constant 0 : index
    %4 = vector.load %arg24[%c0_3, %c0_4, %c0_5] : memref<2x16x16xf32, #tpu.memory_space<vmem>>, vector<2x16x16xf32>
    %5 = vector.shape_cast %3 : vector<2x16x128xf32> to vector<32x128xf32>
    %c0_6 = arith.constant 0 : index
    %c0_7 = arith.constant 0 : index
    %c0_8 = arith.constant 0 : index
    %6 = vector.load %arg4[%c0_6, %c0_7, %c0_8] : memref<1x1x128xf32, #tpu.memory_space<vmem>>, vector<1x1x128xf32>
    %7 = vector.shape_cast %6 : vector<1x1x128xf32> to vector<1x128xf32>
    %c0_9 = arith.constant 0 : index
    %c0_10 = arith.constant 0 : index
    %c0_11 = arith.constant 0 : index
    %8 = vector.load %arg5[%c0_9, %c0_10, %c0_11] : memref<1x1x128xf32, #tpu.memory_space<vmem>>, vector<1x1x128xf32>
    %9 = vector.shape_cast %8 : vector<1x1x128xf32> to vector<1x128xf32>
    %cst = arith.constant dense<0.000000e+00> : vector<32xf32>
    %10 = vector.multi_reduction <add>, %5, %cst [1] : vector<32x128xf32> to vector<32xf32>
    %11 = vector.shape_cast %10 : vector<32xf32> to vector<32x1xf32>
    %cst_12 = arith.constant 1.280000e+02 : f32
    %12 = vector.broadcast %cst_12 : f32 to vector<32x1xf32>
    %13 = arith.divf %11, %12 : vector<32x1xf32>
    %14 = vector.broadcast %13 : vector<32x1xf32> to vector<32x128xf32>
    %15 = arith.subf %5, %14 : vector<32x128xf32>
    %16 = arith.mulf %15, %15 : vector<32x128xf32>
    %cst_13 = arith.constant dense<0.000000e+00> : vector<32xf32>
    %17 = vector.multi_reduction <add>, %16, %cst_13 [1] : vector<32x128xf32> to vector<32xf32>
    %18 = vector.shape_cast %17 : vector<32xf32> to vector<32x1xf32>
    %cst_14 = arith.constant 1.280000e+02 : f32
    %19 = vector.broadcast %cst_14 : f32 to vector<32x1xf32>
    %20 = arith.divf %18, %19 : vector<32x1xf32>
    %21 = vector.broadcast %13 : vector<32x1xf32> to vector<32x128xf32>
    %22 = arith.subf %5, %21 : vector<32x128xf32>
    %cst_15 = arith.constant 9.99999974E-6 : f32
    %23 = vector.broadcast %cst_15 : f32 to vector<32x1xf32>
    %24 = arith.addf %20, %23 : vector<32x1xf32>
    %25 = math.rsqrt %24 : vector<32x1xf32>
    %26 = vector.broadcast %25 : vector<32x1xf32> to vector<32x128xf32>
    %27 = arith.mulf %22, %26 : vector<32x128xf32>
    %28 = vector.broadcast %7 : vector<1x128xf32> to vector<32x128xf32>
    %29 = arith.mulf %27, %28 : vector<32x128xf32>
    %30 = vector.broadcast %9 : vector<1x128xf32> to vector<32x128xf32>
    %31 = arith.addf %29, %30 : vector<32x128xf32>
    %32 = arith.truncf %31 : vector<32x128xf32> to vector<32x128xbf16>
    %c0_16 = arith.constant 0 : index
    %c0_17 = arith.constant 0 : index
    %c0_18 = arith.constant 0 : index
    %33 = vector.load %arg6[%c0_16, %c0_17, %c0_18] : memref<1x128x384xbf16, #tpu.memory_space<vmem>>, vector<1x128x384xbf16>
    %34 = vector.shape_cast %33 : vector<1x128x384xbf16> to vector<128x384xbf16>
    %cst_19 = arith.constant dense<0.000000e+00> : vector<32x384xf32>
    %35 = tpu.matmul %32, %34, %cst_19 {dimension_numbers = #tpu.dot_dimension_numbers<[1], [0], [0], [1], [0, 0, 1, 1], [], []>} : vector<32x128xbf16>, vector<128x384xbf16>, vector<32x384xf32> -> vector<32x384xf32>
    %c0_20 = arith.constant 0 : index
    %c0_21 = arith.constant 0 : index
    %c0_22 = arith.constant 0 : index
    %36 = vector.load %arg7[%c0_20, %c0_21, %c0_22] : memref<1x1x384xf32, #tpu.memory_space<vmem>>, vector<1x1x384xf32>
    %37 = vector.shape_cast %36 : vector<1x1x384xf32> to vector<1x384xf32>
    %38 = vector.broadcast %37 : vector<1x384xf32> to vector<32x384xf32>
    %39 = arith.addf %35, %38 : vector<32x384xf32>
    %40 = vector.shape_cast %39 : vector<32x384xf32> to vector<2x16x384xf32>
    %41 = vector.extract_strided_slice %40 {offsets = [0, 0, 0], sizes = [2, 16, 32], strides = [1, 1, 1]} : vector<2x16x384xf32> to vector<2x16x32xf32>
    %cst_23 = arith.constant 0.176776692 : f32
    %42 = vector.broadcast %cst_23 : f32 to vector<2x16x32xf32>
    %43 = arith.mulf %41, %42 : vector<2x16x32xf32>
    %44 = vector.extract_strided_slice %40 {offsets = [0, 0, 128], sizes = [2, 16, 32], strides = [1, 1, 1]} : vector<2x16x384xf32> to vector<2x16x32xf32>
    %45 = vector.extract_strided_slice %40 {offsets = [0, 0, 256], sizes = [2, 16, 32], strides = [1, 1, 1]} : vector<2x16x384xf32> to vector<2x16x32xf32>
    "tpu.trace_start"() <{level = 10 : i32, message = "bqd,bkd->bqk"}> : () -> ()
    %cst_24 = arith.constant dense<0.000000e+00> : vector<2x16x16xf32>
    %46 = tpu.matmul %43, %44, %cst_24 {dimension_numbers = #tpu.dot_dimension_numbers<[2], [2], [1], [1], [0, 0, 0, 1, 1, 1], [0], [0]>} : vector<2x16x32xf32>, vector<2x16x32xf32>, vector<2x16x16xf32> -> vector<2x16x16xf32>
    "tpu.trace_stop"() : () -> ()
    %47 = arith.addf %46, %4 : vector<2x16x16xf32>
    %cst_25 = arith.constant dense<0xFF800000> : vector<2x16xf32>
    %48 = vector.multi_reduction <maximumf>, %47, %cst_25 [2] : vector<2x16x16xf32> to vector<2x16xf32>
    %49 = vector.shape_cast %48 : vector<2x16xf32> to vector<2x16x1xf32>
    %50 = vector.broadcast %49 : vector<2x16x1xf32> to vector<2x16x16xf32>
    %51 = arith.subf %47, %50 : vector<2x16x16xf32>
    %52 = math.exp %51 : vector<2x16x16xf32>
    %cst_26 = arith.constant dense<0.000000e+00> : vector<2x16xf32>
    %53 = vector.multi_reduction <add>, %52, %cst_26 [2] : vector<2x16x16xf32> to vector<2x16xf32>
    %54 = vector.shape_cast %53 : vector<2x16xf32> to vector<2x16x1xf32>
    %55 = tpu.reciprocal %54 {approx = true} : vector<2x16x1xf32> -> vector<2x16x1xf32>
    %56 = vector.broadcast %55 : vector<2x16x1xf32> to vector<2x16x16xf32>
    %57 = arith.mulf %52, %56 : vector<2x16x16xf32>
    "tpu.trace_start"() <{level = 10 : i32, message = "bqk,bkd->bqd"}> : () -> ()
    %cst_27 = arith.constant dense<0.000000e+00> : vector<2x16x32xf32>
    %58 = tpu.matmul %57, %45, %cst_27 {dimension_numbers = #tpu.dot_dimension_numbers<[2], [1], [1], [2], [0, 0, 0, 1, 1, 2], [0], [0]>} : vector<2x16x16xf32>, vector<2x16x32xf32>, vector<2x16x32xf32> -> vector<2x16x32xf32>
    "tpu.trace_stop"() : () -> ()
    %59 = vector.extract_strided_slice %40 {offsets = [0, 0, 32], sizes = [2, 16, 32], strides = [1, 1, 1]} : vector<2x16x384xf32> to vector<2x16x32xf32>
    %cst_28 = arith.constant 0.176776692 : f32
    %60 = vector.broadcast %cst_28 : f32 to vector<2x16x32xf32>
    %61 = arith.mulf %59, %60 : vector<2x16x32xf32>
    %62 = vector.extract_strided_slice %40 {offsets = [0, 0, 160], sizes = [2, 16, 32], strides = [1, 1, 1]} : vector<2x16x384xf32> to vector<2x16x32xf32>
    %63 = vector.extract_strided_slice %40 {offsets = [0, 0, 288], sizes = [2, 16, 32], strides = [1, 1, 1]} : vector<2x16x384xf32> to vector<2x16x32xf32>
    "tpu.trace_start"() <{level = 10 : i32, message = "bqd,bkd->bqk"}> : () -> ()
    %cst_29 = arith.constant dense<0.000000e+00> : vector<2x16x16xf32>
    %64 = tpu.matmul %61, %62, %cst_29 {dimension_numbers = #tpu.dot_dimension_numbers<[2], [2], [1], [1], [0, 0, 0, 1, 1, 1], [0], [0]>} : vector<2x16x32xf32>, vector<2x16x32xf32>, vector<2x16x16xf32> -> vector<2x16x16xf32>
    "tpu.trace_stop"() : () -> ()
    %65 = arith.addf %64, %4 : vector<2x16x16xf32>
    %cst_30 = arith.constant dense<0xFF800000> : vector<2x16xf32>
    %66 = vector.multi_reduction <maximumf>, %65, %cst_30 [2] : vector<2x16x16xf32> to vector<2x16xf32>
    %67 = vector.shape_cast %66 : vector<2x16xf32> to vector<2x16x1xf32>
    %68 = vector.broadcast %67 : vector<2x16x1xf32> to vector<2x16x16xf32>
    %69 = arith.subf %65, %68 : vector<2x16x16xf32>
    %70 = math.exp %69 : vector<2x16x16xf32>
    %cst_31 = arith.constant dense<0.000000e+00> : vector<2x16xf32>
    %71 = vector.multi_reduction <add>, %70, %cst_31 [2] : vector<2x16x16xf32> to vector<2x16xf32>
    %72 = vector.shape_cast %71 : vector<2x16xf32> to vector<2x16x1xf32>
    %73 = tpu.reciprocal %72 {approx = true} : vector<2x16x1xf32> -> vector<2x16x1xf32>
    %74 = vector.broadcast %73 : vector<2x16x1xf32> to vector<2x16x16xf32>
    %75 = arith.mulf %70, %74 : vector<2x16x16xf32>
    "tpu.trace_start"() <{level = 10 : i32, message = "bqk,bkd->bqd"}> : () -> ()
    %cst_32 = arith.constant dense<0.000000e+00> : vector<2x16x32xf32>
    %76 = tpu.matmul %75, %63, %cst_32 {dimension_numbers = #tpu.dot_dimension_numbers<[2], [1], [1], [2], [0, 0, 0, 1, 1, 2], [0], [0]>} : vector<2x16x16xf32>, vector<2x16x32xf32>, vector<2x16x32xf32> -> vector<2x16x32xf32>
    "tpu.trace_stop"() : () -> ()
    %77 = vector.extract_strided_slice %40 {offsets = [0, 0, 64], sizes = [2, 16, 32], strides = [1, 1, 1]} : vector<2x16x384xf32> to vector<2x16x32xf32>
    %cst_33 = arith.constant 0.176776692 : f32
    %78 = vector.broadcast %cst_33 : f32 to vector<2x16x32xf32>
    %79 = arith.mulf %77, %78 : vector<2x16x32xf32>
    %80 = vector.extract_strided_slice %40 {offsets = [0, 0, 192], sizes = [2, 16, 32], strides = [1, 1, 1]} : vector<2x16x384xf32> to vector<2x16x32xf32>
    %81 = vector.extract_strided_slice %40 {offsets = [0, 0, 320], sizes = [2, 16, 32], strides = [1, 1, 1]} : vector<2x16x384xf32> to vector<2x16x32xf32>
    "tpu.trace_start"() <{level = 10 : i32, message = "bqd,bkd->bqk"}> : () -> ()
    %cst_34 = arith.constant dense<0.000000e+00> : vector<2x16x16xf32>
    %82 = tpu.matmul %79, %80, %cst_34 {dimension_numbers = #tpu.dot_dimension_numbers<[2], [2], [1], [1], [0, 0, 0, 1, 1, 1], [0], [0]>} : vector<2x16x32xf32>, vector<2x16x32xf32>, vector<2x16x16xf32> -> vector<2x16x16xf32>
    "tpu.trace_stop"() : () -> ()
    %83 = arith.addf %82, %4 : vector<2x16x16xf32>
    %cst_35 = arith.constant dense<0xFF800000> : vector<2x16xf32>
    %84 = vector.multi_reduction <maximumf>, %83, %cst_35 [2] : vector<2x16x16xf32> to vector<2x16xf32>
    %85 = vector.shape_cast %84 : vector<2x16xf32> to vector<2x16x1xf32>
    %86 = vector.broadcast %85 : vector<2x16x1xf32> to vector<2x16x16xf32>
    %87 = arith.subf %83, %86 : vector<2x16x16xf32>
    %88 = math.exp %87 : vector<2x16x16xf32>
    %cst_36 = arith.constant dense<0.000000e+00> : vector<2x16xf32>
    %89 = vector.multi_reduction <add>, %88, %cst_36 [2] : vector<2x16x16xf32> to vector<2x16xf32>
    %90 = vector.shape_cast %89 : vector<2x16xf32> to vector<2x16x1xf32>
    %91 = tpu.reciprocal %90 {approx = true} : vector<2x16x1xf32> -> vector<2x16x1xf32>
    %92 = vector.broadcast %91 : vector<2x16x1xf32> to vector<2x16x16xf32>
    %93 = arith.mulf %88, %92 : vector<2x16x16xf32>
    "tpu.trace_start"() <{level = 10 : i32, message = "bqk,bkd->bqd"}> : () -> ()
    %cst_37 = arith.constant dense<0.000000e+00> : vector<2x16x32xf32>
    %94 = tpu.matmul %93, %81, %cst_37 {dimension_numbers = #tpu.dot_dimension_numbers<[2], [1], [1], [2], [0, 0, 0, 1, 1, 2], [0], [0]>} : vector<2x16x16xf32>, vector<2x16x32xf32>, vector<2x16x32xf32> -> vector<2x16x32xf32>
    "tpu.trace_stop"() : () -> ()
    %95 = vector.extract_strided_slice %40 {offsets = [0, 0, 96], sizes = [2, 16, 32], strides = [1, 1, 1]} : vector<2x16x384xf32> to vector<2x16x32xf32>
    %cst_38 = arith.constant 0.176776692 : f32
    %96 = vector.broadcast %cst_38 : f32 to vector<2x16x32xf32>
    %97 = arith.mulf %95, %96 : vector<2x16x32xf32>
    %98 = vector.extract_strided_slice %40 {offsets = [0, 0, 224], sizes = [2, 16, 32], strides = [1, 1, 1]} : vector<2x16x384xf32> to vector<2x16x32xf32>
    %99 = vector.extract_strided_slice %40 {offsets = [0, 0, 352], sizes = [2, 16, 32], strides = [1, 1, 1]} : vector<2x16x384xf32> to vector<2x16x32xf32>
    "tpu.trace_start"() <{level = 10 : i32, message = "bqd,bkd->bqk"}> : () -> ()
    %cst_39 = arith.constant dense<0.000000e+00> : vector<2x16x16xf32>
    %100 = tpu.matmul %97, %98, %cst_39 {dimension_numbers = #tpu.dot_dimension_numbers<[2], [2], [1], [1], [0, 0, 0, 1, 1, 1], [0], [0]>} : vector<2x16x32xf32>, vector<2x16x32xf32>, vector<2x16x16xf32> -> vector<2x16x16xf32>
    "tpu.trace_stop"() : () -> ()
    %101 = arith.addf %100, %4 : vector<2x16x16xf32>
    %cst_40 = arith.constant dense<0xFF800000> : vector<2x16xf32>
    %102 = vector.multi_reduction <maximumf>, %101, %cst_40 [2] : vector<2x16x16xf32> to vector<2x16xf32>
    %103 = vector.shape_cast %102 : vector<2x16xf32> to vector<2x16x1xf32>
    %104 = vector.broadcast %103 : vector<2x16x1xf32> to vector<2x16x16xf32>
    %105 = arith.subf %101, %104 : vector<2x16x16xf32>
    %106 = math.exp %105 : vector<2x16x16xf32>
    %cst_41 = arith.constant dense<0.000000e+00> : vector<2x16xf32>
    %107 = vector.multi_reduction <add>, %106, %cst_41 [2] : vector<2x16x16xf32> to vector<2x16xf32>
    %108 = vector.shape_cast %107 : vector<2x16xf32> to vector<2x16x1xf32>
    %109 = tpu.reciprocal %108 {approx = true} : vector<2x16x1xf32> -> vector<2x16x1xf32>
    %110 = vector.broadcast %109 : vector<2x16x1xf32> to vector<2x16x16xf32>
    %111 = arith.mulf %106, %110 : vector<2x16x16xf32>
    "tpu.trace_start"() <{level = 10 : i32, message = "bqk,bkd->bqd"}> : () -> ()
    %cst_42 = arith.constant dense<0.000000e+00> : vector<2x16x32xf32>
    %112 = tpu.matmul %111, %99, %cst_42 {dimension_numbers = #tpu.dot_dimension_numbers<[2], [1], [1], [2], [0, 0, 0, 1, 1, 2], [0], [0]>} : vector<2x16x16xf32>, vector<2x16x32xf32>, vector<2x16x32xf32> -> vector<2x16x32xf32>
    "tpu.trace_stop"() : () -> ()
    %113 = tpu.concatenate %58, %76, %94, %112 in 2 : vector<2x16x32xf32>, vector<2x16x32xf32>, vector<2x16x32xf32>, vector<2x16x32xf32> -> vector<2x16x128xf32>
    %114 = vector.shape_cast %113 : vector<2x16x128xf32> to vector<32x128xf32>
    %115 = arith.truncf %114 : vector<32x128xf32> to vector<32x128xbf16>
    %c0_43 = arith.constant 0 : index
    %c0_44 = arith.constant 0 : index
    %c0_45 = arith.constant 0 : index
    %116 = vector.load %arg8[%c0_43, %c0_44, %c0_45] : memref<1x128x128xbf16, #tpu.memory_space<vmem>>, vector<1x128x128xbf16>
    %117 = vector.shape_cast %116 : vector<1x128x128xbf16> to vector<128x128xbf16>
    %cst_46 = arith.constant dense<0.000000e+00> : vector<32x128xf32>
    %118 = tpu.matmul %115, %117, %cst_46 {dimension_numbers = #tpu.dot_dimension_numbers<[1], [0], [0], [1], [0, 0, 1, 1], [], []>} : vector<32x128xbf16>, vector<128x128xbf16>, vector<32x128xf32> -> vector<32x128xf32>
    %c0_47 = arith.constant 0 : index
    %c0_48 = arith.constant 0 : index
    %c0_49 = arith.constant 0 : index
    %119 = vector.load %arg9[%c0_47, %c0_48, %c0_49] : memref<1x1x128xf32, #tpu.memory_space<vmem>>, vector<1x1x128xf32>
    %120 = vector.shape_cast %119 : vector<1x1x128xf32> to vector<1x128xf32>
    %121 = vector.broadcast %120 : vector<1x128xf32> to vector<32x128xf32>
    %122 = arith.addf %118, %121 : vector<32x128xf32>
    %123 = vector.shape_cast %122 : vector<32x128xf32> to vector<2x16x128xf32>
    %124 = arith.addf %3, %123 : vector<2x16x128xf32>
    %125 = vector.shape_cast %124 : vector<2x16x128xf32> to vector<32x128xf32>
    %c0_50 = arith.constant 0 : index
    %c0_51 = arith.constant 0 : index
    %c0_52 = arith.constant 0 : index
    %126 = vector.load %arg10[%c0_50, %c0_51, %c0_52] : memref<1x1x128xf32, #tpu.memory_space<vmem>>, vector<1x1x128xf32>
    %127 = vector.shape_cast %126 : vector<1x1x128xf32> to vector<1x128xf32>
    %c0_53 = arith.constant 0 : index
    %c0_54 = arith.constant 0 : index
    %c0_55 = arith.constant 0 : index
    %128 = vector.load %arg11[%c0_53, %c0_54, %c0_55] : memref<1x1x128xf32, #tpu.memory_space<vmem>>, vector<1x1x128xf32>
    %129 = vector.shape_cast %128 : vector<1x1x128xf32> to vector<1x128xf32>
    %cst_56 = arith.constant dense<0.000000e+00> : vector<32xf32>
    %130 = vector.multi_reduction <add>, %125, %cst_56 [1] : vector<32x128xf32> to vector<32xf32>
    %131 = vector.shape_cast %130 : vector<32xf32> to vector<32x1xf32>
    %cst_57 = arith.constant 1.280000e+02 : f32
    %132 = vector.broadcast %cst_57 : f32 to vector<32x1xf32>
    %133 = arith.divf %131, %132 : vector<32x1xf32>
    %134 = vector.broadcast %133 : vector<32x1xf32> to vector<32x128xf32>
    %135 = arith.subf %125, %134 : vector<32x128xf32>
    %136 = arith.mulf %135, %135 : vector<32x128xf32>
    %cst_58 = arith.constant dense<0.000000e+00> : vector<32xf32>
    %137 = vector.multi_reduction <add>, %136, %cst_58 [1] : vector<32x128xf32> to vector<32xf32>
    %138 = vector.shape_cast %137 : vector<32xf32> to vector<32x1xf32>
    %cst_59 = arith.constant 1.280000e+02 : f32
    %139 = vector.broadcast %cst_59 : f32 to vector<32x1xf32>
    %140 = arith.divf %138, %139 : vector<32x1xf32>
    %141 = vector.broadcast %133 : vector<32x1xf32> to vector<32x128xf32>
    %142 = arith.subf %125, %141 : vector<32x128xf32>
    %cst_60 = arith.constant 9.99999974E-6 : f32
    %143 = vector.broadcast %cst_60 : f32 to vector<32x1xf32>
    %144 = arith.addf %140, %143 : vector<32x1xf32>
    %145 = math.rsqrt %144 : vector<32x1xf32>
    %146 = vector.broadcast %145 : vector<32x1xf32> to vector<32x128xf32>
    %147 = arith.mulf %142, %146 : vector<32x128xf32>
    %148 = vector.broadcast %127 : vector<1x128xf32> to vector<32x128xf32>
    %149 = arith.mulf %147, %148 : vector<32x128xf32>
    %150 = vector.broadcast %129 : vector<1x128xf32> to vector<32x128xf32>
    %151 = arith.addf %149, %150 : vector<32x128xf32>
    %152 = arith.truncf %151 : vector<32x128xf32> to vector<32x128xbf16>
    %c0_61 = arith.constant 0 : index
    %c0_62 = arith.constant 0 : index
    %c0_63 = arith.constant 0 : index
    %153 = vector.load %arg12[%c0_61, %c0_62, %c0_63] : memref<1x128x512xbf16, #tpu.memory_space<vmem>>, vector<1x128x512xbf16>
    %154 = vector.shape_cast %153 : vector<1x128x512xbf16> to vector<128x512xbf16>
    %cst_64 = arith.constant dense<0.000000e+00> : vector<32x512xf32>
    %155 = tpu.matmul %152, %154, %cst_64 {dimension_numbers = #tpu.dot_dimension_numbers<[1], [0], [0], [1], [0, 0, 1, 1], [], []>} : vector<32x128xbf16>, vector<128x512xbf16>, vector<32x512xf32> -> vector<32x512xf32>
    %c0_65 = arith.constant 0 : index
    %c0_66 = arith.constant 0 : index
    %c0_67 = arith.constant 0 : index
    %156 = vector.load %arg13[%c0_65, %c0_66, %c0_67] : memref<1x1x512xf32, #tpu.memory_space<vmem>>, vector<1x1x512xf32>
    %157 = vector.shape_cast %156 : vector<1x1x512xf32> to vector<1x512xf32>
    %158 = vector.broadcast %157 : vector<1x512xf32> to vector<32x512xf32>
    %159 = arith.addf %155, %158 : vector<32x512xf32>
    %cst_68 = arith.constant 5.000000e-01 : f32
    %160 = vector.broadcast %cst_68 : f32 to vector<32x512xf32>
    %161 = arith.mulf %160, %159 : vector<32x512xf32>
    %cst_69 = arith.constant 4.471500e-02 : f32
    %162 = vector.broadcast %cst_69 : f32 to vector<32x512xf32>
    %163 = arith.mulf %162, %159 : vector<32x512xf32>
    %164 = arith.mulf %163, %159 : vector<32x512xf32>
    %165 = arith.mulf %164, %159 : vector<32x512xf32>
    %166 = arith.addf %159, %165 : vector<32x512xf32>
    %cst_70 = arith.constant 0.797884583 : f32
    %167 = vector.broadcast %cst_70 : f32 to vector<32x512xf32>
    %168 = arith.mulf %167, %166 : vector<32x512xf32>
    %169 = math.tanh %168 : vector<32x512xf32>
    %cst_71 = arith.constant 1.000000e+00 : f32
    %170 = vector.broadcast %cst_71 : f32 to vector<32x512xf32>
    %171 = arith.addf %170, %169 : vector<32x512xf32>
    %172 = arith.mulf %161, %171 : vector<32x512xf32>
    %173 = arith.truncf %172 : vector<32x512xf32> to vector<32x512xbf16>
    %c0_72 = arith.constant 0 : index
    %c0_73 = arith.constant 0 : index
    %c0_74 = arith.constant 0 : index
    %174 = vector.load %arg14[%c0_72, %c0_73, %c0_74] : memref<1x512x128xbf16, #tpu.memory_space<vmem>>, vector<1x512x128xbf16>
    %175 = vector.shape_cast %174 : vector<1x512x128xbf16> to vector<512x128xbf16>
    %cst_75 = arith.constant dense<0.000000e+00> : vector<32x128xf32>
    %176 = tpu.matmul %173, %175, %cst_75 {dimension_numbers = #tpu.dot_dimension_numbers<[1], [0], [0], [1], [0, 0, 1, 1], [], []>} : vector<32x512xbf16>, vector<512x128xbf16>, vector<32x128xf32> -> vector<32x128xf32>
    %c0_76 = arith.constant 0 : index
    %c0_77 = arith.constant 0 : index
    %c0_78 = arith.constant 0 : index
    %177 = vector.load %arg15[%c0_76, %c0_77, %c0_78] : memref<1x1x128xf32, #tpu.memory_space<vmem>>, vector<1x1x128xf32>
    %178 = vector.shape_cast %177 : vector<1x1x128xf32> to vector<1x128xf32>
    %179 = vector.broadcast %178 : vector<1x128xf32> to vector<32x128xf32>
    %180 = arith.addf %176, %179 : vector<32x128xf32>
    %181 = vector.shape_cast %180 : vector<32x128xf32> to vector<2x16x128xf32>
    %182 = arith.addf %124, %181 : vector<2x16x128xf32>
    %c0_79 = arith.constant 0 : index
    %c0_80 = arith.constant 0 : index
    %c0_81 = arith.constant 0 : index
    %183 = vector.load %arg23[%c0_79, %c0_80, %c0_81] : memref<2x16x128xf32, #tpu.memory_space<vmem>>, vector<2x16x128xf32>
    tpu.vector_store %arg23[%c0_79, %c0_80, %c0_81], %182 {strides = array<i32>} : memref<2x16x128xf32, #tpu.memory_space<vmem>>, vector<2x16x128xf32>,
    %c1_i32 = arith.constant 1 : i32
    %184 = arith.cmpi eq, %arg0, %c1_i32 : i32
    %185 = arith.extui %184 : i1 to i32
    %c0_i32_82 = arith.constant 0 : i32
    %186 = arith.cmpi ne, %185, %c0_i32_82 : i32
    scf.if %186 {
      %187 = vector.shape_cast %182 : vector<2x16x128xf32> to vector<32x128xf32>
      %c0_83 = arith.constant 0 : index
      %c0_84 = arith.constant 0 : index
      %188 = vector.load %arg16[%c0_83, %c0_84] : memref<1x128xf32, #tpu.memory_space<vmem>>, vector<1x128xf32>
      %c0_85 = arith.constant 0 : index
      %c0_86 = arith.constant 0 : index
      %189 = vector.load %arg17[%c0_85, %c0_86] : memref<1x128xf32, #tpu.memory_space<vmem>>, vector<1x128xf32>
      %cst_87 = arith.constant dense<0.000000e+00> : vector<32xf32>
      %190 = vector.multi_reduction <add>, %187, %cst_87 [1] : vector<32x128xf32> to vector<32xf32>
      %191 = vector.shape_cast %190 : vector<32xf32> to vector<32x1xf32>
      %cst_88 = arith.constant 1.280000e+02 : f32
      %192 = vector.broadcast %cst_88 : f32 to vector<32x1xf32>
      %193 = arith.divf %191, %192 : vector<32x1xf32>
      %194 = vector.broadcast %193 : vector<32x1xf32> to vector<32x128xf32>
      %195 = arith.subf %187, %194 : vector<32x128xf32>
      %196 = arith.mulf %195, %195 : vector<32x128xf32>
      %cst_89 = arith.constant dense<0.000000e+00> : vector<32xf32>
      %197 = vector.multi_reduction <add>, %196, %cst_89 [1] : vector<32x128xf32> to vector<32xf32>
      %198 = vector.shape_cast %197 : vector<32xf32> to vector<32x1xf32>
      %cst_90 = arith.constant 1.280000e+02 : f32
      %199 = vector.broadcast %cst_90 : f32 to vector<32x1xf32>
      %200 = arith.divf %198, %199 : vector<32x1xf32>
      %201 = vector.broadcast %193 : vector<32x1xf32> to vector<32x128xf32>
      %202 = arith.subf %187, %201 : vector<32x128xf32>
      %cst_91 = arith.constant 9.99999974E-6 : f32
      %203 = vector.broadcast %cst_91 : f32 to vector<32x1xf32>
      %204 = arith.addf %200, %203 : vector<32x1xf32>
      %205 = math.rsqrt %204 : vector<32x1xf32>
      %206 = vector.broadcast %205 : vector<32x1xf32> to vector<32x128xf32>
      %207 = arith.mulf %202, %206 : vector<32x128xf32>
      %208 = vector.broadcast %188 : vector<1x128xf32> to vector<32x128xf32>
      %209 = arith.mulf %207, %208 : vector<32x128xf32>
      %210 = vector.broadcast %189 : vector<1x128xf32> to vector<32x128xf32>
      %211 = arith.addf %209, %210 : vector<32x128xf32>
      %212 = vector.shape_cast %211 : vector<32x128xf32> to vector<2x16x128xf32>
      %213 = vector.extract_strided_slice %212 {offsets = [0, 0, 0], sizes = [2, 9, 128], strides = [1, 1, 1]} : vector<2x16x128xf32> to vector<2x9x128xf32>
      %cst_92 = arith.constant dense<0.000000e+00> : vector<2x128xf32>
      %214 = vector.multi_reduction <add>, %213, %cst_92 [1] : vector<2x9x128xf32> to vector<2x128xf32>
      %cst_93 = arith.constant 9.000000e+00 : f32
      %215 = vector.broadcast %cst_93 : f32 to vector<2x128xf32>
      %216 = arith.divf %214, %215 : vector<2x128xf32>
      %217 = arith.truncf %216 : vector<2x128xf32> to vector<2x128xbf16>
      %c0_94 = arith.constant 0 : index
      %c0_95 = arith.constant 0 : index
      %218 = vector.load %arg18[%c0_94, %c0_95] : memref<128x64xbf16, #tpu.memory_space<vmem>>, vector<128x64xbf16>
      %cst_96 = arith.constant dense<0.000000e+00> : vector<2x64xf32>
      %219 = tpu.matmul %217, %218, %cst_96 {dimension_numbers = #tpu.dot_dimension_numbers<[1], [0], [0], [1], [0, 0, 1, 1], [], []>} : vector<2x128xbf16>, vector<128x64xbf16>, vector<2x64xf32> -> vector<2x64xf32>
      %c0_97 = arith.constant 0 : index
      %c0_98 = arith.constant 0 : index
      %220 = vector.load %arg19[%c0_97, %c0_98] : memref<1x64xf32, #tpu.memory_space<vmem>>, vector<1x64xf32>
      %221 = vector.broadcast %220 : vector<1x64xf32> to vector<2x64xf32>
      %222 = arith.addf %219, %221 : vector<2x64xf32>
      %223 = arith.truncf %222 : vector<2x64xf32> to vector<2x64xbf16>
      %c0_99 = arith.constant 0 : index
      %c0_100 = arith.constant 0 : index
      %224 = vector.load %arg20[%c0_99, %c0_100] : memref<64x128xbf16, #tpu.memory_space<vmem>>, vector<64x128xbf16>
      %cst_101 = arith.constant dense<0.000000e+00> : vector<2x128xf32>
      %225 = tpu.matmul %223, %224, %cst_101 {dimension_numbers = #tpu.dot_dimension_numbers<[1], [0], [0], [1], [0, 0, 1, 1], [], []>} : vector<2x64xbf16>, vector<64x128xbf16>, vector<2x128xf32> -> vector<2x128xf32>
      %c0_102 = arith.constant 0 : index
      %c0_103 = arith.constant 0 : index
      %226 = vector.load %arg21[%c0_102, %c0_103] : memref<1x128xf32, #tpu.memory_space<vmem>>, vector<1x128xf32>
      %227 = vector.broadcast %226 : vector<1x128xf32> to vector<2x128xf32>
      %228 = arith.addf %225, %227 : vector<2x128xf32>
      %c0_104 = arith.constant 0 : index
      %c0_105 = arith.constant 0 : index
      %229 = vector.load %arg22[%c0_104, %c0_105] : memref<2x128xf32, #tpu.memory_space<vmem>>, vector<2x128xf32>
      tpu.vector_store %arg22[%c0_104, %c0_105], %228 {strides = array<i32>} : memref<2x128xf32, #tpu.memory_space<vmem>>, vector<2x128xf32>,
    } else {
    }
    return
  }
  func.func @transform_0(%arg0: i32) -> (i32, i32, i32) {
    %c0_i32 = arith.constant 0 : i32
    %c0_i32_0 = arith.constant 0 : i32
    %c0_i32_1 = arith.constant 0 : i32
    %c0_i32_2 = arith.constant 0 : i32
    return %c0_i32, %c0_i32_0, %c0_i32_1 : i32, i32, i32
  }
  func.func @transform_1(%arg0: i32) -> (i32, i32) {
    %c0_i32 = arith.constant 0 : i32
    %c0_i32_0 = arith.constant 0 : i32
    %c0_i32_1 = arith.constant 0 : i32
    return %c0_i32, %c0_i32_0 : i32, i32
  }
  func.func @transform_2(%arg0: i32) -> (i32, i32) {
    %c0_i32 = arith.constant 0 : i32
    %c0_i32_0 = arith.constant 0 : i32
    %c0_i32_1 = arith.constant 0 : i32
    return %c0_i32, %c0_i32_0 : i32, i32
  }
  func.func @transform_3(%arg0: i32) -> (i32, i32, i32) {
    %c0_i32 = arith.constant 0 : i32
    %c0_i32_0 = arith.constant 0 : i32
    %c0_i32_1 = arith.constant 0 : i32
    return %arg0, %c0_i32, %c0_i32_0 : i32, i32, i32
  }
  func.func @transform_4(%arg0: i32) -> (i32, i32, i32) {
    %c0_i32 = arith.constant 0 : i32
    %c0_i32_0 = arith.constant 0 : i32
    %c0_i32_1 = arith.constant 0 : i32
    return %arg0, %c0_i32, %c0_i32_0 : i32, i32, i32
  }
  func.func @transform_5(%arg0: i32) -> (i32, i32, i32) {
    %c0_i32 = arith.constant 0 : i32
    %c0_i32_0 = arith.constant 0 : i32
    %c0_i32_1 = arith.constant 0 : i32
    return %arg0, %c0_i32, %c0_i32_0 : i32, i32, i32
  }
  func.func @transform_6(%arg0: i32) -> (i32, i32, i32) {
    %c0_i32 = arith.constant 0 : i32
    %c0_i32_0 = arith.constant 0 : i32
    %c0_i32_1 = arith.constant 0 : i32
    return %arg0, %c0_i32, %c0_i32_0 : i32, i32, i32
  }
  func.func @transform_7(%arg0: i32) -> (i32, i32, i32) {
    %c0_i32 = arith.constant 0 : i32
    %c0_i32_0 = arith.constant 0 : i32
    %c0_i32_1 = arith.constant 0 : i32
    return %arg0, %c0_i32, %c0_i32_0 : i32, i32, i32
  }
  func.func @transform_8(%arg0: i32) -> (i32, i32, i32) {
    %c0_i32 = arith.constant 0 : i32
    %c0_i32_0 = arith.constant 0 : i32
    %c0_i32_1 = arith.constant 0 : i32
    return %arg0, %c0_i32, %c0_i32_0 : i32, i32, i32
  }
  func.func @transform_9(%arg0: i32) -> (i32, i32, i32) {
    %c0_i32 = arith.constant 0 : i32
    %c0_i32_0 = arith.constant 0 : i32
    %c0_i32_1 = arith.constant 0 : i32
    return %arg0, %c0_i32, %c0_i32_0 : i32, i32, i32
  }
  func.func @transform_10(%arg0: i32) -> (i32, i32, i32) {
    %c0_i32 = arith.constant 0 : i32
    %c0_i32_0 = arith.constant 0 : i32
    %c0_i32_1 = arith.constant 0 : i32
    return %arg0, %c0_i32, %c0_i32_0 : i32, i32, i32
  }
  func.func @transform_11(%arg0: i32) -> (i32, i32, i32) {
    %c0_i32 = arith.constant 0 : i32
    %c0_i32_0 = arith.constant 0 : i32
    %c0_i32_1 = arith.constant 0 : i32
    return %arg0, %c0_i32, %c0_i32_0 : i32, i32, i32
  }
  func.func @transform_12(%arg0: i32) -> (i32, i32, i32) {
    %c0_i32 = arith.constant 0 : i32
    %c0_i32_0 = arith.constant 0 : i32
    %c0_i32_1 = arith.constant 0 : i32
    return %arg0, %c0_i32, %c0_i32_0 : i32, i32, i32
  }
  func.func @transform_13(%arg0: i32) -> (i32, i32, i32) {
    %c0_i32 = arith.constant 0 : i32
    %c0_i32_0 = arith.constant 0 : i32
    %c0_i32_1 = arith.constant 0 : i32
    return %arg0, %c0_i32, %c0_i32_0 : i32, i32, i32
  }
  func.func @transform_14(%arg0: i32) -> (i32, i32, i32) {
    %c0_i32 = arith.constant 0 : i32
    %c0_i32_0 = arith.constant 0 : i32
    %c0_i32_1 = arith.constant 0 : i32
    return %arg0, %c0_i32, %c0_i32_0 : i32, i32, i32
  }
  func.func @transform_15(%arg0: i32) -> (i32, i32) {
    %c0_i32 = arith.constant 0 : i32
    %c0_i32_0 = arith.constant 0 : i32
    %c0_i32_1 = arith.constant 0 : i32
    return %c0_i32, %c0_i32_0 : i32, i32
  }
  func.func @transform_16(%arg0: i32) -> (i32, i32) {
    %c0_i32 = arith.constant 0 : i32
    %c0_i32_0 = arith.constant 0 : i32
    %c0_i32_1 = arith.constant 0 : i32
    return %c0_i32, %c0_i32_0 : i32, i32
  }
  func.func @transform_17(%arg0: i32) -> (i32, i32) {
    %c0_i32 = arith.constant 0 : i32
    %c0_i32_0 = arith.constant 0 : i32
    %c0_i32_1 = arith.constant 0 : i32
    return %c0_i32, %c0_i32_0 : i32, i32
  }
  func.func @transform_18(%arg0: i32) -> (i32, i32) {
    %c0_i32 = arith.constant 0 : i32
    %c0_i32_0 = arith.constant 0 : i32
    %c0_i32_1 = arith.constant 0 : i32
    return %c0_i32, %c0_i32_0 : i32, i32
  }
  func.func @transform_19(%arg0: i32) -> (i32, i32) {
    %c0_i32 = arith.constant 0 : i32
    %c0_i32_0 = arith.constant 0 : i32
    %c0_i32_1 = arith.constant 0 : i32
    return %c0_i32, %c0_i32_0 : i32, i32
  }
  func.func @transform_20(%arg0: i32) -> (i32, i32) {
    %c0_i32 = arith.constant 0 : i32
    %c0_i32_0 = arith.constant 0 : i32
    %c0_i32_1 = arith.constant 0 : i32
    return %c0_i32, %c0_i32_0 : i32, i32
  }
  func.func @transform_21(%arg0: i32) -> (i32, i32) {
    %c0_i32 = arith.constant 0 : i32
    %c0_i32_0 = arith.constant 0 : i32
    %c0_i32_1 = arith.constant 0 : i32
    return %c0_i32, %c0_i32_0 : i32, i32
  }
}

</mosaic_0001>

<bundles_post_ra>
// kernel: forward.20
= control target key start
LH: loop header
LB: loop body
LE: loop exit
PB: predicated region body
PF: predicated region fallthrough
CT: control target
= control target key end

     0   :  { %vm544_vm0 = vcmask 1040384   ;;  %vm545_vm1 = vcmask 1041408   ;;  %v1496_v2 = vmov 65535   ;;  %vm447_vm2 = vcmask 154624   ;;  %s2336_s1 = inlined_call_operand.vmem [shape: bf16[147,8], index: 1, kind: input, shape index: {}]   ;;  %s2337_s0 = inlined_call_operand.vmem [shape: bf16[512,147], index: 0, kind: input, shape index: {}]   ;;  %s2338_s2 = inlined_call_operand.vmem [shape: f32[1,8], index: 2, kind: input, shape index: {}]   ;;  %s2339_s3 = inlined_call_operand.vmem [shape: bf16[512,8], index: 3, kind: output, shape index: {}]  }
   0x1   :  { %v1481_v0 = vld [vmem:[%s2336_s1 + $0x38] sm:$0xff]  ;;  %v97_v1 = vld [vmem:[%s2336_s1 + $0x48] sm:$0x3]  ;;  %v546_v3 = vsel %vm544_vm0, 4294967295, %v1496_v2  ;;  %v1480_v5 = vld [vmem:[%s2336_s1 + $0x30] sm:$0xff]  ;;  %vm1017_vm3 = vcmask 60416  }
   0x2   :  { %v427_v4 = vunpack.c.l.b16 %v97_v1  ;;  %551 = vmatpush.bf16.msra.mxu0 %v1481_v0  ;;  %1483 = vmatpush.bf16.msra.mxu2 %v1481_v0  ;;  %v547_v6 = vsel %vm545_vm1, %v546_v3, 0  ;;  %v1479_v9 = vld [vmem:[%s2336_s1 + $0x28] sm:$0xff]  ;;  %v1482_v10 = vld [vmem:[%s2336_s1 + $0x40] sm:$0xff]  ;;  %v1444_v13 = vld [vmem:[%s2337_s0 + $0x114] sm:$0xf] }
   0x3   :  { %v1410_v11 = vld [vmem:[%s2337_s0 + $0x4] sm:$0xf]  ;;  %v1090_v12 = vld [vmem:[%s2337_s0 + $0x8] sm:$0xf0]  ;;  %v1226_v14 = vld [vmem:[%s2337_s0 + $0x118] sm:$0xf0] }
   0x4   :  { %v437_v7 = vpack.c.b16 %v427_v4, %v427_v4  ;;  %v1093_v15 = vor.u32 %v1410_v11, %v1090_v12  ;;  %v1478_v16 = vld [vmem:[%s2336_s1 + $0x20] sm:$0xff]  ;;  %v1229_v17 = vor.u32 %v1444_v13, %v1226_v14  ;;  %v1477_v18 = vld [vmem:[%s2336_s1 + $0x18] sm:$0xff]  ;;  %v1476_v19 = vld [vmem:[%s2336_s1 + $0x10] sm:$0xff] }
   0x5   :  { %v1475_v20 = vld [vmem:[%s2336_s1 + $0x8] sm:$0xff]  ;;  %v1412_v21 = vld [vmem:[%s2337_s0 + $0x14] sm:$0xf]  ;;  %v1098_v22 = vld [vmem:[%s2337_s0 + $0x18] sm:$0xf0] }
   0x6   :  { %v549_v8 = vand.u32 %v547_v6, %v437_v7  ;;  %552 = vmatpush.bf16.msra.mxu0 %v1480_v5  ;;  %1484 = vmatpush.bf16.msra.mxu2 %v1480_v5  ;;  %v1446_v23 = vld [vmem:[%s2337_s0 + $0x124] sm:$0xf]  ;;  %v1234_v24 = vld [vmem:[%s2337_s0 + $0x128] sm:$0xf0]  ;;  %v1101_v25 = vor.u32 %v1412_v21, %v1098_v22  ;;  %v1088_v27 = vld [vmem:[%s2337_s0] sm:$0xf] }
   0x7   :  { %v1474_v26 = vld [vmem:[%s2336_s1] sm:$0xff]  ;;  %v1411_v28 = vld [vmem:[%s2337_s0 + $0x4] sm:$0xf0]  ;;  %v1237_v31 = vor.u32 %v1446_v23, %v1234_v24  ;;  %v1106_v35 = vld [vmem:[%s2337_s0 + $0x28] sm:$0xf0] }
   0x8   :  { %726 = vmatpush.bf16.msra.mxu1 %v549_v8  ;;  %1491 = vmatpush.bf16.msra.mxu3 %v549_v8  ;;  %v1216_v29 = vld [vmem:[%s2337_s0 + $0x100] sm:$0xf]  ;;  %v1443_v30 = vld [vmem:[%s2337_s0 + $0x104] sm:$0xf0]  ;;  %v1089_v32 = vor.u32 %v1411_v28, %v1088_v27  ;;  %v1414_v34 = vld [vmem:[%s2337_s0 + $0x24] sm:$0xf] }
   0x9   :  { %v1217_v33 = vor.u32 %v1443_v30, %v1216_v29  ;;  %v1448_v36 = vld [vmem:[%s2337_s0 + $0x134] sm:$0xf]  ;;  %v1242_v37 = vld [vmem:[%s2337_s0 + $0x138] sm:$0xf0]  ;;  %v1109_v38 = vor.u32 %v1414_v34, %v1106_v35  ;;  %v1096_v39 = vld [vmem:[%s2337_s0 + $0x10] sm:$0xf] }
   0xa   :  { %553 = vmatpush.bf16.msra.mxu0 %v1479_v9  ;;  %1485 = vmatpush.bf16.msra.mxu2 %v1479_v9  ;;  %v1413_v40 = vld [vmem:[%s2337_s0 + $0x14] sm:$0xf0]  ;;  %v1224_v41 = vld [vmem:[%s2337_s0 + $0x110] sm:$0xf]  ;;  %v1245_v43 = vor.u32 %v1448_v36, %v1242_v37  ;;  %v1416_v46 = vld [vmem:[%s2337_s0 + $0x34] sm:$0xf] }
   0xb   :  { %v1445_v42 = vld [vmem:[%s2337_s0 + $0x114] sm:$0xf0]  ;;  %v1097_v44 = vor.u32 %v1413_v40, %v1096_v39  ;;  %v1114_v47 = vld [vmem:[%s2337_s0 + $0x38] sm:$0xf0]  ;;  %v1450_v48 = vld [vmem:[%s2337_s0 + $0x144] sm:$0xf] }
   0xc   :  { %727 = vmatpush.bf16.msra.mxu1 %v1482_v10  ;;  %1492 = vmatpush.bf16.msra.mxu3 %v1482_v10  ;;  %v1225_v45 = vor.u32 %v1445_v42, %v1224_v41  ;;  %v1250_v49 = vld [vmem:[%s2337_s0 + $0x148] sm:$0xf0]  ;;  %v1117_v50 = vor.u32 %v1416_v46, %v1114_v47  ;;  %v1104_v51 = vld [vmem:[%s2337_s0 + $0x20] sm:$0xf]  ;;  %v1415_v52 = vld [vmem:[%s2337_s0 + $0x24] sm:$0xf0] }
   0xd   :  { %v1232_v53 = vld [vmem:[%s2337_s0 + $0x120] sm:$0xf]  ;;  %v1447_v54 = vld [vmem:[%s2337_s0 + $0x124] sm:$0xf0]  ;;  %v1253_v55 = vor.u32 %v1450_v48, %v1250_v49  ;;  %v1105_v56 = vor.u32 %v1415_v52, %v1104_v51  ;;  %v1418_v58 = vld [vmem:[%s2337_s0 + $0x44] sm:$0xf] }
   0xe   :  { %554 = vmatpush.bf16.msra.mxu0 %v1478_v16  ;;  %1486 = vmatpush.bf16.msra.mxu2 %v1478_v16  ;;  %v1233_v57 = vor.u32 %v1447_v54, %v1232_v53  ;;  %v1122_v59 = vld [vmem:[%s2337_s0 + $0x48] sm:$0xf0]  ;;  %v1452_v60 = vld [vmem:[%s2337_s0 + $0x154] sm:$0xf]  ;;  %v1258_v61 = vld [vmem:[%s2337_s0 + $0x158] sm:$0xf0] }
   0xf   :  { %1378 = vmatmul.msk.bf16.vlgmr.msra.gmra.mxu1 %vm447_vm2, %v1093_v15  ;;  %1395 = vmatmul.msk.bf16.vlgmr.msra.gmra.mxu3 %vm447_vm2, %v1229_v17  ;;  %v1125_v62 = vor.u32 %v1418_v58, %v1122_v59  ;;  %v1112_v63 = vld [vmem:[%s2337_s0 + $0x30] sm:$0xf]  ;;  %v1417_v0 = vld [vmem:[%s2337_s0 + $0x34] sm:$0xf0]  ;;  %v1261_v3 = vor.u32 %v1452_v60, %v1258_v61  ;;  %v1420_v6 = vld [vmem:[%s2337_s0 + $0x54] sm:$0xf] }
  0x10   :  { %v1240_v1 = vld [vmem:[%s2337_s0 + $0x130] sm:$0xf]  ;;  %v1449_v2 = vld [vmem:[%s2337_s0 + $0x134] sm:$0xf0]  ;;  %v1113_v4 = vor.u32 %v1417_v0, %v1112_v63  ;;  %v1130_v7 = vld [vmem:[%s2337_s0 + $0x58] sm:$0xf0] }
  0x11   :  { %v1241_v5 = vor.u32 %v1449_v2, %v1240_v1  ;;  %v1454_v8 = vld [vmem:[%s2337_s0 + $0x164] sm:$0xf]  ;;  %v1266_v9 = vld [vmem:[%s2337_s0 + $0x168] sm:$0xf0]  ;;  %v1133_v10 = vor.u32 %v1420_v6, %v1130_v7  ;;  %v1120_v11 = vld [vmem:[%s2337_s0 + $0x40] sm:$0xf] }
  0x12   :  { %555 = vmatpush.bf16.msra.mxu0 %v1477_v18  ;;  %1487 = vmatpush.bf16.msra.mxu2 %v1477_v18  ;;  %v1419_v12 = vld [vmem:[%s2337_s0 + $0x44] sm:$0xf0]  ;;  %v1248_v13 = vld [vmem:[%s2337_s0 + $0x140] sm:$0xf]  ;;  %v1269_v15 = vor.u32 %v1454_v8, %v1266_v9  ;;  %v1422_v18 = vld [vmem:[%s2337_s0 + $0x64] sm:$0xf] }
  0x13   :  { %v1451_v14 = vld [vmem:[%s2337_s0 + $0x144] sm:$0xf0]  ;;  %v1121_v16 = vor.u32 %v1419_v12, %v1120_v11  ;;  %v1274_v21 = vld [vmem:[%s2337_s0 + $0x178] sm:$0xf0]  ;;  %v1128_v23 = vld [vmem:[%s2337_s0 + $0x50] sm:$0xf] }
  0x14   :  { %v1249_v17 = vor.u32 %v1451_v14, %v1248_v13  ;;  %v1421_v24 = vld [vmem:[%s2337_s0 + $0x54] sm:$0xf0]  ;;  %v1424_v30 = vld [vmem:[%s2337_s0 + $0x74] sm:$0xf]  ;;  %v1136_v35 = vld [vmem:[%s2337_s0 + $0x60] sm:$0xf] }
  0x15   :  { %v1129_v28 = vor.u32 %v1421_v24, %v1128_v23  ;;  %v1423_v36 = vld [vmem:[%s2337_s0 + $0x64] sm:$0xf0]  ;;  %v1264_v37 = vld [vmem:[%s2337_s0 + $0x160] sm:$0xf]  ;;  %v1426_v42 = vld [vmem:[%s2337_s0 + $0x84] sm:$0xf] }
  0x16   :  { %556 = vmatpush.bf16.msra.mxu0 %v1476_v19  ;;  %1488 = vmatpush.bf16.msra.mxu2 %v1476_v19  ;;  %v1138_v19 = vld [vmem:[%s2337_s0 + $0x68] sm:$0xf0]  ;;  %v1137_v40 = vor.u32 %v1423_v36, %v1136_v35  ;;  %v1144_v47 = vld [vmem:[%s2337_s0 + $0x70] sm:$0xf]  ;;  %v1425_v48 = vld [vmem:[%s2337_s0 + $0x74] sm:$0xf0] }
  0x17   :  { %v1141_v22 = vor.u32 %v1422_v18, %v1138_v19  ;;  %v1457_v51 = vld [vmem:[%s2337_s0 + $0x174] sm:$0xf0]  ;;  %v1145_v53 = vor.u32 %v1425_v48, %v1144_v47  ;;  %v1162_v58 = vld [vmem:[%s2337_s0 + $0x98] sm:$0xf0]  ;;  %v1462_v59 = vld [vmem:[%s2337_s0 + $0x1a4] sm:$0xf] }
  0x18   :  { %v1298_v60 = vld [vmem:[%s2337_s0 + $0x1a8] sm:$0xf0]  ;;  %v1427_v63 = vld [vmem:[%s2337_s0 + $0x84] sm:$0xf0]  ;;  %v1794_v2 = vld [vmem:[%s2338_s2] ss:$0 sm:$0xff] }
  0x19   :  { %v1430_v18 = vld [vmem:[%s2337_s0 + $0xa4] sm:$0xf]  ;;  %v1170_v19 = vld [vmem:[%s2337_s0 + $0xa8] sm:$0xf0]  ;;  %v1160_v24 = vld [vmem:[%s2337_s0 + $0x90] sm:$0xf] }
  0x1a   :  { %557 = vmatpush.bf16.msra.mxu0 %v1475_v20  ;;  %1489 = vmatpush.bf16.msra.mxu2 %v1475_v20  ;;  %v1456_v20 = vld [vmem:[%s2337_s0 + $0x174] sm:$0xf]  ;;  %v1173_v23 = vor.u32 %v1430_v18, %v1170_v19  ;;  %v1178_v48 = vld [vmem:[%s2337_s0 + $0xb8] sm:$0xf0] }
  0x1b   :  { %v1277_v27 = vor.u32 %v1456_v20, %v1274_v21  ;;  %v1464_v21 = vld [vmem:[%s2337_s0 + $0x1b4] sm:$0xf] }
  0x1c   :  { %v1432_v47 = vld [vmem:[%s2337_s0 + $0xb4] sm:$0xf] }
  0x1e   :  { %558 = vmatpush.bf16.msra.mxu0 %v1474_v26  ;;  %1490 = vmatpush.bf16.msra.mxu2 %v1474_v26  ;;  %v1453_v26 = vld [vmem:[%s2337_s0 + $0x154] sm:$0xf0] }
  0x1f   :  { %1379 = vmatmul.msk.bf16.gmra.mxu1 %vm447_vm2, %v1101_v25  ;;  %1396 = vmatmul.msk.bf16.gmra.mxu3 %vm447_vm2, %v1237_v31  ;;  %v1256_v25 = vld [vmem:[%s2337_s0 + $0x150] sm:$0xf]  ;;  %v1146_v31 = vld [vmem:[%s2337_s0 + $0x78] sm:$0xf0] }
  0x20   :  { %v1257_v29 = vor.u32 %v1453_v26, %v1256_v25  ;;  %v1149_v34 = vor.u32 %v1424_v30, %v1146_v31  ;;  %v1429_v25 = vld [vmem:[%s2337_s0 + $0x94] sm:$0xf0] }
  0x21   :  { %559 = vmatmul.bf16.vlgmr.msra.gmra.mxu0 %v1089_v32  ;;  %639 = vmatmul.bf16.vlgmr.msra.gmra.mxu2 %v1217_v33  ;;  %v1458_v32 = vld [vmem:[%s2337_s0 + $0x184] sm:$0xf]  ;;  %v1282_v33 = vld [vmem:[%s2337_s0 + $0x188] sm:$0xf0]  ;;  %v1461_v30 = vld [vmem:[%s2337_s0 + $0x194] sm:$0xf0] }
  0x22   :  { %v1285_v39 = vor.u32 %v1458_v32, %v1282_v33 }
  0x2f   :  { %1380 = vmatmul.msk.bf16.gmra.mxu1 %vm447_vm2, %v1109_v38  ;;  %1397 = vmatmul.msk.bf16.gmra.mxu3 %vm447_vm2, %v1245_v43  ;;  %v1455_v38 = vld [vmem:[%s2337_s0 + $0x164] sm:$0xf0]  ;;  %v1154_v43 = vld [vmem:[%s2337_s0 + $0x88] sm:$0xf0] }
  0x30   :  { %v1265_v41 = vor.u32 %v1455_v38, %v1264_v37  ;;  %v1157_v46 = vor.u32 %v1426_v42, %v1154_v43 }
  0x31   :  { %564 = vmatmul.bf16.gmra.mxu0 %v1097_v44  ;;  %644 = vmatmul.bf16.gmra.mxu2 %v1225_v45  ;;  %v1460_v44 = vld [vmem:[%s2337_s0 + $0x194] sm:$0xf]  ;;  %v1290_v45 = vld [vmem:[%s2337_s0 + $0x198] sm:$0xf0] }
  0x32   :  { %v1293_v52 = vor.u32 %v1460_v44, %v1290_v45 }
  0x3f   :  { %1381 = vmatmul.msk.bf16.gmra.mxu1 %vm447_vm2, %v1117_v50  ;;  %1398 = vmatmul.msk.bf16.gmra.mxu3 %vm447_vm2, %v1253_v55  ;;  %v1272_v50 = vld [vmem:[%s2337_s0 + $0x170] sm:$0xf] }
  0x40   :  { %v1273_v54 = vor.u32 %v1457_v51, %v1272_v50  ;;  %v1466_v51 = vld [vmem:[%s2337_s0 + $0x1c4] sm:$0xf] }
  0x41   :  { %569 = vmatmul.bf16.gmra.mxu0 %v1105_v56  ;;  %649 = vmatmul.bf16.gmra.mxu2 %v1233_v57  ;;  %v1428_v57 = vld [vmem:[%s2337_s0 + $0x94] sm:$0xf] }
  0x42   :  { %v1165_v61 = vor.u32 %v1428_v57, %v1162_v58  ;;  %v1431_v57 = vld [vmem:[%s2337_s0 + $0xa4] sm:$0xf0] }
  0x4f   :  { %1382 = vmatmul.msk.bf16.gmra.mxu1 %vm447_vm2, %v1125_v62  ;;  %1399 = vmatmul.msk.bf16.gmra.mxu3 %vm447_vm2, %v1261_v3  ;;  %v1152_v62 = vld [vmem:[%s2337_s0 + $0x80] sm:$0xf] }
  0x50   :  { %v1280_v3 = vld [vmem:[%s2337_s0 + $0x180] sm:$0xf]  ;;  %v1153_v6 = vor.u32 %v1427_v63, %v1152_v62 }
  0x51   :  { %574 = vmatmul.bf16.gmra.mxu0 %v1113_v4  ;;  %654 = vmatmul.bf16.gmra.mxu2 %v1241_v5  ;;  %v1459_v4 = vld [vmem:[%s2337_s0 + $0x184] sm:$0xf0]  ;;  %v1301_v5 = vor.u32 %v1462_v59, %v1298_v60  ;;  %v1296_v60 = vld [vmem:[%s2337_s0 + $0x1a0] sm:$0xf] }
  0x52   :  { %v1281_v8 = vor.u32 %v1459_v4, %v1280_v3 }
  0x5f   :  { %1383 = vmatmul.msk.bf16.gmra.mxu1 %vm447_vm2, %v1133_v10  ;;  %1400 = vmatmul.msk.bf16.gmra.mxu3 %vm447_vm2, %v1269_v15 }
  0x61   :  { %579 = vmatmul.bf16.gmra.mxu0 %v1121_v16  ;;  %659 = vmatmul.bf16.gmra.mxu2 %v1249_v17 }
  0x6f   :  { %1384 = vmatmul.msk.bf16.gmra.mxu1 %vm447_vm2, %v1141_v22  ;;  %1401 = vmatmul.msk.bf16.gmra.mxu3 %vm447_vm2, %v1277_v27  ;;  %v1306_v22 = vld [vmem:[%s2337_s0 + $0x1b8] sm:$0xf0] }
  0x70   :  { %v1309_v31 = vor.u32 %v1464_v21, %v1306_v22  ;;  %v1434_v22 = vld [vmem:[%s2337_s0 + $0xc4] sm:$0xf] }
  0x71   :  { %584 = vmatmul.bf16.gmra.mxu0 %v1129_v28  ;;  %664 = vmatmul.bf16.gmra.mxu2 %v1257_v29  ;;  %v1288_v29 = vld [vmem:[%s2337_s0 + $0x190] sm:$0xf] }
  0x72   :  { %v1289_v36 = vor.u32 %v1461_v30, %v1288_v29 }
  0x7f   :  { %1385 = vmatmul.msk.bf16.gmra.mxu1 %vm447_vm2, %v1149_v34  ;;  %1402 = vmatmul.msk.bf16.gmra.mxu3 %vm447_vm2, %v1285_v39  ;;  %v1161_v34 = vor.u32 %v1429_v25, %v1160_v24 }
  0x81   :  { %589 = vmatmul.bf16.gmra.mxu0 %v1137_v40  ;;  %669 = vmatmul.bf16.gmra.mxu2 %v1265_v41 }
  0x8c   :  { %v729_v49 = vpop.f32.mrf.mxu1 }
  0x8f   :  { %1386 = vmatmul.msk.bf16.gmra.mxu1 %vm447_vm2, %v1157_v46  ;;  %1403 = vmatmul.msk.bf16.gmra.mxu3 %vm447_vm2, %v1293_v52  ;;  %v1314_v52 = vld [vmem:[%s2337_s0 + $0x1c8] sm:$0xf0] }
  0x90   :  { %v1317_v62 = vor.u32 %v1466_v51, %v1314_v52 }
  0x91   :  { %594 = vmatmul.bf16.gmra.mxu0 %v1145_v53  ;;  %674 = vmatmul.bf16.gmra.mxu2 %v1273_v54  ;;  %v1181_v54 = vor.u32 %v1432_v47, %v1178_v48 }
  0x92   :  { %v1769_v55 = vpop.f32.mrf.mxu3 }
  0x94   :  { %v731_v56 = vpop.f32.mrf.mxu1 }
  0x9a   :  { %v1789_v0 = vpop.f32.mrf.mxu3 }
  0x9c   :  { %v734_v1 = vpop.f32.mrf.mxu1 }
  0x9e   :  { %v560_v7 = vpop.f32.mrf.mxu0 }
  0x9f   :  { %1387 = vmatmul.msk.bf16.gmra.mxu1 %vm447_vm2, %v1165_v61  ;;  %v561_v9 = vadd.f32 %v1794_v2, %v560_v7  ;;  %1404 = vmatmul.msk.bf16.gmra.mxu3 %vm447_vm2, %v1301_v5  ;;  %v1463_v61 = vld [vmem:[%s2337_s0 + $0x1a4] sm:$0xf0] }
  0xa0   :  { %v1297_v7 = vor.u32 %v1463_v61, %v1296_v60  ;;  %v1194_v61 = vld [vmem:[%s2337_s0 + $0xd8] sm:$0xf0] }
  0xa1   :  { %v730_v10 = vadd.f32 %v729_v49, %v561_v9  ;;  %599 = vmatmul.bf16.gmra.mxu0 %v1153_v6  ;;  %679 = vmatmul.bf16.gmra.mxu2 %v1281_v8 }
  0xa2   :  { %v1805_v11 = vpop.f32.mrf.mxu3 }
  0xa3   :  { %v889_v12 = vmax.f32 %v730_v10, 0.0 }
  0xa4   :  { %v736_v13 = vpop.f32.mrf.mxu1  ;;  %v1807_v15 = vpop.f32.mrf.mxu2 }
  0xa5   :  { %v953_v14 = vpack.c.bf16 %v889_v12, %v889_v12 }
  0xa6   :  { %v562_v16 = vpop.f32.mrf.mxu0 }
  0xa7   :  { %1018 = vst.msk [vmem:[%s2339_s3] sm:$0xf] %vm1017_vm3, %v953_v14  ;;  %v563_v17 = vadd.f32 %v1794_v2, %v562_v16 }
  0xa9   :  { %v732_v20 = vadd.f32 %v731_v56, %v563_v17  ;;  %v1168_v56 = vld [vmem:[%s2337_s0 + $0xa0] sm:$0xf] }
  0xaa   :  { %v1832_v26 = vpop.f32.mrf.mxu3  ;;  %v1169_v4 = vor.u32 %v1431_v57, %v1168_v56 }
  0xab   :  { %v890_v27 = vmax.f32 %v732_v20, 0.0 }
  0xac   :  { %v739_v28 = vpop.f32.mrf.mxu1  ;;  %v1840_v33 = vpop.f32.mrf.mxu2 }
  0xad   :  { %v954_v32 = vpack.c.bf16 %v890_v27, %v890_v27  ;;  %v1468_v27 = vld [vmem:[%s2337_s0 + $0x1d4] sm:$0xf] }
  0xae   :  { %v565_v35 = vpop.f32.mrf.mxu0 }
  0xaf   :  { %1388 = vmatmul.msk.bf16.gmra.mxu1 %vm447_vm2, %v1173_v23  ;;  %1019 = vst.msk [vmem:[%s2339_s3 + $0x4] sm:$0xf] %vm1017_vm3, %v954_v32  ;;  %v566_v37 = vadd.f32 %v1794_v2, %v565_v35  ;;  %1405 = vmatmul.msk.bf16.gmra.mxu3 %vm447_vm2, %v1309_v31  ;;  %v1186_v23 = vld [vmem:[%s2337_s0 + $0xc8] sm:$0xf0]  ;;  %v1176_v31 = vld [vmem:[%s2337_s0 + $0xb0] sm:$0xf] }
  0xb0   :  { %v1189_v30 = vor.u32 %v1434_v22, %v1186_v23  ;;  %v1433_v32 = vld [vmem:[%s2337_s0 + $0xb4] sm:$0xf0] }
  0xb1   :  { %v735_v38 = vadd.f32 %v734_v1, %v566_v37  ;;  %604 = vmatmul.bf16.gmra.mxu0 %v1161_v34  ;;  %684 = vmatmul.bf16.gmra.mxu2 %v1289_v36  ;;  %v1304_v36 = vld [vmem:[%s2337_s0 + $0x1b0] sm:$0xf]  ;;  %v1465_v37 = vld [vmem:[%s2337_s0 + $0x1b4] sm:$0xf0] }
  0xb2   :  { %v1849_v39 = vpop.f32.mrf.mxu3 }
  0xb3   :  { %v891_v40 = vmax.f32 %v735_v38, 0.0 }
  0xb4   :  { %v741_v41 = vpop.f32.mrf.mxu1  ;;  %v645_v43 = vpop.f32.mrf.mxu2 }
  0xb5   :  { %v955_v42 = vpack.c.bf16 %v891_v40, %v891_v40  ;;  %v646_v44 = vadd.f32 %v1794_v2, %v645_v43  ;;  %v1177_v43 = vor.u32 %v1433_v32, %v1176_v31 }
  0xb6   :  { %v567_v45 = vpop.f32.mrf.mxu0 }
  0xb7   :  { %1020 = vst.msk [vmem:[%s2339_s3 + $0x8] sm:$0xf] %vm1017_vm3, %v955_v42  ;;  %v568_v46 = vadd.f32 %v1794_v2, %v567_v45  ;;  %v815_v49 = vadd.f32 %v1769_v55, %v646_v44 }
  0xb9   :  { %v737_v50 = vadd.f32 %v736_v13, %v568_v46  ;;  %v923_v53 = vmax.f32 %v815_v49, 0.0  ;;  %v1305_v46 = vor.u32 %v1465_v37, %v1304_v36  ;;  %v1202_v37 = vld [vmem:[%s2337_s0 + $0xe8] sm:$0xf0] }
  0xba   :  { %v1876_v55 = vpop.f32.mrf.mxu3 }
  0xbb   :  { %v892_v58 = vmax.f32 %v737_v50, 0.0  ;;  %v987_v63 = vpack.c.bf16 %v923_v53, %v923_v53 }
  0xbc   :  { %v744_v59 = vpop.f32.mrf.mxu1  ;;  %v647_v3 = vpop.f32.mrf.mxu2 }
  0xbd   :  { %v956_v1 = vpack.c.bf16 %v892_v58, %v892_v58  ;;  %1052 = vst.msk [vmem:[%s2339_s3 + $0x88] sm:$0xf] %vm1017_vm3, %v987_v63  ;;  %v648_v5 = vadd.f32 %v1794_v2, %v647_v3  ;;  %v1330_v3 = vld [vmem:[%s2337_s0 + $0x1e8] sm:$0xf0] }
  0xbe   :  { %v570_v6 = vpop.f32.mrf.mxu0 }
  0xbf   :  { %1389 = vmatmul.msk.bf16.gmra.mxu1 %vm447_vm2, %v1181_v54  ;;  %1021 = vst.msk [vmem:[%s2339_s3 + $0xc] sm:$0xf] %vm1017_vm3, %v956_v1  ;;  %v571_v8 = vadd.f32 %v1794_v2, %v570_v6  ;;  %1406 = vmatmul.msk.bf16.gmra.mxu3 %vm447_vm2, %v1317_v62  ;;  %v817_v9 = vadd.f32 %v1789_v0, %v648_v5  ;;  %v1470_v1 = vld [vmem:[%s2337_s0 + $0x1e4] sm:$0xf]  ;;  %v1184_v6 = vld [vmem:[%s2337_s0 + $0xc0] sm:$0xf] }
  0xc1   :  { %v740_v10 = vadd.f32 %v739_v28, %v571_v8  ;;  %609 = vmatmul.bf16.gmra.mxu0 %v1169_v4  ;;  %v924_v12 = vmax.f32 %v817_v9, 0.0  ;;  %689 = vmatmul.bf16.gmra.mxu2 %v1297_v7  ;;  %v1322_v28 = vld [vmem:[%s2337_s0 + $0x1d8] sm:$0xf0]  ;;  %v1435_v7 = vld [vmem:[%s2337_s0 + $0xc4] sm:$0xf0] }
  0xc2   :  { %v1897_v13 = vpop.f32.mrf.mxu3  ;;  %v1325_v38 = vor.u32 %v1468_v27, %v1322_v28 }
  0xc3   :  { %v893_v14 = vmax.f32 %v740_v10, 0.0  ;;  %v988_v17 = vpack.c.bf16 %v924_v12, %v924_v12  ;;  %v1312_v10 = vld [vmem:[%s2337_s0 + $0x1c0] sm:$0xf]  ;;  %v1467_v12 = vld [vmem:[%s2337_s0 + $0x1c4] sm:$0xf0] }
  0xc4   :  { %v746_v16 = vpop.f32.mrf.mxu1  ;;  %v650_v19 = vpop.f32.mrf.mxu2 }
  0xc5   :  { %v957_v18 = vpack.c.bf16 %v893_v14, %v893_v14  ;;  %1053 = vst.msk [vmem:[%s2339_s3 + $0x8c] sm:$0xf] %vm1017_vm3, %v988_v17  ;;  %v651_v20 = vadd.f32 %v1794_v2, %v650_v19  ;;  %v1333_v14 = vor.u32 %v1470_v1, %v1330_v3  ;;  %v1185_v19 = vor.u32 %v1435_v7, %v1184_v6 }
  0xc6   :  { %v572_v21 = vpop.f32.mrf.mxu0 }
  0xc7   :  { %1022 = vst.msk [vmem:[%s2339_s3 + $0x10] sm:$0xf] %vm1017_vm3, %v957_v18  ;;  %v573_v0 = vadd.f32 %v1794_v2, %v572_v21  ;;  %v820_v24 = vadd.f32 %v1805_v11, %v651_v20 }
  0xc9   :  { %v742_v25 = vadd.f32 %v741_v41, %v573_v0  ;;  %v925_v29 = vmax.f32 %v820_v24, 0.0  ;;  %v1313_v0 = vor.u32 %v1467_v12, %v1312_v10  ;;  %v1210_v12 = vld [vmem:[%s2337_s0 + $0xf8] sm:$0xf0] }
  0xca   :  { %v1928_v11 = vpop.f32.mrf.mxu3 }
  0xcb   :  { %v894_v34 = vmax.f32 %v742_v25, 0.0  ;;  %v989_v40 = vpack.c.bf16 %v925_v29, %v925_v29 }
  0xcc   :  { %v749_v35 = vpop.f32.mrf.mxu1  ;;  %v652_v42 = vpop.f32.mrf.mxu2 }
  0xcd   :  { %v958_v41 = vpack.c.bf16 %v894_v34, %v894_v34  ;;  %1054 = vst.msk [vmem:[%s2339_s3 + $0x90] sm:$0xf] %vm1017_vm3, %v989_v40  ;;  %v653_v44 = vadd.f32 %v1794_v2, %v652_v42  ;;  %v1338_v42 = vld [vmem:[%s2337_s0 + $0x1f8] sm:$0xf0] }
  0xce   :  { %v575_v45 = vpop.f32.mrf.mxu0 }
  0xcf   :  { %1390 = vmatmul.msk.bf16.gmra.mxu1 %vm447_vm2, %v1189_v30  ;;  %1023 = vst.msk [vmem:[%s2339_s3 + $0x14] sm:$0xf] %vm1017_vm3, %v958_v41  ;;  %v576_v47 = vadd.f32 %v1794_v2, %v575_v45  ;;  %1407 = vmatmul.msk.bf16.gmra.mxu3 %vm447_vm2, %v1325_v38  ;;  %v822_v48 = vadd.f32 %v1832_v26, %v653_v44  ;;  %v1472_v41 = vld [vmem:[%s2337_s0 + $0x1f4] sm:$0xf]  ;;  %v1192_v45 = vld [vmem:[%s2337_s0 + $0xd0] sm:$0xf] }
  0xd1   :  { %v745_v49 = vadd.f32 %v744_v59, %v576_v47  ;;  %614 = vmatmul.bf16.gmra.mxu0 %v1177_v43  ;;  %v926_v50 = vmax.f32 %v822_v48, 0.0  ;;  %694 = vmatmul.bf16.gmra.mxu2 %v1305_v46  ;;  %v1436_v59 = vld [vmem:[%s2337_s0 + $0xd4] sm:$0xf]  ;;  %v1437_v46 = vld [vmem:[%s2337_s0 + $0xd4] sm:$0xf0] }
  0xd2   :  { %v1949_v51 = vpop.f32.mrf.mxu3  ;;  %v1197_v5 = vor.u32 %v1436_v59, %v1194_v61  ;;  %v1320_v48 = vld [vmem:[%s2337_s0 + $0x1d0] sm:$0xf] }
  0xd3   :  { %v895_v52 = vmax.f32 %v745_v49, 0.0  ;;  %v990_v54 = vpack.c.bf16 %v926_v50, %v926_v50  ;;  %v1469_v49 = vld [vmem:[%s2337_s0 + $0x1d4] sm:$0xf0] }
  0xd4   :  { %v751_v53 = vpop.f32.mrf.mxu1  ;;  %v655_v57 = vpop.f32.mrf.mxu2 }
  0xd5   :  { %v959_v56 = vpack.c.bf16 %v895_v52, %v895_v52  ;;  %1055 = vst.msk [vmem:[%s2339_s3 + $0x94] sm:$0xf] %vm1017_vm3, %v990_v54  ;;  %v656_v58 = vadd.f32 %v1794_v2, %v655_v57  ;;  %v1341_v52 = vor.u32 %v1472_v41, %v1338_v42  ;;  %v1193_v57 = vor.u32 %v1437_v46, %v1192_v45  ;;  %v1442_v45 = vld [vmem:[%s2337_s0 + $0x104] sm:$0xf]  ;;  %v1218_v46 = vld [vmem:[%s2337_s0 + $0x108] sm:$0xf0] }
  0xd6   :  { %v577_v60 = vpop.f32.mrf.mxu0 }
  0xd7   :  { %1024 = vst.msk [vmem:[%s2339_s3 + $0x18] sm:$0xf] %vm1017_vm3, %v959_v56  ;;  %v578_v26 = vadd.f32 %v1794_v2, %v577_v60  ;;  %v825_v62 = vadd.f32 %v1849_v39, %v656_v58 }
  0xd9   :  { %v747_v63 = vadd.f32 %v746_v16, %v578_v26  ;;  %v927_v4 = vmax.f32 %v825_v62, 0.0  ;;  %v1321_v26 = vor.u32 %v1469_v49, %v1320_v48 }
  0xda   :  { %v1980_v39 = vpop.f32.mrf.mxu3 }
  0xdb   :  { %v896_v8 = vmax.f32 %v747_v63, 0.0  ;;  %v991_v16 = vpack.c.bf16 %v927_v4, %v927_v4 }
  0xdc   :  { %v754_v9 = vpop.f32.mrf.mxu1  ;;  %v657_v18 = vpop.f32.mrf.mxu2 }
  0xdd   :  { %v960_v17 = vpack.c.bf16 %v896_v8, %v896_v8  ;;  %1056 = vst.msk [vmem:[%s2339_s3 + $0x98] sm:$0xf] %vm1017_vm3, %v991_v16  ;;  %v658_v20 = vadd.f32 %v1794_v2, %v657_v18 }
  0xde   :  { %v580_v21 = vpop.f32.mrf.mxu0 }
  0xdf   :  { %1391 = vmatmul.msk.bf16.gmra.mxu1 %vm447_vm2, %v1197_v5  ;;  %1025 = vst.msk [vmem:[%s2339_s3 + $0x1c] sm:$0xf] %vm1017_vm3, %v960_v17  ;;  %v581_v22 = vadd.f32 %v1794_v2, %v580_v21  ;;  %1408 = vmatmul.msk.bf16.gmra.mxu3 %vm447_vm2, %v1333_v14  ;;  %v827_v23 = vadd.f32 %v1876_v55, %v658_v20  ;;  %v1439_v20 = vld [vmem:[%s2337_s0 + $0xe4] sm:$0xf0] }
  0xe1   :  { %v750_v24 = vadd.f32 %v749_v35, %v581_v22  ;;  %619 = vmatmul.bf16.gmra.mxu0 %v1185_v19  ;;  %v928_v25 = vmax.f32 %v827_v23, 0.0  ;;  %699 = vmatmul.bf16.gmra.mxu2 %v1313_v0  ;;  %v1438_v35 = vld [vmem:[%s2337_s0 + $0xe4] sm:$0xf]  ;;  %v1200_v19 = vld [vmem:[%s2337_s0 + $0xe0] sm:$0xf] }
  0xe2   :  { %v2001_v27 = vpop.f32.mrf.mxu3  ;;  %v1205_v44 = vor.u32 %v1438_v35, %v1202_v37  ;;  %v1328_v22 = vld [vmem:[%s2337_s0 + $0x1e0] sm:$0xf] }
  0xe3   :  { %v897_v28 = vmax.f32 %v750_v24, 0.0  ;;  %v992_v30 = vpack.c.bf16 %v928_v25, %v928_v25 }
  0xe4   :  { %v756_v29 = vpop.f32.mrf.mxu1  ;;  %v660_v32 = vpop.f32.mrf.mxu2 }
  0xe5   :  { %v961_v31 = vpack.c.bf16 %v897_v28, %v897_v28  ;;  %1057 = vst.msk [vmem:[%s2339_s3 + $0x9c] sm:$0xf] %vm1017_vm3, %v992_v30  ;;  %v661_v34 = vadd.f32 %v1794_v2, %v660_v32  ;;  %v1201_v28 = vor.u32 %v1439_v20, %v1200_v19 }
  0xe6   :  { %v582_v36 = vpop.f32.mrf.mxu0 }
  0xe7   :  { %1026 = vst.msk [vmem:[%s2339_s3 + $0x20] sm:$0xf] %vm1017_vm3, %v961_v31  ;;  %v583_v55 = vadd.f32 %v1794_v2, %v582_v36  ;;  %v830_v38 = vadd.f32 %v1897_v13, %v661_v34 }
  0xe9   :  { %v752_v40 = vadd.f32 %v751_v53, %v583_v55  ;;  %v929_v43 = vmax.f32 %v830_v38, 0.0 }
  0xea   :  { %v2038_v50 = vpop.f32.mrf.mxu3 }
  0xeb   :  { %v898_v13 = vmax.f32 %v752_v40, 0.0  ;;  %v993_v53 = vpack.c.bf16 %v929_v43, %v929_v43 }
  0xec   :  { %v759_v47 = vpop.f32.mrf.mxu1  ;;  %v662_v56 = vpop.f32.mrf.mxu2 }
  0xed   :  { %v962_v54 = vpack.c.bf16 %v898_v13, %v898_v13  ;;  %1058 = vst.msk [vmem:[%s2339_s3 + $0xa0] sm:$0xf] %vm1017_vm3, %v993_v53  ;;  %v663_v58 = vadd.f32 %v1794_v2, %v662_v56  ;;  %v1208_v53 = vld [vmem:[%s2337_s0 + $0xf0] sm:$0xf] }
  0xee   :  { %v585_v60 = vpop.f32.mrf.mxu0 }
  0xef   :  { %1392 = vmatmul.msk.bf16.gmra.mxu1 %vm447_vm2, %v1205_v44  ;;  %1027 = vst.msk [vmem:[%s2339_s3 + $0x24] sm:$0xf] %vm1017_vm3, %v962_v54  ;;  %v586_v59 = vadd.f32 %v1794_v2, %v585_v60  ;;  %1409 = vmatmul.msk.bf16.gmra.mxu3 %vm447_vm2, %v1341_v52  ;;  %v832_v61 = vadd.f32 %v1928_v11, %v663_v58  ;;  %v1441_v54 = vld [vmem:[%s2337_s0 + $0xf4] sm:$0xf0]  ;;  %v1336_v58 = vld [vmem:[%s2337_s0 + $0x1f0] sm:$0xf] }
  0xf0   :  { %v1221_v52 = vor.u32 %v1442_v45, %v1218_v46 }
  0xf1   :  { %v755_v62 = vadd.f32 %v754_v9, %v586_v59  ;;  %624 = vmatmul.bf16.gmra.mxu0 %v1193_v57  ;;  %v930_v63 = vmax.f32 %v832_v61, 0.0  ;;  %704 = vmatmul.bf16.gmra.mxu2 %v1321_v26  ;;  %v1440_v9 = vld [vmem:[%s2337_s0 + $0xf4] sm:$0xf]  ;;  %v1209_v61 = vor.u32 %v1441_v54, %v1208_v53 }
  0xf2   :  { %v2053_v7 = vpop.f32.mrf.mxu3  ;;  %v1213_v18 = vor.u32 %v1440_v9, %v1210_v12 }
  0xf3   :  { %v899_v1 = vmax.f32 %v755_v62, 0.0  ;;  %v994_v4 = vpack.c.bf16 %v930_v63, %v930_v63 }
  0xf4   :  { %v761_v3 = vpop.f32.mrf.mxu1  ;;  %v665_v6 = vpop.f32.mrf.mxu2 }
  0xf5   :  { %v963_v5 = vpack.c.bf16 %v899_v1, %v899_v1  ;;  %1059 = vst.msk [vmem:[%s2339_s3 + $0xa4] sm:$0xf] %vm1017_vm3, %v994_v4  ;;  %v666_v8 = vadd.f32 %v1794_v2, %v665_v6 }
  0xf6   :  { %v587_v10 = vpop.f32.mrf.mxu0 }
  0xf7   :  { %1028 = vst.msk [vmem:[%s2339_s3 + $0x28] sm:$0xf] %vm1017_vm3, %v963_v5  ;;  %v588_v11 = vadd.f32 %v1794_v2, %v587_v10  ;;  %v835_v14 = vadd.f32 %v1949_v51, %v666_v8  ;;  %v1471_v51 = vld [vmem:[%s2337_s0 + $0x1e4] sm:$0xf0] }
  0xf8   :  { %v1329_v31 = vor.u32 %v1471_v51, %v1328_v22 }
  0xf9   :  { %v757_v16 = vadd.f32 %v756_v29, %v588_v11  ;;  %v931_v17 = vmax.f32 %v835_v14, 0.0 }
  0xfa   :  { %v2095_v34 = vpop.f32.mrf.mxu3 }
  0xfb   :  { %v900_v21 = vmax.f32 %v757_v16, 0.0  ;;  %v995_v23 = vpack.c.bf16 %v931_v17, %v931_v17 }
  0xfc   :  { %v764_v0 = vpop.f32.mrf.mxu1  ;;  %v667_v25 = vpop.f32.mrf.mxu2 }
  0xfd   :  { %v964_v24 = vpack.c.bf16 %v900_v21, %v900_v21  ;;  %1060 = vst.msk [vmem:[%s2339_s3 + $0xa8] sm:$0xf] %vm1017_vm3, %v995_v23  ;;  %v668_v29 = vadd.f32 %v1794_v2, %v667_v25 }
  0xfe   :  { %v590_v30 = vpop.f32.mrf.mxu0 }
  0xff   :  { %1393 = vmatmul.msk.bf16.gmra.mxu1 %vm447_vm2, %v1213_v18  ;;  %1029 = vst.msk [vmem:[%s2339_s3 + $0x2c] sm:$0xf] %vm1017_vm3, %v964_v24  ;;  %v591_v32 = vadd.f32 %v1794_v2, %v590_v30  ;;  %v837_v36 = vadd.f32 %v1980_v39, %v668_v29 }
 0x101   :  { %v760_v55 = vadd.f32 %v759_v47, %v591_v32  ;;  %629 = vmatmul.bf16.gmra.mxu0 %v1201_v28  ;;  %v932_v35 = vmax.f32 %v837_v36, 0.0  ;;  %709 = vmatmul.bf16.gmra.mxu2 %v1329_v31 }
 0x102   :  { %v2115_v48 = vpop.f32.mrf.mxu3 }
 0x103   :  { %v901_v37 = vmax.f32 %v760_v55, 0.0  ;;  %v996_v40 = vpack.c.bf16 %v932_v35, %v932_v35 }
 0x104   :  { %v766_v38 = vpop.f32.mrf.mxu1  ;;  %v670_v42 = vpop.f32.mrf.mxu2 }
 0x105   :  { %v965_v41 = vpack.c.bf16 %v901_v37, %v901_v37  ;;  %1061 = vst.msk [vmem:[%s2339_s3 + $0xac] sm:$0xf] %vm1017_vm3, %v996_v40  ;;  %v671_v43 = vadd.f32 %v1794_v2, %v670_v42 }
 0x106   :  { %v592_v44 = vpop.f32.mrf.mxu0 }
 0x107   :  { %1030 = vst.msk [vmem:[%s2339_s3 + $0x30] sm:$0xf] %vm1017_vm3, %v965_v41  ;;  %v593_v39 = vadd.f32 %v1794_v2, %v592_v44  ;;  %v840_v13 = vadd.f32 %v2001_v27, %v671_v43  ;;  %v1473_v27 = vld [vmem:[%s2337_s0 + $0x1f4] sm:$0xf0] }
 0x108   :  { %v1337_v1 = vor.u32 %v1473_v27, %v1336_v58 }
 0x109   :  { %v762_v47 = vadd.f32 %v761_v3, %v593_v39  ;;  %v933_v49 = vmax.f32 %v840_v13, 0.0 }
 0x10a   :  { %v851_v11 = vpop.f32.mrf.mxu3 }
 0x10b   :  { %v902_v56 = vmax.f32 %v762_v47, 0.0  ;;  %v997_v60 = vpack.c.bf16 %v933_v49, %v933_v49 }
 0x10c   :  { %v769_v57 = vpop.f32.mrf.mxu1  ;;  %v672_v59 = vpop.f32.mrf.mxu2 }
 0x10d   :  { %v966_v26 = vpack.c.bf16 %v902_v56, %v902_v56  ;;  %1062 = vst.msk [vmem:[%s2339_s3 + $0xb0] sm:$0xf] %vm1017_vm3, %v997_v60  ;;  %v673_v62 = vadd.f32 %v1794_v2, %v672_v59 }
 0x10e   :  { %v595_v63 = vpop.f32.mrf.mxu0 }
 0x10f   :  { %1394 = vmatmul.msk.bf16.gmra.mxu1 %vm447_vm2, %v1221_v52  ;;  %1031 = vst.msk [vmem:[%s2339_s3 + $0x34] sm:$0xf] %vm1017_vm3, %v966_v26  ;;  %v596_v3 = vadd.f32 %v1794_v2, %v595_v63  ;;  %v842_v4 = vadd.f32 %v2038_v50, %v673_v62 }
 0x111   :  { %v765_v5 = vadd.f32 %v764_v0, %v596_v3  ;;  %634 = vmatmul.bf16.gmra.mxu0 %v1209_v61  ;;  %v934_v6 = vmax.f32 %v842_v4, 0.0  ;;  %714 = vmatmul.bf16.gmra.mxu2 %v1337_v1 }
 0x112   :  { %v854_v24 = vpop.f32.mrf.mxu3 }
 0x113   :  { %v903_v8 = vmax.f32 %v765_v5, 0.0  ;;  %v998_v9 = vpack.c.bf16 %v934_v6, %v934_v6 }
 0x114   :  { %v771_v10 = vpop.f32.mrf.mxu1  ;;  %v675_v14 = vpop.f32.mrf.mxu2 }
 0x115   :  { %v967_v12 = vpack.c.bf16 %v903_v8, %v903_v8  ;;  %1063 = vst.msk [vmem:[%s2339_s3 + $0xb4] sm:$0xf] %vm1017_vm3, %v998_v9  ;;  %v676_v16 = vadd.f32 %v1794_v2, %v675_v14 }
 0x116   :  { %v597_v17 = vpop.f32.mrf.mxu0 }
 0x117   :  { %1032 = vst.msk [vmem:[%s2339_s3 + $0x38] sm:$0xf] %vm1017_vm3, %v967_v12  ;;  %v598_v50 = vadd.f32 %v1794_v2, %v597_v17  ;;  %v845_v18 = vadd.f32 %v2053_v7, %v676_v16 }
 0x119   :  { %v767_v19 = vadd.f32 %v766_v38, %v598_v50  ;;  %v935_v20 = vmax.f32 %v845_v18, 0.0 }
 0x11a   :  { %v856_v41 = vpop.f32.mrf.mxu3 }
 0x11b   :  { %v904_v21 = vmax.f32 %v767_v19, 0.0  ;;  %v999_v22 = vpack.c.bf16 %v935_v20, %v935_v20 }
 0x11c   :  { %v774_v0 = vpop.f32.mrf.mxu1  ;;  %v677_v23 = vpop.f32.mrf.mxu2 }
 0x11d   :  { %v968_v51 = vpack.c.bf16 %v904_v21, %v904_v21  ;;  %1064 = vst.msk [vmem:[%s2339_s3 + $0xb8] sm:$0xf] %vm1017_vm3, %v999_v22  ;;  %v678_v25 = vadd.f32 %v1794_v2, %v677_v23 }
 0x11e   :  { %v600_v28 = vpop.f32.mrf.mxu0 }
 0x11f   :  { %1033 = vst.msk [vmem:[%s2339_s3 + $0x3c] sm:$0xf] %vm1017_vm3, %v968_v51  ;;  %v601_v7 = vadd.f32 %v1794_v2, %v600_v28  ;;  %v847_v29 = vadd.f32 %v2095_v34, %v678_v25 }
 0x121   :  { %v770_v30 = vadd.f32 %v769_v57, %v601_v7  ;;  %v936_v31 = vmax.f32 %v847_v29, 0.0 }
 0x122   :  { %v859_v56 = vpop.f32.mrf.mxu3 }
 0x123   :  { %v905_v32 = vmax.f32 %v770_v30, 0.0  ;;  %v1000_v55 = vpack.c.bf16 %v936_v31, %v936_v31 }
 0x124   :  { %v776_v36 = vpop.f32.mrf.mxu1  ;;  %v680_v37 = vpop.f32.mrf.mxu2 }
 0x125   :  { %v969_v35 = vpack.c.bf16 %v905_v32, %v905_v32  ;;  %1065 = vst.msk [vmem:[%s2339_s3 + $0xbc] sm:$0xf] %vm1017_vm3, %v1000_v55  ;;  %v681_v38 = vadd.f32 %v1794_v2, %v680_v37 }
 0x126   :  { %v602_v40 = vpop.f32.mrf.mxu0 }
 0x127   :  { %1034 = vst.msk [vmem:[%s2339_s3 + $0x40] sm:$0xf] %vm1017_vm3, %v969_v35  ;;  %v603_v34 = vadd.f32 %v1794_v2, %v602_v40  ;;  %v850_v42 = vadd.f32 %v2115_v48, %v681_v38 }
 0x129   :  { %v772_v43 = vadd.f32 %v771_v10, %v603_v34  ;;  %v937_v44 = vmax.f32 %v850_v42, 0.0 }
 0x12a   :  { %v861_v8 = vpop.f32.mrf.mxu3 }
 0x12b   :  { %v906_v39 = vmax.f32 %v772_v43, 0.0  ;;  %v1001_v46 = vpack.c.bf16 %v937_v44, %v937_v44 }
 0x12c   :  { %v779_v45 = vpop.f32.mrf.mxu1  ;;  %v682_v47 = vpop.f32.mrf.mxu2 }
 0x12d   :  { %v970_v13 = vpack.c.bf16 %v906_v39, %v906_v39  ;;  %1066 = vst.msk [vmem:[%s2339_s3 + $0xc0] sm:$0xf] %vm1017_vm3, %v1001_v46  ;;  %v683_v49 = vadd.f32 %v1794_v2, %v682_v47 }
 0x12e   :  { %v605_v52 = vpop.f32.mrf.mxu0 }
 0x12f   :  { %1035 = vst.msk [vmem:[%s2339_s3 + $0x44] sm:$0xf] %vm1017_vm3, %v970_v13  ;;  %v606_v48 = vadd.f32 %v1794_v2, %v605_v52  ;;  %v852_v53 = vadd.f32 %v851_v11, %v683_v49 }
 0x131   :  { %v775_v54 = vadd.f32 %v774_v0, %v606_v48  ;;  %v938_v57 = vmax.f32 %v852_v53, 0.0 }
 0x132   :  { %v864_v51 = vpop.f32.mrf.mxu3 }
 0x133   :  { %v907_v58 = vmax.f32 %v775_v54, 0.0  ;;  %v1002_v60 = vpack.c.bf16 %v938_v57, %v938_v57 }
 0x134   :  { %v781_v27 = vpop.f32.mrf.mxu1  ;;  %v685_v59 = vpop.f32.mrf.mxu2 }
 0x135   :  { %v971_v26 = vpack.c.bf16 %v907_v58, %v907_v58  ;;  %1067 = vst.msk [vmem:[%s2339_s3 + $0xc4] sm:$0xf] %vm1017_vm3, %v1002_v60  ;;  %v686_v61 = vadd.f32 %v1794_v2, %v685_v59 }
 0x136   :  { %v607_v62 = vpop.f32.mrf.mxu0 }
 0x137   :  { %1036 = vst.msk [vmem:[%s2339_s3 + $0x48] sm:$0xf] %vm1017_vm3, %v971_v26  ;;  %v608_v63 = vadd.f32 %v1794_v2, %v607_v62  ;;  %v855_v1 = vadd.f32 %v854_v24, %v686_v61 }
 0x139   :  { %v777_v3 = vadd.f32 %v776_v36, %v608_v63  ;;  %v939_v4 = vmax.f32 %v855_v1, 0.0 }
 0x13a   :  { %v866_v40 = vpop.f32.mrf.mxu3 }
 0x13b   :  { %v908_v5 = vmax.f32 %v777_v3, 0.0  ;;  %v1003_v10 = vpack.c.bf16 %v939_v4, %v939_v4 }
 0x13c   :  { %v784_v6 = vpop.f32.mrf.mxu1  ;;  %v687_v9 = vpop.f32.mrf.mxu2 }
 0x13d   :  { %v972_v11 = vpack.c.bf16 %v908_v5, %v908_v5  ;;  %1068 = vst.msk [vmem:[%s2339_s3 + $0xc8] sm:$0xf] %vm1017_vm3, %v1003_v10  ;;  %v688_v12 = vadd.f32 %v1794_v2, %v687_v9 }
 0x13e   :  { %v610_v14 = vpop.f32.mrf.mxu0 }
 0x13f   :  { %1037 = vst.msk [vmem:[%s2339_s3 + $0x4c] sm:$0xf] %vm1017_vm3, %v972_v11  ;;  %v611_v16 = vadd.f32 %v1794_v2, %v610_v14  ;;  %v857_v17 = vadd.f32 %v856_v41, %v688_v12 }
 0x141   :  { %v780_v50 = vadd.f32 %v779_v45, %v611_v16  ;;  %v940_v18 = vmax.f32 %v857_v17, 0.0 }
 0x142   :  { %v869_v53 = vpop.f32.mrf.mxu3 }
 0x143   :  { %v909_v19 = vmax.f32 %v780_v50, 0.0  ;;  %v1004_v21 = vpack.c.bf16 %v940_v18, %v940_v18 }
 0x144   :  { %v786_v20 = vpop.f32.mrf.mxu1  ;;  %v690_v22 = vpop.f32.mrf.mxu2 }
 0x145   :  { %v973_v0 = vpack.c.bf16 %v909_v19, %v909_v19  ;;  %1069 = vst.msk [vmem:[%s2339_s3 + $0xcc] sm:$0xf] %vm1017_vm3, %v1004_v21  ;;  %v691_v23 = vadd.f32 %v1794_v2, %v690_v22 }
 0x146   :  { %v612_v24 = vpop.f32.mrf.mxu0 }
 0x147   :  { %1038 = vst.msk [vmem:[%s2339_s3 + $0x50] sm:$0xf] %vm1017_vm3, %v973_v0  ;;  %v613_v25 = vadd.f32 %v1794_v2, %v612_v24  ;;  %v860_v28 = vadd.f32 %v859_v56, %v691_v23 }
 0x149   :  { %v782_v7 = vadd.f32 %v781_v27, %v613_v25  ;;  %v941_v29 = vmax.f32 %v860_v28, 0.0 }
 0x14a   :  { %v871_v5 = vpop.f32.mrf.mxu3 }
 0x14b   :  { %v910_v30 = vmax.f32 %v782_v7, 0.0  ;;  %v1005_v32 = vpack.c.bf16 %v941_v29, %v941_v29 }
 0x14c   :  { %v789_v31 = vpop.f32.mrf.mxu1  ;;  %v692_v55 = vpop.f32.mrf.mxu2 }
 0x14d   :  { %v974_v36 = vpack.c.bf16 %v910_v30, %v910_v30  ;;  %1070 = vst.msk [vmem:[%s2339_s3 + $0xd0] sm:$0xf] %vm1017_vm3, %v1005_v32  ;;  %v693_v35 = vadd.f32 %v1794_v2, %v692_v55 }
 0x14e   :  { %v615_v37 = vpop.f32.mrf.mxu0 }
 0x14f   :  { %1039 = vst.msk [vmem:[%s2339_s3 + $0x54] sm:$0xf] %vm1017_vm3, %v974_v36  ;;  %v616_v38 = vadd.f32 %v1794_v2, %v615_v37  ;;  %v862_v34 = vadd.f32 %v861_v8, %v693_v35 }
 0x151   :  { %v785_v41 = vadd.f32 %v784_v6, %v616_v38  ;;  %v942_v42 = vmax.f32 %v862_v34, 0.0 }
 0x152   :  { %v874_v0 = vpop.f32.mrf.mxu3 }
 0x153   :  { %v911_v43 = vmax.f32 %v785_v41, 0.0  ;;  %v1006_v39 = vpack.c.bf16 %v942_v42, %v942_v42 }
 0x154   :  { %v791_v44 = vpop.f32.mrf.mxu1  ;;  %v695_v46 = vpop.f32.mrf.mxu2 }
 0x155   :  { %v975_v45 = vpack.c.bf16 %v911_v43, %v911_v43  ;;  %1071 = vst.msk [vmem:[%s2339_s3 + $0xd4] sm:$0xf] %vm1017_vm3, %v1006_v39  ;;  %v696_v13 = vadd.f32 %v1794_v2, %v695_v46 }
 0x156   :  { %v617_v47 = vpop.f32.mrf.mxu0 }
 0x157   :  { %1040 = vst.msk [vmem:[%s2339_s3 + $0x58] sm:$0xf] %vm1017_vm3, %v975_v45  ;;  %v618_v49 = vadd.f32 %v1794_v2, %v617_v47  ;;  %v865_v52 = vadd.f32 %v864_v51, %v696_v13 }
 0x159   :  { %v787_v48 = vadd.f32 %v786_v20, %v618_v49  ;;  %v943_v54 = vmax.f32 %v865_v52, 0.0 }
 0x15a   :  { %v876_v37 = vpop.f32.mrf.mxu3 }
 0x15b   :  { %v912_v56 = vmax.f32 %v787_v48, 0.0  ;;  %v1007_v58 = vpack.c.bf16 %v943_v54, %v943_v54 }
 0x15c   :  { %v794_v57 = vpop.f32.mrf.mxu1  ;;  %v697_v60 = vpop.f32.mrf.mxu2 }
 0x15d   :  { %v976_v27 = vpack.c.bf16 %v912_v56, %v912_v56  ;;  %1072 = vst.msk [vmem:[%s2339_s3 + $0xd8] sm:$0xf] %vm1017_vm3, %v1007_v58  ;;  %v698_v26 = vadd.f32 %v1794_v2, %v697_v60 }
 0x15e   :  { %v620_v59 = vpop.f32.mrf.mxu0 }
 0x15f   :  { %1041 = vst.msk [vmem:[%s2339_s3 + $0x5c] sm:$0xf] %vm1017_vm3, %v976_v27  ;;  %v621_v61 = vadd.f32 %v1794_v2, %v620_v59  ;;  %v867_v62 = vadd.f32 %v866_v40, %v698_v26 }
 0x161   :  { %v790_v63 = vadd.f32 %v789_v31, %v621_v61  ;;  %v944_v1 = vmax.f32 %v867_v62, 0.0  ;;  %v641_v62 = vadd.f32 %v1794_v2, %v1807_v15 }
 0x162   :  { %v879_v52 = vpop.f32.mrf.mxu3 }
 0x163   :  { %v913_v3 = vmax.f32 %v790_v63, 0.0  ;;  %v1008_v6 = vpack.c.bf16 %v944_v1, %v944_v1 }
 0x164   :  { %v796_v4 = vpop.f32.mrf.mxu1  ;;  %v700_v10 = vpop.f32.mrf.mxu2 }
 0x165   :  { %v977_v8 = vpack.c.bf16 %v913_v3, %v913_v3  ;;  %1073 = vst.msk [vmem:[%s2339_s3 + $0xdc] sm:$0xf] %vm1017_vm3, %v1008_v6  ;;  %v701_v11 = vadd.f32 %v1794_v2, %v700_v10 }
 0x166   :  { %v622_v9 = vpop.f32.mrf.mxu0 }
 0x167   :  { %1042 = vst.msk [vmem:[%s2339_s3 + $0x60] sm:$0xf] %vm1017_vm3, %v977_v8  ;;  %v623_v12 = vadd.f32 %v1794_v2, %v622_v9  ;;  %v870_v14 = vadd.f32 %v869_v53, %v701_v11  ;;  %v1495_v9 = vld [vmem:[%s2338_s2] ss:$0 sm:$0xff] }
 0x169   :  { %v792_v16 = vadd.f32 %v791_v44, %v623_v12  ;;  %v945_v17 = vmax.f32 %v870_v14, 0.0 }
 0x16a   :  { %v881_v3 = vpop.f32.mrf.mxu3 }
 0x16b   :  { %v914_v50 = vmax.f32 %v792_v16, 0.0  ;;  %v1009_v19 = vpack.c.bf16 %v945_v17, %v945_v17 }
 0x16c   :  { %v799_v18 = vpop.f32.mrf.mxu1  ;;  %v702_v21 = vpop.f32.mrf.mxu2 }
 0x16d   :  { %v978_v20 = vpack.c.bf16 %v914_v50, %v914_v50  ;;  %1074 = vst.msk [vmem:[%s2339_s3 + $0xe0] sm:$0xf] %vm1017_vm3, %v1009_v19  ;;  %v703_v22 = vadd.f32 %v1794_v2, %v702_v21  ;;  %v643_v50 = vadd.f32 %v1495_v9, %v1840_v33 }
 0x16e   :  { %v625_v51 = vpop.f32.mrf.mxu0 }
 0x16f   :  { %1043 = vst.msk [vmem:[%s2339_s3 + $0x64] sm:$0xf] %vm1017_vm3, %v978_v20  ;;  %v626_v23 = vadd.f32 %v1794_v2, %v625_v51  ;;  %v872_v24 = vadd.f32 %v871_v5, %v703_v22 }
 0x171   :  { %v795_v25 = vadd.f32 %v794_v57, %v626_v23  ;;  %v946_v28 = vmax.f32 %v872_v24, 0.0 }
 0x172   :  { %v884_v51 = vpop.f32.mrf.mxu3 }
 0x173   :  { %v915_v7 = vmax.f32 %v795_v25, 0.0  ;;  %v1010_v30 = vpack.c.bf16 %v946_v28, %v946_v28 }
 0x174   :  { %v801_v29 = vpop.f32.mrf.mxu1  ;;  %v705_v32 = vpop.f32.mrf.mxu2 }
 0x175   :  { %v979_v31 = vpack.c.bf16 %v915_v7, %v915_v7  ;;  %1075 = vst.msk [vmem:[%s2339_s3 + $0xe4] sm:$0xf] %vm1017_vm3, %v1010_v30  ;;  %v706_v36 = vadd.f32 %v1794_v2, %v705_v32 }
 0x176   :  { %v627_v55 = vpop.f32.mrf.mxu0 }
 0x177   :  { %1044 = vst.msk [vmem:[%s2339_s3 + $0x68] sm:$0xf] %vm1017_vm3, %v979_v31  ;;  %v628_v35 = vadd.f32 %v1794_v2, %v627_v55  ;;  %v875_v38 = vadd.f32 %v874_v0, %v706_v36 }
 0x179   :  { %v797_v40 = vadd.f32 %v796_v4, %v628_v35  ;;  %v947_v34 = vmax.f32 %v875_v38, 0.0 }
 0x17a   :  { %v886_v38 = vpop.f32.mrf.mxu3 }
 0x17b   :  { %v916_v41 = vmax.f32 %v797_v40, 0.0  ;;  %v1011_v43 = vpack.c.bf16 %v947_v34, %v947_v34 }
 0x17c   :  { %v804_v42 = vpop.f32.mrf.mxu1  ;;  %v707_v39 = vpop.f32.mrf.mxu2 }
 0x17d   :  { %v980_v44 = vpack.c.bf16 %v916_v41, %v916_v41  ;;  %1076 = vst.msk [vmem:[%s2339_s3 + $0xe8] sm:$0xf] %vm1017_vm3, %v1011_v43  ;;  %v708_v45 = vadd.f32 %v1794_v2, %v707_v39 }
 0x17e   :  { %v630_v46 = vpop.f32.mrf.mxu0 }
 0x17f   :  { %1045 = vst.msk [vmem:[%s2339_s3 + $0x6c] sm:$0xf] %vm1017_vm3, %v980_v44  ;;  %v631_v13 = vadd.f32 %v1794_v2, %v630_v46  ;;  %v877_v47 = vadd.f32 %v876_v37, %v708_v45 }
 0x181   :  { %v800_v49 = vadd.f32 %v799_v18, %v631_v13  ;;  %v948_v48 = vmax.f32 %v877_v47, 0.0 }
 0x183   :  { %v917_v53 = vmax.f32 %v800_v49, 0.0  ;;  %v1012_v56 = vpack.c.bf16 %v948_v48, %v948_v48 }
 0x184   :  { %v806_v54 = vpop.f32.mrf.mxu1  ;;  %v710_v58 = vpop.f32.mrf.mxu2 }
 0x185   :  { %v981_v57 = vpack.c.bf16 %v917_v53, %v917_v53  ;;  %1077 = vst.msk [vmem:[%s2339_s3 + $0xec] sm:$0xf] %vm1017_vm3, %v1012_v56  ;;  %v711_v27 = vadd.f32 %v1794_v2, %v710_v58 }
 0x186   :  { %v632_v60 = vpop.f32.mrf.mxu0 }
 0x187   :  { %1046 = vst.msk [vmem:[%s2339_s3 + $0x70] sm:$0xf] %vm1017_vm3, %v981_v57  ;;  %v633_v26 = vadd.f32 %v1794_v2, %v632_v60  ;;  %v880_v59 = vadd.f32 %v879_v52, %v711_v27 }
 0x189   :  { %v802_v61 = vadd.f32 %v801_v29, %v633_v26  ;;  %v949_v63 = vmax.f32 %v880_v59, 0.0 }
 0x18b   :  { %v918_v1 = vmax.f32 %v802_v61, 0.0  ;;  %v1013_v5 = vpack.c.bf16 %v949_v63, %v949_v63 }
 0x18c   :  { %v809_v4 = vpop.f32.mrf.mxu1  ;;  %v712_v10 = vpop.f32.mrf.mxu2 }
 0x18d   :  { %v810_v6 = vadd.f32 %v809_v4, %v641_v62  ;;  %v982_v8 = vpack.c.bf16 %v918_v1, %v918_v1  ;;  %1078 = vst.msk [vmem:[%s2339_s3 + $0xf0] sm:$0xf] %vm1017_vm3, %v1013_v5  ;;  %v713_v12 = vadd.f32 %v1495_v9, %v712_v10 }
 0x18e   :  { %v635_v2 = vpop.f32.mrf.mxu0 }
 0x18f   :  { %v921_v11 = vmax.f32 %v810_v6, 0.0  ;;  %1047 = vst.msk [vmem:[%s2339_s3 + $0x74] sm:$0xf] %vm1017_vm3, %v982_v8  ;;  %v636_v15 = vadd.f32 %v1495_v9, %v635_v2  ;;  %v882_v16 = vadd.f32 %v881_v3, %v713_v12 }
 0x191   :  { %v985_v14 = vpack.c.bf16 %v921_v11, %v921_v11  ;;  %v805_v17 = vadd.f32 %v804_v42, %v636_v15  ;;  %v950_v18 = vmax.f32 %v882_v16, 0.0 }
 0x193   :  { %1050 = vst.msk [vmem:[%s2339_s3 + $0x80] sm:$0xf] %vm1017_vm3, %v985_v14  ;;  %v919_v19 = vmax.f32 %v805_v17, 0.0  ;;  %v1014_v21 = vpack.c.bf16 %v950_v18, %v950_v18 }
 0x194   :  { %v811_v20 = vpop.f32.mrf.mxu1  ;;  %v715_v23 = vpop.f32.mrf.mxu2 }
 0x195   :  { %v812_v0 = vadd.f32 %v811_v20, %v643_v50  ;;  %v983_v22 = vpack.c.bf16 %v919_v19, %v919_v19  ;;  %1079 = vst.msk [vmem:[%s2339_s3 + $0xf4] sm:$0xf] %vm1017_vm3, %v1014_v21  ;;  %v716_v33 = vadd.f32 %v1495_v9, %v715_v23 }
 0x196   :  { %v637_v25 = vpop.f32.mrf.mxu0 }
 0x197   :  { %v922_v24 = vmax.f32 %v812_v0, 0.0  ;;  %1048 = vst.msk [vmem:[%s2339_s3 + $0x78] sm:$0xf] %vm1017_vm3, %v983_v22  ;;  %v638_v28 = vadd.f32 %v1495_v9, %v637_v25  ;;  %v885_v29 = vadd.f32 %v884_v51, %v716_v33 }
 0x199   :  { %v986_v7 = vpack.c.bf16 %v922_v24, %v922_v24  ;;  %v807_v30 = vadd.f32 %v806_v54, %v638_v28  ;;  %v951_v31 = vmax.f32 %v885_v29, 0.0 }
 0x19b   :  { %1051 = vst.msk [vmem:[%s2339_s3 + $0x84] sm:$0xf] %vm1017_vm3, %v986_v7  ;;  %v920_v32 = vmax.f32 %v807_v30, 0.0  ;;  %v1015_v36 = vpack.c.bf16 %v951_v31, %v951_v31 }
 0x19c   :  { %v717_v35 = vpop.f32.mrf.mxu2 }
 0x19d   :  { %v984_v55 = vpack.c.bf16 %v920_v32, %v920_v32  ;;  %1080 = vst.msk [vmem:[%s2339_s3 + $0xf8] sm:$0xf] %vm1017_vm3, %v1015_v36  ;;  %v718_v37 = vadd.f32 %v1495_v9, %v717_v35 }
 0x19f   :  { %1049 = vst.msk [vmem:[%s2339_s3 + $0x7c] sm:$0xf] %vm1017_vm3, %v984_v55  ;;  %v887_v40 = vadd.f32 %v886_v38, %v718_v37 }
 0x1a1   :  { %v952_v34 = vmax.f32 %v887_v40, 0.0 }
 0x1a3   :  { %v1016_v41 = vpack.c.bf16 %v952_v34, %v952_v34 }
 0x1a5   :  { %1081 = vst.msk [vmem:[%s2339_s3 + $0xfc] sm:$0xf] %vm1017_vm3, %v1016_v41 }

// kernel: forward.22
= control target key start
LH: loop header
LB: loop body
LE: loop exit
PB: predicated region body
PF: predicated region fallthrough
CT: control target
= control target key end

     0   :  { %vm136_vm0 = vcmask 1043456   ;;  %vm111_vm1 = vcmask 588800   ;;  %vm221_vm2 = vcmask 60416   ;;  %s478_s1 = inlined_call_operand.vmem [shape: bf16[72,8], index: 1, kind: input, shape index: {}]   ;;  %s479_s2 = inlined_call_operand.vmem [shape: f32[1,8], index: 2, kind: input, shape index: {}]   ;;  %s480_s0 = inlined_call_operand.vmem [shape: bf16[128,72], index: 0, kind: input, shape index: {}]   ;;  %s481_s3 = inlined_call_operand.vmem [shape: bf16[128,8], index: 3, kind: output, shape index: {}]  }
   0x1   :  { %v39_v0 = vld [vmem:[%s478_s1 + $0x20] sm:$0xf]  ;;  %v309_v4 = vld [vmem:[%s478_s1 + $0x18] sm:$0xff]  ;;  %v308_v5 = vld [vmem:[%s478_s1 + $0x10] sm:$0xff] }
   0x2   :  { %v101_v1 = vunpack.c.l.b16 %v39_v0  ;;  %v307_v6 = vld [vmem:[%s478_s1 + $0x8] sm:$0xff]  ;;  %v306_v7 = vld [vmem:[%s478_s1] sm:$0xff]  ;;  %v300_v9 = vld [vmem:[%s480_s0 + $0x10] sm:$0xff] }
   0x3   :  { %v298_v8 = vld [vmem:[%s480_s0] sm:$0xff]  ;;  %v304_v11 = vld [vmem:[%s480_s0 + $0x30] sm:$0xff]  ;;  %v299_v12 = vld [vmem:[%s480_s0 + $0x8] sm:$0xff] }
   0x4   :  { %v106_v2 = vpack.c.b16 %v101_v1, %v101_v1  ;;  %v302_v10 = vld [vmem:[%s480_s0 + $0x20] sm:$0xff]  ;;  %v301_v13 = vld [vmem:[%s480_s0 + $0x18] sm:$0xff]  ;;  %v303_v14 = vld [vmem:[%s480_s0 + $0x28] sm:$0xff] }
   0x5   :  { %v305_v15 = vld [vmem:[%s480_s0 + $0x38] sm:$0xff]  ;;  %v396_v16 = vld [vmem:[%s479_s2] ss:$0 sm:$0xff] }
   0x6   :  { %v138_v3 = vsel %vm136_vm0, %v106_v2, 0 }
   0x7   :  { %143 = vmatpush.bf16.msra.mxu0 %v138_v3  ;;  %310 = vmatpush.bf16.msra.mxu1 %v138_v3 }
   0x8   :  { %311 = vmatpush.bf16.msra.mxu2 %v138_v3  ;;  %312 = vmatpush.bf16.msra.mxu3 %v138_v3 }
   0xb   :  { %144 = vmatpush.bf16.msra.mxu0 %v309_v4  ;;  %313 = vmatpush.bf16.msra.mxu1 %v309_v4 }
   0xc   :  { %314 = vmatpush.bf16.msra.mxu2 %v309_v4  ;;  %315 = vmatpush.bf16.msra.mxu3 %v309_v4 }
   0xf   :  { %145 = vmatpush.bf16.msra.mxu0 %v308_v5  ;;  %316 = vmatpush.bf16.msra.mxu1 %v308_v5 }
  0x10   :  { %317 = vmatpush.bf16.msra.mxu2 %v308_v5  ;;  %318 = vmatpush.bf16.msra.mxu3 %v308_v5 }
  0x13   :  { %146 = vmatpush.bf16.msra.mxu0 %v307_v6  ;;  %319 = vmatpush.bf16.msra.mxu1 %v307_v6 }
  0x14   :  { %320 = vmatpush.bf16.msra.mxu2 %v307_v6  ;;  %321 = vmatpush.bf16.msra.mxu3 %v307_v6 }
  0x17   :  { %147 = vmatpush.bf16.msra.mxu0 %v306_v7  ;;  %322 = vmatpush.bf16.msra.mxu1 %v306_v7 }
  0x18   :  { %323 = vmatpush.bf16.msra.mxu2 %v306_v7  ;;  %324 = vmatpush.bf16.msra.mxu3 %v306_v7 }
  0x1a   :  { %290 = vmatmul.msk.bf16.vlgmr.msra.gmra.mxu0 %vm111_vm1, %v298_v8  ;;  %292 = vmatmul.msk.bf16.vlgmr.msra.gmra.mxu1 %vm111_vm1, %v300_v9 }
  0x1b   :  { %294 = vmatmul.msk.bf16.vlgmr.msra.gmra.mxu2 %vm111_vm1, %v302_v10  ;;  %296 = vmatmul.msk.bf16.vlgmr.msra.gmra.mxu3 %vm111_vm1, %v304_v11 }
  0x2a   :  { %291 = vmatmul.msk.bf16.gmra.mxu0 %vm111_vm1, %v299_v12  ;;  %293 = vmatmul.msk.bf16.gmra.mxu1 %vm111_vm1, %v301_v13 }
  0x2b   :  { %295 = vmatmul.msk.bf16.gmra.mxu2 %vm111_vm1, %v303_v14  ;;  %297 = vmatmul.msk.bf16.gmra.mxu3 %vm111_vm1, %v305_v15 }
  0x97   :  { %v149_v17 = vpop.f32.mrf.mxu0  ;;  %v159_v18 = vpop.f32.mrf.mxu1 }
  0x98   :  { %v150_v19 = vadd.f32 %v396_v16, %v149_v17  ;;  %v160_v20 = vadd.f32 %v396_v16, %v159_v18 }
  0x9a   :  { %v189_v21 = vmax.f32 %v150_v19, 0.0  ;;  %v193_v22 = vmax.f32 %v160_v20, 0.0 }
  0x9c   :  { %v205_v23 = vpack.c.bf16 %v189_v21, %v189_v21  ;;  %v209_v24 = vpack.c.bf16 %v193_v22, %v193_v22 }
  0x9e   :  { %222 = vst.msk [vmem:[%s481_s3] sm:$0xf] %vm221_vm2, %v205_v23  ;;  %v169_v25 = vpop.f32.mrf.mxu2  ;;  %v179_v26 = vpop.f32.mrf.mxu3 }
  0x9f   :  { %226 = vst.msk [vmem:[%s481_s3 + $0x10] sm:$0xf] %vm221_vm2, %v209_v24  ;;  %v170_v27 = vadd.f32 %v396_v16, %v169_v25  ;;  %v180_v28 = vadd.f32 %v396_v16, %v179_v26  ;;  %v151_v29 = vpop.f32.mrf.mxu0  ;;  %v161_v30 = vpop.f32.mrf.mxu1 }
  0xa0   :  { %v152_v31 = vadd.f32 %v396_v16, %v151_v29  ;;  %v162_v32 = vadd.f32 %v396_v16, %v161_v30 }
  0xa1   :  { %v197_v33 = vmax.f32 %v170_v27, 0.0  ;;  %v201_v34 = vmax.f32 %v180_v28, 0.0 }
  0xa2   :  { %v190_v35 = vmax.f32 %v152_v31, 0.0  ;;  %v194_v36 = vmax.f32 %v162_v32, 0.0 }
  0xa3   :  { %v213_v37 = vpack.c.bf16 %v197_v33, %v197_v33  ;;  %v217_v38 = vpack.c.bf16 %v201_v34, %v201_v34 }
  0xa4   :  { %v206_v39 = vpack.c.bf16 %v190_v35, %v190_v35  ;;  %v210_v40 = vpack.c.bf16 %v194_v36, %v194_v36 }
  0xa5   :  { %230 = vst.msk [vmem:[%s481_s3 + $0x20] sm:$0xf] %vm221_vm2, %v213_v37 }
  0xa6   :  { %234 = vst.msk [vmem:[%s481_s3 + $0x30] sm:$0xf] %vm221_vm2, %v217_v38  ;;  %v171_v41 = vpop.f32.mrf.mxu2  ;;  %v181_v42 = vpop.f32.mrf.mxu3 }
  0xa7   :  { %223 = vst.msk [vmem:[%s481_s3 + $0x4] sm:$0xf] %vm221_vm2, %v206_v39  ;;  %v172_v43 = vadd.f32 %v396_v16, %v171_v41  ;;  %v182_v44 = vadd.f32 %v396_v16, %v181_v42  ;;  %v154_v45 = vpop.f32.mrf.mxu0  ;;  %v164_v46 = vpop.f32.mrf.mxu1 }
  0xa8   :  { %227 = vst.msk [vmem:[%s481_s3 + $0x14] sm:$0xf] %vm221_vm2, %v210_v40  ;;  %v155_v47 = vadd.f32 %v396_v16, %v154_v45  ;;  %v165_v48 = vadd.f32 %v396_v16, %v164_v46 }
  0xa9   :  { %v198_v49 = vmax.f32 %v172_v43, 0.0  ;;  %v202_v50 = vmax.f32 %v182_v44, 0.0 }
  0xaa   :  { %v191_v51 = vmax.f32 %v155_v47, 0.0  ;;  %v195_v52 = vmax.f32 %v165_v48, 0.0 }
  0xab   :  { %v214_v53 = vpack.c.bf16 %v198_v49, %v198_v49  ;;  %v218_v54 = vpack.c.bf16 %v202_v50, %v202_v50 }
  0xac   :  { %v207_v55 = vpack.c.bf16 %v191_v51, %v191_v51  ;;  %v211_v56 = vpack.c.bf16 %v195_v52, %v195_v52 }
  0xad   :  { %231 = vst.msk [vmem:[%s481_s3 + $0x24] sm:$0xf] %vm221_vm2, %v214_v53 }
  0xae   :  { %235 = vst.msk [vmem:[%s481_s3 + $0x34] sm:$0xf] %vm221_vm2, %v218_v54  ;;  %v174_v57 = vpop.f32.mrf.mxu2  ;;  %v184_v58 = vpop.f32.mrf.mxu3 }
  0xaf   :  { %224 = vst.msk [vmem:[%s481_s3 + $0x8] sm:$0xf] %vm221_vm2, %v207_v55  ;;  %v175_v59 = vadd.f32 %v396_v16, %v174_v57  ;;  %v185_v60 = vadd.f32 %v396_v16, %v184_v58  ;;  %v156_v61 = vpop.f32.mrf.mxu0  ;;  %v166_v62 = vpop.f32.mrf.mxu1 }
  0xb0   :  { %228 = vst.msk [vmem:[%s481_s3 + $0x18] sm:$0xf] %vm221_vm2, %v211_v56  ;;  %v157_v63 = vadd.f32 %v396_v16, %v156_v61  ;;  %v167_v0 = vadd.f32 %v396_v16, %v166_v62 }
  0xb1   :  { %v199_v1 = vmax.f32 %v175_v59, 0.0  ;;  %v203_v2 = vmax.f32 %v185_v60, 0.0 }
  0xb2   :  { %v192_v3 = vmax.f32 %v157_v63, 0.0  ;;  %v196_v4 = vmax.f32 %v167_v0, 0.0 }
  0xb3   :  { %v215_v5 = vpack.c.bf16 %v199_v1, %v199_v1  ;;  %v219_v6 = vpack.c.bf16 %v203_v2, %v203_v2 }
  0xb4   :  { %v208_v7 = vpack.c.bf16 %v192_v3, %v192_v3  ;;  %v212_v8 = vpack.c.bf16 %v196_v4, %v196_v4 }
  0xb5   :  { %232 = vst.msk [vmem:[%s481_s3 + $0x28] sm:$0xf] %vm221_vm2, %v215_v5 }
  0xb6   :  { %236 = vst.msk [vmem:[%s481_s3 + $0x38] sm:$0xf] %vm221_vm2, %v219_v6  ;;  %v176_v9 = vpop.f32.mrf.mxu2  ;;  %v186_v10 = vpop.f32.mrf.mxu3 }
  0xb7   :  { %225 = vst.msk [vmem:[%s481_s3 + $0xc] sm:$0xf] %vm221_vm2, %v208_v7  ;;  %v177_v11 = vadd.f32 %v396_v16, %v176_v9  ;;  %v187_v12 = vadd.f32 %v396_v16, %v186_v10 }
  0xb8   :  { %229 = vst.msk [vmem:[%s481_s3 + $0x1c] sm:$0xf] %vm221_vm2, %v212_v8 }
  0xb9   :  { %v200_v13 = vmax.f32 %v177_v11, 0.0  ;;  %v204_v14 = vmax.f32 %v187_v12, 0.0 }
  0xbb   :  { %v216_v15 = vpack.c.bf16 %v200_v13, %v200_v13  ;;  %v220_v17 = vpack.c.bf16 %v204_v14, %v204_v14 }
  0xbd   :  { %233 = vst.msk [vmem:[%s481_s3 + $0x2c] sm:$0xf] %vm221_vm2, %v216_v15 }
  0xbe   :  { %237 = vst.msk [vmem:[%s481_s3 + $0x3c] sm:$0xf] %vm221_vm2, %v220_v17 }

// kernel: forward.21
= control target key start
LH: loop header
LB: loop body
LE: loop exit
PB: predicated region body
PF: predicated region fallthrough
CT: control target
= control target key end

     0   :  { %vm113_vm0 = vcmask 1046528   ;;  %vm964_vm1 = vcmask 60416   ;;  %s1701_s0 = inlined_call_operand.vmem [shape: bf16[2,9,9,8], index: 0, kind: input, shape index: {}]   ;;  %s1702_s1 = inlined_call_operand.vmem [shape: bf16[2,9,9,8], index: 1, kind: input, shape index: {}]   ;;  %s1703_s2 = inlined_call_operand.vmem [shape: bf16[2,9,9,8], index: 2, kind: input, shape index: {}]   ;;  %s1704_s3 = inlined_call_operand.vmem [shape: bf16[2,9,9,8], index: 3, kind: input, shape index: {}]   ;;  %s1705_s4 = inlined_call_operand.vmem [shape: bf16[2,8,8,8], index: 4, kind: output, shape index: {}]  }
   0x1   :  { %v17_v0 = vld [vmem:[%s1701_s0] sm:$0xf]  ;;  %v33_v1 = vld [vmem:[%s1701_s0 + $0x4] sm:$0x1]  ;;  %v985_v2 = vld [vmem:[%s1701_s0 + $0x8] sm:$0xf] }
   0x2   :  { %v49_v3 = vunpack.c.l.bf16 %v17_v0  ;;  %v65_v4 = vunpack.c.l.bf16 %v33_v1  ;;  %v243_v5 = vunpack.c.l.bf16 %v985_v2  ;;  %v1001_v6 = vld [vmem:[%s1701_s0 + $0xc] sm:$0x1]  ;;  %v467_v7 = vld [vmem:[%s1702_s1] sm:$0xf]  ;;  %v1076_v8 = vld [vmem:[%s1702_s1 + $0x8] sm:$0xf] }
   0x3   :  { %v323_v9 = vunpack.c.l.bf16 %v1001_v6  ;;  %v499_v10 = vunpack.c.l.bf16 %v467_v7  ;;  %v1081_v11 = vld [vmem:[%s1703_s2] sm:$0xf]  ;;  %v708_v12 = vld [vmem:[%s1703_s2 + $0x4] sm:$0x1]  ;;  %v18_v18 = vld [vmem:[%s1701_s0 + $0x8] sm:$0xf]  ;;  %v580_v20 = vunpack.c.l.bf16 %v1076_v8 }
   0x4   :  { %v1089_v13 = vld [vmem:[%s1704_s3] sm:$0xf]  ;;  %v114_v14 = vrot.slane %v49_v3, 1  ;;  %v115_v15 = vrot.slane %v65_v4, 1  ;;  %v371_v16 = vrot.slane %v243_v5, 1  ;;  %v660_v17 = vunpack.c.l.bf16 %v1081_v11 }
   0x5   :  { %v372_v19 = vrot.slane %v323_v9, 1  ;;  %v740_v21 = vunpack.c.l.bf16 %v708_v12  ;;  %v34_v22 = vld [vmem:[%s1701_s0 + $0xc] sm:$0x1]  ;;  %v50_v23 = vunpack.c.l.bf16 %v18_v18  ;;  %v986_v24 = vld [vmem:[%s1701_s0 + $0x10] sm:$0xf]  ;;  %v916_v33 = vunpack.c.l.bf16 %v1089_v13 }
   0x6   :  { %v116_v25 = vsel %vm113_vm0, %v114_v14, %v115_v15  ;;  %v788_v26 = vrot.slane %v660_v17, 1  ;;  %v66_v27 = vunpack.c.l.bf16 %v34_v22  ;;  %v244_v28 = vunpack.c.l.bf16 %v986_v24  ;;  %v1002_v29 = vld [vmem:[%s1701_s0 + $0x14] sm:$0x1]  ;;  %v468_v30 = vld [vmem:[%s1702_s1 + $0x8] sm:$0xf] }
   0x7   :  { %v178_v31 = vmax.f32 %v49_v3, %v116_v25  ;;  %v789_v32 = vrot.slane %v740_v21, 1  ;;  %v117_v34 = vrot.slane %v50_v23, 1  ;;  %v1115_v35 = vld [vmem:[%s1702_s1 + $0x10] sm:$0xf]  ;;  %v1120_v36 = vld [vmem:[%s1703_s2 + $0x8] sm:$0xf]  ;;  %v373_v37 = vsel %vm113_vm0, %v371_v16, %v372_v19 }
   0x8   :  { %v118_v38 = vrot.slane %v66_v27, 1  ;;  %v324_v39 = vunpack.c.l.bf16 %v1002_v29  ;;  %v374_v40 = vrot.slane %v244_v28, 1  ;;  %v709_v41 = vld [vmem:[%s1703_s2 + $0xc] sm:$0x1]  ;;  %v500_v44 = vunpack.c.l.bf16 %v468_v30  ;;  %v19_v46 = vld [vmem:[%s1701_s0 + $0x10] sm:$0xf] }
   0x9   :  { %v259_v42 = vmax.f32 %v178_v31, %v243_v5  ;;  %v1127_v43 = vsel %vm113_vm0, %v788_v26, %v789_v32  ;;  %v661_v45 = vunpack.c.l.bf16 %v1120_v36  ;;  %v35_v47 = vld [vmem:[%s1701_s0 + $0x14] sm:$0x1]  ;;  %v987_v48 = vld [vmem:[%s1701_s0 + $0x18] sm:$0xf]  ;;  %v581_v51 = vunpack.c.l.bf16 %v1115_v35  ;;  %v1003_v53 = vld [vmem:[%s1701_s0 + $0x1c] sm:$0x1] }
   0xa   :  { %v119_v49 = vsel %vm113_vm0, %v117_v34, %v118_v38  ;;  %v375_v50 = vrot.slane %v324_v39, 1  ;;  %v741_v52 = vunpack.c.l.bf16 %v709_v41  ;;  %v1149_v57 = vld [vmem:[%s1704_s3 + $0x8] sm:$0xf]  ;;  %v51_v58 = vunpack.c.l.bf16 %v19_v46  ;;  %v469_v63 = vld [vmem:[%s1702_s1 + $0x10] sm:$0xf] }
   0xb   :  { %v435_v54 = vmax.f32 %v259_v42, %v373_v37  ;;  %v179_v55 = vmax.f32 %v50_v23, %v119_v49  ;;  %v791_v56 = vrot.slane %v661_v45, 1  ;;  %v67_v61 = vunpack.c.l.bf16 %v35_v47  ;;  %v1158_v0 = vld [vmem:[%s1702_s1 + $0x18] sm:$0xf]  ;;  %v1163_v5 = vld [vmem:[%s1703_s2 + $0x10] sm:$0xf] }
   0xc   :  { %v376_v59 = vsel %vm113_vm0, %v374_v40, %v375_v50  ;;  %v792_v60 = vrot.slane %v741_v52, 1  ;;  %v245_v62 = vunpack.c.l.bf16 %v987_v48  ;;  %v120_v3 = vrot.slane %v51_v58, 1  ;;  %v710_v6 = vld [vmem:[%s1703_s2 + $0x14] sm:$0x1]  ;;  %v20_v18 = vld [vmem:[%s1701_s0 + $0x18] sm:$0xf] }
   0xd   :  { %v515_v1 = vmax.f32 %v435_v54, %v499_v10  ;;  %v260_v2 = vmax.f32 %v179_v55, %v244_v28  ;;  %v325_v4 = vunpack.c.l.bf16 %v1003_v53  ;;  %v917_v8 = vunpack.c.l.bf16 %v1149_v57  ;;  %v36_v19 = vld [vmem:[%s1701_s0 + $0x1c] sm:$0x1]  ;;  %v1188_v29 = vld [vmem:[%s1704_s3 + $0x10] sm:$0xf]  ;;  %v1004_v30 = vld [vmem:[%s1701_s0 + $0x24] sm:$0x1] }
   0xe   :  { %v793_v7 = vsel %vm113_vm0, %v791_v56, %v792_v60  ;;  %v121_v9 = vrot.slane %v67_v61, 1  ;;  %v377_v12 = vrot.slane %v245_v62, 1  ;;  %v501_v16 = vunpack.c.l.bf16 %v469_v63  ;;  %v470_v39 = vld [vmem:[%s1702_s1 + $0x18] sm:$0xf]  ;;  %v1020_v46 = vld [vmem:[%s1702_s1 + $0x20] sm:$0xf] }
   0xf   :  { %v596_v10 = vmax.f32 %v515_v1, %v580_v20  ;;  %v436_v14 = vmax.f32 %v260_v2, %v376_v59  ;;  %v378_v15 = vrot.slane %v325_v4, 1  ;;  %v582_v22 = vunpack.c.l.bf16 %v1158_v0  ;;  %v988_v20 = vld [vmem:[%s1701_s0 + $0x20] sm:$0xf]  ;;  %v1208_v50 = vld [vmem:[%s1703_s2 + $0x18] sm:$0xf] }
  0x10   :  { %v122_v21 = vsel %vm113_vm0, %v120_v3, %v121_v9  ;;  %v662_v23 = vunpack.c.l.bf16 %v1163_v5  ;;  %v742_v24 = vunpack.c.l.bf16 %v710_v6  ;;  %v52_v34 = vunpack.c.l.bf16 %v20_v18  ;;  %v21_v36 = vld [vmem:[%s1701_s0 + $0x20] sm:$0xf]  ;;  %v37_v57 = vld [vmem:[%s1701_s0 + $0x24] sm:$0x1]  ;;  %v1005_v3 = vld [vmem:[%s1701_s0 + $0x2c] sm:$0x1] }
  0x11   :  { %v676_v25 = vmax.f32 %v596_v10, %v660_v17  ;;  %v516_v26 = vmax.f32 %v436_v14, %v500_v44  ;;  %v180_v27 = vmax.f32 %v51_v58, %v122_v21  ;;  %v379_v28 = vsel %vm113_vm0, %v377_v12, %v378_v15  ;;  %v989_v58 = vld [vmem:[%s1701_s0 + $0x28] sm:$0xf]  ;;  %v887_v6 = vld [vmem:[%s1704_s3 + $0x18] sm:$0xf] }
  0x12   :  { %v794_v31 = vrot.slane %v662_v23, 1  ;;  %v795_v32 = vrot.slane %v742_v24, 1  ;;  %v68_v35 = vunpack.c.l.bf16 %v36_v19  ;;  %v246_v38 = vunpack.c.l.bf16 %v988_v20 }
  0x13   :  { %v852_v11 = vmax.f32 %v676_v25, %v1127_v43  ;;  %v597_v17 = vmax.f32 %v516_v26, %v581_v51  ;;  %v261_v37 = vmax.f32 %v180_v27, %v245_v62  ;;  %v918_v40 = vunpack.c.l.bf16 %v1188_v29  ;;  %v711_v51 = vld [vmem:[%s1703_s2 + $0x1c] sm:$0x1]  ;;  %v22_v26 = vld [vmem:[%s1701_s0 + $0x28] sm:$0xf] }
  0x14   :  { %v123_v41 = vrot.slane %v52_v34, 1  ;;  %v124_v42 = vrot.slane %v68_v35, 1  ;;  %v326_v44 = vunpack.c.l.bf16 %v1004_v30  ;;  %v380_v49 = vrot.slane %v246_v38, 1 }
  0x15   :  { %v932_v47 = vmax.f32 %v852_v11, %v916_v33  ;;  %v677_v43 = vmax.f32 %v597_v17, %v661_v45  ;;  %v437_v48 = vmax.f32 %v261_v37, %v379_v28  ;;  %v796_v52 = vsel %vm113_vm0, %v794_v31, %v795_v32  ;;  %v38_v31 = vld [vmem:[%s1701_s0 + $0x2c] sm:$0x1]  ;;  %v1021_v17 = vld [vmem:[%s1702_s1 + $0x28] sm:$0xf]  ;;  %v990_v37 = vld [vmem:[%s1701_s0 + $0x30] sm:$0xf] }
  0x16   :  { %v125_v53 = vsel %vm113_vm0, %v123_v41, %v124_v42  ;;  %v381_v13 = vrot.slane %v326_v44, 1  ;;  %v502_v33 = vunpack.c.l.bf16 %v470_v39  ;;  %v583_v60 = vunpack.c.l.bf16 %v1020_v46 }
  0x17   :  { %v948_v45 = vpack.c.bf16 %v932_v47, %v932_v47  ;;  %v853_v54 = vmax.f32 %v677_v43, %v793_v7  ;;  %v517_v55 = vmax.f32 %v437_v48, %v501_v16  ;;  %v181_v56 = vmax.f32 %v52_v34, %v125_v53  ;;  %v712_v16 = vld [vmem:[%s1703_s2 + $0x24] sm:$0x1] }
  0x18   :  { %v382_v59 = vsel %vm113_vm0, %v380_v49, %v381_v13  ;;  %v663_v61 = vunpack.c.l.bf16 %v1208_v50  ;;  %v743_v62 = vunpack.c.l.bf16 %v711_v51  ;;  %v53_v2 = vunpack.c.l.bf16 %v21_v36  ;;  %v1278_v49 = vld [vmem:[%s1703_s2 + $0x28] sm:$0xf]  ;;  %v713_v13 = vld [vmem:[%s1703_s2 + $0x2c] sm:$0x1] }
  0x19   :  { %965 = vst.msk [vmem:[%s1705_s4] sm:$0xf] %vm964_vm1, %v948_v45  ;;  %v933_v63 = vmax.f32 %v853_v54, %v917_v8  ;;  %v598_v0 = vmax.f32 %v517_v55, %v582_v22  ;;  %v262_v1 = vmax.f32 %v181_v56, %v246_v38  ;;  %v69_v7 = vunpack.c.l.bf16 %v37_v57  ;;  %v1239_v8 = vld [vmem:[%s1703_s2 + $0x20] sm:$0xf]  ;;  %v1006_v38 = vld [vmem:[%s1701_s0 + $0x34] sm:$0x1] }
  0x1a   :  { %v797_v4 = vrot.slane %v663_v61, 1  ;;  %v798_v5 = vrot.slane %v743_v62, 1  ;;  %v247_v9 = vunpack.c.l.bf16 %v989_v58  ;;  %v126_v15 = vrot.slane %v53_v2, 1  ;;  %v471_v22 = vld [vmem:[%s1702_s1 + $0x20] sm:$0xf] }
  0x1b   :  { %v949_v12 = vpack.c.bf16 %v933_v63, %v933_v63  ;;  %v678_v10 = vmax.f32 %v598_v0, %v662_v23  ;;  %v438_v14 = vmax.f32 %v262_v1, %v382_v59  ;;  %v127_v18 = vrot.slane %v69_v7, 1  ;;  %v472_v55 = vld [vmem:[%s1702_s1 + $0x28] sm:$0xf]  ;;  %v39_v1 = vld [vmem:[%s1701_s0 + $0x34] sm:$0x1] }
  0x1c   :  { %v327_v19 = vunpack.c.l.bf16 %v1005_v3  ;;  %v383_v21 = vrot.slane %v247_v9, 1  ;;  %v799_v20 = vsel %vm113_vm0, %v797_v4, %v798_v5  ;;  %v919_v25 = vunpack.c.l.bf16 %v887_v6  ;;  %v1007_v3 = vld [vmem:[%s1701_s0 + $0x3c] sm:$0x1]  ;;  %v1022_v7 = vld [vmem:[%s1702_s1 + $0x30] sm:$0xf] }
  0x1d   :  { %966 = vst.msk [vmem:[%s1705_s4 + $0x4] sm:$0xf] %vm964_vm1, %v949_v12  ;;  %v854_v23 = vmax.f32 %v678_v10, %v796_v52  ;;  %v518_v24 = vmax.f32 %v438_v14, %v502_v33  ;;  %v128_v27 = vsel %vm113_vm0, %v126_v15, %v127_v18  ;;  %v664_v29 = vunpack.c.l.bf16 %v1239_v8  ;;  %v1315_v12 = vld [vmem:[%s1704_s3 + $0x28] sm:$0xf] }
  0x1e   :  { %v384_v28 = vrot.slane %v327_v19, 1  ;;  %v744_v30 = vunpack.c.l.bf16 %v712_v16  ;;  %v182_v35 = vmax.f32 %v53_v2, %v128_v27  ;;  %v503_v11 = vunpack.c.l.bf16 %v471_v22  ;;  %v991_v2 = vld [vmem:[%s1701_s0 + $0x38] sm:$0xf]  ;;  %v1320_v22 = vld [vmem:[%s1703_s2 + $0x30] sm:$0xf] }
  0x1f   :  { %v934_v32 = vmax.f32 %v854_v23, %v918_v40  ;;  %v599_v34 = vmax.f32 %v518_v24, %v583_v60  ;;  %v800_v41 = vrot.slane %v664_v29, 1  ;;  %v1273_v40 = vld [vmem:[%s1704_s3 + $0x20] sm:$0xf]  ;;  %v54_v44 = vunpack.c.l.bf16 %v22_v26  ;;  %v23_v60 = vld [vmem:[%s1701_s0 + $0x30] sm:$0xf] }
  0x20   :  { %v385_v39 = vsel %vm113_vm0, %v383_v21, %v384_v28  ;;  %v801_v42 = vrot.slane %v744_v30, 1  ;;  %v263_v43 = vmax.f32 %v182_v35, %v247_v9  ;;  %v70_v48 = vunpack.c.l.bf16 %v38_v31  ;;  %v714_v23 = vld [vmem:[%s1703_s2 + $0x34] sm:$0x1]  ;;  %v473_v27 = vld [vmem:[%s1702_s1 + $0x30] sm:$0xf] }
  0x21   :  { %v950_v46 = vpack.c.bf16 %v934_v32, %v934_v32  ;;  %v679_v47 = vmax.f32 %v599_v34, %v663_v61  ;;  %v584_v50 = vunpack.c.l.bf16 %v1021_v17  ;;  %v129_v51 = vrot.slane %v54_v44, 1 }
  0x22   :  { %v248_v52 = vunpack.c.l.bf16 %v990_v37  ;;  %v328_v53 = vunpack.c.l.bf16 %v1006_v38  ;;  %v439_v36 = vmax.f32 %v263_v43, %v385_v39  ;;  %v920_v45 = vunpack.c.l.bf16 %v1273_v40  ;;  %v40_v37 = vld [vmem:[%s1701_s0 + $0x3c] sm:$0x1]  ;;  %v992_v38 = vld [vmem:[%s1701_s0 + $0x40] sm:$0xf] }
  0x23   :  { %967 = vst.msk [vmem:[%s1705_s4 + $0x8] sm:$0xf] %vm964_vm1, %v950_v46  ;;  %v855_v33 = vmax.f32 %v679_v47, %v799_v20  ;;  %v130_v54 = vrot.slane %v70_v48, 1  ;;  %v802_v56 = vsel %vm113_vm0, %v800_v41, %v801_v42  ;;  %v665_v59 = vunpack.c.l.bf16 %v1278_v49  ;;  %v1008_v46 = vld [vmem:[%s1701_s0 + $0x44] sm:$0x1] }
  0x24   :  { %v386_v57 = vrot.slane %v248_v52, 1  ;;  %v387_v58 = vrot.slane %v328_v53, 1  ;;  %v519_v62 = vmax.f32 %v439_v36, %v503_v11  ;;  %v745_v0 = vunpack.c.l.bf16 %v713_v13  ;;  %v25_v49 = vld [vmem:[%s1701_s0 + $0x48] sm:$0xf] }
  0x25   :  { %v935_v61 = vmax.f32 %v855_v33, %v919_v25  ;;  %v131_v63 = vsel %vm113_vm0, %v129_v51, %v130_v54  ;;  %v504_v6 = vunpack.c.l.bf16 %v472_v55  ;;  %v803_v9 = vrot.slane %v665_v59, 1 }
  0x26   :  { %v183_v4 = vmax.f32 %v54_v44, %v131_v63  ;;  %v388_v5 = vsel %vm113_vm0, %v386_v57, %v387_v58  ;;  %v600_v14 = vmax.f32 %v519_v62, %v584_v50  ;;  %v804_v15 = vrot.slane %v745_v0, 1  ;;  %v1023_v44 = vld [vmem:[%s1702_s1 + $0x38] sm:$0xf]  ;;  %v715_v57 = vld [vmem:[%s1703_s2 + $0x3c] sm:$0x1] }
  0x27   :  { %v951_v10 = vpack.c.bf16 %v935_v61, %v935_v61  ;;  %v55_v8 = vunpack.c.l.bf16 %v23_v60  ;;  %v71_v18 = vunpack.c.l.bf16 %v39_v1  ;;  %v249_v19 = vunpack.c.l.bf16 %v991_v2  ;;  %v474_v63 = vld [vmem:[%s1702_s1 + $0x38] sm:$0xf] }
  0x28   :  { %v264_v16 = vmax.f32 %v183_v4, %v248_v52  ;;  %v329_v21 = vunpack.c.l.bf16 %v1007_v3  ;;  %v680_v24 = vmax.f32 %v600_v14, %v664_v29  ;;  %v585_v20 = vunpack.c.l.bf16 %v1022_v7  ;;  %v24_v29 = vld [vmem:[%s1701_s0 + $0x38] sm:$0xf]  ;;  %v1357_v52 = vld [vmem:[%s1704_s3 + $0x30] sm:$0xf]  ;;  %v41_v7 = vld [vmem:[%s1701_s0 + $0x4c] sm:$0x1] }
  0x29   :  { %968 = vst.msk [vmem:[%s1705_s4 + $0xc] sm:$0xf] %vm964_vm1, %v951_v10  ;;  %v921_v25 = vunpack.c.l.bf16 %v1315_v12  ;;  %v132_v26 = vrot.slane %v55_v8, 1  ;;  %v133_v30 = vrot.slane %v71_v18, 1  ;;  %v389_v31 = vrot.slane %v249_v19, 1 }
  0x2a   :  { %v440_v28 = vmax.f32 %v264_v16, %v388_v5  ;;  %v390_v32 = vrot.slane %v329_v21, 1  ;;  %v856_v34 = vmax.f32 %v680_v24, %v802_v56  ;;  %v805_v35 = vsel %vm113_vm0, %v803_v9, %v804_v15  ;;  %v993_v9 = vld [vmem:[%s1701_s0 + $0x50] sm:$0xf]  ;;  %v1009_v16 = vld [vmem:[%s1701_s0 + $0x54] sm:$0x1] }
  0x2b   :  { %v666_v11 = vunpack.c.l.bf16 %v1320_v22  ;;  %v746_v17 = vunpack.c.l.bf16 %v714_v23  ;;  %v134_v41 = vsel %vm113_vm0, %v132_v26, %v133_v30  ;;  %v505_v40 = vunpack.c.l.bf16 %v473_v27  ;;  %v1399_v26 = vld [vmem:[%s1704_s3 + $0x38] sm:$0xf]  ;;  %v1404_v30 = vld [vmem:[%s1703_s2 + $0x48] sm:$0xf] }
  0x2c   :  { %v520_v39 = vmax.f32 %v440_v28, %v504_v6  ;;  %v391_v42 = vsel %vm113_vm0, %v389_v31, %v390_v32  ;;  %v936_v47 = vmax.f32 %v856_v34, %v920_v45  ;;  %v184_v43 = vmax.f32 %v55_v8, %v134_v41  ;;  %v1362_v45 = vld [vmem:[%s1703_s2 + $0x38] sm:$0xf]  ;;  %v1024_v8 = vld [vmem:[%s1702_s1 + $0x40] sm:$0xf] }
  0x2d   :  { %v806_v48 = vrot.slane %v666_v11, 1  ;;  %v807_v50 = vrot.slane %v746_v17, 1  ;;  %v56_v53 = vunpack.c.l.bf16 %v24_v29  ;;  %v72_v13 = vunpack.c.l.bf16 %v40_v37 }
  0x2e   :  { %v601_v51 = vmax.f32 %v520_v39, %v585_v20  ;;  %v250_v33 = vunpack.c.l.bf16 %v992_v38  ;;  %v952_v36 = vpack.c.bf16 %v936_v47, %v936_v47  ;;  %v265_v54 = vmax.f32 %v184_v43, %v249_v19  ;;  %v475_v39 = vld [vmem:[%s1702_s1 + $0x48] sm:$0xf] }
  0x2f   :  { %v586_v55 = vunpack.c.l.bf16 %v1023_v44  ;;  %v330_v56 = vunpack.c.l.bf16 %v1008_v46  ;;  %v135_v60 = vrot.slane %v56_v53, 1  ;;  %v136_v61 = vrot.slane %v72_v13, 1 }
  0x30   :  { %v681_v58 = vmax.f32 %v601_v51, %v665_v59  ;;  %v392_v62 = vrot.slane %v250_v33, 1  ;;  %969 = vst.msk [vmem:[%s1705_s4 + $0x10] sm:$0xf] %vm964_vm1, %v952_v36  ;;  %v441_v0 = vmax.f32 %v265_v54, %v391_v42  ;;  %v808_v1 = vsel %vm113_vm0, %v806_v48, %v807_v50  ;;  %v42_v48 = vld [vmem:[%s1701_s0 + $0x54] sm:$0x1] }
  0x31   :  { %v922_v2 = vunpack.c.l.bf16 %v1357_v52  ;;  %v393_v3 = vrot.slane %v330_v56, 1  ;;  %v137_v4 = vsel %vm113_vm0, %v135_v60, %v136_v61  ;;  %v667_v5 = vunpack.c.l.bf16 %v1362_v45  ;;  %v994_v50 = vld [vmem:[%s1701_s0 + $0x58] sm:$0xf]  ;;  %v1010_v51 = vld [vmem:[%s1701_s0 + $0x5c] sm:$0x1] }
  0x32   :  { %v857_v59 = vmax.f32 %v681_v58, %v805_v35  ;;  %v747_v6 = vunpack.c.l.bf16 %v715_v57  ;;  %v521_v12 = vmax.f32 %v441_v0, %v505_v40  ;;  %v185_v10 = vmax.f32 %v56_v53, %v137_v4  ;;  %v716_v35 = vld [vmem:[%s1703_s2 + $0x4c] sm:$0x1]  ;;  %v1441_v58 = vld [vmem:[%s1704_s3 + $0x48] sm:$0xf] }
  0x33   :  { %v394_v14 = vsel %vm113_vm0, %v392_v62, %v393_v3  ;;  %v506_v15 = vunpack.c.l.bf16 %v474_v63  ;;  %v809_v19 = vrot.slane %v667_v5, 1  ;;  %v57_v23 = vunpack.c.l.bf16 %v25_v49  ;;  %v1446_v63 = vld [vmem:[%s1703_s2 + $0x50] sm:$0xf] }
  0x34   :  { %v937_v18 = vmax.f32 %v857_v59, %v921_v25  ;;  %v810_v21 = vrot.slane %v747_v6, 1  ;;  %v602_v24 = vmax.f32 %v521_v12, %v586_v55  ;;  %v266_v20 = vmax.f32 %v185_v10, %v250_v33  ;;  %v1025_v33 = vld [vmem:[%s1702_s1 + $0x50] sm:$0xf]  ;;  %v717_v59 = vld [vmem:[%s1703_s2 + $0x54] sm:$0x1] }
  0x35   :  { %v73_v27 = vunpack.c.l.bf16 %v41_v7  ;;  %v251_v28 = vunpack.c.l.bf16 %v993_v9  ;;  %v587_v32 = vunpack.c.l.bf16 %v1024_v8  ;;  %v138_v25 = vrot.slane %v57_v23, 1  ;;  %v476_v49 = vld [vmem:[%s1702_s1 + $0x50] sm:$0xf]  ;;  %v43_v8 = vld [vmem:[%s1701_s0 + $0x5c] sm:$0x1] }
  0x36   :  { %v953_v31 = vpack.c.bf16 %v937_v18, %v937_v18  ;;  %v331_v34 = vunpack.c.l.bf16 %v1009_v16  ;;  %v682_v17 = vmax.f32 %v602_v24, %v666_v11  ;;  %v442_v29 = vmax.f32 %v266_v20, %v394_v14  ;;  %v26_v11 = vld [vmem:[%s1701_s0 + $0x50] sm:$0xf]  ;;  %v1011_v24 = vld [vmem:[%s1701_s0 + $0x64] sm:$0x1] }
  0x37   :  { %v139_v37 = vrot.slane %v73_v27, 1  ;;  %v395_v38 = vrot.slane %v251_v28, 1  ;;  %v811_v41 = vsel %vm113_vm0, %v809_v19, %v810_v21  ;;  %v923_v42 = vunpack.c.l.bf16 %v1399_v26 }
  0x38   :  { %970 = vst.msk [vmem:[%s1705_s4 + $0x14] sm:$0xf] %vm964_vm1, %v953_v31  ;;  %v396_v40 = vrot.slane %v331_v34, 1  ;;  %v668_v22 = vunpack.c.l.bf16 %v1404_v30  ;;  %v858_v44 = vmax.f32 %v682_v17, %v808_v1  ;;  %v522_v46 = vmax.f32 %v442_v29, %v506_v15  ;;  %v27_v15 = vld [vmem:[%s1701_s0 + $0x58] sm:$0xf] }
  0x39   :  { %v140_v47 = vsel %vm113_vm0, %v138_v25, %v139_v37  ;;  %v748_v43 = vunpack.c.l.bf16 %v716_v35  ;;  %v507_v13 = vunpack.c.l.bf16 %v475_v39  ;;  %v58_v45 = vunpack.c.l.bf16 %v26_v11  ;;  %v1481_v25 = vld [vmem:[%s1704_s3 + $0x50] sm:$0xf]  ;;  %v1486_v39 = vld [vmem:[%s1703_s2 + $0x58] sm:$0xf] }
  0x3a   :  { %v186_v52 = vmax.f32 %v57_v23, %v140_v47  ;;  %v397_v53 = vsel %vm113_vm0, %v395_v38, %v396_v40  ;;  %v812_v36 = vrot.slane %v668_v22, 1  ;;  %v938_v54 = vmax.f32 %v858_v44, %v922_v2  ;;  %v995_v23 = vld [vmem:[%s1701_s0 + $0x60] sm:$0xf]  ;;  %v477_v44 = vld [vmem:[%s1702_s1 + $0x58] sm:$0xf] }
  0x3b   :  { %v603_v55 = vmax.f32 %v522_v46, %v587_v32  ;;  %v813_v56 = vrot.slane %v748_v43, 1  ;;  %v74_v60 = vunpack.c.l.bf16 %v42_v48  ;;  %v252_v61 = vunpack.c.l.bf16 %v994_v50  ;;  %v718_v46 = vld [vmem:[%s1703_s2 + $0x5c] sm:$0x1]  ;;  %v28_v50 = vld [vmem:[%s1701_s0 + $0x60] sm:$0xf] }
  0x3c   :  { %v267_v57 = vmax.f32 %v186_v52, %v251_v28  ;;  %v332_v62 = vunpack.c.l.bf16 %v1010_v51  ;;  %v954_v0 = vpack.c.bf16 %v938_v54, %v938_v54  ;;  %v588_v2 = vunpack.c.l.bf16 %v1025_v33  ;;  %v1026_v28 = vld [vmem:[%s1702_s1 + $0x58] sm:$0xf]  ;;  %v44_v33 = vld [vmem:[%s1701_s0 + $0x64] sm:$0x1] }
  0x3d   :  { %v683_v1 = vmax.f32 %v603_v55, %v667_v5  ;;  %v141_v3 = vrot.slane %v58_v45, 1  ;;  %v142_v6 = vrot.slane %v74_v60, 1  ;;  %v398_v7 = vrot.slane %v252_v61, 1 }
  0x3e   :  { %v443_v4 = vmax.f32 %v267_v57, %v397_v53  ;;  %v399_v9 = vrot.slane %v332_v62, 1  ;;  %971 = vst.msk [vmem:[%s1705_s4 + $0x18] sm:$0xf] %vm964_vm1, %v954_v0  ;;  %v814_v12 = vsel %vm113_vm0, %v812_v36, %v813_v56  ;;  %v924_v10 = vunpack.c.l.bf16 %v1441_v58  ;;  %v1012_v57 = vld [vmem:[%s1701_s0 + $0x6c] sm:$0x1] }
  0x3f   :  { %v859_v5 = vmax.f32 %v683_v1, %v811_v41  ;;  %v669_v14 = vunpack.c.l.bf16 %v1446_v63  ;;  %v143_v18 = vsel %vm113_vm0, %v141_v3, %v142_v6  ;;  %v508_v19 = vunpack.c.l.bf16 %v476_v49  ;;  %v894_v3 = vld [vmem:[%s1704_s3 + $0x58] sm:$0xf] }
  0x40   :  { %v523_v16 = vmax.f32 %v443_v4, %v507_v13  ;;  %v749_v21 = vunpack.c.l.bf16 %v717_v59  ;;  %v187_v26 = vmax.f32 %v58_v45, %v143_v18  ;;  %v400_v27 = vsel %vm113_vm0, %v398_v7, %v399_v9  ;;  %v996_v45 = vld [vmem:[%s1701_s0 + $0x68] sm:$0xf]  ;;  %v1524_v9 = vld [vmem:[%s1703_s2 + $0x60] sm:$0xf] }
  0x41   :  { %v939_v20 = vmax.f32 %v859_v5, %v923_v42  ;;  %v815_v30 = vrot.slane %v669_v14, 1  ;;  %v59_v34 = vunpack.c.l.bf16 %v27_v15  ;;  %v75_v35 = vunpack.c.l.bf16 %v43_v8  ;;  %v478_v8 = vld [vmem:[%s1702_s1 + $0x60] sm:$0xf] }
  0x42   :  { %v604_v31 = vmax.f32 %v523_v16, %v588_v2  ;;  %v816_v32 = vrot.slane %v749_v21, 1  ;;  %v268_v29 = vmax.f32 %v187_v26, %v252_v61  ;;  %v253_v37 = vunpack.c.l.bf16 %v995_v23  ;;  %v1027_v61 = vld [vmem:[%s1702_s1 + $0x60] sm:$0xf]  ;;  %v719_v16 = vld [vmem:[%s1703_s2 + $0x64] sm:$0x1] }
  0x43   :  { %v955_v17 = vpack.c.bf16 %v939_v20, %v939_v20  ;;  %v333_v38 = vunpack.c.l.bf16 %v1011_v24  ;;  %v589_v42 = vunpack.c.l.bf16 %v1026_v28  ;;  %v144_v40 = vrot.slane %v59_v34, 1  ;;  %v29_v23 = vld [vmem:[%s1701_s0 + $0x68] sm:$0xf]  ;;  %v45_v28 = vld [vmem:[%s1701_s0 + $0x6c] sm:$0x1] }
  0x44   :  { %v684_v41 = vmax.f32 %v604_v31, %v668_v22  ;;  %v145_v11 = vrot.slane %v75_v35, 1  ;;  %v444_v47 = vmax.f32 %v268_v29, %v400_v27  ;;  %v925_v43 = vunpack.c.l.bf16 %v1481_v25  ;;  %v1013_v35 = vld [vmem:[%s1701_s0 + $0x74] sm:$0x1] }
  0x45   :  { %972 = vst.msk [vmem:[%s1705_s4 + $0x1c] sm:$0xf] %vm964_vm1, %v955_v17  ;;  %v401_v22 = vrot.slane %v253_v37, 1  ;;  %v402_v48 = vrot.slane %v333_v38, 1  ;;  %v817_v52 = vsel %vm113_vm0, %v815_v30, %v816_v32  ;;  %v670_v13 = vunpack.c.l.bf16 %v1486_v39  ;;  %v997_v30 = vld [vmem:[%s1701_s0 + $0x70] sm:$0xf] }
  0x46   :  { %v860_v51 = vmax.f32 %v684_v41, %v814_v12  ;;  %v146_v53 = vsel %vm113_vm0, %v144_v40, %v145_v11  ;;  %v524_v36 = vmax.f32 %v444_v47, %v508_v19  ;;  %v509_v55 = vunpack.c.l.bf16 %v477_v44 }
  0x47   :  { %v188_v54 = vmax.f32 %v59_v34, %v146_v53  ;;  %v750_v56 = vunpack.c.l.bf16 %v718_v46  ;;  %v403_v60 = vsel %vm113_vm0, %v401_v22, %v402_v48  ;;  %v818_v62 = vrot.slane %v670_v13, 1  ;;  %v1558_v48 = vld [vmem:[%s1703_s2 + $0x68] sm:$0xf] }
  0x48   :  { %v940_v58 = vmax.f32 %v860_v51, %v924_v10  ;;  %v60_v63 = vunpack.c.l.bf16 %v28_v50  ;;  %v605_v0 = vmax.f32 %v524_v36, %v589_v42  ;;  %v76_v49 = vunpack.c.l.bf16 %v44_v33  ;;  %v479_v33 = vld [vmem:[%s1702_s1 + $0x68] sm:$0xf] }
  0x49   :  { %v269_v1 = vmax.f32 %v188_v54, %v253_v37  ;;  %v819_v2 = vrot.slane %v750_v56, 1  ;;  %v254_v6 = vunpack.c.l.bf16 %v996_v45  ;;  %v334_v7 = vunpack.c.l.bf16 %v1012_v57  ;;  %v1028_v37 = vld [vmem:[%s1702_s1 + $0x68] sm:$0xf] }
  0x4a   :  { %v956_v59 = vpack.c.bf16 %v940_v58, %v940_v58  ;;  %v147_v4 = vrot.slane %v60_v63, 1  ;;  %v685_v5 = vmax.f32 %v605_v0, %v669_v14  ;;  %v590_v10 = vunpack.c.l.bf16 %v1027_v61  ;;  %v998_v61 = vld [vmem:[%s1701_s0 + $0x78] sm:$0xf] }
  0x4b   :  { %v445_v12 = vmax.f32 %v269_v1, %v403_v60  ;;  %v148_v15 = vrot.slane %v76_v49, 1  ;;  %v820_v18 = vsel %vm113_vm0, %v818_v62, %v819_v2  ;;  %v926_v19 = vunpack.c.l.bf16 %v894_v3  ;;  %v46_v60 = vld [vmem:[%s1701_s0 + $0x74] sm:$0x1]  ;;  %v1014_v3 = vld [vmem:[%s1701_s0 + $0x7c] sm:$0x1] }
  0x4c   :  { %973 = vst.msk [vmem:[%s1705_s4 + $0x20] sm:$0xf] %vm964_vm1, %v956_v59  ;;  %v404_v14 = vrot.slane %v254_v6, 1  ;;  %v405_v21 = vrot.slane %v334_v7, 1  ;;  %v861_v24 = vmax.f32 %v685_v5, %v817_v52  ;;  %v671_v27 = vunpack.c.l.bf16 %v1524_v9  ;;  %v1029_v59 = vld [vmem:[%s1702_s1 + $0x70] sm:$0xf] }
  0x4d   :  { %v525_v20 = vmax.f32 %v445_v12, %v509_v55  ;;  %v149_v26 = vsel %vm113_vm0, %v147_v4, %v148_v15  ;;  %v510_v25 = vunpack.c.l.bf16 %v478_v8  ;;  %v751_v34 = vunpack.c.l.bf16 %v719_v16  ;;  %v30_v55 = vld [vmem:[%s1701_s0 + $0x70] sm:$0xf] }
  0x4e   :  { %v189_v31 = vmax.f32 %v60_v63, %v149_v26  ;;  %v406_v32 = vsel %vm113_vm0, %v404_v14, %v405_v21  ;;  %v941_v17 = vmax.f32 %v861_v24, %v925_v43  ;;  %v821_v38 = vrot.slane %v671_v27, 1  ;;  %v720_v43 = vld [vmem:[%s1703_s2 + $0x6c] sm:$0x1]  ;;  %v895_v63 = vld [vmem:[%s1704_s3 + $0x60] sm:$0xf] }
  0x4f   :  { %v606_v29 = vmax.f32 %v525_v20, %v590_v10  ;;  %v61_v39 = vunpack.c.l.bf16 %v29_v23  ;;  %v822_v42 = vrot.slane %v751_v34, 1  ;;  %v77_v40 = vunpack.c.l.bf16 %v45_v28  ;;  %v1595_v15 = vld [vmem:[%s1703_s2 + $0x70] sm:$0xf]  ;;  %v721_v21 = vld [vmem:[%s1703_s2 + $0x74] sm:$0x1] }
  0x50   :  { %v270_v41 = vmax.f32 %v189_v31, %v254_v6  ;;  %v255_v11 = vunpack.c.l.bf16 %v997_v30  ;;  %v957_v44 = vpack.c.bf16 %v941_v17, %v941_v17  ;;  %v335_v22 = vunpack.c.l.bf16 %v1013_v35  ;;  %v480_v14 = vld [vmem:[%s1702_s1 + $0x70] sm:$0xf] }
  0x51   :  { %v686_v46 = vmax.f32 %v606_v29, %v670_v13  ;;  %v150_v47 = vrot.slane %v61_v39, 1  ;;  %v591_v51 = vunpack.c.l.bf16 %v1028_v37  ;;  %v151_v52 = vrot.slane %v77_v40, 1  ;;  %v999_v37 = vld [vmem:[%s1701_s0 + $0x80] sm:$0xf] }
  0x52   :  { %v446_v50 = vmax.f32 %v270_v41, %v406_v32  ;;  %v407_v53 = vrot.slane %v255_v11, 1  ;;  %974 = vst.msk [vmem:[%s1705_s4 + $0x24] sm:$0xf] %vm964_vm1, %v957_v44  ;;  %v823_v36 = vsel %vm113_vm0, %v821_v38, %v822_v42  ;;  %v408_v54 = vrot.slane %v335_v22, 1  ;;  %v31_v32 = vld [vmem:[%s1701_s0 + $0x78] sm:$0xf] }
  0x53   :  { %v862_v13 = vmax.f32 %v686_v46, %v820_v18  ;;  %v152_v45 = vsel %vm113_vm0, %v150_v47, %v151_v52  ;;  %v672_v57 = vunpack.c.l.bf16 %v1558_v48  ;;  %v752_v58 = vunpack.c.l.bf16 %v720_v43  ;;  %v1015_v38 = vld [vmem:[%s1701_s0 + $0x84] sm:$0x1]  ;;  %v896_v41 = vld [vmem:[%s1704_s3 + $0x68] sm:$0xf]  ;;  %v1030_v46 = vld [vmem:[%s1702_s1 + $0x78] sm:$0xf] }
  0x54   :  { %v526_v56 = vmax.f32 %v446_v50, %v510_v25  ;;  %v190_v0 = vmax.f32 %v61_v39, %v152_v45  ;;  %v409_v1 = vsel %vm113_vm0, %v407_v53, %v408_v54  ;;  %v511_v2 = vunpack.c.l.bf16 %v479_v33  ;;  %v47_v25 = vld [vmem:[%s1701_s0 + $0x7c] sm:$0x1] }
  0x55   :  { %v942_v62 = vmax.f32 %v862_v13, %v926_v19  ;;  %v824_v4 = vrot.slane %v672_v57, 1  ;;  %v825_v6 = vrot.slane %v752_v58, 1  ;;  %v62_v7 = vunpack.c.l.bf16 %v30_v55  ;;  %v642_v55 = vld [vmem:[%s1703_s2 + $0x78] sm:$0xf] }
  0x56   :  { %v607_v49 = vmax.f32 %v526_v56, %v591_v51  ;;  %v271_v5 = vmax.f32 %v190_v0, %v255_v11  ;;  %v78_v12 = vunpack.c.l.bf16 %v46_v60  ;;  %v256_v10 = vunpack.c.l.bf16 %v998_v61  ;;  %v897_v51 = vld [vmem:[%s1704_s3 + $0x70] sm:$0xf]  ;;  %v32_v56 = vld [vmem:[%s1701_s0 + $0x80] sm:$0xf]  ;;  %v722_v61 = vld [vmem:[%s1703_s2 + $0x7c] sm:$0x1] }
  0x57   :  { %v958_v9 = vpack.c.bf16 %v942_v62, %v942_v62  ;;  %v927_v16 = vunpack.c.l.bf16 %v895_v63  ;;  %v153_v18 = vrot.slane %v62_v7, 1  ;;  %v336_v19 = vunpack.c.l.bf16 %v1014_v3 }
  0x58   :  { %v687_v8 = vmax.f32 %v607_v49, %v671_v27  ;;  %v447_v23 = vmax.f32 %v271_v5, %v409_v1  ;;  %v592_v24 = vunpack.c.l.bf16 %v1029_v59  ;;  %v154_v20 = vrot.slane %v78_v12, 1  ;;  %v481_v1 = vld [vmem:[%s1702_s1 + $0x78] sm:$0xf]  ;;  %v1031_v12 = vld [vmem:[%s1702_s1 + $0x80] sm:$0xf] }
  0x59   :  { %975 = vst.msk [vmem:[%s1705_s4 + $0x28] sm:$0xf] %vm964_vm1, %v958_v9  ;;  %v410_v26 = vrot.slane %v256_v10, 1  ;;  %v826_v28 = vsel %vm113_vm0, %v824_v4, %v825_v6  ;;  %v411_v30 = vrot.slane %v336_v19, 1  ;;  %v673_v31 = vunpack.c.l.bf16 %v1595_v15  ;;  %v1000_v6 = vld [vmem:[%s1701_s0 + $0x88] sm:$0xf] }
  0x5a   :  { %v863_v27 = vmax.f32 %v687_v8, %v823_v36  ;;  %v527_v34 = vmax.f32 %v447_v23, %v511_v2  ;;  %v155_v35 = vsel %vm113_vm0, %v153_v18, %v154_v20  ;;  %v512_v17 = vunpack.c.l.bf16 %v480_v14  ;;  %v48_v2 = vld [vmem:[%s1701_s0 + $0x84] sm:$0x1] }
  0x5b   :  { %v753_v29 = vunpack.c.l.bf16 %v721_v21  ;;  %v191_v42 = vmax.f32 %v62_v7, %v155_v35  ;;  %v412_v40 = vsel %vm113_vm0, %v410_v26, %v411_v30  ;;  %v827_v11 = vrot.slane %v673_v31, 1  ;;  %v1016_v7 = vld [vmem:[%s1701_s0 + $0x8c] sm:$0x1]  ;;  %v643_v30 = vld [vmem:[%s1703_s2 + $0x80] sm:$0xf] }
  0x5c   :  { %v943_v39 = vmax.f32 %v863_v27, %v927_v16  ;;  %v608_v44 = vmax.f32 %v527_v34, %v592_v24  ;;  %v63_v22 = vunpack.c.l.bf16 %v31_v32  ;;  %v79_v48 = vunpack.c.l.bf16 %v47_v25  ;;  %v723_v32 = vld [vmem:[%s1703_s2 + $0x84] sm:$0x1] }
  0x5d   :  { %v828_v47 = vrot.slane %v753_v29, 1  ;;  %v272_v50 = vmax.f32 %v191_v42, %v256_v10  ;;  %v257_v52 = vunpack.c.l.bf16 %v999_v37  ;;  %v337_v53 = vunpack.c.l.bf16 %v1015_v38  ;;  %v482_v38 = vld [vmem:[%s1702_s1 + $0x80] sm:$0xf] }
  0x5e   :  { %v959_v43 = vpack.c.bf16 %v943_v39, %v943_v39  ;;  %v688_v33 = vmax.f32 %v608_v44, %v672_v57  ;;  %v928_v13 = vunpack.c.l.bf16 %v896_v41  ;;  %v156_v36 = vrot.slane %v63_v22, 1  ;;  %v898_v39 = vld [vmem:[%s1704_s3 + $0x78] sm:$0xf] }
  0x5f   :  { %v157_v54 = vrot.slane %v79_v48, 1  ;;  %v448_v45 = vmax.f32 %v272_v50, %v412_v40  ;;  %v593_v58 = vunpack.c.l.bf16 %v1030_v46  ;;  %v413_v60 = vrot.slane %v257_v52, 1  ;;  %v1032_v46 = vld [vmem:[%s1702_s1 + $0x88] sm:$0xf] }
  0x60   :  { %976 = vst.msk [vmem:[%s1705_s4 + $0x2c] sm:$0xf] %vm964_vm1, %v959_v43  ;;  %v414_v57 = vrot.slane %v337_v53, 1  ;;  %v864_v62 = vmax.f32 %v688_v33, %v826_v28  ;;  %v929_v63 = vunpack.c.l.bf16 %v897_v51  ;;  %v829_v49 = vsel %vm113_vm0, %v827_v11, %v828_v47 }
  0x61   :  { %v158_v0 = vsel %vm113_vm0, %v156_v36, %v157_v54  ;;  %v528_v3 = vmax.f32 %v448_v45, %v512_v17  ;;  %v674_v4 = vunpack.c.l.bf16 %v642_v55  ;;  %v754_v10 = vunpack.c.l.bf16 %v722_v61  ;;  %v899_v45 = vld [vmem:[%s1704_s3 + $0x80] sm:$0xf] }
  0x62   :  { %v192_v59 = vmax.f32 %v63_v22, %v158_v0  ;;  %v944_v9 = vmax.f32 %v864_v62, %v928_v13  ;;  %v415_v5 = vsel %vm113_vm0, %v413_v60, %v414_v57  ;;  %v64_v15 = vunpack.c.l.bf16 %v32_v56 }
  0x63   :  { %v609_v8 = vmax.f32 %v528_v3, %v593_v58  ;;  %v513_v18 = vunpack.c.l.bf16 %v481_v1  ;;  %v80_v19 = vunpack.c.l.bf16 %v48_v2  ;;  %v258_v23 = vunpack.c.l.bf16 %v1000_v6 }
  0x64   :  { %v273_v16 = vmax.f32 %v192_v59, %v257_v52  ;;  %v960_v14 = vpack.c.bf16 %v944_v9, %v944_v9  ;;  %v159_v21 = vrot.slane %v64_v15, 1  ;;  %v338_v24 = vunpack.c.l.bf16 %v1016_v7 }
  0x65   :  { %v689_v20 = vmax.f32 %v609_v8, %v673_v31  ;;  %v594_v27 = vunpack.c.l.bf16 %v1031_v12  ;;  %v160_v28 = vrot.slane %v80_v19, 1  ;;  %v830_v25 = vrot.slane %v674_v4, 1 }
  0x66   :  { %v449_v26 = vmax.f32 %v273_v16, %v415_v5  ;;  %977 = vst.msk [vmem:[%s1705_s4 + $0x30] sm:$0xf] %vm964_vm1, %v960_v14  ;;  %v831_v34 = vrot.slane %v754_v10, 1  ;;  %v416_v35 = vrot.slane %v258_v23, 1  ;;  %v417_v31 = vrot.slane %v338_v24, 1 }
  0x67   :  { %v865_v17 = vmax.f32 %v689_v20, %v829_v49  ;;  %v161_v37 = vsel %vm113_vm0, %v159_v21, %v160_v28  ;;  %v675_v42 = vunpack.c.l.bf16 %v643_v30  ;;  %v755_v47 = vunpack.c.l.bf16 %v723_v32 }
  0x68   :  { %v529_v29 = vmax.f32 %v449_v26, %v513_v18  ;;  %v193_v41 = vmax.f32 %v64_v15, %v161_v37  ;;  %v418_v44 = vsel %vm113_vm0, %v416_v35, %v417_v31  ;;  %v832_v22 = vsel %vm113_vm0, %v830_v25, %v831_v34 }
  0x69   :  { %v945_v40 = vmax.f32 %v865_v17, %v929_v63  ;;  %v514_v43 = vunpack.c.l.bf16 %v482_v38  ;;  %v930_v52 = vunpack.c.l.bf16 %v898_v39  ;;  %v595_v33 = vunpack.c.l.bf16 %v1032_v46 }
  0x6a   :  { %v610_v11 = vmax.f32 %v529_v29, %v594_v27  ;;  %v274_v48 = vmax.f32 %v193_v41, %v258_v23  ;;  %v833_v36 = vrot.slane %v675_v42, 1  ;;  %v834_v54 = vrot.slane %v755_v47, 1 }
  0x6b   :  { %v961_v50 = vpack.c.bf16 %v945_v40, %v945_v40  ;;  %v931_v62 = vunpack.c.l.bf16 %v899_v45 }
  0x6c   :  { %v690_v51 = vmax.f32 %v610_v11, %v674_v4  ;;  %v450_v53 = vmax.f32 %v274_v48, %v418_v44  ;;  %v835_v57 = vsel %vm113_vm0, %v833_v36, %v834_v54 }
  0x6d   :  { %978 = vst.msk [vmem:[%s1705_s4 + $0x34] sm:$0xf] %vm964_vm1, %v961_v50 }
  0x6e   :  { %v866_v13 = vmax.f32 %v690_v51, %v832_v22  ;;  %v530_v55 = vmax.f32 %v450_v53, %v514_v43 }
  0x70   :  { %v946_v56 = vmax.f32 %v866_v13, %v930_v52  ;;  %v611_v58 = vmax.f32 %v530_v55, %v595_v33 }
  0x72   :  { %v962_v60 = vpack.c.bf16 %v946_v56, %v946_v56  ;;  %v691_v61 = vmax.f32 %v611_v58, %v675_v42 }
  0x74   :  { %979 = vst.msk [vmem:[%s1705_s4 + $0x38] sm:$0xf] %vm964_vm1, %v962_v60  ;;  %v867_v63 = vmax.f32 %v691_v61, %v835_v57 }
  0x76   :  { %v947_v0 = vmax.f32 %v867_v63, %v931_v62 }
  0x78   :  { %v963_v1 = vpack.c.bf16 %v947_v0, %v947_v0 }
  0x7a   :  { %980 = vst.msk [vmem:[%s1705_s4 + $0x3c] sm:$0xf] %vm964_vm1, %v963_v1 }

// kernel: forward.23
= control target key start
LH: loop header
LB: loop body
LE: loop exit
PB: predicated region body
PF: predicated region fallthrough
CT: control target
= control target key end

     0   :  { %vm139_vm0 = vcmask 1043456   ;;  %vm114_vm1 = vcmask 588800   ;;  %vm272_vm2 = vcmask 60416   ;;  %s597_s1 = inlined_call_operand.vmem [shape: bf16[72,8], index: 1, kind: input, shape index: {}]   ;;  %s598_s2 = inlined_call_operand.vmem [shape: f32[1,8], index: 2, kind: input, shape index: {}]   ;;  %s599_s0 = inlined_call_operand.vmem [shape: bf16[128,72], index: 0, kind: input, shape index: {}]   ;;  %s600_s3 = inlined_call_operand.vmem [shape: bf16[128,8], index: 3, kind: input, shape index: {}]   ;;  %s601_s4 = inlined_call_operand.vmem [shape: bf16[128,8], index: 4, kind: output, shape index: {}]  }
   0x1   :  { %v42_v0 = vld [vmem:[%s597_s1 + $0x20] sm:$0xf]  ;;  %v360_v4 = vld [vmem:[%s597_s1 + $0x18] sm:$0xff]  ;;  %v359_v5 = vld [vmem:[%s597_s1 + $0x10] sm:$0xff] }
   0x2   :  { %v104_v1 = vunpack.c.l.b16 %v42_v0  ;;  %v358_v6 = vld [vmem:[%s597_s1 + $0x8] sm:$0xff]  ;;  %v357_v7 = vld [vmem:[%s597_s1] sm:$0xff]  ;;  %v351_v9 = vld [vmem:[%s599_s0 + $0x10] sm:$0xff] }
   0x3   :  { %v349_v8 = vld [vmem:[%s599_s0] sm:$0xff]  ;;  %v355_v11 = vld [vmem:[%s599_s0 + $0x30] sm:$0xff]  ;;  %v350_v12 = vld [vmem:[%s599_s0 + $0x8] sm:$0xff] }
   0x4   :  { %v109_v2 = vpack.c.b16 %v104_v1, %v104_v1  ;;  %v353_v10 = vld [vmem:[%s599_s0 + $0x20] sm:$0xff]  ;;  %v352_v13 = vld [vmem:[%s599_s0 + $0x18] sm:$0xff]  ;;  %v354_v14 = vld [vmem:[%s599_s0 + $0x28] sm:$0xff] }
   0x5   :  { %v356_v15 = vld [vmem:[%s599_s0 + $0x38] sm:$0xff]  ;;  %v362_v16 = vld [vmem:[%s600_s3] sm:$0xff]   ;;  %v394_v17 = vld [vmem:[%s600_s3 + $0x10] sm:$0xff]  }
   0x6   :  { %v141_v3 = vsel %vm139_vm0, %v109_v2, 0  ;;  %v497_v18 = vld [vmem:[%s598_s2] ss:$0 sm:$0xff]  ;;  %v363_v19 = vunpack.c.l.bf16 %v362_v16  ;;  %v371_v20 = vunpack.c.l.bf16 %v394_v17  ;;  %v398_v28 = vld [vmem:[%s600_s3 + $0x30] sm:$0xff]   ;;  %v364_v37 = vunpack.c.h.bf16 %v362_v16  ;;  %v393_v51 = vld [vmem:[%s600_s3 + $0x8] sm:$0xff]  }
   0x7   :  { %146 = vmatpush.bf16.msra.mxu0 %v141_v3  ;;  %400 = vmatpush.bf16.msra.mxu1 %v141_v3  ;;  %v396_v27 = vld [vmem:[%s600_s3 + $0x20] sm:$0xff]   ;;  %v387_v32 = vunpack.c.l.bf16 %v398_v28  ;;  %v372_v38 = vunpack.c.h.bf16 %v394_v17  ;;  %v395_v52 = vld [vmem:[%s600_s3 + $0x18] sm:$0xff]   ;;  %v388_v58 = vunpack.c.h.bf16 %v398_v28  ;;  %v367_v63 = vunpack.c.l.bf16 %v393_v51 }
   0x8   :  { %401 = vmatpush.bf16.msra.mxu2 %v141_v3  ;;  %402 = vmatpush.bf16.msra.mxu3 %v141_v3  ;;  %v379_v31 = vunpack.c.l.bf16 %v396_v27  ;;  %v380_v57 = vunpack.c.h.bf16 %v396_v27  ;;  %v375_v0 = vunpack.c.l.bf16 %v395_v52  ;;  %v376_v27 = vunpack.c.h.bf16 %v395_v52 }
   0xb   :  { %147 = vmatpush.bf16.msra.mxu0 %v360_v4  ;;  %403 = vmatpush.bf16.msra.mxu1 %v360_v4 }
   0xc   :  { %404 = vmatpush.bf16.msra.mxu2 %v360_v4  ;;  %405 = vmatpush.bf16.msra.mxu3 %v360_v4 }
   0xf   :  { %148 = vmatpush.bf16.msra.mxu0 %v359_v5  ;;  %406 = vmatpush.bf16.msra.mxu1 %v359_v5 }
  0x10   :  { %407 = vmatpush.bf16.msra.mxu2 %v359_v5  ;;  %408 = vmatpush.bf16.msra.mxu3 %v359_v5 }
  0x13   :  { %149 = vmatpush.bf16.msra.mxu0 %v358_v6  ;;  %409 = vmatpush.bf16.msra.mxu1 %v358_v6 }
  0x14   :  { %410 = vmatpush.bf16.msra.mxu2 %v358_v6  ;;  %411 = vmatpush.bf16.msra.mxu3 %v358_v6 }
  0x17   :  { %150 = vmatpush.bf16.msra.mxu0 %v357_v7  ;;  %412 = vmatpush.bf16.msra.mxu1 %v357_v7 }
  0x18   :  { %413 = vmatpush.bf16.msra.mxu2 %v357_v7  ;;  %414 = vmatpush.bf16.msra.mxu3 %v357_v7 }
  0x1a   :  { %341 = vmatmul.msk.bf16.vlgmr.msra.gmra.mxu0 %vm114_vm1, %v349_v8  ;;  %343 = vmatmul.msk.bf16.vlgmr.msra.gmra.mxu1 %vm114_vm1, %v351_v9 }
  0x1b   :  { %345 = vmatmul.msk.bf16.vlgmr.msra.gmra.mxu2 %vm114_vm1, %v353_v10  ;;  %347 = vmatmul.msk.bf16.vlgmr.msra.gmra.mxu3 %vm114_vm1, %v355_v11  ;;  %v397_v11 = vld [vmem:[%s600_s3 + $0x28] sm:$0xff]  }
  0x2a   :  { %342 = vmatmul.msk.bf16.gmra.mxu0 %vm114_vm1, %v350_v12  ;;  %344 = vmatmul.msk.bf16.gmra.mxu1 %vm114_vm1, %v352_v13  ;;  %v399_v12 = vld [vmem:[%s600_s3 + $0x38] sm:$0xff]  }
  0x2b   :  { %346 = vmatmul.msk.bf16.gmra.mxu2 %vm114_vm1, %v354_v14  ;;  %348 = vmatmul.msk.bf16.gmra.mxu3 %vm114_vm1, %v356_v15 }
  0x97   :  { %v152_v21 = vpop.f32.mrf.mxu0  ;;  %v162_v22 = vpop.f32.mrf.mxu1 }
  0x98   :  { %v153_v23 = vadd.f32 %v497_v18, %v152_v21  ;;  %v163_v24 = vadd.f32 %v497_v18, %v162_v22  ;;  %v391_v21 = vunpack.c.l.bf16 %v399_v12 }
  0x9a   :  { %v224_v25 = vadd.f32 %v363_v19, %v153_v23  ;;  %v228_v26 = vadd.f32 %v371_v20, %v163_v24  ;;  %v383_v20 = vunpack.c.l.bf16 %v397_v11 }
  0x9c   :  { %v240_v29 = vmax.f32 %v224_v25, 0.0  ;;  %v244_v30 = vmax.f32 %v228_v26, 0.0  ;;  %v368_v26 = vunpack.c.h.bf16 %v393_v51 }
  0x9e   :  { %v256_v33 = vpack.c.bf16 %v240_v29, %v240_v29  ;;  %v260_v34 = vpack.c.bf16 %v244_v30, %v244_v30  ;;  %v172_v35 = vpop.f32.mrf.mxu2  ;;  %v182_v36 = vpop.f32.mrf.mxu3 }
  0x9f   :  { %v173_v39 = vadd.f32 %v497_v18, %v172_v35  ;;  %v183_v40 = vadd.f32 %v497_v18, %v182_v36  ;;  %v154_v41 = vpop.f32.mrf.mxu0  ;;  %v164_v42 = vpop.f32.mrf.mxu1 }
  0xa0   :  { %273 = vst.msk [vmem:[%s601_s4] sm:$0xf] %vm272_vm2, %v256_v33  ;;  %v155_v43 = vadd.f32 %v497_v18, %v154_v41  ;;  %v165_v44 = vadd.f32 %v497_v18, %v164_v42 }
  0xa1   :  { %277 = vst.msk [vmem:[%s601_s4 + $0x10] sm:$0xf] %vm272_vm2, %v260_v34  ;;  %v232_v45 = vadd.f32 %v379_v31, %v173_v39  ;;  %v236_v46 = vadd.f32 %v387_v32, %v183_v40 }
  0xa2   :  { %v225_v47 = vadd.f32 %v364_v37, %v155_v43  ;;  %v229_v48 = vadd.f32 %v372_v38, %v165_v44  ;;  %v384_v44 = vunpack.c.h.bf16 %v397_v11 }
  0xa3   :  { %v248_v49 = vmax.f32 %v232_v45, 0.0  ;;  %v252_v50 = vmax.f32 %v236_v46, 0.0  ;;  %v392_v45 = vunpack.c.h.bf16 %v399_v12 }
  0xa4   :  { %v241_v53 = vmax.f32 %v225_v47, 0.0  ;;  %v245_v54 = vmax.f32 %v229_v48, 0.0 }
  0xa5   :  { %v264_v55 = vpack.c.bf16 %v248_v49, %v248_v49  ;;  %v268_v56 = vpack.c.bf16 %v252_v50, %v252_v50 }
  0xa6   :  { %v257_v59 = vpack.c.bf16 %v241_v53, %v241_v53  ;;  %v261_v60 = vpack.c.bf16 %v245_v54, %v245_v54  ;;  %v174_v61 = vpop.f32.mrf.mxu2  ;;  %v184_v62 = vpop.f32.mrf.mxu3 }
  0xa7   :  { %281 = vst.msk [vmem:[%s601_s4 + $0x20] sm:$0xf] %vm272_vm2, %v264_v55  ;;  %v175_v1 = vadd.f32 %v497_v18, %v174_v61  ;;  %v185_v2 = vadd.f32 %v497_v18, %v184_v62  ;;  %v157_v3 = vpop.f32.mrf.mxu0  ;;  %v167_v4 = vpop.f32.mrf.mxu1 }
  0xa8   :  { %285 = vst.msk [vmem:[%s601_s4 + $0x30] sm:$0xf] %vm272_vm2, %v268_v56  ;;  %v158_v5 = vadd.f32 %v497_v18, %v157_v3  ;;  %v168_v6 = vadd.f32 %v497_v18, %v167_v4 }
  0xa9   :  { %274 = vst.msk [vmem:[%s601_s4 + $0x4] sm:$0xf] %vm272_vm2, %v257_v59  ;;  %v233_v7 = vadd.f32 %v380_v57, %v175_v1  ;;  %v237_v8 = vadd.f32 %v388_v58, %v185_v2 }
  0xaa   :  { %278 = vst.msk [vmem:[%s601_s4 + $0x14] sm:$0xf] %vm272_vm2, %v261_v60  ;;  %v226_v9 = vadd.f32 %v367_v63, %v158_v5  ;;  %v230_v10 = vadd.f32 %v375_v0, %v168_v6 }
  0xab   :  { %v249_v13 = vmax.f32 %v233_v7, 0.0  ;;  %v253_v14 = vmax.f32 %v237_v8, 0.0 }
  0xac   :  { %v242_v15 = vmax.f32 %v226_v9, 0.0  ;;  %v246_v16 = vmax.f32 %v230_v10, 0.0 }
  0xad   :  { %v265_v17 = vpack.c.bf16 %v249_v13, %v249_v13  ;;  %v269_v19 = vpack.c.bf16 %v253_v14, %v253_v14 }
  0xae   :  { %v258_v22 = vpack.c.bf16 %v242_v15, %v242_v15  ;;  %v262_v23 = vpack.c.bf16 %v246_v16, %v246_v16  ;;  %v177_v24 = vpop.f32.mrf.mxu2  ;;  %v187_v25 = vpop.f32.mrf.mxu3 }
  0xaf   :  { %282 = vst.msk [vmem:[%s601_s4 + $0x24] sm:$0xf] %vm272_vm2, %v265_v17  ;;  %v178_v28 = vadd.f32 %v497_v18, %v177_v24  ;;  %v188_v29 = vadd.f32 %v497_v18, %v187_v25  ;;  %v159_v30 = vpop.f32.mrf.mxu0  ;;  %v169_v31 = vpop.f32.mrf.mxu1 }
  0xb0   :  { %286 = vst.msk [vmem:[%s601_s4 + $0x34] sm:$0xf] %vm272_vm2, %v269_v19  ;;  %v160_v32 = vadd.f32 %v497_v18, %v159_v30  ;;  %v170_v33 = vadd.f32 %v497_v18, %v169_v31 }
  0xb1   :  { %275 = vst.msk [vmem:[%s601_s4 + $0x8] sm:$0xf] %vm272_vm2, %v258_v22  ;;  %v234_v34 = vadd.f32 %v383_v20, %v178_v28  ;;  %v238_v35 = vadd.f32 %v391_v21, %v188_v29 }
  0xb2   :  { %279 = vst.msk [vmem:[%s601_s4 + $0x18] sm:$0xf] %vm272_vm2, %v262_v23  ;;  %v227_v36 = vadd.f32 %v368_v26, %v160_v32  ;;  %v231_v37 = vadd.f32 %v376_v27, %v170_v33 }
  0xb3   :  { %v250_v38 = vmax.f32 %v234_v34, 0.0  ;;  %v254_v39 = vmax.f32 %v238_v35, 0.0 }
  0xb4   :  { %v243_v40 = vmax.f32 %v227_v36, 0.0  ;;  %v247_v41 = vmax.f32 %v231_v37, 0.0 }
  0xb5   :  { %v266_v42 = vpack.c.bf16 %v250_v38, %v250_v38  ;;  %v270_v43 = vpack.c.bf16 %v254_v39, %v254_v39 }
  0xb6   :  { %v259_v46 = vpack.c.bf16 %v243_v40, %v243_v40  ;;  %v263_v47 = vpack.c.bf16 %v247_v41, %v247_v41  ;;  %v179_v48 = vpop.f32.mrf.mxu2  ;;  %v189_v49 = vpop.f32.mrf.mxu3 }
  0xb7   :  { %283 = vst.msk [vmem:[%s601_s4 + $0x28] sm:$0xf] %vm272_vm2, %v266_v42  ;;  %v180_v50 = vadd.f32 %v497_v18, %v179_v48  ;;  %v190_v51 = vadd.f32 %v497_v18, %v189_v49 }
  0xb8   :  { %287 = vst.msk [vmem:[%s601_s4 + $0x38] sm:$0xf] %vm272_vm2, %v270_v43 }
  0xb9   :  { %276 = vst.msk [vmem:[%s601_s4 + $0xc] sm:$0xf] %vm272_vm2, %v259_v46  ;;  %v235_v52 = vadd.f32 %v384_v44, %v180_v50  ;;  %v239_v53 = vadd.f32 %v392_v45, %v190_v51 }
  0xba   :  { %280 = vst.msk [vmem:[%s601_s4 + $0x1c] sm:$0xf] %vm272_vm2, %v263_v47 }
  0xbb   :  { %v251_v54 = vmax.f32 %v235_v52, 0.0  ;;  %v255_v55 = vmax.f32 %v239_v53, 0.0 }
  0xbd   :  { %v267_v18 = vpack.c.bf16 %v251_v54, %v251_v54  ;;  %v271_v56 = vpack.c.bf16 %v255_v55, %v255_v55 }
  0xbf   :  { %284 = vst.msk [vmem:[%s601_s4 + $0x2c] sm:$0xf] %vm272_vm2, %v267_v18 }
  0xc0   :  { %288 = vst.msk [vmem:[%s601_s4 + $0x3c] sm:$0xf] %vm272_vm2, %v271_v56 }

// kernel: forward.26
= control target key start
LH: loop header
LB: loop body
LE: loop exit
PB: predicated region body
PF: predicated region fallthrough
CT: control target
= control target key end

     0   :  { %s216_s25 = smov 96   ;;  %vm84_vm0 = vcmask 1043456   ;;  %vm77_vm1 = vcmask 588800   ;;  %vm129_vm2 = vcmask 64512   ;;  %vm115_vm3 = vcmask 125952   ;;  %s314_s0 = inlined_call_operand.vmem [shape: bf16[32,72], index: 0, kind: input, shape index: {}]   ;;  %s315_s1 = inlined_call_operand.vmem [shape: bf16[72,16], index: 1, kind: input, shape index: {}]   ;;  %s316_s3 = inlined_call_operand.vmem [shape: bf16[8,16], index: 3, kind: input, shape index: {}]   ;;  %s317_s4 = inlined_call_operand.vmem [shape: f32[1,16], index: 4, kind: input, shape index: {}]   ;;  %s318_s2 = inlined_call_operand.vmem [shape: f32[1,16], index: 2, kind: input, shape index: {}]   ;;  %s319_s5 = inlined_call_operand.vmem [shape: bf16[32,16], index: 5, kind: output, shape index: {0}]   ;;  %s320_s6 = inlined_call_operand.vmem [shape: bf16[32,16], index: 6, kind: output, shape index: {1}]  }
   0x1   :  { %v202_v0 = vld [vmem:[%s314_s0] sm:$0xff]  ;;  %v203_v7 = vld [vmem:[%s314_s0 + $0x8] sm:$0xff]  ;;  %v207_v8 = vld [vmem:[%s315_s1 + $0x18] sm:$0xff] }
   0x2   :  { %v35_v1 = vld [vmem:[%s315_s1 + $0x20] sm:$0xf]  ;;  %125 = vrot.lane.b32.xlu0 %v202_v0, %s216_s25  ;;  %v206_v9 = vld [vmem:[%s315_s1 + $0x10] sm:$0xff]  ;;  %v205_v10 = vld [vmem:[%s315_s1 + $0x8] sm:$0xff] }
   0x3   :  { %v67_v2 = vunpack.c.l.b16 %v35_v1  ;;  %v120_v3 = vld [vmem:[%s316_s3] sm:$0xf] }
   0x4   :  { %v137_v5 = vsel %vm84_vm0, %v120_v3, 0  ;;  %v204_v11 = vld [vmem:[%s315_s1] sm:$0xff] }
   0x5   :  { %v72_v4 = vpack.c.b16 %v67_v2, %v67_v2  ;;  %146 = vmatpush.bf16.msra.mxu1 %v137_v5  ;;  %v215_v14 = vld [vmem:[%s318_s2] ss:$0 sm:$0xff] }
   0x6   :  { %v214_v31 = vld [vmem:[%s317_s4] ss:$0 sm:$0xff] }
   0x7   :  { %v86_v6 = vsel %vm84_vm0, %v72_v4, 0 }
   0x8   :  { %208 = vmatpush.bf16.msra.mxu2 %v86_v6  ;;  %91 = vmatpush.bf16.msra.mxu0 %v86_v6 }
   0xa   :  { %127 = vrot.lane.b32.xlu0 %v203_v7, %s216_s25 }
   0xc   :  { %209 = vmatpush.bf16.msra.mxu2 %v207_v8  ;;  %92 = vmatpush.bf16.msra.mxu0 %v207_v8 }
  0x10   :  { %210 = vmatpush.bf16.msra.mxu2 %v206_v9  ;;  %93 = vmatpush.bf16.msra.mxu0 %v206_v9 }
  0x14   :  { %211 = vmatpush.bf16.msra.mxu2 %v205_v10  ;;  %94 = vmatpush.bf16.msra.mxu0 %v205_v10 }
  0x18   :  { %212 = vmatpush.bf16.msra.mxu2 %v204_v11  ;;  %95 = vmatpush.bf16.msra.mxu0 %v204_v11 }
  0x1b   :  { %199 = vmatmul.msk.bf16.vlgmr.msra.gmra.mxu2 %vm77_vm1, %v203_v7  ;;  %198 = vmatmul.msk.bf16.vlgmr.msra.gmra.mxu0 %vm77_vm1, %v202_v0 }
  0x74   :  { %v126_v12 = vpop.permute.xlu0 %125 }
  0x75   :  { %200 = vmatmul.msk.bf16.vlgmr.msra.gmra.mxu1 %vm129_vm2, %v126_v12 }
  0x7c   :  { %v128_v13 = vpop.permute.xlu0 %127 }
  0x85   :  { %201 = vmatmul.msk.bf16.gmra.mxu1 %vm129_vm2, %v128_v13 }
  0x98   :  { %v97_v15 = vpop.f32.mrf.mxu0 }
  0x99   :  { %v98_v17 = vadd.f32 %v215_v14, %v97_v15 }
  0x9b   :  { %v107_v19 = vmax.f32 %v98_v17, 0.0 }
  0x9d   :  { %v111_v21 = vpack.c.bf16 %v107_v19, %v107_v19 }
  0x9e   :  { %v102_v16 = vpop.f32.mrf.mxu2 }
  0x9f   :  { %v103_v18 = vadd.f32 %v215_v14, %v102_v16  ;;  %116 = vst.msk [vmem:[%s319_s5] sm:$0xf] %vm115_vm3, %v111_v21 }
  0xa0   :  { %v99_v23 = vpop.f32.mrf.mxu0 }
  0xa1   :  { %v109_v20 = vmax.f32 %v103_v18, 0.0  ;;  %v100_v24 = vadd.f32 %v215_v14, %v99_v23 }
  0xa3   :  { %v113_v22 = vpack.c.bf16 %v109_v20, %v109_v20  ;;  %v108_v27 = vmax.f32 %v100_v24, 0.0 }
  0xa5   :  { %118 = vst.msk [vmem:[%s319_s5 + $0x8] sm:$0xf] %vm115_vm3, %v113_v22  ;;  %v112_v29 = vpack.c.bf16 %v108_v27, %v108_v27 }
  0xa6   :  { %v104_v25 = vpop.f32.mrf.mxu2 }
  0xa7   :  { %v105_v26 = vadd.f32 %v215_v14, %v104_v25  ;;  %117 = vst.msk [vmem:[%s319_s5 + $0x4] sm:$0xf] %vm115_vm3, %v112_v29 }
  0xa9   :  { %v110_v28 = vmax.f32 %v105_v26, 0.0 }
  0xab   :  { %v114_v30 = vpack.c.bf16 %v110_v28, %v110_v28 }
  0xad   :  { %119 = vst.msk [vmem:[%s319_s5 + $0xc] sm:$0xf] %vm115_vm3, %v114_v30 }
  0xf2   :  { %v148_v32 = vpop.f32.mrf.mxu1 }
  0xf3   :  { %v149_v33 = vadd.f32 %v214_v31, %v148_v32 }
  0xf5   :  { %v158_v34 = vpack.c.bf16 %v149_v33, %v149_v33 }
  0xf7   :  { %162 = vst.msk [vmem:[%s320_s6] sm:$0xf] %vm115_vm3, %v158_v34 }
  0xfa   :  { %v150_v35 = vpop.f32.mrf.mxu1 }
  0xfb   :  { %v151_v36 = vadd.f32 %v214_v31, %v150_v35 }
  0xfd   :  { %v159_v37 = vpack.c.bf16 %v151_v36, %v151_v36 }
  0xff   :  { %163 = vst.msk [vmem:[%s320_s6 + $0x4] sm:$0xf] %vm115_vm3, %v159_v37 }
 0x102   :  { %v153_v38 = vpop.f32.mrf.mxu1 }
 0x103   :  { %v154_v39 = vadd.f32 %v214_v31, %v153_v38 }
 0x105   :  { %v160_v40 = vpack.c.bf16 %v154_v39, %v154_v39 }
 0x107   :  { %164 = vst.msk [vmem:[%s320_s6 + $0x8] sm:$0xf] %vm115_vm3, %v160_v40 }
 0x10a   :  { %v155_v41 = vpop.f32.mrf.mxu1 }
 0x10b   :  { %v156_v42 = vadd.f32 %v214_v31, %v155_v41 }
 0x10d   :  { %v161_v43 = vpack.c.bf16 %v156_v42, %v156_v42 }
 0x10f   :  { %165 = vst.msk [vmem:[%s320_s6 + $0xc] sm:$0xf] %vm115_vm3, %v161_v43 }

// kernel: forward.28
= control target key start
LH: loop header
LB: loop body
LE: loop exit
PB: predicated region body
PF: predicated region fallthrough
CT: control target
= control target key end

     0   :  { %vm113_vm0 = vcmask 130048   ;;  %vm166_vm1 = vcmask 125952   ;;  %s343_s1 = inlined_call_operand.vmem [shape: bf16[144,16], index: 1, kind: input, shape index: {}]   ;;  %s344_s0 = inlined_call_operand.vmem [shape: bf16[32,144], index: 0, kind: input, shape index: {}]   ;;  %s345_s2 = inlined_call_operand.vmem [shape: f32[1,16], index: 2, kind: input, shape index: {}]   ;;  %s346_s3 = inlined_call_operand.vmem [shape: bf16[32,16], index: 3, kind: output, shape index: {}]  }
   0x1   :  { %v240_v0 = vld [vmem:[%s343_s1 + $0x38] sm:$0xff]  ;;  %v241_v1 = vld [vmem:[%s343_s1 + $0x40] sm:$0xff]  ;;  %v239_v3 = vld [vmem:[%s343_s1 + $0x30] sm:$0xff] }
   0x2   :  { %v229_v2 = vld [vmem:[%s344_s0 + $0x4] sm:$0xf]  ;;  %120 = vmatpush.bf16.msra.mxu0 %v240_v0  ;;  %242 = vmatpush.bf16.msra.mxu2 %v240_v0  ;;  %v179_v4 = vld [vmem:[%s344_s0 + $0x8] sm:$0xf0]  ;;  %v236_v8 = vld [vmem:[%s343_s1 + $0x18] sm:$0xff] }
   0x3   :  { %146 = vmatpush.bf16.msra.mxu1 %v241_v1  ;;  %v182_v5 = vor.u32 %v229_v2, %v179_v4  ;;  %v238_v6 = vld [vmem:[%s343_s1 + $0x28] sm:$0xff]  ;;  %v237_v7 = vld [vmem:[%s343_s1 + $0x20] sm:$0xff]  ;;  %v231_v9 = vld [vmem:[%s344_s0 + $0x14] sm:$0xf] }
   0x4   :  { %v187_v10 = vld [vmem:[%s344_s0 + $0x18] sm:$0xf0]  ;;  %v235_v11 = vld [vmem:[%s343_s1 + $0x10] sm:$0xff]  ;;  %v234_v13 = vld [vmem:[%s343_s1 + $0x8] sm:$0xff] }
   0x5   :  { %v190_v12 = vor.u32 %v231_v9, %v187_v10  ;;  %v233_v14 = vld [vmem:[%s343_s1] sm:$0xff]  ;;  %v230_v16 = vld [vmem:[%s344_s0 + $0x4] sm:$0xf0]  ;;  %v185_v17 = vld [vmem:[%s344_s0 + $0x10] sm:$0xf] }
   0x6   :  { %121 = vmatpush.bf16.msra.mxu0 %v239_v3  ;;  %243 = vmatpush.bf16.msra.mxu2 %v239_v3  ;;  %v177_v15 = vld [vmem:[%s344_s0] sm:$0xf]  ;;  %v232_v18 = vld [vmem:[%s344_s0 + $0x14] sm:$0xf0] }
   0x7   :  { %227 = vmatmul.msk.bf16.vlgmr.msra.gmra.mxu1 %vm113_vm0, %v182_v5  ;;  %v178_v19 = vor.u32 %v230_v16, %v177_v15  ;;  %v186_v20 = vor.u32 %v232_v18, %v185_v17  ;;  %v250_v23 = vld [vmem:[%s345_s2] ss:$0 sm:$0xff] }
   0xa   :  { %122 = vmatpush.bf16.msra.mxu0 %v238_v6  ;;  %244 = vmatpush.bf16.msra.mxu2 %v238_v6 }
   0xe   :  { %123 = vmatpush.bf16.msra.mxu0 %v237_v7  ;;  %245 = vmatpush.bf16.msra.mxu2 %v237_v7 }
  0x12   :  { %124 = vmatpush.bf16.msra.mxu0 %v236_v8  ;;  %246 = vmatpush.bf16.msra.mxu2 %v236_v8 }
  0x16   :  { %125 = vmatpush.bf16.msra.mxu0 %v235_v11  ;;  %247 = vmatpush.bf16.msra.mxu2 %v235_v11 }
  0x17   :  { %228 = vmatmul.msk.bf16.gmra.mxu1 %vm113_vm0, %v190_v12 }
  0x1a   :  { %126 = vmatpush.bf16.msra.mxu0 %v234_v13  ;;  %248 = vmatpush.bf16.msra.mxu2 %v234_v13 }
  0x1e   :  { %127 = vmatpush.bf16.msra.mxu0 %v233_v14  ;;  %249 = vmatpush.bf16.msra.mxu2 %v233_v14 }
  0x21   :  { %128 = vmatmul.bf16.vlgmr.msra.gmra.mxu0 %v178_v19  ;;  %133 = vmatmul.bf16.vlgmr.msra.gmra.mxu2 %v186_v20 }
  0x84   :  { %v148_v21 = vpop.f32.mrf.mxu1 }
  0x8c   :  { %v150_v22 = vpop.f32.mrf.mxu1 }
  0x94   :  { %v153_v28 = vpop.f32.mrf.mxu1 }
  0x9c   :  { %v155_v42 = vpop.f32.mrf.mxu1 }
  0x9e   :  { %v129_v24 = vpop.f32.mrf.mxu0 }
  0x9f   :  { %v130_v25 = vadd.f32 %v250_v23, %v129_v24 }
  0xa1   :  { %v149_v26 = vadd.f32 %v148_v21, %v130_v25 }
  0xa3   :  { %v158_v27 = vmax.f32 %v149_v26, 0.0 }
  0xa4   :  { %v134_v29 = vpop.f32.mrf.mxu2 }
  0xa5   :  { %v162_v30 = vpack.c.bf16 %v158_v27, %v158_v27  ;;  %v135_v31 = vadd.f32 %v250_v23, %v134_v29 }
  0xa6   :  { %v131_v32 = vpop.f32.mrf.mxu0 }
  0xa7   :  { %167 = vst.msk [vmem:[%s346_s3] sm:$0xf] %vm166_vm1, %v162_v30  ;;  %v154_v33 = vadd.f32 %v153_v28, %v135_v31  ;;  %v132_v34 = vadd.f32 %v250_v23, %v131_v32 }
  0xa9   :  { %v160_v35 = vmax.f32 %v154_v33, 0.0  ;;  %v151_v36 = vadd.f32 %v150_v22, %v132_v34 }
  0xab   :  { %v164_v37 = vpack.c.bf16 %v160_v35, %v160_v35  ;;  %v159_v38 = vmax.f32 %v151_v36, 0.0 }
  0xac   :  { %v136_v39 = vpop.f32.mrf.mxu2 }
  0xad   :  { %169 = vst.msk [vmem:[%s346_s3 + $0x8] sm:$0xf] %vm166_vm1, %v164_v37  ;;  %v163_v40 = vpack.c.bf16 %v159_v38, %v159_v38  ;;  %v137_v41 = vadd.f32 %v250_v23, %v136_v39 }
  0xaf   :  { %168 = vst.msk [vmem:[%s346_s3 + $0x4] sm:$0xf] %vm166_vm1, %v163_v40  ;;  %v156_v43 = vadd.f32 %v155_v42, %v137_v41 }
  0xb1   :  { %v161_v44 = vmax.f32 %v156_v43, 0.0 }
  0xb3   :  { %v165_v45 = vpack.c.bf16 %v161_v44, %v161_v44 }
  0xb5   :  { %170 = vst.msk [vmem:[%s346_s3 + $0xc] sm:$0xf] %vm166_vm1, %v165_v45 }

// kernel: forward.27
= control target key start
LH: loop header
LB: loop body
LE: loop exit
PB: predicated region body
PF: predicated region fallthrough
CT: control target
= control target key end

     0   :  { %vm116_vm0 = vcmask 130048   ;;  %vm181_vm1 = vcmask 125952   ;;  %s378_s1 = inlined_call_operand.vmem [shape: bf16[144,16], index: 1, kind: input, shape index: {}]   ;;  %s379_s0 = inlined_call_operand.vmem [shape: bf16[32,144], index: 0, kind: input, shape index: {}]   ;;  %s380_s2 = inlined_call_operand.vmem [shape: f32[1,16], index: 2, kind: input, shape index: {}]   ;;  %s381_s3 = inlined_call_operand.vmem [shape: bf16[32,16], index: 3, kind: input, shape index: {}]   ;;  %s382_s4 = inlined_call_operand.vmem [shape: bf16[32,16], index: 4, kind: output, shape index: {}]  }
   0x1   :  { %v255_v0 = vld [vmem:[%s378_s1 + $0x38] sm:$0xff]  ;;  %v256_v1 = vld [vmem:[%s378_s1 + $0x40] sm:$0xff]  ;;  %v254_v3 = vld [vmem:[%s378_s1 + $0x30] sm:$0xff] }
   0x2   :  { %v244_v2 = vld [vmem:[%s379_s0 + $0x4] sm:$0xf]  ;;  %123 = vmatpush.bf16.msra.mxu0 %v255_v0  ;;  %266 = vmatpush.bf16.msra.mxu2 %v255_v0  ;;  %v194_v4 = vld [vmem:[%s379_s0 + $0x8] sm:$0xf0]  ;;  %v251_v8 = vld [vmem:[%s378_s1 + $0x18] sm:$0xff] }
   0x3   :  { %149 = vmatpush.bf16.msra.mxu1 %v256_v1  ;;  %v197_v5 = vor.u32 %v244_v2, %v194_v4  ;;  %v253_v6 = vld [vmem:[%s378_s1 + $0x28] sm:$0xff]  ;;  %v252_v7 = vld [vmem:[%s378_s1 + $0x20] sm:$0xff]  ;;  %v246_v9 = vld [vmem:[%s379_s0 + $0x14] sm:$0xf] }
   0x4   :  { %v202_v10 = vld [vmem:[%s379_s0 + $0x18] sm:$0xf0]  ;;  %v250_v11 = vld [vmem:[%s378_s1 + $0x10] sm:$0xff]  ;;  %v249_v13 = vld [vmem:[%s378_s1 + $0x8] sm:$0xff] }
   0x5   :  { %v205_v12 = vor.u32 %v246_v9, %v202_v10  ;;  %v248_v14 = vld [vmem:[%s378_s1] sm:$0xff]  ;;  %v245_v16 = vld [vmem:[%s379_s0 + $0x4] sm:$0xf0]  ;;  %v200_v17 = vld [vmem:[%s379_s0 + $0x10] sm:$0xf] }
   0x6   :  { %124 = vmatpush.bf16.msra.mxu0 %v254_v3  ;;  %267 = vmatpush.bf16.msra.mxu2 %v254_v3  ;;  %v192_v15 = vld [vmem:[%s379_s0] sm:$0xf]  ;;  %v247_v18 = vld [vmem:[%s379_s0 + $0x14] sm:$0xf0]  ;;  %v265_v29 = vld [vmem:[%s381_s3 + $0x8] sm:$0xff]  }
   0x7   :  { %242 = vmatmul.msk.bf16.vlgmr.msra.gmra.mxu1 %vm116_vm0, %v197_v5  ;;  %v193_v19 = vor.u32 %v245_v16, %v192_v15  ;;  %v201_v20 = vor.u32 %v247_v18, %v200_v17  ;;  %v274_v23 = vld [vmem:[%s380_s2] ss:$0 sm:$0xff]  ;;  %v263_v35 = vunpack.c.l.bf16 %v265_v29  ;;  %v264_v49 = vunpack.c.h.bf16 %v265_v29 }
   0x8   :  { %v258_v24 = vld [vmem:[%s381_s3] sm:$0xff]  }
   0x9   :  { %v259_v27 = vunpack.c.l.bf16 %v258_v24  ;;  %v260_v40 = vunpack.c.h.bf16 %v258_v24 }
   0xa   :  { %125 = vmatpush.bf16.msra.mxu0 %v253_v6  ;;  %268 = vmatpush.bf16.msra.mxu2 %v253_v6 }
   0xe   :  { %126 = vmatpush.bf16.msra.mxu0 %v252_v7  ;;  %269 = vmatpush.bf16.msra.mxu2 %v252_v7 }
  0x12   :  { %127 = vmatpush.bf16.msra.mxu0 %v251_v8  ;;  %270 = vmatpush.bf16.msra.mxu2 %v251_v8 }
  0x16   :  { %128 = vmatpush.bf16.msra.mxu0 %v250_v11  ;;  %271 = vmatpush.bf16.msra.mxu2 %v250_v11 }
  0x17   :  { %243 = vmatmul.msk.bf16.gmra.mxu1 %vm116_vm0, %v205_v12 }
  0x1a   :  { %129 = vmatpush.bf16.msra.mxu0 %v249_v13  ;;  %272 = vmatpush.bf16.msra.mxu2 %v249_v13 }
  0x1e   :  { %130 = vmatpush.bf16.msra.mxu0 %v248_v14  ;;  %273 = vmatpush.bf16.msra.mxu2 %v248_v14 }
  0x21   :  { %131 = vmatmul.bf16.vlgmr.msra.gmra.mxu0 %v193_v19  ;;  %136 = vmatmul.bf16.vlgmr.msra.gmra.mxu2 %v201_v20 }
  0x84   :  { %v151_v21 = vpop.f32.mrf.mxu1 }
  0x8c   :  { %v153_v22 = vpop.f32.mrf.mxu1 }
  0x94   :  { %v156_v31 = vpop.f32.mrf.mxu1 }
  0x9c   :  { %v158_v50 = vpop.f32.mrf.mxu1 }
  0x9e   :  { %v132_v25 = vpop.f32.mrf.mxu0 }
  0x9f   :  { %v133_v26 = vadd.f32 %v274_v23, %v132_v25 }
  0xa1   :  { %v152_v28 = vadd.f32 %v151_v21, %v133_v26 }
  0xa3   :  { %v169_v30 = vadd.f32 %v259_v27, %v152_v28 }
  0xa4   :  { %v137_v32 = vpop.f32.mrf.mxu2 }
  0xa5   :  { %v173_v33 = vmax.f32 %v169_v30, 0.0  ;;  %v138_v34 = vadd.f32 %v274_v23, %v137_v32 }
  0xa6   :  { %v134_v36 = vpop.f32.mrf.mxu0 }
  0xa7   :  { %v177_v37 = vpack.c.bf16 %v173_v33, %v173_v33  ;;  %v157_v38 = vadd.f32 %v156_v31, %v138_v34  ;;  %v135_v39 = vadd.f32 %v274_v23, %v134_v36 }
  0xa9   :  { %182 = vst.msk [vmem:[%s382_s4] sm:$0xf] %vm181_vm1, %v177_v37  ;;  %v171_v41 = vadd.f32 %v263_v35, %v157_v38  ;;  %v154_v42 = vadd.f32 %v153_v22, %v135_v39 }
  0xab   :  { %v175_v43 = vmax.f32 %v171_v41, 0.0  ;;  %v170_v44 = vadd.f32 %v260_v40, %v154_v42 }
  0xac   :  { %v139_v45 = vpop.f32.mrf.mxu2 }
  0xad   :  { %v179_v46 = vpack.c.bf16 %v175_v43, %v175_v43  ;;  %v174_v47 = vmax.f32 %v170_v44, 0.0  ;;  %v140_v48 = vadd.f32 %v274_v23, %v139_v45 }
  0xaf   :  { %184 = vst.msk [vmem:[%s382_s4 + $0x8] sm:$0xf] %vm181_vm1, %v179_v46  ;;  %v178_v51 = vpack.c.bf16 %v174_v47, %v174_v47  ;;  %v159_v52 = vadd.f32 %v158_v50, %v140_v48 }
  0xb1   :  { %183 = vst.msk [vmem:[%s382_s4 + $0x4] sm:$0xf] %vm181_vm1, %v178_v51  ;;  %v172_v53 = vadd.f32 %v264_v49, %v159_v52 }
  0xb3   :  { %v176_v54 = vmax.f32 %v172_v53, 0.0 }
  0xb5   :  { %v180_v55 = vpack.c.bf16 %v176_v54, %v176_v54 }
  0xb7   :  { %185 = vst.msk [vmem:[%s382_s4 + $0xc] sm:$0xf] %vm181_vm1, %v180_v55 }

// kernel: forward.29
= control target key start
LH: loop header
LB: loop body
LE: loop exit
PB: predicated region body
PF: predicated region fallthrough
CT: control target
= control target key end

     0   :  { %9 = vsyncpa [#allocation3], 0  ;;  %s317_s18 = smov [#allocation2]   ;;  %s421_s0 = inlined_call_operand.vmem [shape: bf16[32,144], index: 0, kind: input, shape index: {}]   ;;  %s422_s1 = inlined_call_operand.vmem [shape: bf16[144,16], index: 1, kind: input, shape index: {}]   ;;  %s423_s2 = inlined_call_operand.hbm [shape: f32[1,16], index: 2, kind: input, shape index: {}]   ;;  %s424_s3 = inlined_call_operand.vmem [shape: bf16[32,16], index: 3, kind: input, shape index: {}]   ;;  %s425_s4 = inlined_call_operand.vmem [shape: bf16[32,16], index: 4, kind: output, shape index: {}]  }
   0x1   :  { %s19_s17 = sshll.u32 %s423_s2, 4  ;;  %s21_s19 = sshll.u32 %s317_s18, 4  ;;  %s20_s17 = int_to_ptr.hbm [resolvable:$true] %s19_s17  ;;  %s22_s19 = int_to_ptr.vmem [resolvable:$true] %s21_s19 }
   0x2   :  { %24 = dma.hbm_to_vmem [thread:$0]  %s20_s17, 16, %s22_s19, [#allocation3]  }
   0x3   :  { %315 = dma.done.wait [#allocation3], 16  }
   0x4   :  { %316 = vsyncadd [#allocation3], 4294967280  ;;  %v270_v0 = vld [vmem:[%s422_s1 + $0x38] sm:$0xff]  ;;  %v271_v1 = vld [vmem:[%s422_s1 + $0x40] sm:$0xff]  ;;  %vm130_vm0 = vcmask 130048   ;;  %vm195_vm1 = vcmask 125952  }
   0x5   :  { %v259_v2 = vld [vmem:[%s421_s0 + $0x4] sm:$0xf]  ;;  %137 = vmatpush.bf16.msra.mxu0 %v270_v0  ;;  %281 = vmatpush.bf16.msra.mxu2 %v270_v0  ;;  %v269_v3 = vld [vmem:[%s422_s1 + $0x30] sm:$0xff]  ;;  %v209_v4 = vld [vmem:[%s421_s0 + $0x8] sm:$0xf0] }
   0x6   :  { %163 = vmatpush.bf16.msra.mxu1 %v271_v1  ;;  %v212_v5 = vor.u32 %v259_v2, %v209_v4  ;;  %v268_v6 = vld [vmem:[%s422_s1 + $0x28] sm:$0xff]  ;;  %v267_v7 = vld [vmem:[%s422_s1 + $0x20] sm:$0xff]  ;;  %v266_v8 = vld [vmem:[%s422_s1 + $0x18] sm:$0xff] }
   0x7   :  { %v261_v9 = vld [vmem:[%s421_s0 + $0x14] sm:$0xf]  ;;  %v217_v10 = vld [vmem:[%s421_s0 + $0x18] sm:$0xf0]  ;;  %v264_v13 = vld [vmem:[%s422_s1 + $0x8] sm:$0xff] }
   0x8   :  { %v265_v11 = vld [vmem:[%s422_s1 + $0x10] sm:$0xff]  ;;  %v220_v12 = vor.u32 %v261_v9, %v217_v10  ;;  %v263_v14 = vld [vmem:[%s422_s1] sm:$0xff]  ;;  %v260_v16 = vld [vmem:[%s421_s0 + $0x4] sm:$0xf0] }
   0x9   :  { %138 = vmatpush.bf16.msra.mxu0 %v269_v3  ;;  %282 = vmatpush.bf16.msra.mxu2 %v269_v3  ;;  %v207_v15 = vld [vmem:[%s421_s0] sm:$0xf]  ;;  %v215_v17 = vld [vmem:[%s421_s0 + $0x10] sm:$0xf]  ;;  %v262_v18 = vld [vmem:[%s421_s0 + $0x14] sm:$0xf0] }
   0xa   :  { %257 = vmatmul.msk.bf16.vlgmr.msra.gmra.mxu1 %vm130_vm0, %v212_v5  ;;  %v208_v19 = vor.u32 %v260_v16, %v207_v15  ;;  %v216_v20 = vor.u32 %v262_v18, %v215_v17  ;;  %v290_v23 = vld [vmem:[#allocation2] ss:$0 sm:$0xff]  ;;  %v280_v29 = vld [vmem:[%s424_s3 + $0x8] sm:$0xff]  }
   0xb   :  { %v273_v24 = vld [vmem:[%s424_s3] sm:$0xff]   ;;  %v278_v35 = vunpack.c.l.bf16 %v280_v29  ;;  %v279_v49 = vunpack.c.h.bf16 %v280_v29 }
   0xc   :  { %v274_v27 = vunpack.c.l.bf16 %v273_v24  ;;  %v275_v40 = vunpack.c.h.bf16 %v273_v24 }
   0xd   :  { %139 = vmatpush.bf16.msra.mxu0 %v268_v6  ;;  %283 = vmatpush.bf16.msra.mxu2 %v268_v6 }
  0x11   :  { %140 = vmatpush.bf16.msra.mxu0 %v267_v7  ;;  %284 = vmatpush.bf16.msra.mxu2 %v267_v7 }
  0x15   :  { %141 = vmatpush.bf16.msra.mxu0 %v266_v8  ;;  %285 = vmatpush.bf16.msra.mxu2 %v266_v8 }
  0x19   :  { %142 = vmatpush.bf16.msra.mxu0 %v265_v11  ;;  %286 = vmatpush.bf16.msra.mxu2 %v265_v11 }
  0x1a   :  { %258 = vmatmul.msk.bf16.gmra.mxu1 %vm130_vm0, %v220_v12 }
  0x1d   :  { %143 = vmatpush.bf16.msra.mxu0 %v264_v13  ;;  %287 = vmatpush.bf16.msra.mxu2 %v264_v13 }
  0x21   :  { %144 = vmatpush.bf16.msra.mxu0 %v263_v14  ;;  %288 = vmatpush.bf16.msra.mxu2 %v263_v14 }
  0x24   :  { %145 = vmatmul.bf16.vlgmr.msra.gmra.mxu0 %v208_v19  ;;  %150 = vmatmul.bf16.vlgmr.msra.gmra.mxu2 %v216_v20 }
  0x87   :  { %v165_v21 = vpop.f32.mrf.mxu1 }
  0x8f   :  { %v167_v22 = vpop.f32.mrf.mxu1 }
  0x97   :  { %v170_v31 = vpop.f32.mrf.mxu1 }
  0x9f   :  { %v172_v50 = vpop.f32.mrf.mxu1 }
  0xa1   :  { %v146_v25 = vpop.f32.mrf.mxu0 }
  0xa2   :  { %v147_v26 = vadd.f32 %v290_v23, %v146_v25 }
  0xa4   :  { %v166_v28 = vadd.f32 %v165_v21, %v147_v26 }
  0xa6   :  { %v183_v30 = vadd.f32 %v274_v27, %v166_v28 }
  0xa7   :  { %v151_v32 = vpop.f32.mrf.mxu2 }
  0xa8   :  { %v187_v33 = vmax.f32 %v183_v30, 0.0  ;;  %v152_v34 = vadd.f32 %v290_v23, %v151_v32 }
  0xa9   :  { %v148_v36 = vpop.f32.mrf.mxu0 }
  0xaa   :  { %v191_v37 = vpack.c.bf16 %v187_v33, %v187_v33  ;;  %v171_v38 = vadd.f32 %v170_v31, %v152_v34  ;;  %v149_v39 = vadd.f32 %v290_v23, %v148_v36 }
  0xac   :  { %196 = vst.msk [vmem:[%s425_s4] sm:$0xf] %vm195_vm1, %v191_v37  ;;  %v185_v41 = vadd.f32 %v278_v35, %v171_v38  ;;  %v168_v42 = vadd.f32 %v167_v22, %v149_v39 }
  0xae   :  { %v189_v43 = vmax.f32 %v185_v41, 0.0  ;;  %v184_v44 = vadd.f32 %v275_v40, %v168_v42 }
  0xaf   :  { %v153_v45 = vpop.f32.mrf.mxu2 }
  0xb0   :  { %v193_v46 = vpack.c.bf16 %v189_v43, %v189_v43  ;;  %v188_v47 = vmax.f32 %v184_v44, 0.0  ;;  %v154_v48 = vadd.f32 %v290_v23, %v153_v45 }
  0xb2   :  { %198 = vst.msk [vmem:[%s425_s4 + $0x8] sm:$0xf] %vm195_vm1, %v193_v46  ;;  %v192_v51 = vpack.c.bf16 %v188_v47, %v188_v47  ;;  %v173_v52 = vadd.f32 %v172_v50, %v154_v48 }
  0xb4   :  { %197 = vst.msk [vmem:[%s425_s4 + $0x4] sm:$0xf] %vm195_vm1, %v192_v51  ;;  %v186_v53 = vadd.f32 %v279_v49, %v173_v52 }
  0xb6   :  { %v190_v54 = vmax.f32 %v186_v53, 0.0 }
  0xb8   :  { %v194_v55 = vpack.c.bf16 %v190_v54, %v190_v54 }
  0xba   :  { %199 = vst.msk [vmem:[%s425_s4 + $0xc] sm:$0xf] %vm195_vm1, %v194_v55 }
  0xbb   :  { %204 = vsyncpa [#allocation3], 1 }

// kernel: forward.32
= control target key start
LH: loop header
LB: loop body
LE: loop exit
PB: predicated region body
PF: predicated region fallthrough
CT: control target
= control target key end

     0   :  { %vm175_vm0 = vcmask 261120   ;;  %vm220_vm1 = vcmask 257024   ;;  %s404_s1 = inlined_call_operand.vmem [shape: bf16[288,32], index: 1, kind: input, shape index: {}]   ;;  %s405_s0 = inlined_call_operand.vmem [shape: bf16[8,288], index: 0, kind: input, shape index: {}]   ;;  %s406_s2 = inlined_call_operand.vmem [shape: f32[1,32], index: 2, kind: input, shape index: {}]   ;;  %s407_s3 = inlined_call_operand.vmem [shape: bf16[8,32], index: 3, kind: output, shape index: {}]  }
   0x1   :  { %v306_v0 = vld [vmem:[%s404_s1 + $0x38] sm:$0xff]  ;;  %v305_v2 = vld [vmem:[%s404_s1 + $0x30] sm:$0xff]  ;;  %v316_v4 = vld [vmem:[%s404_s1 + $0x88] sm:$0xff] }
   0x2   :  { %v314_v1 = vld [vmem:[%s404_s1 + $0x78] sm:$0xff]  ;;  %179 = vmatpush.bf16.msra.mxu0 %v306_v0  ;;  %v313_v3 = vld [vmem:[%s404_s1 + $0x70] sm:$0xff]  ;;  %211 = vmatpush.bf16.msra.mxu2 %v316_v4  ;;  %v315_v5 = vld [vmem:[%s404_s1 + $0x80] sm:$0xff] }
   0x3   :  { %192 = vmatpush.bf16.msra.mxu1 %v314_v1  ;;  %v16_v6 = vld [vmem:[%s405_s0 + $0x8] sm:$0xf]  ;;  %v303_v11 = vld [vmem:[%s404_s1 + $0x20] sm:$0xff]  ;;  %v302_v13 = vld [vmem:[%s404_s1 + $0x18] sm:$0xff] }
   0x4   :  { %v61_v7 = vunpack.c.l.b16 %v16_v6  ;;  %v304_v8 = vld [vmem:[%s404_s1 + $0x28] sm:$0xff]  ;;  %v311_v12 = vld [vmem:[%s404_s1 + $0x60] sm:$0xff]  ;;  %v310_v14 = vld [vmem:[%s404_s1 + $0x58] sm:$0xff] }
   0x5   :  { %v312_v9 = vld [vmem:[%s404_s1 + $0x68] sm:$0xff]  ;;  %v301_v15 = vld [vmem:[%s404_s1 + $0x10] sm:$0xff]  ;;  %v15_v19 = vld [vmem:[%s405_s0] sm:$0xff] }
   0x6   :  { %180 = vmatpush.bf16.msra.mxu0 %v305_v2  ;;  %v64_v10 = vpack.c.b16 %v61_v7, %v61_v7  ;;  %212 = vmatpush.bf16.msra.mxu2 %v315_v5  ;;  %v309_v16 = vld [vmem:[%s404_s1 + $0x50] sm:$0xff]  ;;  %v300_v17 = vld [vmem:[%s404_s1 + $0x8] sm:$0xff]  ;;  %v59_v20 = vunpack.c.l.b16 %v15_v19  ;;  %v60_v21 = vunpack.c.h.b16 %v15_v19  ;;  %v299_v22 = vld [vmem:[%s404_s1] sm:$0xff] }
   0x7   :  { %193 = vmatpush.bf16.msra.mxu1 %v313_v3  ;;  %v308_v18 = vld [vmem:[%s404_s1 + $0x48] sm:$0xff]  ;;  %v307_v23 = vld [vmem:[%s404_s1 + $0x40] sm:$0xff] }
   0x8   :  { %v62_v24 = vpack.c.b16 %v59_v20, %v59_v20  ;;  %v63_v25 = vpack.c.b16 %v60_v21, %v60_v21  ;;  %v317_v28 = vld [vmem:[%s406_s2] ss:$0 sm:$0xff] }
   0x9   :  { %298 = vmatmul.msk.bf16.vlgmr.msra.gmra.mxu2 %vm175_vm0, %v64_v10 }
   0xa   :  { %181 = vmatpush.bf16.msra.mxu0 %v304_v8 }
   0xb   :  { %194 = vmatpush.bf16.msra.mxu1 %v312_v9 }
   0xe   :  { %182 = vmatpush.bf16.msra.mxu0 %v303_v11 }
   0xf   :  { %195 = vmatpush.bf16.msra.mxu1 %v311_v12 }
  0x12   :  { %183 = vmatpush.bf16.msra.mxu0 %v302_v13 }
  0x13   :  { %196 = vmatpush.bf16.msra.mxu1 %v310_v14 }
  0x16   :  { %184 = vmatpush.bf16.msra.mxu0 %v301_v15 }
  0x17   :  { %197 = vmatpush.bf16.msra.mxu1 %v309_v16 }
  0x1a   :  { %185 = vmatpush.bf16.msra.mxu0 %v300_v17 }
  0x1b   :  { %198 = vmatpush.bf16.msra.mxu1 %v308_v18 }
  0x1e   :  { %186 = vmatpush.bf16.msra.mxu0 %v299_v22 }
  0x1f   :  { %199 = vmatpush.bf16.msra.mxu1 %v307_v23 }
  0x21   :  { %187 = vmatmul.bf16.vlgmr.msra.gmra.mxu0 %v62_v24 }
  0x22   :  { %200 = vmatmul.bf16.vlgmr.msra.gmra.mxu1 %v63_v25 }
  0x8c   :  { %v214_v26 = vpop.f32.mrf.mxu2 }
  0x94   :  { %v216_v27 = vpop.f32.mrf.mxu2 }
  0x9e   :  { %v188_v29 = vpop.f32.mrf.mxu0 }
  0x9f   :  { %v201_v30 = vpop.f32.mrf.mxu1  ;;  %v189_v31 = vadd.f32 %v317_v28, %v188_v29 }
  0xa1   :  { %v202_v32 = vadd.f32 %v201_v30, %v189_v31 }
  0xa3   :  { %v215_v33 = vadd.f32 %v214_v26, %v202_v32 }
  0xa5   :  { %v218_v34 = vmax.f32 %v215_v33, 0.0 }
  0xa6   :  { %v190_v35 = vpop.f32.mrf.mxu0 }
  0xa7   :  { %v203_v36 = vpop.f32.mrf.mxu1  ;;  %v219_v37 = vpack.c.bf16 %v218_v34, %v218_v34 }
  0xa9   :  { %221 = vst.msk [vmem:[%s407_s3] sm:$0xf] %vm220_vm1, %v219_v37 }

// kernel: forward.30
= control target key start
LH: loop header
LB: loop body
LE: loop exit
PB: predicated region body
PF: predicated region fallthrough
CT: control target
= control target key end

     0   :  { %vm106_vm0 = vcmask 130048   ;;  %vm138_vm1 = vcmask 257024   ;;  %s318_s0 = inlined_call_operand.vmem [shape: bf16[8,144], index: 0, kind: input, shape index: {}]   ;;  %s319_s1 = inlined_call_operand.vmem [shape: bf16[144,32], index: 1, kind: input, shape index: {}]   ;;  %s320_s3 = inlined_call_operand.vmem [shape: bf16[16,32], index: 3, kind: input, shape index: {}]   ;;  %s321_s2 = inlined_call_operand.vmem [shape: f32[1,32], index: 2, kind: input, shape index: {}]   ;;  %s322_s4 = inlined_call_operand.vmem [shape: f32[1,32], index: 4, kind: input, shape index: {}]   ;;  %s323_s5 = inlined_call_operand.vmem [shape: bf16[8,32], index: 5, kind: output, shape index: {0}]   ;;  %s324_s6 = inlined_call_operand.vmem [shape: bf16[8,32], index: 6, kind: output, shape index: {1}]  }
   0x1   :  { %v23_v0 = vld [vmem:[%s318_s0] sm:$0xff]  ;;  %v229_v1 = vld [vmem:[%s319_s1 + $0x38] sm:$0xff]  ;;  %v228_v4 = vld [vmem:[%s319_s1 + $0x30] sm:$0xff]  ;;  %s235_s0 = smov 64  }
   0x2   :  { %v47_v2 = vunpack.c.l.b16 %v23_v0  ;;  %v48_v3 = vunpack.c.h.b16 %v23_v0  ;;  %110 = vmatpush.bf16.msra.mxu0 %v229_v1  ;;  %v230_v6 = vld [vmem:[%s319_s1 + $0x40] sm:$0xff]  ;;  %v227_v9 = vld [vmem:[%s319_s1 + $0x28] sm:$0xff]  ;;  %v225_v11 = vld [vmem:[%s319_s1 + $0x18] sm:$0xff] }
   0x3   :  { %v231_v7 = vld [vmem:[%s320_s3] sm:$0xff]  ;;  %130 = vmatpush.bf16.msra.mxu1 %v230_v6  ;;  %v224_v12 = vld [vmem:[%s319_s1 + $0x10] sm:$0xff]  ;;  %v223_v13 = vld [vmem:[%s319_s1 + $0x8] sm:$0xff] }
   0x4   :  { %v49_v5 = vpack.c.b16 %v47_v2, %v47_v2  ;;  %v50_v8 = vpack.c.b16 %v48_v3, %v48_v3  ;;  %164 = vmatpush.bf16.msra.mxu2 %v231_v7  ;;  %v226_v10 = vld [vmem:[%s319_s1 + $0x20] sm:$0xff] }
   0x5   :  { %v222_v14 = vld [vmem:[%s319_s1] sm:$0xff] }
   0x6   :  { %146 = vrot.lane.b32.xlu0 %v49_v5, %s235_s0  ;;  %111 = vmatpush.bf16.msra.mxu0 %v228_v4  ;;  %v233_v18 = vld [vmem:[%s321_s2] ss:$0 sm:$0xff] }
   0x7   :  { %216 = vmatmul.msk.bf16.vlgmr.msra.gmra.mxu1 %vm106_vm0, %v50_v8  ;;  %v234_v25 = vld [vmem:[%s322_s4] ss:$0 sm:$0xff] }
   0xa   :  { %112 = vmatpush.bf16.msra.mxu0 %v227_v9 }
   0xe   :  { %113 = vmatpush.bf16.msra.mxu0 %v226_v10 }
  0x12   :  { %114 = vmatpush.bf16.msra.mxu0 %v225_v11 }
  0x16   :  { %115 = vmatpush.bf16.msra.mxu0 %v224_v12 }
  0x1a   :  { %116 = vmatpush.bf16.msra.mxu0 %v223_v13 }
  0x1e   :  { %117 = vmatpush.bf16.msra.mxu0 %v222_v14 }
  0x21   :  { %118 = vmatmul.bf16.vlgmr.msra.gmra.mxu0 %v49_v5 }
  0x78   :  { %v147_v15 = vpop.permute.xlu0 %146 }
  0x79   :  { %221 = vmatmul.msk.bf16.vlgmr.msra.gmra.mxu2 %vm106_vm0, %v147_v15 }
  0x84   :  { %v132_v16 = vpop.f32.mrf.mxu1 }
  0x8c   :  { %v134_v17 = vpop.f32.mrf.mxu1 }
  0x9e   :  { %v119_v19 = vpop.f32.mrf.mxu0 }
  0x9f   :  { %v120_v20 = vadd.f32 %v233_v18, %v119_v19 }
  0xa1   :  { %v133_v21 = vadd.f32 %v132_v16, %v120_v20 }
  0xa3   :  { %v136_v22 = vmax.f32 %v133_v21, 0.0 }
  0xa5   :  { %v137_v23 = vpack.c.bf16 %v136_v22, %v136_v22 }
  0xa6   :  { %v121_v24 = vpop.f32.mrf.mxu0 }
  0xa7   :  { %139 = vst.msk [vmem:[%s323_s5] sm:$0xf] %vm138_vm1, %v137_v23 }
  0xfc   :  { %v166_v26 = vpop.f32.mrf.mxu2 }
  0xfd   :  { %v167_v27 = vadd.f32 %v234_v25, %v166_v26 }
  0xff   :  { %v170_v28 = vpack.c.bf16 %v167_v27, %v167_v27 }
 0x101   :  { %171 = vst.msk [vmem:[%s324_s6] sm:$0xf] %vm138_vm1, %v170_v28 }
 0x104   :  { %v168_v29 = vpop.f32.mrf.mxu2 }

// kernel: forward.31
= control target key start
LH: loop header
LB: loop body
LE: loop exit
PB: predicated region body
PF: predicated region fallthrough
CT: control target
= control target key end

     0   :  { %vm178_vm0 = vcmask 261120   ;;  %vm226_vm1 = vcmask 257024   ;;  %s418_s1 = inlined_call_operand.vmem [shape: bf16[288,32], index: 1, kind: input, shape index: {}]   ;;  %s419_s0 = inlined_call_operand.vmem [shape: bf16[8,288], index: 0, kind: input, shape index: {}]   ;;  %s420_s2 = inlined_call_operand.vmem [shape: f32[1,32], index: 2, kind: input, shape index: {}]   ;;  %s421_s3 = inlined_call_operand.vmem [shape: bf16[8,32], index: 3, kind: input, shape index: {}]   ;;  %s422_s4 = inlined_call_operand.vmem [shape: bf16[8,32], index: 4, kind: output, shape index: {}]  }
   0x1   :  { %v312_v0 = vld [vmem:[%s418_s1 + $0x38] sm:$0xff]  ;;  %v311_v2 = vld [vmem:[%s418_s1 + $0x30] sm:$0xff]  ;;  %v322_v4 = vld [vmem:[%s418_s1 + $0x88] sm:$0xff] }
   0x2   :  { %v320_v1 = vld [vmem:[%s418_s1 + $0x78] sm:$0xff]  ;;  %182 = vmatpush.bf16.msra.mxu0 %v312_v0  ;;  %v319_v3 = vld [vmem:[%s418_s1 + $0x70] sm:$0xff]  ;;  %214 = vmatpush.bf16.msra.mxu2 %v322_v4  ;;  %v321_v5 = vld [vmem:[%s418_s1 + $0x80] sm:$0xff] }
   0x3   :  { %195 = vmatpush.bf16.msra.mxu1 %v320_v1  ;;  %v19_v6 = vld [vmem:[%s419_s0 + $0x8] sm:$0xf]  ;;  %v309_v11 = vld [vmem:[%s418_s1 + $0x20] sm:$0xff]  ;;  %v308_v13 = vld [vmem:[%s418_s1 + $0x18] sm:$0xff] }
   0x4   :  { %v64_v7 = vunpack.c.l.b16 %v19_v6  ;;  %v310_v8 = vld [vmem:[%s418_s1 + $0x28] sm:$0xff]  ;;  %v317_v12 = vld [vmem:[%s418_s1 + $0x60] sm:$0xff]  ;;  %v316_v14 = vld [vmem:[%s418_s1 + $0x58] sm:$0xff] }
   0x5   :  { %v318_v9 = vld [vmem:[%s418_s1 + $0x68] sm:$0xff]  ;;  %v307_v15 = vld [vmem:[%s418_s1 + $0x10] sm:$0xff]  ;;  %v18_v19 = vld [vmem:[%s419_s0] sm:$0xff] }
   0x6   :  { %183 = vmatpush.bf16.msra.mxu0 %v311_v2  ;;  %v67_v10 = vpack.c.b16 %v64_v7, %v64_v7  ;;  %215 = vmatpush.bf16.msra.mxu2 %v321_v5  ;;  %v315_v16 = vld [vmem:[%s418_s1 + $0x50] sm:$0xff]  ;;  %v306_v17 = vld [vmem:[%s418_s1 + $0x8] sm:$0xff]  ;;  %v62_v20 = vunpack.c.l.b16 %v18_v19  ;;  %v63_v21 = vunpack.c.h.b16 %v18_v19  ;;  %v305_v22 = vld [vmem:[%s418_s1] sm:$0xff] }
   0x7   :  { %196 = vmatpush.bf16.msra.mxu1 %v319_v3  ;;  %v314_v18 = vld [vmem:[%s418_s1 + $0x48] sm:$0xff]  ;;  %v313_v23 = vld [vmem:[%s418_s1 + $0x40] sm:$0xff] }
   0x8   :  { %v65_v24 = vpack.c.b16 %v62_v20, %v62_v20  ;;  %v66_v25 = vpack.c.b16 %v63_v21, %v63_v21  ;;  %v323_v28 = vld [vmem:[%s420_s2] ss:$0 sm:$0xff] }
   0x9   :  { %304 = vmatmul.msk.bf16.vlgmr.msra.gmra.mxu2 %vm178_vm0, %v67_v10  ;;  %v221_v31 = vld [vmem:[%s421_s3] sm:$0xf] }
   0xa   :  { %184 = vmatpush.bf16.msra.mxu0 %v310_v8  ;;  %v222_v34 = vunpack.c.l.bf16 %v221_v31 }
   0xb   :  { %197 = vmatpush.bf16.msra.mxu1 %v318_v9 }
   0xe   :  { %185 = vmatpush.bf16.msra.mxu0 %v309_v11 }
   0xf   :  { %198 = vmatpush.bf16.msra.mxu1 %v317_v12 }
  0x12   :  { %186 = vmatpush.bf16.msra.mxu0 %v308_v13 }
  0x13   :  { %199 = vmatpush.bf16.msra.mxu1 %v316_v14 }
  0x16   :  { %187 = vmatpush.bf16.msra.mxu0 %v307_v15 }
  0x17   :  { %200 = vmatpush.bf16.msra.mxu1 %v315_v16 }
  0x1a   :  { %188 = vmatpush.bf16.msra.mxu0 %v306_v17 }
  0x1b   :  { %201 = vmatpush.bf16.msra.mxu1 %v314_v18 }
  0x1e   :  { %189 = vmatpush.bf16.msra.mxu0 %v305_v22 }
  0x1f   :  { %202 = vmatpush.bf16.msra.mxu1 %v313_v23 }
  0x21   :  { %190 = vmatmul.bf16.vlgmr.msra.gmra.mxu0 %v65_v24 }
  0x22   :  { %203 = vmatmul.bf16.vlgmr.msra.gmra.mxu1 %v66_v25 }
  0x8c   :  { %v217_v26 = vpop.f32.mrf.mxu2 }
  0x94   :  { %v219_v27 = vpop.f32.mrf.mxu2 }
  0x9e   :  { %v191_v29 = vpop.f32.mrf.mxu0 }
  0x9f   :  { %v204_v30 = vpop.f32.mrf.mxu1  ;;  %v192_v32 = vadd.f32 %v323_v28, %v191_v29 }
  0xa1   :  { %v205_v33 = vadd.f32 %v204_v30, %v192_v32 }
  0xa3   :  { %v218_v35 = vadd.f32 %v217_v26, %v205_v33 }
  0xa5   :  { %v223_v36 = vadd.f32 %v222_v34, %v218_v35 }
  0xa6   :  { %v193_v37 = vpop.f32.mrf.mxu0 }
  0xa7   :  { %v206_v38 = vpop.f32.mrf.mxu1  ;;  %v224_v39 = vmax.f32 %v223_v36, 0.0 }
  0xa9   :  { %v225_v40 = vpack.c.bf16 %v224_v39, %v224_v39 }
  0xab   :  { %227 = vst.msk [vmem:[%s422_s4] sm:$0xf] %vm226_vm1, %v225_v40 }

// kernel: forward.34
= control target key start
LH: loop header
LB: loop body
LE: loop exit
PB: predicated region body
PF: predicated region fallthrough
CT: control target
= control target key end

     0   :  { %vm179_vm0 = vcmask 261120   ;;  %vm223_vm1 = vcmask 516096   ;;  %s488_s1 = inlined_call_operand.vmem [shape: bf16[288,64], index: 1, kind: input, shape index: {}]   ;;  %s489_s3 = inlined_call_operand.vmem [shape: bf16[32,64], index: 3, kind: input, shape index: {}]   ;;  %s490_s0 = inlined_call_operand.vmem [shape: bf16[2,288], index: 0, kind: input, shape index: {}]   ;;  %s491_s4 = inlined_call_operand.vmem [shape: f32[1,64], index: 4, kind: input, shape index: {}]   ;;  %s492_s2 = inlined_call_operand.vmem [shape: f32[1,64], index: 2, kind: input, shape index: {}]   ;;  %s493_s6 = inlined_call_operand.vmem [shape: bf16[2,64], index: 6, kind: output, shape index: {1}]   ;;  %s494_s5 = inlined_call_operand.vmem [shape: bf16[2,64], index: 5, kind: output, shape index: {0}]  }
   0x1   :  { %v361_v0 = vld [vmem:[%s488_s1 + $0x38] sm:$0xff]  ;;  %v360_v2 = vld [vmem:[%s488_s1 + $0x30] sm:$0xff]  ;;  %v371_v4 = vld [vmem:[%s488_s1 + $0x88] sm:$0xff] }
   0x2   :  { %v369_v1 = vld [vmem:[%s488_s1 + $0x78] sm:$0xff]  ;;  %182 = vmatpush.bf16.msra.mxu0 %v361_v0  ;;  %v368_v3 = vld [vmem:[%s488_s1 + $0x70] sm:$0xff]  ;;  %v373_v5 = vld [vmem:[%s489_s3 + $0x8] sm:$0xff]  ;;  %214 = vmatpush.bf16.msra.mxu2 %v371_v4 }
   0x3   :  { %195 = vmatpush.bf16.msra.mxu1 %v369_v1  ;;  %v370_v6 = vld [vmem:[%s488_s1 + $0x80] sm:$0xff]  ;;  %255 = vmatpush.bf16.msra.mxu3 %v373_v5  ;;  %v359_v9 = vld [vmem:[%s488_s1 + $0x28] sm:$0xff]  ;;  %v357_v16 = vld [vmem:[%s488_s1 + $0x18] sm:$0xff] }
   0x4   :  { %v372_v7 = vld [vmem:[%s489_s3] sm:$0xff]  ;;  %v367_v10 = vld [vmem:[%s488_s1 + $0x68] sm:$0xff]  ;;  %v365_v17 = vld [vmem:[%s488_s1 + $0x58] sm:$0xff] }
   0x5   :  { %v23_v8 = vld [vmem:[%s490_s0] sm:$0x7]  ;;  %v356_v18 = vld [vmem:[%s488_s1 + $0x10] sm:$0xff]  ;;  %v355_v21 = vld [vmem:[%s488_s1 + $0x8] sm:$0xff] }
   0x6   :  { %183 = vmatpush.bf16.msra.mxu0 %v360_v2  ;;  %65 = vst [vmem:[#allocation1] ss:$9 sm:$0xff] %v23_v8  ;;  %215 = vmatpush.bf16.msra.mxu2 %v370_v6  ;;  %v358_v11 = vld [vmem:[%s488_s1 + $0x20] sm:$0xff]  ;;  %v364_v19 = vld [vmem:[%s488_s1 + $0x50] sm:$0xff]  ;;  %v363_v22 = vld [vmem:[%s488_s1 + $0x48] sm:$0xff] }
   0x7   :  { %196 = vmatpush.bf16.msra.mxu1 %v368_v3  ;;  %256 = vmatpush.bf16.msra.mxu3 %v372_v7  ;;  %v366_v12 = vld [vmem:[%s488_s1 + $0x60] sm:$0xff] }
   0x8   :  { %v354_v23 = vld [vmem:[%s488_s1] sm:$0xff] }
   0x9   :  { %v362_v24 = vld [vmem:[%s488_s1 + $0x40] sm:$0xff] }
   0xa   :  { %184 = vmatpush.bf16.msra.mxu0 %v359_v9  ;;  %v374_v26 = vld [vmem:[%s491_s4] ss:$0 sm:$0xff] }
   0xb   :  { %197 = vmatpush.bf16.msra.mxu1 %v367_v10  ;;  %v375_v30 = vld [vmem:[%s492_s2] ss:$0 sm:$0xff] }
   0xd   :  { %v66_v13 = vld [vmem:[#allocation1] sm:$0xff]  ;;  %v67_v14 = vld [vmem:[#allocation1 + $0x9] sm:$0xff]  ;;  %v68_v15 = vld [vmem:[#allocation1 + $0x12] sm:$0xff] }
   0xe   :  { %185 = vmatpush.bf16.msra.mxu0 %v358_v11  ;;  %233 = vst [vmem:[#allocation1] ss:$9 sm:$0xff] %v23_v8  ;;  %344 = vmatmul.msk.bf16.vlgmr.msra.gmra.mxu2 %vm179_vm0, %v68_v15 }
   0xf   :  { %198 = vmatpush.bf16.msra.mxu1 %v366_v12 }
  0x12   :  { %186 = vmatpush.bf16.msra.mxu0 %v357_v16 }
  0x13   :  { %199 = vmatpush.bf16.msra.mxu1 %v365_v17 }
  0x15   :  { %v234_v20 = vld [vmem:[#allocation1 + $0x9] sm:$0xff] }
  0x16   :  { %187 = vmatpush.bf16.msra.mxu0 %v356_v18  ;;  %353 = vmatmul.msk.bf16.vlgmr.msra.gmra.mxu3 %vm179_vm0, %v234_v20 }
  0x17   :  { %200 = vmatpush.bf16.msra.mxu1 %v364_v19 }
  0x1a   :  { %188 = vmatpush.bf16.msra.mxu0 %v355_v21 }
  0x1b   :  { %201 = vmatpush.bf16.msra.mxu1 %v363_v22 }
  0x1e   :  { %189 = vmatpush.bf16.msra.mxu0 %v354_v23 }
  0x1f   :  { %202 = vmatpush.bf16.msra.mxu1 %v362_v24 }
  0x21   :  { %190 = vmatmul.bf16.vlgmr.msra.gmra.mxu0 %v66_v13 }
  0x22   :  { %203 = vmatmul.bf16.vlgmr.msra.gmra.mxu1 %v67_v14 }
  0x91   :  { %v217_v25 = vpop.f32.mrf.mxu2 }
  0x99   :  { %v258_v27 = vpop.f32.mrf.mxu3  ;;  %v219_v28 = vpop.f32.mrf.mxu2 }
  0x9a   :  { %v259_v29 = vadd.f32 %v374_v26, %v258_v27 }
  0x9c   :  { %v262_v31 = vpack.c.bf16 %v259_v29, %v259_v29 }
  0x9e   :  { %v191_v32 = vpop.f32.mrf.mxu0  ;;  %263 = vst.msk [vmem:[%s493_s6] sm:$0x1] %vm223_vm1, %v262_v31 }
  0x9f   :  { %v204_v33 = vpop.f32.mrf.mxu1  ;;  %v192_v34 = vadd.f32 %v375_v30, %v191_v32 }
  0xa1   :  { %v205_v35 = vadd.f32 %v204_v33, %v192_v34  ;;  %v260_v36 = vpop.f32.mrf.mxu3 }
  0xa3   :  { %v218_v37 = vadd.f32 %v217_v25, %v205_v35 }
  0xa5   :  { %v221_v38 = vmax.f32 %v218_v37, 0.0 }
  0xa6   :  { %v193_v39 = vpop.f32.mrf.mxu0 }
  0xa7   :  { %v206_v40 = vpop.f32.mrf.mxu1  ;;  %v222_v41 = vpack.c.bf16 %v221_v38, %v221_v38 }
  0xa9   :  { %224 = vst.msk [vmem:[%s494_s5] sm:$0x1] %vm223_vm1, %v222_v41 }

// kernel: forward.38
= control target key start
LH: loop header
LB: loop body
LE: loop exit
PB: predicated region body
PF: predicated region fallthrough
CT: control target
= control target key end

     0   :  { %vm40_vm0 = vcmask 1041409   ;;  %vm67_vm1 = vcmask 523264   ;;  %s155_s1 = inlined_call_operand.vmem [shape: bf16[64,128], index: 1, kind: input, shape index: {}]   ;;  %s156_s0 = inlined_call_operand.vmem [shape: bf16[2,1,64], index: 0, kind: input, shape index: {}]   ;;  %s157_s2 = inlined_call_operand.vmem [shape: f32[1,128], index: 2, kind: input, shape index: {}]   ;;  %s158_s3 = inlined_call_operand.vmem [shape: f32[2,128], index: 3, kind: output, shape index: {}]  }
   0x1   :  { %v109_v0 = vld [vmem:[%s155_s1 + $0x18] sm:$0xff]  ;;  %v15_v1 = vld [vmem:[%s156_s0] sm:$0x1]  ;;  %v16_v2 = vld [vmem:[%s156_s0 + $0x1] sm:$0x1] }
   0x2   :  { %75 = vmatpush.bf16.msra.mxu0 %v109_v0  ;;  %v108_v3 = vld [vmem:[%s155_s1 + $0x10] sm:$0xff]  ;;  %v17_v4 = vunpack.c.l.bf16 %v15_v1  ;;  %v18_v5 = vunpack.c.l.bf16 %v16_v2  ;;  %v107_v8 = vld [vmem:[%s155_s1 + $0x8] sm:$0xff]  ;;  %v106_v12 = vld [vmem:[%s155_s1] sm:$0xff] }
   0x3   :  { %v110_v15 = vld [vmem:[%s157_s2] ss:$0 sm:$0xff] }
   0x4   :  { %v21_v6 = vpack.c.bf16 %v17_v4, %v17_v4  ;;  %v22_v7 = vpack.c.bf16 %v18_v5, %v18_v5 }
   0x6   :  { %76 = vmatpush.bf16.msra.mxu0 %v108_v3  ;;  %v37_v9 = vunpack.c.l.b16 %v21_v6  ;;  %v38_v10 = vunpack.c.l.b16 %v22_v7 }
   0x8   :  { %v39_v11 = vrot.slane %v38_v10, 7 }
   0xa   :  { %77 = vmatpush.bf16.msra.mxu0 %v107_v8  ;;  %v41_v13 = vsel %vm40_vm0, %v39_v11, %v37_v9 }
   0xb   :  { %v42_v14 = vpack.c.b16 %v41_v13, %v41_v13 }
   0xe   :  { %78 = vmatpush.bf16.msra.mxu0 %v106_v12 }
  0x11   :  { %105 = vmatmul.msk.bf16.vlgmr.msra.gmra.mxu0 %vm67_vm1, %v42_v14 }
  0x8e   :  { %v80_v16 = vpop.f32.mrf.mxu0 }
  0x8f   :  { %v81_v17 = vadd.f32 %v110_v15, %v80_v16 }
  0x91   :  { %84 = vst [vmem:[%s158_s3] sm:$0x3] %v81_v17 }
  0x96   :  { %v82_v18 = vpop.f32.mrf.mxu0 }

// kernel: forward.35
= control target key start
LH: loop header
LB: loop body
LE: loop exit
PB: predicated region body
PF: predicated region fallthrough
CT: control target
= control target key end

     0   :  { %vm322_vm0 = vcmask 523264   ;;  %vm395_vm1 = vcmask 516096   ;;  %s728_s1 = inlined_call_operand.vmem [shape: bf16[576,64], index: 1, kind: input, shape index: {}]   ;;  %s729_s0 = inlined_call_operand.vmem [shape: bf16[2,576], index: 0, kind: input, shape index: {}]   ;;  %s730_s2 = inlined_call_operand.vmem [shape: f32[1,64], index: 2, kind: input, shape index: {}]   ;;  %s731_s3 = inlined_call_operand.vmem [shape: bf16[2,64], index: 3, kind: input, shape index: {}]   ;;  %s732_s4 = inlined_call_operand.vmem [shape: bf16[2,64], index: 4, kind: output, shape index: {}]  }
   0x1   :  { %v553_v0 = vld [vmem:[%s728_s1 + $0x38] sm:$0xff]  ;;  %v552_v4 = vld [vmem:[%s728_s1 + $0x30] sm:$0xff]  ;;  %v551_v8 = vld [vmem:[%s728_s1 + $0x28] sm:$0xff] }
   0x2   :  { %v569_v1 = vld [vmem:[%s728_s1 + $0xb8] sm:$0xff]  ;;  %325 = vmatpush.bf16.msra.mxu0 %v553_v0  ;;  %v568_v5 = vld [vmem:[%s728_s1 + $0xb0] sm:$0xff]  ;;  %v567_v9 = vld [vmem:[%s728_s1 + $0xa8] sm:$0xff] }
   0x3   :  { %v577_v2 = vld [vmem:[%s728_s1 + $0xf8] sm:$0xff]  ;;  %351 = vmatpush.bf16.msra.mxu2 %v569_v1  ;;  %v576_v6 = vld [vmem:[%s728_s1 + $0xf0] sm:$0xff]  ;;  %v575_v10 = vld [vmem:[%s728_s1 + $0xe8] sm:$0xff] }
   0x4   :  { %v561_v3 = vld [vmem:[%s728_s1 + $0x78] sm:$0xff]  ;;  %364 = vmatpush.bf16.msra.mxu3 %v577_v2  ;;  %v560_v7 = vld [vmem:[%s728_s1 + $0x70] sm:$0xff]  ;;  %v559_v11 = vld [vmem:[%s728_s1 + $0x68] sm:$0xff] }
   0x5   :  { %338 = vmatpush.bf16.msra.mxu1 %v561_v3  ;;  %v550_v12 = vld [vmem:[%s728_s1 + $0x20] sm:$0xff]  ;;  %v549_v17 = vld [vmem:[%s728_s1 + $0x18] sm:$0xff]  ;;  %v548_v21 = vld [vmem:[%s728_s1 + $0x10] sm:$0xff] }
   0x6   :  { %326 = vmatpush.bf16.msra.mxu0 %v552_v4  ;;  %v566_v13 = vld [vmem:[%s728_s1 + $0xa0] sm:$0xff]  ;;  %v565_v18 = vld [vmem:[%s728_s1 + $0x98] sm:$0xff]  ;;  %v564_v22 = vld [vmem:[%s728_s1 + $0x90] sm:$0xff] }
   0x7   :  { %352 = vmatpush.bf16.msra.mxu2 %v568_v5  ;;  %v18_v14 = vld [vmem:[%s729_s0] sm:$0x1f]  ;;  %v573_v19 = vld [vmem:[%s728_s1 + $0xd8] sm:$0xff]  ;;  %v572_v23 = vld [vmem:[%s728_s1 + $0xd0] sm:$0xff] }
   0x8   :  { %365 = vmatpush.bf16.msra.mxu3 %v576_v6  ;;  %v574_v15 = vld [vmem:[%s728_s1 + $0xe0] sm:$0xff]  ;;  %96 = vst [vmem:[#allocation1] ss:$9 sm:$0xff] %v18_v14  ;;  %v557_v20 = vld [vmem:[%s728_s1 + $0x58] sm:$0xff]  ;;  %v556_v24 = vld [vmem:[%s728_s1 + $0x50] sm:$0xff] }
   0x9   :  { %339 = vmatpush.bf16.msra.mxu1 %v560_v7  ;;  %v558_v16 = vld [vmem:[%s728_s1 + $0x60] sm:$0xff]  ;;  %v547_v25 = vld [vmem:[%s728_s1 + $0x8] sm:$0xff]  ;;  %v581_v33 = vld [vmem:[%s728_s1 + $0x118] sm:$0xff] }
   0xa   :  { %327 = vmatpush.bf16.msra.mxu0 %v551_v8  ;;  %v563_v26 = vld [vmem:[%s728_s1 + $0x88] sm:$0xff]  ;;  %v546_v29 = vld [vmem:[%s728_s1] sm:$0xff]  ;;  %v580_v38 = vld [vmem:[%s728_s1 + $0x110] sm:$0xff] }
   0xb   :  { %353 = vmatpush.bf16.msra.mxu2 %v567_v9  ;;  %v571_v27 = vld [vmem:[%s728_s1 + $0xc8] sm:$0xff]  ;;  %v562_v30 = vld [vmem:[%s728_s1 + $0x80] sm:$0xff] }
   0xc   :  { %366 = vmatpush.bf16.msra.mxu3 %v575_v10  ;;  %v555_v28 = vld [vmem:[%s728_s1 + $0x48] sm:$0xff]  ;;  %v570_v31 = vld [vmem:[%s728_s1 + $0xc0] sm:$0xff] }
   0xd   :  { %340 = vmatpush.bf16.msra.mxu1 %v559_v11  ;;  %v554_v32 = vld [vmem:[%s728_s1 + $0x40] sm:$0xff]  ;;  %v579_v39 = vld [vmem:[%s728_s1 + $0x108] sm:$0xff] }
   0xe   :  { %328 = vmatpush.bf16.msra.mxu0 %v550_v12  ;;  %v578_v40 = vld [vmem:[%s728_s1 + $0x100] sm:$0xff] }
   0xf   :  { %354 = vmatpush.bf16.msra.mxu2 %v566_v13  ;;  %v97_v34 = vld [vmem:[#allocation1] sm:$0xff]  ;;  %v99_v35 = vld [vmem:[#allocation1 + $0x12] sm:$0xff]  ;;  %v98_v37 = vld [vmem:[#allocation1 + $0x9] sm:$0xff] }
  0x10   :  { %367 = vmatpush.bf16.msra.mxu3 %v574_v15  ;;  %v100_v36 = vld [vmem:[#allocation1 + $0x1b] sm:$0xff]  ;;  %v101_v41 = vld [vmem:[#allocation1 + $0x24] sm:$0xff] }
  0x11   :  { %341 = vmatpush.bf16.msra.mxu1 %v558_v16  ;;  %v582_v43 = vld [vmem:[%s730_s2] ss:$0 sm:$0xff] }
  0x12   :  { %329 = vmatpush.bf16.msra.mxu0 %v549_v17  ;;  %v390_v52 = vld [vmem:[%s731_s3] sm:$0x1] }
  0x13   :  { %355 = vmatpush.bf16.msra.mxu2 %v565_v18  ;;  %v391_v56 = vunpack.c.l.bf16 %v390_v52 }
  0x14   :  { %368 = vmatpush.bf16.msra.mxu3 %v573_v19 }
  0x15   :  { %342 = vmatpush.bf16.msra.mxu1 %v557_v20 }
  0x16   :  { %330 = vmatpush.bf16.msra.mxu0 %v548_v21 }
  0x17   :  { %356 = vmatpush.bf16.msra.mxu2 %v564_v22 }
  0x18   :  { %369 = vmatpush.bf16.msra.mxu3 %v572_v23 }
  0x19   :  { %343 = vmatpush.bf16.msra.mxu1 %v556_v24 }
  0x1a   :  { %331 = vmatpush.bf16.msra.mxu0 %v547_v25 }
  0x1b   :  { %357 = vmatpush.bf16.msra.mxu2 %v563_v26 }
  0x1c   :  { %370 = vmatpush.bf16.msra.mxu3 %v571_v27 }
  0x1d   :  { %344 = vmatpush.bf16.msra.mxu1 %v555_v28 }
  0x1e   :  { %332 = vmatpush.bf16.msra.mxu0 %v546_v29 }
  0x1f   :  { %358 = vmatpush.bf16.msra.mxu2 %v562_v30 }
  0x20   :  { %371 = vmatpush.bf16.msra.mxu3 %v570_v31 }
  0x21   :  { %345 = vmatpush.bf16.msra.mxu1 %v554_v32  ;;  %333 = vmatmul.bf16.vlgmr.msra.gmra.mxu0 %v97_v34 }
  0x22   :  { %381 = vmatpush.bf16.msrb.mxu0 %v581_v33  ;;  %359 = vmatmul.bf16.vlgmr.msra.gmra.mxu2 %v99_v35 }
  0x23   :  { %372 = vmatmul.bf16.vlgmr.msra.gmra.mxu3 %v100_v36 }
  0x24   :  { %346 = vmatmul.bf16.vlgmr.msra.gmra.mxu1 %v98_v37 }
  0x26   :  { %382 = vmatpush.bf16.msrb.mxu0 %v580_v38 }
  0x2a   :  { %383 = vmatpush.bf16.msrb.mxu0 %v579_v39 }
  0x2e   :  { %384 = vmatpush.bf16.msrb.mxu0 %v578_v40 }
  0x31   :  { %545 = vmatmul.msk.bf16.vlgmr.msrb.gmra.mxu0 %vm322_vm0, %v101_v41 }
  0x9e   :  { %v334_v42 = vpop.f32.mrf.mxu0 }
  0x9f   :  { %v335_v45 = vadd.f32 %v582_v43, %v334_v42 }
  0xa1   :  { %v347_v44 = vpop.f32.mrf.mxu1 }
  0xa2   :  { %v348_v49 = vadd.f32 %v347_v44, %v335_v45 }
  0xa5   :  { %v360_v46 = vpop.f32.mrf.mxu2 }
  0xa6   :  { %v373_v47 = vpop.f32.mrf.mxu3  ;;  %v336_v48 = vpop.f32.mrf.mxu0  ;;  %v361_v51 = vadd.f32 %v360_v46, %v348_v49 }
  0xa8   :  { %v374_v54 = vadd.f32 %v373_v47, %v361_v51 }
  0xa9   :  { %v349_v50 = vpop.f32.mrf.mxu1 }
  0xad   :  { %v362_v53 = vpop.f32.mrf.mxu2 }
  0xae   :  { %v375_v55 = vpop.f32.mrf.mxu3  ;;  %v386_v57 = vpop.f32.mrf.mxu0 }
  0xaf   :  { %v387_v58 = vadd.f32 %v386_v57, %v374_v54 }
  0xb1   :  { %v392_v59 = vadd.f32 %v391_v56, %v387_v58 }
  0xb3   :  { %v393_v60 = vmax.f32 %v392_v59, 0.0 }
  0xb5   :  { %v394_v61 = vpack.c.bf16 %v393_v60, %v393_v60 }
  0xb6   :  { %v388_v62 = vpop.f32.mrf.mxu0 }
  0xb7   :  { %396 = vst.msk [vmem:[%s732_s4] sm:$0x1] %vm395_vm1, %v394_v61 }

// kernel: forward.36
= control target key start
LH: loop header
LB: loop body
LE: loop exit
PB: predicated region body
PF: predicated region fallthrough
CT: control target
= control target key end

     0   :  { %vm319_vm0 = vcmask 523264   ;;  %vm389_vm1 = vcmask 516096   ;;  %s714_s1 = inlined_call_operand.vmem [shape: bf16[576,64], index: 1, kind: input, shape index: {}]   ;;  %s715_s0 = inlined_call_operand.vmem [shape: bf16[2,576], index: 0, kind: input, shape index: {}]   ;;  %s716_s2 = inlined_call_operand.vmem [shape: f32[1,64], index: 2, kind: input, shape index: {}]   ;;  %s717_s3 = inlined_call_operand.vmem [shape: bf16[2,64], index: 3, kind: output, shape index: {}]  }
   0x1   :  { %v547_v0 = vld [vmem:[%s714_s1 + $0x38] sm:$0xff]  ;;  %v546_v4 = vld [vmem:[%s714_s1 + $0x30] sm:$0xff]  ;;  %v545_v8 = vld [vmem:[%s714_s1 + $0x28] sm:$0xff] }
   0x2   :  { %v563_v1 = vld [vmem:[%s714_s1 + $0xb8] sm:$0xff]  ;;  %322 = vmatpush.bf16.msra.mxu0 %v547_v0  ;;  %v562_v5 = vld [vmem:[%s714_s1 + $0xb0] sm:$0xff]  ;;  %v561_v9 = vld [vmem:[%s714_s1 + $0xa8] sm:$0xff] }
   0x3   :  { %v571_v2 = vld [vmem:[%s714_s1 + $0xf8] sm:$0xff]  ;;  %348 = vmatpush.bf16.msra.mxu2 %v563_v1  ;;  %v570_v6 = vld [vmem:[%s714_s1 + $0xf0] sm:$0xff]  ;;  %v569_v10 = vld [vmem:[%s714_s1 + $0xe8] sm:$0xff] }
   0x4   :  { %v555_v3 = vld [vmem:[%s714_s1 + $0x78] sm:$0xff]  ;;  %361 = vmatpush.bf16.msra.mxu3 %v571_v2  ;;  %v554_v7 = vld [vmem:[%s714_s1 + $0x70] sm:$0xff]  ;;  %v553_v11 = vld [vmem:[%s714_s1 + $0x68] sm:$0xff] }
   0x5   :  { %335 = vmatpush.bf16.msra.mxu1 %v555_v3  ;;  %v544_v12 = vld [vmem:[%s714_s1 + $0x20] sm:$0xff]  ;;  %v543_v17 = vld [vmem:[%s714_s1 + $0x18] sm:$0xff]  ;;  %v542_v21 = vld [vmem:[%s714_s1 + $0x10] sm:$0xff] }
   0x6   :  { %323 = vmatpush.bf16.msra.mxu0 %v546_v4  ;;  %v560_v13 = vld [vmem:[%s714_s1 + $0xa0] sm:$0xff]  ;;  %v559_v18 = vld [vmem:[%s714_s1 + $0x98] sm:$0xff]  ;;  %v558_v22 = vld [vmem:[%s714_s1 + $0x90] sm:$0xff] }
   0x7   :  { %349 = vmatpush.bf16.msra.mxu2 %v562_v5  ;;  %v15_v14 = vld [vmem:[%s715_s0] sm:$0x1f]  ;;  %v567_v19 = vld [vmem:[%s714_s1 + $0xd8] sm:$0xff]  ;;  %v566_v23 = vld [vmem:[%s714_s1 + $0xd0] sm:$0xff] }
   0x8   :  { %362 = vmatpush.bf16.msra.mxu3 %v570_v6  ;;  %v568_v15 = vld [vmem:[%s714_s1 + $0xe0] sm:$0xff]  ;;  %93 = vst [vmem:[#allocation1] ss:$9 sm:$0xff] %v15_v14  ;;  %v551_v20 = vld [vmem:[%s714_s1 + $0x58] sm:$0xff]  ;;  %v550_v24 = vld [vmem:[%s714_s1 + $0x50] sm:$0xff] }
   0x9   :  { %336 = vmatpush.bf16.msra.mxu1 %v554_v7  ;;  %v552_v16 = vld [vmem:[%s714_s1 + $0x60] sm:$0xff]  ;;  %v541_v25 = vld [vmem:[%s714_s1 + $0x8] sm:$0xff]  ;;  %v575_v33 = vld [vmem:[%s714_s1 + $0x118] sm:$0xff] }
   0xa   :  { %324 = vmatpush.bf16.msra.mxu0 %v545_v8  ;;  %v557_v26 = vld [vmem:[%s714_s1 + $0x88] sm:$0xff]  ;;  %v540_v29 = vld [vmem:[%s714_s1] sm:$0xff]  ;;  %v574_v38 = vld [vmem:[%s714_s1 + $0x110] sm:$0xff] }
   0xb   :  { %350 = vmatpush.bf16.msra.mxu2 %v561_v9  ;;  %v565_v27 = vld [vmem:[%s714_s1 + $0xc8] sm:$0xff]  ;;  %v556_v30 = vld [vmem:[%s714_s1 + $0x80] sm:$0xff] }
   0xc   :  { %363 = vmatpush.bf16.msra.mxu3 %v569_v10  ;;  %v549_v28 = vld [vmem:[%s714_s1 + $0x48] sm:$0xff]  ;;  %v564_v31 = vld [vmem:[%s714_s1 + $0xc0] sm:$0xff] }
   0xd   :  { %337 = vmatpush.bf16.msra.mxu1 %v553_v11  ;;  %v548_v32 = vld [vmem:[%s714_s1 + $0x40] sm:$0xff]  ;;  %v573_v39 = vld [vmem:[%s714_s1 + $0x108] sm:$0xff] }
   0xe   :  { %325 = vmatpush.bf16.msra.mxu0 %v544_v12  ;;  %v572_v40 = vld [vmem:[%s714_s1 + $0x100] sm:$0xff] }
   0xf   :  { %351 = vmatpush.bf16.msra.mxu2 %v560_v13  ;;  %v94_v34 = vld [vmem:[#allocation1] sm:$0xff]  ;;  %v96_v35 = vld [vmem:[#allocation1 + $0x12] sm:$0xff]  ;;  %v95_v37 = vld [vmem:[#allocation1 + $0x9] sm:$0xff] }
  0x10   :  { %364 = vmatpush.bf16.msra.mxu3 %v568_v15  ;;  %v97_v36 = vld [vmem:[#allocation1 + $0x1b] sm:$0xff]  ;;  %v98_v41 = vld [vmem:[#allocation1 + $0x24] sm:$0xff] }
  0x11   :  { %338 = vmatpush.bf16.msra.mxu1 %v552_v16  ;;  %v576_v43 = vld [vmem:[%s716_s2] ss:$0 sm:$0xff] }
  0x12   :  { %326 = vmatpush.bf16.msra.mxu0 %v543_v17 }
  0x13   :  { %352 = vmatpush.bf16.msra.mxu2 %v559_v18 }
  0x14   :  { %365 = vmatpush.bf16.msra.mxu3 %v567_v19 }
  0x15   :  { %339 = vmatpush.bf16.msra.mxu1 %v551_v20 }
  0x16   :  { %327 = vmatpush.bf16.msra.mxu0 %v542_v21 }
  0x17   :  { %353 = vmatpush.bf16.msra.mxu2 %v558_v22 }
  0x18   :  { %366 = vmatpush.bf16.msra.mxu3 %v566_v23 }
  0x19   :  { %340 = vmatpush.bf16.msra.mxu1 %v550_v24 }
  0x1a   :  { %328 = vmatpush.bf16.msra.mxu0 %v541_v25 }
  0x1b   :  { %354 = vmatpush.bf16.msra.mxu2 %v557_v26 }
  0x1c   :  { %367 = vmatpush.bf16.msra.mxu3 %v565_v27 }
  0x1d   :  { %341 = vmatpush.bf16.msra.mxu1 %v549_v28 }
  0x1e   :  { %329 = vmatpush.bf16.msra.mxu0 %v540_v29 }
  0x1f   :  { %355 = vmatpush.bf16.msra.mxu2 %v556_v30 }
  0x20   :  { %368 = vmatpush.bf16.msra.mxu3 %v564_v31 }
  0x21   :  { %342 = vmatpush.bf16.msra.mxu1 %v548_v32  ;;  %330 = vmatmul.bf16.vlgmr.msra.gmra.mxu0 %v94_v34 }
  0x22   :  { %378 = vmatpush.bf16.msrb.mxu0 %v575_v33  ;;  %356 = vmatmul.bf16.vlgmr.msra.gmra.mxu2 %v96_v35 }
  0x23   :  { %369 = vmatmul.bf16.vlgmr.msra.gmra.mxu3 %v97_v36 }
  0x24   :  { %343 = vmatmul.bf16.vlgmr.msra.gmra.mxu1 %v95_v37 }
  0x26   :  { %379 = vmatpush.bf16.msrb.mxu0 %v574_v38 }
  0x2a   :  { %380 = vmatpush.bf16.msrb.mxu0 %v573_v39 }
  0x2e   :  { %381 = vmatpush.bf16.msrb.mxu0 %v572_v40 }
  0x31   :  { %539 = vmatmul.msk.bf16.vlgmr.msrb.gmra.mxu0 %vm319_vm0, %v98_v41 }
  0x9e   :  { %v331_v42 = vpop.f32.mrf.mxu0 }
  0x9f   :  { %v332_v45 = vadd.f32 %v576_v43, %v331_v42 }
  0xa1   :  { %v344_v44 = vpop.f32.mrf.mxu1 }
  0xa2   :  { %v345_v49 = vadd.f32 %v344_v44, %v332_v45 }
  0xa5   :  { %v357_v46 = vpop.f32.mrf.mxu2 }
  0xa6   :  { %v370_v47 = vpop.f32.mrf.mxu3  ;;  %v333_v48 = vpop.f32.mrf.mxu0  ;;  %v358_v51 = vadd.f32 %v357_v46, %v345_v49 }
  0xa8   :  { %v371_v53 = vadd.f32 %v370_v47, %v358_v51 }
  0xa9   :  { %v346_v50 = vpop.f32.mrf.mxu1 }
  0xad   :  { %v359_v52 = vpop.f32.mrf.mxu2 }
  0xae   :  { %v372_v54 = vpop.f32.mrf.mxu3  ;;  %v383_v55 = vpop.f32.mrf.mxu0 }
  0xaf   :  { %v384_v56 = vadd.f32 %v383_v55, %v371_v53 }
  0xb1   :  { %v387_v57 = vmax.f32 %v384_v56, 0.0 }
  0xb3   :  { %v388_v58 = vpack.c.bf16 %v387_v57, %v387_v57 }
  0xb5   :  { %390 = vst.msk [vmem:[%s717_s3] sm:$0x1] %vm389_vm1, %v388_v58 }
  0xb6   :  { %v385_v59 = vpop.f32.mrf.mxu0 }

// kernel: forward.39
= control target key start
LH: loop header
LB: loop body
LE: loop exit
PB: predicated region body
PF: predicated region fallthrough
CT: control target
= control target key end

     0   :  { %s5290_s0 = inlined_call_operand.vmem [shape: f32[2,16,128], index: 0, kind: input, shape index: {}]   ;;  %s5291_s1 = inlined_call_operand.vmem [shape: f32[16,128], index: 1, kind: input, shape index: {}]   ;;  %s5292_s2 = inlined_call_operand.vmem [shape: f32[2,16], index: 2, kind: input, shape index: {}]   ;;  %s5293_s3 = inlined_call_operand.vmem [shape: f32[2,1,128], index: 3, kind: input, shape index: {}]   ;;  %s5294_s4 = inlined_call_operand.vmem [shape: f32[2,1,128], index: 4, kind: input, shape index: {}]   ;;  %s5295_s5 = inlined_call_operand.vmem [shape: bf16[2,128,384], index: 5, kind: input, shape index: {}]   ;;  %s5296_s6 = inlined_call_operand.vmem [shape: f32[2,1,384], index: 6, kind: input, shape index: {}]   ;;  %s5297_s7 = inlined_call_operand.vmem [shape: bf16[2,128,128], index: 7, kind: input, shape index: {}]   ;;  %s5298_s8 = inlined_call_operand.vmem [shape: f32[2,1,128], index: 8, kind: input, shape index: {}]   ;;  %s5299_s9 = inlined_call_operand.vmem [shape: f32[2,1,128], index: 9, kind: input, shape index: {}]   ;;  %s5300_s10 = inlined_call_operand.vmem [shape: f32[2,1,128], index: 10, kind: input, shape index: {}]   ;;  %s5301_s11 = inlined_call_operand.vmem [shape: bf16[2,128,512], index: 11, kind: input, shape index: {}]   ;;  %s5302_s12 = inlined_call_operand.vmem [shape: f32[2,1,512], index: 12, kind: input, shape index: {}]   ;;  %s5303_s13 = inlined_call_operand.vmem [shape: bf16[2,512,128], index: 13, kind: input, shape index: {}]   ;;  %s5304_s14 = inlined_call_operand.vmem [shape: f32[2,1,128], index: 14, kind: input, shape index: {}]   ;;  %s5305_s15 = inlined_call_operand.vmem [shape: f32[1,128], index: 15, kind: input, shape index: {}]   ;;  %s5306_s16 = inlined_call_operand.vmem [shape: f32[1,128], index: 16, kind: input, shape index: {}]   ;;  %s5307_s17 = inlined_call_operand.vmem [shape: bf16[128,64], index: 17, kind: input, shape index: {}]   ;;  %s5308_s18 = inlined_call_operand.vmem [shape: f32[1,64], index: 18, kind: input, shape index: {}]   ;;  %s5309_s19 = inlined_call_operand.vmem [shape: bf16[64,128], index: 19, kind: input, shape index: {}]   ;;  %s5310_s20 = inlined_call_operand.vmem [shape: f32[1,128], index: 20, kind: input, shape index: {}]   ;;  %s5311_s21 = inlined_call_operand.hbm [shape: f32[2,128], index: 21, kind: output, shape index: {}]  }
   0x1   :  { %5316 = sst [smem:[#allocation8_spill]] %s5290_s0 }
   0x2   :  { %5317 = sst [smem:[#allocation9_spill]] %s5291_s1 }
   0x3   :  { %5318 = sst [smem:[#allocation10_spill]] %s5292_s2 }
   0x4   :  { %5319 = sst [smem:[#allocation11_spill]] %s5293_s3 }
   0x5   :  { %5320 = sst [smem:[#allocation12_spill]] %s5294_s4 }
   0x6   :  { %5321 = sst [smem:[#allocation13_spill]] %s5295_s5 }
   0x7   :  { %5322 = sst [smem:[#allocation14_spill]] %s5296_s6 }
   0x8   :  { %5323 = sst [smem:[#allocation15_spill]] %s5297_s7 }
   0x9   :  { %5324 = sst [smem:[#allocation16_spill]] %s5306_s16 }
   0xa   :  { %5325 = sst [smem:[#allocation17_spill]] %s5308_s18 }
   0xb   :  { %5326 = sst [smem:[#allocation18_spill]] %s5309_s19 }
   0xc   :  { %5327 = sst [smem:[#allocation19_spill]] %s5310_s20 }
   0xd   :  { %5328 = sst [smem:[#allocation20_spill]] %s5311_s21 }
   0xe   :  { %26 = vsyncpa [#allocation5], 0  ;;  %s4424_s2 = smov 0  }
   0xf LB: > { %5329 = sst [smem:[#allocation7_spill]] %s4304_s2  ;;  %s4430_s25 = sadd.s32 4294967295, %s4304_s2   ;;  %s4304_s2 = sphi %s4424_s2, %s32_s2  }
  0x10   : > { %p3435_p0 = scmp.ge.s32.totalorder %s4304_s2, 1  ;;  %p679_p1 = scmp.lt.s32.totalorder %s4304_s2, 3 }
  0x12   : > { %p680_p2 = pnand %p3435_p0, %p679_p1 }
  0x13   : > { %p775_p3 = scmp.lt.s32.totalorder (!%p680_p2), %s4430_s25, 1  ;;  %s5332_s7 = sld [smem:[#allocation15_spill]] (!%p680_p2) }
  0x14   : > { %683 = sbr.rel (%p680_p2) target bundleno = 3035 (0xbdb), region = 104  ;;  %s5333_s20 = sld [smem:[#allocation13_spill]] (!%p680_p2) }
  0x15   : > { %s5334_s6 = sld [smem:[#allocation14_spill]] (!%p680_p2)  ;;  %p3444_p4 = scmp.ne.s32.totalorder (!%p680_p2), %s4430_s25, 0 }
  0x19   : > { %s4436_s26 = scalar_select %p775_p3, %s4430_s25, 1 }
  0x1a   : > { %s5337_s2 = sld [smem:[#allocation10_spill]] (!%p3444_p4) }
  0x1b   : > { %s4044_s22 = smul.u32 192, %s4436_s26  ;;  %s3931_s23 = sshll.u32 %s4436_s26, 6 }
  0x1c   : > { %s4045_s1 = smul.u32 3, %s4436_s26  ;;  %s4452_s3 = scalar_lea.vmem %s5332_s7, %s3931_s23 }
  0x1d   : > { %s4457_s18 = scalar_lea.vmem %s5333_s20, %s4044_s22  ;;  %s3932_s21 = sshll.u32 %s4436_s26, 8 }
  0x1e   : > { %s4466_s30 = scalar_lea.vmem %s5334_s6, %s4045_s1  ;;  %s4480_s22 = scalar_lea.vmem %s5301_s11, %s3932_s21 }
  0x1f   : > { %s3441_s19 = sshll.u32 %s4436_s26, 2  ;;  %s4491_s16 = scalar_lea.vmem %s5303_s13, %s3932_s21 }
  0x20   : > { %s4486_s1 = scalar_lea.vmem %s5302_s12, %s3441_s19  ;;  %s820_s27 = scalar_lea.vmem %s5304_s14, %s4436_s26 }
  0x21   : > { %825 = sbr.rel (%p3444_p4) target bundleno = 51 (0x33), region = 108  ;;  %s5335_s7 = sld [smem:[#allocation8_spill]] (!%p3444_p4) }
  0x22   : > { %s5336_s19 = sld [smem:[#allocation9_spill]] (!%p3444_p4) }
  0x26   : > { %v840_v3 = vlaneseq  ;;  %v847_v12 = vld [vmem:[%s5337_s2] sm:$0x3]  ;;  %v4306_v15 = vmov 0   ;;  %vm871_vm5 = vcmask 130048   ;;  %v4307_v21 = vmov -1e+09  }
  0x27   : > { %v826_v0 = vld [vmem:[%s5335_s7] sm:$0xff]  ;;  %v827_v2 = vld [vmem:[%s5335_s7 + $0x8] sm:$0xff]  ;;  %v828_v6 = vld [vmem:[%s5335_s7 + $0x10] sm:$0xff]  ;;  %vm851_vm0 = vcmp.gt.f32.partialorder %v847_v12, 0.5  ;;  %v849_v14 = vrot.slane %v847_v12, 1 }
  0x28   : > { %v830_v1 = vld [vmem:[%s5336_s19] sm:$0xff]  ;;  %v831_v5 = vld [vmem:[%s5336_s19 + $0x8] sm:$0xff]  ;;  %v829_v7 = vld [vmem:[%s5335_s7 + $0x18] sm:$0xff]  ;;  %v841_v11 = vshrl.u32 %v840_v3, 7  ;;  %v844_v13 = vand.u32 127, %v840_v3  ;;  %v857_v16 = vsel %vm851_vm0, 1, %v4306_v15 }
  0x29   : > { %v832_v4 = vadd.f32 %v830_v1, %v826_v0  ;;  %v833_v8 = vadd.f32 %v831_v5, %v827_v2  ;;  %v834_v9 = vadd.f32 %v830_v1, %v828_v6  ;;  %v835_v10 = vadd.f32 %v831_v5, %v829_v7 }
  0x2a   : > { %v842_v17 = vadd.s32 8, %v841_v11  ;;  %vm845_vm1 = vcmp.le.s32.totalorder %v844_v13, %v841_v11  ;;  %v859_v18 = vperm.slane %v857_v16, 0  ;;  %vm852_vm2 = vcmp.gt.f32.partialorder %v849_v14, 0.5 }
  0x2b   : > { %836 = vst [vmem:[#allocation2 + $0x10] sm:$0xff] %v832_v4  ;;  %v858_v19 = vsel %vm852_vm2, 1, %v4306_v15 }
  0x2c   : > { %837 = vst [vmem:[#allocation2] sm:$0xff] %v833_v8  ;;  %vm846_vm3 = vcmp.le.s32.totalorder %v844_v13, %v842_v17  ;;  %vm861_vm4 = vcmp.eq.s32.totalorder %v859_v18, 1  ;;  %v860_v20 = vperm.slane %v858_v19, 0 }
  0x2d   : > { %838 = vst [vmem:[#allocation2 + $0x18] sm:$0xff] %v834_v9  ;;  %vm863_vm6 = vmand %vm845_vm1, %vm861_vm4 }
  0x2e   : > { %839 = vst [vmem:[#allocation2 + $0x8] sm:$0xff] %v835_v10  ;;  %v867_v22 = vsel %vm863_vm6, 0.0, %v4307_v21  ;;  %vm864_vm7 = vmand %vm846_vm3, %vm861_vm4  ;;  %vm862_vm8 = vcmp.eq.s32.totalorder %v860_v20, 1 }
  0x2f   : > { %872 = vst.msk [vmem:[#allocation3] sm:$0xff] %vm871_vm5, %v867_v22  ;;  %v868_v23 = vsel %vm864_vm7, 0.0, %v4307_v21  ;;  %vm865_vm9 = vmand %vm845_vm1, %vm862_vm8 }
  0x30   : > { %873 = vst.msk [vmem:[#allocation3 + $0x8] sm:$0xff] %vm871_vm5, %v868_v23  ;;  %v869_v24 = vsel %vm865_vm9, 0.0, %v4307_v21  ;;  %vm866_vm10 = vmand %vm846_vm3, %vm862_vm8 }
  0x31   : > { %874 = vst.msk [vmem:[#allocation3 + $0x10] sm:$0xff] %vm871_vm5, %v869_v24  ;;  %v870_v25 = vsel %vm866_vm10, 0.0, %v4307_v21 }
  0x32   : > { %875 = vst.msk [vmem:[#allocation3 + $0x18] sm:$0xff] %vm871_vm5, %v870_v25 }
  0x33 PF: > { %v876_v26 = vld [vmem:[#allocation2 + $0x10] sm:$0xff]  ;;  %v877_v28 = vld [vmem:[#allocation2] sm:$0xff]  ;;  %v4308_v30 = vmov 128.0   ;;  %v3531_v53 = vld [vmem:[%s4457_s18 + $0xa8] sm:$0xf]  ;;  %s5338_s28 = sld [smem:[#allocation11_spill]]  ;;  %s5342_s2 = scalar_lea.vmem %s5298_s8, %s4436_s26 }
  0x34   : > { %v878_v27 = vld [vmem:[#allocation2 + $0x18] sm:$0xff]  ;;  %886 = vadd.xlane.f32.xlu0 %v876_v26  ;;  %4134 = vrcp.f32 %v4308_v30  ;;  %v3956_v54 = vld [vmem:[%s4457_s18 + $0xb0] sm:$0xf0]  ;;  %v3955_v55 = vld [vmem:[%s4457_s18 + $0xac] sm:$0xf]  ;;  %s5340_s5 = sld [smem:[#allocation12_spill]]  ;;  %s5343_s29 = scalar_lea.vmem %s5299_s9, %s4436_s26 }
  0x35   : > { %890 = vadd.xlane.f32.xlu2 %v878_v27  ;;  %v879_v29 = vld [vmem:[#allocation2 + $0x8] sm:$0xff]  ;;  %v3532_v56 = vor.u32 %v3956_v54, %v3531_v53  ;;  %v3533_v57 = vld [vmem:[%s4457_s18 + $0xb4] sm:$0xf0]  ;;  %v3539_v58 = vld [vmem:[%s4457_s18 + $0xb0] sm:$0xf]  ;;  %s4309_s20 = smov 96   ;;  %s5344_s0 = scalar_lea.vmem %s5300_s10, %s4436_s26 }
  0x36   : > { %v3957_v59 = vld [vmem:[%s4457_s18 + $0xb8] sm:$0xf0]  ;;  %v3536_v60 = vor.u32 %v3955_v55, %v3533_v57  ;;  %v3519_v62 = vld [vmem:[%s4457_s18 + $0x90] sm:$0xf]  ;;  %v3952_v0 = vld [vmem:[%s4457_s18 + $0x94] sm:$0xf] }
  0x37   : > { %v3540_v61 = vor.u32 %v3957_v59, %v3539_v58  ;;  %1157 = vmatpush.bf16.msra.mxu0 %v3532_v56  ;;  %v3953_v63 = vld [vmem:[%s4457_s18 + $0x98] sm:$0xf0]  ;;  %v3521_v2 = vld [vmem:[%s4457_s18 + $0x9c] sm:$0xf0]  ;;  %v3527_v3 = vld [vmem:[%s4457_s18 + $0x98] sm:$0xf] }
  0x38   : > { %1176 = vmatpush.bf16.msra.mxu1 %v3536_v60  ;;  %v3520_v1 = vor.u32 %v3953_v63, %v3519_v62  ;;  %v3954_v4 = vld [vmem:[%s4457_s18 + $0xa0] sm:$0xf0]  ;;  %v3524_v5 = vor.u32 %v3952_v0, %v3521_v2  ;;  %v3507_v7 = vld [vmem:[%s4457_s18 + $0x78] sm:$0xf]  ;;  %v3949_v9 = vld [vmem:[%s4457_s18 + $0x7c] sm:$0xf] }
  0x39   : > { %1195 = vmatpush.bf16.msra.mxu2 %v3540_v61  ;;  %v3528_v6 = vor.u32 %v3954_v4, %v3527_v3  ;;  %v3950_v8 = vld [vmem:[%s4457_s18 + $0x80] sm:$0xf0]  ;;  %v3509_v11 = vld [vmem:[%s4457_s18 + $0x84] sm:$0xf0]  ;;  %v3515_v12 = vld [vmem:[%s4457_s18 + $0x80] sm:$0xf]  ;;  %s5339_s21 = scalar_lea.vmem %s5338_s28, %s4436_s26 }
  0x3a   : > { %v4135_v31 = vpop.eup %4134  ;;  %v3508_v10 = vor.u32 %v3950_v8, %v3507_v7  ;;  %v3951_v13 = vld [vmem:[%s4457_s18 + $0x88] sm:$0xf0]  ;;  %v3512_v14 = vor.u32 %v3949_v9, %v3509_v11  ;;  %v3495_v16 = vld [vmem:[%s4457_s18 + $0x60] sm:$0xf]  ;;  %v3946_v18 = vld [vmem:[%s4457_s18 + $0x64] sm:$0xf]  ;;  %s5341_s23 = scalar_lea.vmem %s5340_s5, %s4436_s26 }
  0x3b   : > { %v895_v32 = vmul.f32 128.0, %v4135_v31  ;;  %vm899_vm11 = vweird.f32 %v4135_v31  ;;  %1158 = vmatpush.bf16.msra.mxu0 %v3520_v1  ;;  %v3516_v15 = vor.u32 %v3951_v13, %v3515_v12  ;;  %v3947_v17 = vld [vmem:[%s4457_s18 + $0x68] sm:$0xf0]  ;;  %v3497_v20 = vld [vmem:[%s4457_s18 + $0x6c] sm:$0xf0]  ;;  %vm1218_vm8 = vcmask 261120  }
  0x3c   : > { %888 = vadd.xlane.f32.xlu0 %v877_v28  ;;  %1177 = vmatpush.bf16.msra.mxu1 %v3524_v5  ;;  %v3496_v19 = vor.u32 %v3947_v17, %v3495_v16  ;;  %v3503_v21 = vld [vmem:[%s4457_s18 + $0x68] sm:$0xf]  ;;  %v3948_v22 = vld [vmem:[%s4457_s18 + $0x70] sm:$0xf0]  ;;  %v3500_v23 = vor.u32 %v3946_v18, %v3497_v20  ;;  %v3491_v30 = vld [vmem:[%s4457_s18 + $0x50] sm:$0xf] }
  0x3d   : > { %892 = vadd.xlane.f32.xlu2 %v879_v29  ;;  %v896_v33 = vsub.f32 1.0, %v895_v32  ;;  %1196 = vmatpush.bf16.msra.mxu2 %v3528_v6  ;;  %v3504_v24 = vor.u32 %v3948_v22, %v3503_v21  ;;  %v3483_v25 = vld [vmem:[%s4457_s18 + $0x48] sm:$0xf]  ;;  %v3467_v53 = vld [vmem:[%s4457_s18 + $0x20] sm:$0xf]  ;;  %vm1289_vm9 = vcmask 130048  }
  0x3e   : > { %v3939_v54 = vld [vmem:[%s4457_s18 + $0x28] sm:$0xf0]  ;;  %v3447_v61 = vld [vmem:[%s4457_s18] sm:$0xf]  ;;  %v3934_v63 = vld [vmem:[%s4457_s18 + $0x4] sm:$0xf] }
  0x3f   : > { %v897_v34 = vmul.f32 %v4135_v31, %v896_v33  ;;  %1159 = vmatpush.bf16.msra.mxu0 %v3508_v10  ;;  %v3468_v56 = vor.u32 %v3939_v54, %v3467_v53  ;;  %v3935_v62 = vld [vmem:[%s4457_s18 + $0x8] sm:$0xf0]  ;;  %v3449_v1 = vld [vmem:[%s4457_s18 + $0xc] sm:$0xf0]  ;;  %v3455_v2 = vld [vmem:[%s4457_s18 + $0x8] sm:$0xf] }
  0x40   : > { %1178 = vmatpush.bf16.msra.mxu1 %v3512_v14  ;;  %v3448_v0 = vor.u32 %v3935_v62, %v3447_v61  ;;  %v3936_v3 = vld [vmem:[%s4457_s18 + $0x10] sm:$0xf0]  ;;  %v3452_v6 = vor.u32 %v3934_v63, %v3449_v1  ;;  %v1021_v61 = vld [vmem:[%s4466_s30] sm:$0x7]  ;;  %s4310_s30 = smov 64   ;;  %s4311_s6 = smov 32  }
  0x41   : > { %v898_v35 = vadd.f32 %v4135_v31, %v897_v34  ;;  %1197 = vmatpush.bf16.msra.mxu2 %v3516_v15  ;;  %v3471_v34 = vld [vmem:[%s4457_s18 + $0x30] sm:$0xf]  ;;  %v3456_v7 = vor.u32 %v3936_v3, %v3455_v2  ;;  %v1023_v62 = vperm.slane %v1021_v61, 0  ;;  %v1024_v63 = vperm.slane %v1021_v61, 1  ;;  %p3877_p5 = scmp.ne.s32.totalorder %s4430_s25, 1 }
  0x42   : > { %vm2024_vm10 = vcmask 523264  }
  0x43   : > { %v4523_v36 = vsel %vm899_vm11, %v4135_v31, %v898_v35  ;;  %1160 = vmatpush.bf16.msra.mxu0 %v3496_v19  ;;  %v3945_v31 = vld [vmem:[%s4457_s18 + $0x58] sm:$0xf0]  ;;  %vm2029_vm11 = vcmask 785408  }
  0x44   : > { %1179 = vmatpush.bf16.msra.mxu1 %v3500_v23  ;;  %v3492_v33 = vor.u32 %v3945_v31, %v3491_v30  ;;  %v3941_v35 = vld [vmem:[%s4457_s18 + $0x38] sm:$0xf0] }
  0x45   : > { %1198 = vmatpush.bf16.msra.mxu2 %v3504_v24 }
  0x49   : > { %1199 = vmatpush.bf16.msra.mxu2 %v3492_v33 }
  0xa7   : > { %v887_v37 = vpop.xlane.xlu0 %886 }
  0xa8   : > { %v891_v38 = vpop.xlane.xlu2 %890  ;;  %v901_v39 = vmul.f32 %v4523_v36, %v887_v37  ;;  %v3940_v37 = vld [vmem:[%s4457_s18 + $0x34] sm:$0xf] }
  0xa9   : > { %v903_v40 = vmul.f32 %v4523_v36, %v891_v38  ;;  %v3472_v38 = vor.u32 %v3941_v35, %v3471_v34 }
  0xaa   : > { %v4527_v41 = vsub.f32 %v876_v26, %v901_v39  ;;  %v3944_v26 = vld [vmem:[%s4457_s18 + $0x50] sm:$0xf0]  ;;  %v3473_v39 = vld [vmem:[%s4457_s18 + $0x3c] sm:$0xf0] }
  0xab   : > { %v4529_v42 = vsub.f32 %v878_v27, %v903_v40  ;;  %v3943_v27 = vld [vmem:[%s4457_s18 + $0x4c] sm:$0xf]  ;;  %v3479_v40 = vld [vmem:[%s4457_s18 + $0x38] sm:$0xf] }
  0xac   : > { %v909_v43 = vmul.f32 %v4527_v41, %v4527_v41 }
  0xad   : > { %v911_v44 = vmul.f32 %v4529_v42, %v4529_v42 }
  0xae   : > { %913 = vadd.xlane.f32.xlu1 %v909_v43  ;;  %v3942_v43 = vld [vmem:[%s4457_s18 + $0x40] sm:$0xf0] }
  0xaf   : > { %917 = vadd.xlane.f32.xlu0 %v911_v44  ;;  %v889_v45 = vpop.xlane.xlu0 %888  ;;  %v3476_v44 = vor.u32 %v3940_v37, %v3473_v39 }
  0xb0   : > { %v893_v46 = vpop.xlane.xlu2 %892  ;;  %v902_v47 = vmul.f32 %v4523_v36, %v889_v45  ;;  %v3480_v45 = vor.u32 %v3942_v43, %v3479_v40 }
  0xb1   : > { %v904_v49 = vmul.f32 %v4523_v36, %v893_v46  ;;  %v3459_v46 = vld [vmem:[%s4457_s18 + $0x18] sm:$0xf] }
  0xb2   : > { %v4536_v48 = vsub.f32 %v877_v28, %v902_v47  ;;  %v3484_v28 = vor.u32 %v3944_v26, %v3483_v25  ;;  %1200 = vmatpush.bf16.msra.mxu2 %v3480_v45  ;;  %v3938_v47 = vld [vmem:[%s4457_s18 + $0x20] sm:$0xf0] }
  0xb3   : > { %v4541_v51 = vsub.f32 %v879_v29, %v904_v49  ;;  %v3485_v29 = vld [vmem:[%s4457_s18 + $0x54] sm:$0xf0]  ;;  %v3937_v49 = vld [vmem:[%s4457_s18 + $0x1c] sm:$0xf] }
  0xb4   : > { %v910_v50 = vmul.f32 %v4536_v48, %v4536_v48  ;;  %v3488_v32 = vor.u32 %v3943_v27, %v3485_v29  ;;  %1161 = vmatpush.bf16.msra.mxu0 %v3484_v28 }
  0xb5   : > { %v912_v52 = vmul.f32 %v4541_v51, %v4541_v51 }
  0xb6   : > { %915 = vadd.xlane.f32.xlu1 %v910_v50  ;;  %1180 = vmatpush.bf16.msra.mxu1 %v3488_v32  ;;  %v3460_v50 = vor.u32 %v3938_v47, %v3459_v46  ;;  %v4128_v32 = vld [vmem:[%s5339_s21] ss:$0 sm:$0xff] }
  0xb7   : > { %1201 = vmatpush.bf16.msra.mxu2 %v3468_v56 }
  0xb8   : > { %1162 = vmatpush.bf16.msra.mxu0 %v3472_v38 }
  0xba   : > { %1181 = vmatpush.bf16.msra.mxu1 %v3476_v44 }
  0xbb   : > { %1202 = vmatpush.bf16.msra.mxu2 %v3456_v7  ;;  %v1025_v7 = vperm.slane %v1021_v61, 2 }
  0xbc   : > { %1163 = vmatpush.bf16.msra.mxu0 %v3460_v50 }
  0xbe   : > { %919 = vadd.xlane.f32.xlu1 %v912_v52  ;;  %v3461_v52 = vld [vmem:[%s4457_s18 + $0x24] sm:$0xf0] }
  0xbf   : > { %v3464_v55 = vor.u32 %v3937_v49, %v3461_v52 }
  0xc0   : > { %1164 = vmatpush.bf16.msra.mxu0 %v3448_v0 }
  0xc1   : > { %1182 = vmatpush.bf16.msra.mxu1 %v3464_v55 }
  0xc5   : > { %1183 = vmatpush.bf16.msra.mxu1 %v3452_v6 }
 0x121   : > { %v914_v57 = vpop.xlane.xlu1 %913 }
 0x122   : > { %v918_v58 = vpop.xlane.xlu0 %917  ;;  %v921_v59 = vmul.f32 %v914_v57, %v4523_v36 }
 0x123   : > { %v923_v60 = vmul.f32 %v918_v58, %v4523_v36 }
 0x124   : > { %v925_v4 = vadd.f32 1e-05, %v921_v59 }
 0x125   : > { %v927_v5 = vadd.f32 1e-05, %v923_v60 }
 0x126   : > { %4136 = vrsqrt.f32 %v925_v4  ;;  %vm935_vm13 = vweird.f32 %v925_v4 }
 0x127   : > { %4138 = vrsqrt.f32 %v927_v5  ;;  %vm955_vm2 = vweird.f32 %v927_v5 }
 0x129   : > { %v916_v8 = vpop.xlane.xlu1 %915 }
 0x12a   : > { %v922_v9 = vmul.f32 %v916_v8, %v4523_v36 }
 0x12c   : > { %v4137_v10 = vpop.eup %4136  ;;  %v926_v11 = vadd.f32 1e-05, %v922_v9 }
 0x12d   : > { %v930_v12 = vmul.f32 %v4137_v10, %v925_v4  ;;  %v4139_v13 = vpop.eup %4138  ;;  %vm936_vm12 = vweird.f32 %v4137_v10 }
 0x12e   : > { %4140 = vrsqrt.f32 %v926_v11  ;;  %v950_v17 = vmul.f32 %v4139_v13, %v927_v5  ;;  %vm937_vm14 = vmor %vm935_vm13, %vm936_vm12  ;;  %vm945_vm0 = vweird.f32 %v926_v11  ;;  %vm956_vm3 = vweird.f32 %v4139_v13 }
 0x12f   : > { %v931_v14 = vmul.f32 %v4137_v10, %v930_v12  ;;  %vm957_vm6 = vmor %vm955_vm2, %vm956_vm3 }
 0x130   : > { %v951_v24 = vmul.f32 %v4139_v13, %v950_v17 }
 0x131   : > { %v932_v15 = vmul.f32 0.5, %v931_v14  ;;  %v920_v16 = vpop.xlane.xlu1 %919 }
 0x132   : > { %v924_v18 = vmul.f32 %v920_v16, %v4523_v36  ;;  %v952_v28 = vmul.f32 0.5, %v951_v24 }
 0x133   : > { %v933_v19 = vsub.f32 1.5, %v932_v15 }
 0x134   : > { %v4141_v20 = vpop.eup %4140  ;;  %v928_v21 = vadd.f32 1e-05, %v924_v18  ;;  %v953_v35 = vsub.f32 1.5, %v952_v28 }
 0x135   : > { %v934_v22 = vmul.f32 %v4137_v10, %v933_v19  ;;  %v940_v23 = vmul.f32 %v4141_v20, %v926_v11  ;;  %vm946_vm15 = vweird.f32 %v4141_v20 }
 0x136   : > { %4142 = vrsqrt.f32 %v928_v21  ;;  %vm947_vm1 = vmor %vm945_vm0, %vm946_vm15  ;;  %vm965_vm4 = vweird.f32 %v928_v21  ;;  %v954_v44 = vmul.f32 %v4139_v13, %v953_v35  ;;  %v4672_v35 = vld [vmem:[#allocation3] sm:$0xff] }
 0x137   : > { %v941_v25 = vmul.f32 %v4141_v20, %v940_v23  ;;  %v938_v26 = vsel %vm937_vm14, %v4137_v10, %v934_v22 }
 0x138   : > { %v969_v31 = vmul.f32 %v938_v26, %v4527_v41  ;;  %v4129_v41 = vld [vmem:[%s5341_s23] ss:$0 sm:$0xff]  ;;  %v958_v52 = vsel %vm957_vm6, %v4139_v13, %v954_v44  ;;  %s5346_s23 = sld [smem:[#allocation18_spill]] (!%p3877_p5) }
 0x139   : > { %v942_v27 = vmul.f32 0.5, %v941_v25  ;;  %v971_v55 = vmul.f32 %v958_v52, %v4529_v42 }
 0x13a   : > { %v976_v40 = vmul.f32 %v4128_v32, %v969_v31 }
 0x13b   : > { %v943_v29 = vsub.f32 1.5, %v942_v27  ;;  %v978_v56 = vmul.f32 %v4128_v32, %v971_v55 }
 0x13c   : > { %v4143_v30 = vpop.eup %4142  ;;  %v983_v47 = vadd.f32 %v4129_v41, %v976_v40  ;;  %v4676_v40 = vld [vmem:[#allocation3 + $0x8] sm:$0xff] }
 0x13d   : > { %v944_v33 = vmul.f32 %v4141_v20, %v943_v29  ;;  %v960_v34 = vmul.f32 %v4143_v30, %v928_v21  ;;  %vm966_vm5 = vweird.f32 %v4143_v30  ;;  %v985_v58 = vadd.f32 %v4129_v41, %v978_v56 }
 0x13e   : > { %vm967_vm7 = vmor %vm965_vm4, %vm966_vm5 }
 0x13f   : > { %v948_v37 = vsel %vm947_vm1, %v4141_v20, %v944_v33  ;;  %v961_v38 = vmul.f32 %v4143_v30, %v960_v34 }
 0x140   : > { %v970_v39 = vmul.f32 %v948_v37, %v4536_v48 }
 0x141   : > { %v962_v43 = vmul.f32 0.5, %v961_v38 }
 0x142   : > { %v977_v45 = vmul.f32 %v4128_v32, %v970_v39 }
 0x143   : > { %v963_v46 = vsub.f32 1.5, %v962_v43 }
 0x144   : > { %v984_v49 = vadd.f32 %v4129_v41, %v977_v45 }
 0x145   : > { %v964_v50 = vmul.f32 %v4143_v30, %v963_v46 }
 0x146   : > { %v987_v48 = vpack.c.bf16 %v984_v49, %v983_v47 }
 0x147   : > { %v968_v53 = vsel %vm967_vm7, %v4143_v30, %v964_v50 }
 0x148   : > { %v972_v54 = vmul.f32 %v968_v53, %v4541_v51  ;;  %1165 = vmatmul.bf16.vlgmr.msra.gmra.mxu0 %v987_v48  ;;  %1184 = vmatmul.bf16.vlgmr.msra.gmra.mxu1 %v987_v48 }
 0x149   : > { %1203 = vmatmul.bf16.vlgmr.msra.gmra.mxu2 %v987_v48 }
 0x14a   : > { %v979_v57 = vmul.f32 %v4128_v32, %v972_v54 }
 0x14c   : > { %v986_v59 = vadd.f32 %v4129_v41, %v979_v57 }
 0x14e   : > { %v988_v60 = vpack.c.bf16 %v986_v59, %v985_v58 }
 0x158   : > { %1189 = vmatmul.bf16.gmra.mxu1 %v988_v60  ;;  %1170 = vmatmul.bf16.gmra.mxu0 %v988_v60 }
 0x159   : > { %1208 = vmatmul.bf16.gmra.mxu2 %v988_v60 }
 0x1c5   : > { %v1166_v0 = vpop.f32.mrf.mxu0  ;;  %v1185_v1 = vpop.f32.mrf.mxu1 }
 0x1c6   : > { %v1167_v2 = vadd.f32 %v1166_v0, %v1023_v62  ;;  %v4612_v51 = vadd.f32 %v1185_v1, %v1024_v63 }
 0x1c8   : > { %v4614_v42 = vmul.f32 0.17677669, %v1167_v2  ;;  %1396 = vrot.lane.b32.xlu0 %v4612_v51, %s4309_s20 }
 0x1ca   : > { %1392 = vrot.lane.b32.xlu1 %v4614_v42, %s4309_s20 }
 0x1cc   : > { %v1204_v3 = vpop.f32.mrf.mxu2 }
 0x1cd   : > { %v1187_v4 = vpop.f32.mrf.mxu1  ;;  %v1168_v6 = vpop.f32.mrf.mxu0  ;;  %v1205_v10 = vadd.f32 %v1204_v3, %v1025_v7 }
 0x1ce   : > { %v4620_v5 = vadd.f32 %v1187_v4, %v1024_v63  ;;  %v1169_v8 = vadd.f32 %v1168_v6, %v1023_v62 }
 0x1d0   : > { %1398 = vrot.lane.b32.xlu2 %v4620_v5, %s4309_s20  ;;  %3541 = vmatpush.xpose.msk.msra.mxu3 %vm1218_vm8, %v4620_v5  ;;  %v4628_v13 = vmul.f32 0.17677669, %v1169_v8 }
 0x1d4   : > { %v1206_v9 = vpop.f32.mrf.mxu2  ;;  %3542 = vmatpush.xpose.msk.msra.mxu3 %vm1218_vm8, %v4612_v51 }
 0x1d5   : > { %v1207_v11 = vadd.f32 %v1206_v9, %v1025_v7  ;;  %v1190_v12 = vpop.f32.mrf.mxu1  ;;  %v1171_v15 = vpop.f32.mrf.mxu0  ;;  %v4725_v9 = vld [vmem:[#allocation3 + $0x10] sm:$0xff] }
 0x1d6   : > { %v4640_v19 = vadd.f32 %v1190_v12, %v1024_v63  ;;  %v1172_v20 = vadd.f32 %v1171_v15, %v1023_v62 }
 0x1d7   : > { %3543 = vmatmul.msk.f32.vlgmr.msra.gmra.mxu3 %vm1218_vm8, %v4614_v42  ;;  %v4632_v14 = vpack.i.bf16 %v1205_v10, %v1207_v11 }
 0x1d8   : > { %1394 = vrot.lane.b32.xlu2 %v4628_v13, %s4309_s20  ;;  %v1216_v22 = vmul.f32 0.17677669, %v1172_v20 }
 0x1dc   : > { %v1209_v16 = vpop.f32.mrf.mxu2 }
 0x1dd   : > { %v1192_v17 = vpop.f32.mrf.mxu1  ;;  %v1173_v24 = vpop.f32.mrf.mxu0  ;;  %v1210_v25 = vadd.f32 %v1209_v16, %v1025_v7 }
 0x1de   : > { %v4636_v18 = vadd.f32 %v1192_v17, %v1024_v63  ;;  %v1174_v26 = vadd.f32 %v1173_v24, %v1023_v62 }
 0x1df   : > { %3544 = vmatmul.msk.f32.gmra.mxu3 %vm1218_vm8, %v4628_v13 }
 0x1e0   : > { %1594 = vrot.lane.b32.xlu2 %v4620_v5, %s4310_s30  ;;  %3545 = vmatpush.xpose.msk.msrb.mxu3 %vm1218_vm8, %v4636_v18  ;;  %v4654_v27 = vmul.f32 0.17677669, %v1174_v26 }
 0x1e1   : > { %1437 = vrot.lane.b32.xlu1 %v4636_v18, %s4309_s20 }
 0x1e4   : > { %3546 = vmatpush.xpose.msk.msrb.mxu3 %vm1218_vm8, %v4640_v19  ;;  %v1211_v21 = vpop.f32.mrf.mxu2 }
 0x1e5   : > { %v1212_v23 = vadd.f32 %v1211_v21, %v1025_v7 }
 0x1e7   : > { %3547 = vmatmul.msk.f32.vlgmr.msrb.gmra.mxu3 %vm1218_vm8, %v1216_v22  ;;  %v4662_v28 = vpack.i.bf16 %v1210_v25, %v1212_v23 }
 0x1e8   : > { %1354 = vmatpush.msra.mxu3 %v1207_v11  ;;  %1588 = vrot.lane.b32.xlu2 %v4614_v42, %s4310_s30 }
 0x1e9   : > { %1431 = vrot.lane.b32.xlu1 %v1216_v22, %s4309_s20 }
 0x1ea   : > { %1355 = vmatpush.msra.mxu3 %v1205_v10 }
 0x1ec   : > { %1383 = vmatpush.msrb.mxu3 %v1212_v23 }
 0x1ee   : > { %1384 = vmatpush.msrb.mxu3 %v1210_v25 }
 0x1ef   : > { %3548 = vmatmul.msk.f32.gmra.mxu3 %vm1218_vm8, %v4654_v27 }
 0x1f0   : > { %1633 = vrot.lane.b32.xlu2 %v4636_v18, %s4310_s30 }
 0x1f1   : > { %1433 = vrot.lane.b32.xlu1 %v4654_v27, %s4309_s20 }
 0x1f9   : > { %1631 = vrot.lane.b32.xlu1 %v4640_v19, %s4310_s30 }
 0x22a   : > { %v1399_v29 = vpop.permute.xlu2 %1398 }
 0x22b   : > { %3553 = vmatpush.xpose.msk.msrb.mxu1 %vm1218_vm8, %v1399_v29 }
 0x232   : > { %v1395_v30 = vpop.permute.xlu2 %1394 }
 0x23a   : > { %v1595_v31 = vpop.permute.xlu2 %1594  ;;  %v1397_v32 = vpop.permute.xlu0 %1396 }
 0x23b   : > { %3554 = vmatpush.xpose.msk.msrb.mxu1 %vm1218_vm8, %v1397_v32  ;;  %3565 = vmatpush.xpose.msk.msrb.mxu0 %vm1218_vm8, %v1595_v31 }
 0x23c   : > { %v1393_v33 = vpop.permute.xlu1 %1392 }
 0x23e   : > { %3555 = vmatmul.msk.f32.vlgmr.msrb.gmra.mxu1 %vm1218_vm8, %v1393_v33 }
 0x242   : > { %v1589_v46 = vpop.permute.xlu2 %1588 }
 0x246   : > { %3556 = vmatmul.msk.f32.gmra.mxu1 %vm1218_vm8, %v1395_v30 }
 0x24a   : > { %v1634_v50 = vpop.permute.xlu2 %1633 }
 0x253   : > { %v1438_v34 = vpop.permute.xlu1 %1437 }
 0x254   : > { %3557 = vmatpush.xpose.msk.msra.mxu1 %vm1218_vm8, %v1438_v34 }
 0x25a   : > { %v1248_v45 = vpop.f32.mrf.mxu3 }
 0x25b   : > { %v1432_v59 = vpop.permute.xlu1 %1431  ;;  %v1249_v10 = vadd.f32 %v1248_v45, %v4672_v35 }
 0x25d   : > { %v1290_v12 = vsel %vm1289_vm9, %v1249_v10, -inf }
 0x262   : > { %v1251_v47 = vpop.f32.mrf.mxu3 }
 0x263   : > { %v4697_v49 = vadd.f32 %v1251_v47, %v4676_v40  ;;  %v1434_v1 = vpop.permute.xlu1 %1433 }
 0x265   : > { %v1293_v53 = vsel %vm1289_vm9, %v4697_v49, -inf }
 0x26a   : > { %v1283_v8 = vpop.f32.mrf.mxu3 }
 0x26b   : > { %v1632_v3 = vpop.permute.xlu1 %1631  ;;  %v4729_v11 = vadd.f32 %v1283_v8, %v4725_v9 }
 0x26d   : > { %v1296_v16 = vsel %vm1289_vm9, %v4729_v11, -inf }
 0x272   : > { %v1286_v15 = vpop.f32.mrf.mxu3 }
 0x2bb   : > { %v1425_v37 = vpop.f32.mrf.mxu1 }
 0x2bc   : > { %v1426_v38 = vadd.f32 %v1425_v37, %v4672_v35 }
 0x2be   : > { %v1470_v39 = vsel %vm1289_vm9, %v1426_v38, -inf }
 0x2bf   : > { %1471 = vmax.xlane.f32.xlu0 %v1470_v39 }
 0x2c3   : > { %v1428_v41 = vpop.f32.mrf.mxu1 }
 0x2c4   : > { %v1429_v43 = vadd.f32 %v1428_v41, %v4676_v40 }
 0x2c6   : > { %v1473_v44 = vsel %vm1289_vm9, %v1429_v43, -inf }
 0x2c7   : > { %1474 = vmax.xlane.f32.xlu2 %v1473_v44 }
 0x2d3   : > { %4069 = vrot.lane.b32.xlu0 %v4632_v14, %s4309_s20 }
 0x2db   : > { %1435 = vrot.lane.b32.xlu0 %v4640_v19, %s4309_s20 }
 0x2df   : > { %1784 = vrot.lane.b32.xlu2 %v4612_v51, %s4311_s6 }
 0x2e3   : > { %1592 = vrot.lane.b32.xlu0 %v4612_v51, %s4310_s30 }
 0x2eb   : > { %1590 = vrot.lane.b32.xlu0 %v4628_v13, %s4310_s30 }
 0x2f3   : > { %1786 = vrot.lane.b32.xlu0 %v4620_v5, %s4311_s6 }
 0x2fb   : > { %1627 = vrot.lane.b32.xlu0 %v1216_v22, %s4310_s30 }
 0x303   : > { %1782 = vrot.lane.b32.xlu0 %v4628_v13, %s4311_s6  ;;  %v4732_v13 = vld [vmem:[#allocation3 + $0x18] sm:$0xff] }
 0x304   : > { %v4737_v17 = vadd.f32 %v1286_v15, %v4732_v13 }
 0x30b   : > { %1819 = vrot.lane.b32.xlu0 %v1216_v22, %s4311_s6 }
 0x332   : > { %v1472_v52 = vpop.xlane.xlu0 %1471 }
 0x333   : > { %v1482_v48 = vsub.f32 %v1426_v38, %v1472_v52 }
 0x335   : > { %v1486_v54 = vmul.f32 1.442695, %v1482_v48  ;;  %1294 = vmax.xlane.f32.xlu0 %v1293_v53 }
 0x337   : > { %4144 = vpow2.f32 %v1486_v54 }
 0x33a   : > { %v1475_v55 = vpop.xlane.xlu2 %1474 }
 0x33b   : > { %v1483_v56 = vsub.f32 %v1429_v43, %v1475_v55 }
 0x33d   : > { %v4145_v57 = vpop.eup %4144  ;;  %v1488_v58 = vmul.f32 1.442695, %v1483_v56 }
 0x33e   : > { %v1494_v60 = vsel %vm1289_vm9, %v4145_v57, 0.0 }
 0x33f   : > { %4146 = vpow2.f32 %v1488_v58  ;;  %1495 = vadd.xlane.f32.xlu1 %v1494_v60 }
 0x345   : > { %v4147_v61 = vpop.eup %4146  ;;  %v4070_v62 = vpop.permute.xlu0 %4069 }
 0x346   : > { %v1497_v63 = vsel %vm1289_vm9, %v4147_v61, 0.0  ;;  %v4071_v0 = vunpack.i.l.bf16 %v4070_v62  ;;  %v4072_v2 = vunpack.i.h.bf16 %v4070_v62 }
 0x347   : > { %1498 = vadd.xlane.f32.xlu2 %v1497_v63 }
 0x348   : > { %1542 = vmatpush.msrb.mxu2 %v4071_v0 }
 0x34a   : > { %1543 = vmatpush.msrb.mxu2 %v4072_v2 }
 0x34c   : > { %4042 = vmatpush.xpose.msk.msra.mxu2 %vm1218_vm8, %v1595_v31 }
 0x34d   : > { %v1436_v51 = vpop.permute.xlu0 %1435 }
 0x34e   : > { %3558 = vmatpush.xpose.msk.msra.mxu1 %vm1218_vm8, %v1436_v51 }
 0x351   : > { %3559 = vmatmul.msk.f32.vlgmr.msra.gmra.mxu1 %vm1218_vm8, %v1432_v59 }
 0x352   : > { %3569 = vmatpush.xpose.msk.msrb.mxu1 %vm1218_vm8, %v1634_v50 }
 0x355   : > { %v1593_v4 = vpop.permute.xlu0 %1592 }
 0x356   : > { %3570 = vmatpush.xpose.msk.msrb.mxu1 %vm1218_vm8, %v1632_v3  ;;  %3566 = vmatpush.xpose.msk.msrb.mxu0 %vm1218_vm8, %v1593_v4 }
 0x357   : > { %4043 = vmatpush.xpose.msk.msra.mxu2 %vm1218_vm8, %v1593_v4 }
 0x358   : > { %1780 = vrot.lane.b32.xlu1 %v4614_v42, %s4311_s6  ;;  %v1785_v42 = vpop.permute.xlu2 %1784 }
 0x359   : > { %3560 = vmatmul.msk.f32.gmra.mxu1 %vm1218_vm8, %v1434_v1  ;;  %3567 = vmatmul.msk.f32.vlgmr.msrb.gmra.mxu0 %vm1218_vm8, %v1589_v46 }
 0x35d   : > { %v1591_v5 = vpop.permute.xlu0 %1590 }
 0x35f   : > { %1629 = vrot.lane.b32.xlu2 %v4654_v27, %s4310_s30 }
 0x360   : > { %1825 = vrot.lane.b32.xlu1 %v4636_v18, %s4311_s6  ;;  %v1299_v18 = vsel %vm1289_vm9, %v4737_v17, -inf }
 0x365   : > { %v1787_v6 = vpop.permute.xlu0 %1786 }
 0x366   : > { %3577 = vmatpush.xpose.msk.msra.mxu0 %vm1218_vm8, %v1787_v6 }
 0x367   : > { %1823 = vrot.lane.b32.xlu2 %v4640_v19, %s4311_s6 }
 0x368   : > { %1821 = vrot.lane.b32.xlu1 %v4654_v27, %s4311_s6 }
 0x36a   : > { %3578 = vmatpush.xpose.msk.msra.mxu0 %vm1218_vm8, %v1785_v42 }
 0x36d   : > { %v1628_v7 = vpop.permute.xlu0 %1627 }
 0x36e   : > { %3571 = vmatmul.msk.f32.vlgmr.msrb.gmra.mxu1 %vm1218_vm8, %v1628_v7 }
 0x375   : > { %v1783_v30 = vpop.permute.xlu0 %1782 }
 0x37d   : > { %v1820_v44 = vpop.permute.xlu0 %1819 }
 0x390   : > { %1291 = vmax.xlane.f32.xlu2 %v1290_v12 }
 0x392   : > { %1297 = vmax.xlane.f32.xlu1 %v1296_v16 }
 0x398   : > { %1300 = vmax.xlane.f32.xlu2 %v1299_v18 }
 0x3a8   : > { %v1295_v52 = vpop.xlane.xlu0 %1294 }
 0x3a9   : > { %v1303_v54 = vsub.f32 %v4697_v49, %v1295_v52 }
 0x3ab   : > { %v1308_v56 = vmul.f32 1.442695, %v1303_v54 }
 0x3b2   : > { %v1496_v19 = vpop.xlane.xlu1 %1495 }
 0x3b3   : > { %4148 = vrcp.f32 %v1496_v19 }
 0x3b9   : > { %v4149_v20 = vpop.eup %4148 }
 0x3ba   : > { %v1499_v21 = vpop.xlane.xlu2 %1498  ;;  %v1510_v22 = vmul.f32 %v4149_v20, %v4145_v57 }
 0x3bb   : > { %4150 = vrcp.f32 %v1499_v21 }
 0x3bc   : > { %3561 = vmatmul.msk.f32.vlgmr.msrb.gmra.mxu2 %vm1289_vm9, %v1510_v22 }
 0x3c1   : > { %v4151_v23 = vpop.eup %4150 }
 0x3c2   : > { %v1630_v24 = vpop.permute.xlu2 %1629  ;;  %v1511_v25 = vmul.f32 %v4151_v23, %v4147_v61 }
 0x3c3   : > { %3572 = vmatmul.msk.f32.gmra.mxu1 %vm1218_vm8, %v1630_v24 }
 0x3c4   : > { %3562 = vmatmul.msk.f32.gmra.mxu2 %vm1289_vm9, %v1511_v25 }
 0x3ca   : > { %v1781_v26 = vpop.permute.xlu1 %1780  ;;  %v1824_v33 = vpop.permute.xlu2 %1823 }
 0x3cb   : > { %3579 = vmatmul.msk.f32.vlgmr.msra.gmra.mxu0 %vm1218_vm8, %v1781_v26 }
 0x3cc   : > { %3568 = vmatmul.msk.f32.vlgmr.msra.gmra.mxu2 %vm1218_vm8, %v1591_v5 }
 0x3ce   : > { %v1464_v27 = vpop.f32.mrf.mxu1 }
 0x3cf   : > { %v4747_v29 = vadd.f32 %v1464_v27, %v4725_v9 }
 0x3d1   : > { %v1476_v31 = vsel %vm1289_vm9, %v4747_v29, -inf }
 0x3d2   : > { %v1826_v32 = vpop.permute.xlu1 %1825  ;;  %1477 = vmax.xlane.f32.xlu0 %v1476_v31 }
 0x3d3   : > { %3580 = vmatmul.msk.f32.gmra.mxu0 %vm1218_vm8, %v1783_v30  ;;  %3581 = vmatpush.xpose.msk.msra.mxu1 %vm1218_vm8, %v1826_v32 }
 0x3d6   : > { %v1467_v34 = vpop.f32.mrf.mxu1  ;;  %v1621_v37 = vpop.f32.mrf.mxu0 }
 0x3d7   : > { %v4754_v38 = vadd.f32 %v1467_v34, %v4732_v13  ;;  %v1622_v39 = vadd.f32 %v1621_v37, %v4672_v35  ;;  %3582 = vmatpush.xpose.msk.msra.mxu1 %vm1218_vm8, %v1824_v33 }
 0x3d9   : > { %v1479_v41 = vsel %vm1289_vm9, %v4754_v38, -inf  ;;  %v1666_v43 = vsel %vm1289_vm9, %v1622_v39, -inf }
 0x3da   : > { %1480 = vmax.xlane.f32.xlu2 %v1479_v41  ;;  %1667 = vmax.xlane.f32.xlu1 %v1666_v43  ;;  %v1822_v45 = vpop.permute.xlu1 %1821 }
 0x3db   : > { %3583 = vmatmul.msk.f32.vlgmr.msra.gmra.mxu1 %vm1218_vm8, %v1820_v44 }
 0x3e3   : > { %3584 = vmatmul.msk.f32.gmra.mxu1 %vm1218_vm8, %v1822_v45 }
 0x3eb   : > { %v1660_v46 = vpop.f32.mrf.mxu1 }
 0x3ec   : > { %v4764_v47 = vadd.f32 %v1660_v46, %v4725_v9 }
 0x3ee   : > { %v1672_v50 = vsel %vm1289_vm9, %v4764_v47, -inf }
 0x3ef   : > { %1673 = vmax.xlane.f32.xlu1 %v1672_v50 }
 0x403   : > { %v1292_v48 = vpop.xlane.xlu2 %1291 }
 0x404   : > { %v1302_v53 = vsub.f32 %v1249_v10, %v1292_v48 }
 0x405   : > { %v1298_v0 = vpop.xlane.xlu1 %1297 }
 0x406   : > { %v1306_v55 = vmul.f32 1.442695, %v1302_v53  ;;  %v1304_v4 = vsub.f32 %v4729_v11, %v1298_v0 }
 0x408   : > { %4152 = vpow2.f32 %v1306_v55  ;;  %v1310_v6 = vmul.f32 1.442695, %v1304_v4 }
 0x409   : > { %4154 = vpow2.f32 %v1308_v56 }
 0x40a   : > { %4156 = vpow2.f32 %v1310_v6 }
 0x40b   : > { %v1301_v42 = vpop.xlane.xlu2 %1300 }
 0x40c   : > { %v1305_v10 = vsub.f32 %v4737_v17, %v1301_v42 }
 0x40e   : > { %v4769_v57 = vpop.eup %4152 }
 0x40f   : > { %v1314_v58 = vsel %vm1289_vm9, %v4769_v57, 0.0  ;;  %v4773_v59 = vpop.eup %4154 }
 0x410   : > { %1315 = vadd.xlane.f32.xlu0 %v1314_v58  ;;  %v1317_v60 = vsel %vm1289_vm9, %v4773_v59, 0.0  ;;  %v4800_v11 = vpop.eup %4156 }
 0x411   : > { %v1320_v17 = vsel %vm1289_vm9, %v4800_v11, 0.0 }
 0x418   : > { %1318 = vadd.xlane.f32.xlu0 %v1317_v60 }
 0x43f   : > { %v4777_v61 = vpop.f32.mrf.mxu2 }
 0x440   : > { %v1663_v62 = vpop.f32.mrf.mxu1 }
 0x441   : > { %v4780_v49 = vadd.f32 %v1663_v62, %v4732_v13 }
 0x443   : > { %v1675_v63 = vsel %vm1289_vm9, %v4780_v49, -inf }
 0x444   : > { %1676 = vmax.xlane.f32.xlu1 %v1675_v63 }
 0x445   : > { %v1478_v41 = vpop.xlane.xlu0 %1477 }
 0x446   : > { %v1484_v52 = vsub.f32 %v4747_v29, %v1478_v41 }
 0x447   : > { %v4784_v1 = vpop.f32.mrf.mxu2 }
 0x448   : > { %v4098_v2 = vpack.i.bf16 %v4784_v1, %v4777_v61  ;;  %v1813_v51 = vpop.f32.mrf.mxu0  ;;  %v1490_v54 = vmul.f32 1.442695, %v1484_v52 }
 0x449   : > { %v4789_v3 = vadd.f32 %v1813_v51, %v4672_v35  ;;  %v1312_v35 = vmul.f32 1.442695, %v1305_v10 }
 0x44b   : > { %v1858_v5 = vsel %vm1289_vm9, %v4789_v3, -inf  ;;  %4158 = vpow2.f32 %v1312_v35 }
 0x44c   : > { %1859 = vmax.xlane.f32.xlu2 %v1858_v5 }
 0x44d   : > { %v1668_v15 = vpop.xlane.xlu1 %1667  ;;  %v1481_v22 = vpop.xlane.xlu2 %1480 }
 0x44e   : > { %v1678_v19 = vsub.f32 %v1622_v39, %v1668_v15 }
 0x44f   : > { %v1624_v44 = vpop.f32.mrf.mxu2 }
 0x450   : > { %v1816_v7 = vpop.f32.mrf.mxu0  ;;  %v1682_v21 = vmul.f32 1.442695, %v1678_v19  ;;  %v4837_v45 = vadd.f32 %v1624_v44, %v4676_v40 }
 0x451   : > { %v4795_v8 = vadd.f32 %v1816_v7, %v4676_v40  ;;  %v4809_v23 = vpop.eup %4158 }
 0x452   : > { %4160 = vpow2.f32 %v1682_v21  ;;  %v1323_v26 = vsel %vm1289_vm9, %v4809_v23, 0.0 }
 0x453   : > { %v1861_v12 = vsel %vm1289_vm9, %v4795_v8, -inf }
 0x454   : > { %1862 = vmax.xlane.f32.xlu2 %v1861_v12 }
 0x458   : > { %v1852_v16 = vpop.f32.mrf.mxu1  ;;  %v4819_v32 = vpop.eup %4160 }
 0x459   : > { %v4803_v18 = vadd.f32 %v1852_v16, %v4725_v9  ;;  %v1485_v9 = vsub.f32 %v4754_v38, %v1481_v22 }
 0x45b   : > { %v1864_v20 = vsel %vm1289_vm9, %v4803_v18, -inf  ;;  %v1492_v30 = vmul.f32 1.442695, %v1485_v9 }
 0x45c   : > { %1865 = vmax.xlane.f32.xlu1 %v1864_v20  ;;  %1321 = vadd.xlane.f32.xlu2 %v1320_v17 }
 0x45d   : > { %4162 = vpow2.f32 %v1492_v30 }
 0x460   : > { %v1855_v24 = vpop.f32.mrf.mxu1 }
 0x461   : > { %v4812_v25 = vadd.f32 %v1855_v24, %v4732_v13  ;;  %v1690_v13 = vsel %vm1289_vm9, %v4819_v32, 0.0 }
 0x462   : > { %v1674_v31 = vpop.xlane.xlu1 %1673 }
 0x463   : > { %v1867_v27 = vsel %vm1289_vm9, %v4812_v25, -inf  ;;  %v1680_v33 = vsub.f32 %v4764_v47, %v1674_v31  ;;  %v4824_v37 = vpop.eup %4162  ;;  %v1669_v47 = vsel %vm1289_vm9, %v4837_v45, -inf }
 0x464   : > { %1324 = vadd.xlane.f32.xlu1 %v1323_v26  ;;  %1868 = vmax.xlane.f32.xlu0 %v1867_v27  ;;  %v1503_v38 = vsel %vm1289_vm9, %v4824_v37, 0.0 }
 0x465   : > { %v1686_v34 = vmul.f32 1.442695, %v1680_v33 }
 0x467   : > { %4164 = vpow2.f32 %v1686_v34 }
 0x46c   : > { %1691 = vadd.xlane.f32.xlu0 %v1690_v13 }
 0x46d   : > { %v4830_v39 = vpop.eup %4164 }
 0x46e   : > { %v1696_v43 = vsel %vm1289_vm9, %v4830_v39, 0.0 }
 0x474   : > { %1504 = vadd.xlane.f32.xlu0 %v1503_v38  ;;  %4079 = vrot.lane.b32.xlu2 %v4632_v14, %s4310_s30 }
 0x47c   : > { %1697 = vadd.xlane.f32.xlu0 %v1696_v43 }
 0x47d   : > { %4074 = vrot.lane.b32.xlu1 %v4662_v28, %s4309_s20 }
 0x483   : > { %v1316_v46 = vpop.xlane.xlu0 %1315 }
 0x484   : > { %4166 = vrcp.f32 %v1316_v46  ;;  %1670 = vmax.xlane.f32.xlu0 %v1669_v47 }
 0x48a   : > { %v4167_v50 = vpop.eup %4166 }
 0x48b   : > { %v1330_v48 = vmul.f32 %v4167_v50, %v4769_v57  ;;  %v1319_v53 = vpop.xlane.xlu0 %1318 }
 0x48c   : > { %4168 = vrcp.f32 %v1319_v53 }
 0x48d   : > { %3549 = vmatmul.msk.f32.vlgmr.msra.gmra.mxu3 %vm1289_vm9, %v1330_v48  ;;  %4170 = vpow2.f32 %v1490_v54 }
 0x492   : > { %v4169_v55 = vpop.eup %4168 }
 0x493   : > { %v1331_v40 = vmul.f32 %v4169_v55, %v4773_v59  ;;  %v4846_v56 = vpop.eup %4170 }
 0x494   : > { %v1500_v58 = vsel %vm1289_vm9, %v4846_v56, 0.0 }
 0x495   : > { %3550 = vmatmul.msk.f32.gmra.mxu3 %vm1289_vm9, %v1331_v40 }
 0x49d   : > { %1501 = vadd.xlane.f32.xlu2 %v1500_v58 }
 0x4b5   : > { %4084 = vrot.lane.b32.xlu2 %v4662_v28, %s4310_s30 }
 0x4b7   : > { %v1677_v62 = vpop.xlane.xlu1 %1676 }
 0x4b8   : > { %v1681_v0 = vsub.f32 %v4780_v49, %v1677_v62 }
 0x4ba   : > { %v1688_v4 = vmul.f32 1.442695, %v1681_v0 }
 0x4bf   : > { %v1860_v29 = vpop.xlane.xlu2 %1859 }
 0x4c0   : > { %v1870_v57 = vsub.f32 %v4789_v3, %v1860_v29 }
 0x4c2   : > { %v1874_v60 = vmul.f32 1.442695, %v1870_v57 }
 0x4c4   : > { %4172 = vpow2.f32 %v1874_v60 }
 0x4c7   : > { %v4853_v63 = vpop.xlane.xlu2 %1862 }
 0x4ca   : > { %v4855_v59 = vpop.eup %4172 }
 0x4cb   : > { %v1882_v51 = vsel %vm1289_vm9, %v4855_v59, 0.0 }
 0x4cc   : > { %1883 = vadd.xlane.f32.xlu1 %v1882_v51 }
 0x4cf   : > { %v1866_v5 = vpop.xlane.xlu1 %1865  ;;  %v1322_v6 = vpop.xlane.xlu2 %1321 }
 0x4d0   : > { %v1872_v42 = vsub.f32 %v4803_v18, %v1866_v5  ;;  %4174 = vrcp.f32 %v1322_v6 }
 0x4d1   : > { %4176 = vpow2.f32 %v1688_v4 }
 0x4d2   : > { %v1878_v3 = vmul.f32 1.442695, %v1872_v42 }
 0x4d4   : > { %4178 = vpow2.f32 %v1878_v3 }
 0x4d6   : > { %v4175_v7 = vpop.eup %4174 }
 0x4d7   : > { %v1332_v10 = vmul.f32 %v4175_v7, %v4800_v11  ;;  %v1325_v12 = vpop.xlane.xlu1 %1324  ;;  %v1869_v35 = vpop.xlane.xlu0 %1868 }
 0x4d8   : > { %4180 = vrcp.f32 %v1325_v12  ;;  %v1873_v49 = vsub.f32 %v4812_v25, %v1869_v35  ;;  %v4080_v15 = vpop.permute.xlu2 %4079  ;;  %v4863_v16 = vpop.eup %4176 }
 0x4d9   : > { %v4081_v19 = vunpack.i.l.bf16 %v4080_v15  ;;  %3551 = vmatmul.msk.f32.vlgmr.msrb.gmra.mxu3 %vm1289_vm9, %v1332_v10  ;;  %v4082_v17 = vunpack.i.h.bf16 %v4080_v15  ;;  %v1699_v11 = vsel %vm1289_vm9, %v4863_v16, 0.0 }
 0x4da   : > { %v4866_v20 = vpop.eup %4178  ;;  %v1880_v18 = vmul.f32 1.442695, %v1873_v49 }
 0x4db   : > { %1736 = vmatpush.msrb.mxu2 %v4081_v19  ;;  %v1888_v21 = vsel %vm1289_vm9, %v4866_v20, 0.0 }
 0x4dc   : > { %4182 = vpow2.f32 %v1880_v18  ;;  %1889 = vadd.xlane.f32.xlu1 %v1888_v21 }
 0x4dd   : > { %1737 = vmatpush.msrb.mxu2 %v4082_v17 }
 0x4de   : > { %v4181_v22 = vpop.eup %4180  ;;  %1700 = vadd.xlane.f32.xlu2 %v1699_v11 }
 0x4df   : > { %v1692_v24 = vpop.xlane.xlu0 %1691  ;;  %v1333_v25 = vmul.f32 %v4181_v22, %v4809_v23 }
 0x4e0   : > { %4184 = vrcp.f32 %v1692_v24 }
 0x4e1   : > { %3552 = vmatmul.msk.f32.gmra.mxu3 %vm1289_vm9, %v1333_v25 }
 0x4e2   : > { %v4874_v9 = vpop.eup %4182 }
 0x4e3   : > { %v1891_v26 = vsel %vm1289_vm9, %v4874_v9, 0.0 }
 0x4e6   : > { %v4185_v27 = vpop.eup %4184  ;;  %1892 = vadd.xlane.f32.xlu2 %v1891_v26 }
 0x4e7   : > { %v1706_v30 = vmul.f32 %v4185_v27, %v4819_v32  ;;  %v1505_v31 = vpop.xlane.xlu0 %1504 }
 0x4e9   : > { %3573 = vmatmul.msk.f32.vlgmr.msrb.gmra.mxu2 %vm1289_vm9, %v1706_v30 }
 0x4ef   : > { %v4075_v33 = vpop.permute.xlu1 %4074  ;;  %v1698_v13 = vpop.xlane.xlu0 %1697 }
 0x4f0   : > { %v4076_v34 = vunpack.i.l.bf16 %v4075_v33  ;;  %v4077_v38 = vunpack.i.h.bf16 %v4075_v33 }
 0x4f2   : > { %1579 = vmatpush.msra.mxu3 %v4076_v34 }
 0x4f4   : > { %1580 = vmatpush.msra.mxu3 %v4077_v38  ;;  %v3965_v38 = vld [vmem:[%s4452_s3 + $0x38] sm:$0xff] }
 0x4f5   : > { %4094 = vrot.lane.b32.xlu1 %v4662_v28, %s4311_s6  ;;  %2104 = vmatpush.bf16.msrb.mxu0 %v3965_v38 }
 0x4f7   : > { %v1671_v23 = vpop.xlane.xlu0 %1670 }
 0x4f8   : > { %v1679_v41 = vsub.f32 %v4837_v45, %v1671_v23  ;;  %v3964_v23 = vld [vmem:[%s4452_s3 + $0x30] sm:$0xff] }
 0x4f9   : > { %2105 = vmatpush.bf16.msrb.mxu0 %v3964_v23 }
 0x4fa   : > { %v1684_v43 = vmul.f32 1.442695, %v1679_v41  ;;  %v3963_v41 = vld [vmem:[%s4452_s3 + $0x28] sm:$0xff] }
 0x4fc   : > { %4186 = vpow2.f32 %v1684_v43  ;;  %v3962_v43 = vld [vmem:[%s4452_s3 + $0x20] sm:$0xff] }
 0x4fd   : > { %2106 = vmatpush.bf16.msrb.mxu0 %v3963_v41 }
 0x4fe   : > { %4099 = vrot.lane.b32.xlu2 %v4098_v2, %s4311_s6 }
 0x501   : > { %2107 = vmatpush.bf16.msrb.mxu0 %v3962_v43 }
 0x502   : > { %v4187_v32 = vpop.eup %4186 }
 0x503   : > { %v1693_v44 = vsel %vm1289_vm9, %v4187_v32, 0.0 }
 0x504   : > { %1694 = vadd.xlane.f32.xlu0 %v1693_v44  ;;  %v3960_v44 = vld [vmem:[%s4452_s3 + $0x10] sm:$0xff] }
 0x510   : > { %v1502_v46 = vpop.xlane.xlu2 %1501  ;;  %v4905_v5 = vpop.f32.mrf.mxu3 }
 0x511   : > { %4188 = vrcp.f32 %v1502_v46  ;;  %v3959_v46 = vld [vmem:[%s4452_s3 + $0x8] sm:$0xff] }
 0x512   : > { %4190 = vrcp.f32 %v1505_v31 }
 0x513   : > { %4192 = vrcp.f32 %v1698_v13 }
 0x517   : > { %v4189_v47 = vpop.eup %4188 }
 0x518   : > { %v1512_v28 = vmul.f32 %v4189_v47, %v4846_v56  ;;  %4089 = vrot.lane.b32.xlu0 %v4632_v14, %s4311_s6  ;;  %v4085_v45 = vpop.permute.xlu2 %4084  ;;  %v4191_v61 = vpop.eup %4190  ;;  %v1871_v14 = vsub.f32 %v4795_v8, %v4853_v63  ;;  %v3958_v47 = vld [vmem:[%s4452_s3] sm:$0xff] }
 0x519   : > { %v4086_v50 = vunpack.i.l.bf16 %v4085_v45  ;;  %v4087_v52 = vunpack.i.h.bf16 %v4085_v45  ;;  %v1513_v1 = vmul.f32 %v4191_v61, %v4824_v37  ;;  %v4193_v2 = vpop.eup %4192  ;;  %v4908_v3 = vpop.f32.mrf.mxu3 }
 0x51a   : > { %3563 = vmatmul.msk.f32.vlgmr.msra.gmra.mxu3 %vm1289_vm9, %v1512_v28  ;;  %v1708_v48 = vmul.f32 %v4193_v2, %v4830_v39  ;;  %v1876_v53 = vmul.f32 1.442695, %v1871_v14 }
 0x51b   : > { %1771 = vmatpush.msrb.mxu3 %v4086_v50 }
 0x51c   : > { %4194 = vpow2.f32 %v1876_v53 }
 0x51d   : > { %1772 = vmatpush.msrb.mxu3 %v4087_v52 }
 0x522   : > { %3564 = vmatmul.msk.f32.gmra.mxu3 %vm1289_vm9, %v1513_v1  ;;  %v4195_v54 = vpop.eup %4194 }
 0x523   : > { %v1885_v55 = vsel %vm1289_vm9, %v4195_v54, 0.0 }
 0x52a   : > { %3575 = vmatmul.msk.f32.vlgmr.msrb.gmra.mxu3 %vm1289_vm9, %v1708_v48 }
 0x53f   : > { %v1884_v56 = vpop.xlane.xlu1 %1883 }
 0x542   : > { %1886 = vadd.xlane.f32.xlu0 %v1885_v55 }
 0x54f   : > { %v1890_v39 = vpop.xlane.xlu1 %1889 }
 0x551   : > { %v1701_v40 = vpop.xlane.xlu2 %1700 }
 0x552   : > { %4196 = vrcp.f32 %v1701_v40 }
 0x553   : > { %4198 = vrcp.f32 %v1890_v39 }
 0x558   : > { %v4197_v37 = vpop.eup %4196 }
 0x559   : > { %v1709_v58 = vmul.f32 %v4197_v37, %v4863_v16  ;;  %v1893_v29 = vpop.xlane.xlu2 %1892  ;;  %v4199_v60 = vpop.eup %4198 }
 0x55a   : > { %4200 = vrcp.f32 %v1893_v29  ;;  %v1900_v63 = vmul.f32 %v4199_v60, %v4866_v20 }
 0x55b   : > { %3576 = vmatmul.msk.f32.gmra.mxu3 %vm1289_vm9, %v1709_v58 }
 0x55c   : > { %v4910_v12 = vpop.f32.mrf.mxu3 }
 0x560   : > { %v4201_v0 = vpop.eup %4200 }
 0x561   : > { %v1901_v51 = vmul.f32 %v4201_v0, %v4874_v9  ;;  %v4100_v28 = vpop.permute.xlu2 %4099 }
 0x562   : > { %v4102_v50 = vunpack.i.h.bf16 %v4100_v28  ;;  %v4101_v52 = vunpack.i.l.bf16 %v4100_v28 }
 0x564   : > { %v4914_v16 = vpop.f32.mrf.mxu3  ;;  %v2021_v48 = vsel %vm1218_vm8, %v4908_v3, %v4102_v50  ;;  %v2020_v14 = vsel %vm1218_vm8, %v4905_v5, %v4101_v52  ;;  %v3735_v50 = vld [vmem:[%s4480_s22 + $0xe0] sm:$0xf]  ;;  %v3996_v52 = vld [vmem:[%s4480_s22 + $0xec] sm:$0xf0] }
 0x567   : > { %v4095_v57 = vpop.permute.xlu1 %4094 }
 0x568   : > { %v4096_v8 = vunpack.i.l.bf16 %v4095_v57  ;;  %v4097_v62 = vunpack.i.h.bf16 %v4095_v57 }
 0x56a   : > { %1963 = vmatpush.msra.mxu3 %v4096_v8 }
 0x56c   : > { %1964 = vmatpush.msra.mxu3 %v4097_v62 }
 0x56d   : > { %3587 = vmatmul.msk.f32.vlgmr.msra.gmra.mxu3 %vm1289_vm9, %v1900_v63 }
 0x575   : > { %3588 = vmatmul.msk.f32.gmra.mxu3 %vm1289_vm9, %v1901_v51 }
 0x577   : > { %v1695_v4 = vpop.xlane.xlu0 %1694 }
 0x578   : > { %4202 = vrcp.f32 %v1695_v4 }
 0x579   : > { %4204 = vrcp.f32 %v1884_v56 }
 0x57e   : > { %v4203_v6 = vpop.eup %4202 }
 0x57f   : > { %v1707_v42 = vmul.f32 %v4203_v6, %v4187_v32  ;;  %v4205_v10 = vpop.eup %4204  ;;  %v3961_v32 = vld [vmem:[%s4452_s3 + $0x18] sm:$0xff] }
 0x580   : > { %v1898_v15 = vmul.f32 %v4205_v10, %v4855_v59  ;;  %v1739_v59 = vpop.f32.mrf.mxu2  ;;  %2108 = vmatpush.bf16.msrb.mxu0 %v3961_v32 }
 0x581   : > { %3574 = vmatmul.msk.f32.gmra.mxu2 %vm1289_vm9, %v1707_v42 }
 0x584   : > { %2109 = vmatpush.bf16.msrb.mxu0 %v3960_v44 }
 0x588   : > { %2110 = vmatpush.bf16.msrb.mxu0 %v3959_v46 }
 0x58a   : > { %v4090_v7 = vpop.permute.xlu0 %4089 }
 0x58b   : > { %v4091_v35 = vunpack.i.l.bf16 %v4090_v7  ;;  %v4092_v49 = vunpack.i.h.bf16 %v4090_v7 }
 0x58c   : > { %2111 = vmatpush.bf16.msrb.mxu0 %v3958_v47 }
 0x58d   : > { %1928 = vmatpush.msra.mxu2 %v4091_v35 }
 0x58f   : > { %1929 = vmatpush.msra.mxu2 %v4092_v49 }
 0x590   : > { %3585 = vmatmul.msk.f32.vlgmr.msra.gmra.mxu2 %vm1289_vm9, %v1898_v15  ;;  %v4248_v15 = vld [vmem:[#allocation2 + $0x10] sm:$0xff] }
 0x59d   : > { %v1582_v19 = vpop.f32.mrf.mxu3 }
 0x5a5   : > { %v1585_v20 = vpop.f32.mrf.mxu3 }
 0x5a6   : > { %v4113_v18 = vpack.i.bf16 %v1585_v20, %v1582_v19 }
 0x5ad   : > { %v1774_v22 = vpop.f32.mrf.mxu3 }
 0x5b5   : > { %v1887_v17 = vpop.xlane.xlu0 %1886 }
 0x5b6   : > { %4206 = vrcp.f32 %v1887_v17 }
 0x5bc   : > { %v4207_v21 = vpop.eup %4206 }
 0x5bd   : > { %v1899_v11 = vmul.f32 %v4207_v21, %v4195_v54 }
 0x5bf   : > { %3586 = vmatmul.msk.f32.gmra.mxu2 %vm1289_vm9, %v1899_v11 }
 0x5de   : > { %v1777_v24 = vpop.f32.mrf.mxu3 }
 0x5df   : > { %v4118_v25 = vpack.i.bf16 %v1777_v24, %v1774_v22  ;;  %v4250_v22 = vld [vmem:[#allocation2 + $0x18] sm:$0xff] }
 0x5e1   : > { %4119 = vrot.lane.b32.xlu2 %v4118_v25, %s4310_s30 }
 0x5f0   : > { %v1966_v9 = vpop.f32.mrf.mxu3 }
 0x5f8   : > { %v1969_v30 = vpop.f32.mrf.mxu3 }
 0x5f9   : > { %v4123_v31 = vpack.i.bf16 %v1969_v30, %v1966_v9  ;;  %v4251_v9 = vld [vmem:[#allocation2 + $0x8] sm:$0xff] }
 0x604   : > { %v1742_v26 = vpop.f32.mrf.mxu2 }
 0x605   : > { %v4103_v27 = vpack.i.bf16 %v1742_v26, %v1739_v59 }
 0x607   : > { %4104 = vrot.lane.b32.xlu0 %v4103_v27, %s4310_s30 }
 0x60f   : > { %4124 = vrot.lane.b32.xlu0 %v4123_v31, %s4309_s20 }
 0x613   : > { %v1931_v33 = vpop.f32.mrf.mxu2 }
 0x63b   : > { %v4120_v29 = vpop.permute.xlu2 %4119 }
 0x63c   : > { %v4122_v63 = vunpack.i.h.bf16 %v4120_v29  ;;  %v4121_v0 = vunpack.i.l.bf16 %v4120_v29 }
 0x642   : > { %v1934_v13 = vpop.f32.mrf.mxu2 }
 0x643   : > { %v4108_v34 = vpack.i.bf16 %v1934_v13, %v1931_v33 }
 0x645   : > { %4109 = vrot.lane.b32.xlu1 %v4108_v34, %s4309_s20 }
 0x64d   : > { %4114 = vrot.lane.b32.xlu1 %v4113_v18, %s4311_s6  ;;  %v4249_v18 = vld [vmem:[#allocation2] sm:$0xff] }
 0x679   : > { %v4105_v45 = vpop.permute.xlu0 %4104 }
 0x67a   : > { %v4107_v61 = vunpack.i.h.bf16 %v4105_v45  ;;  %v4106_v1 = vunpack.i.l.bf16 %v4105_v45 }
 0x67c   : > { %v2026_v55 = vsel %vm2024_vm10, %v2021_v48, %v4107_v61  ;;  %v2025_v40 = vsel %vm2024_vm10, %v2020_v14, %v4106_v1  ;;  %v3994_v61 = vld [vmem:[%s4480_s22 + $0xe4] sm:$0xf]  ;;  %v3736_v1 = vor.u32 %v3996_v52, %v3735_v50  ;;  %v3743_v48 = vld [vmem:[%s4480_s22 + $0xe8] sm:$0xf]  ;;  %v3997_v14 = vld [vmem:[%s4480_s22 + $0xf4] sm:$0xf0] }
 0x67e   : > { %2427 = vmatpush.bf16.msrb.mxu1 %v3736_v1  ;;  %v3681_v1 = vld [vmem:[%s4480_s22 + $0x78] sm:$0xf0] }
 0x681   : > { %v4125_v51 = vpop.permute.xlu0 %4124 }
 0x682   : > { %v4127_v6 = vunpack.i.h.bf16 %v4125_v51  ;;  %v4126_v42 = vunpack.i.l.bf16 %v4125_v51  ;;  %v3729_v51 = vld [vmem:[%s4480_s22 + $0xd8] sm:$0xf0] }
 0x6b7   : > { %v4110_v2 = vpop.permute.xlu1 %4109 }
 0x6b8   : > { %v4112_v53 = vunpack.i.h.bf16 %v4110_v2  ;;  %v4111_v54 = vunpack.i.l.bf16 %v4110_v2  ;;  %v3737_v2 = vld [vmem:[%s4480_s22 + $0xf0] sm:$0xf0] }
 0x6ba   : > { %v2031_v56 = vsel %vm2029_vm11, %v2026_v55, %v4112_v53  ;;  %v2030_v37 = vsel %vm2029_vm11, %v2025_v40, %v4111_v54  ;;  %v3740_v53 = vor.u32 %v3994_v61, %v3737_v2  ;;  %v3744_v54 = vor.u32 %v3997_v14, %v3743_v48  ;;  %v3995_v55 = vld [vmem:[%s4480_s22 + $0xec] sm:$0xf]  ;;  %v3745_v40 = vld [vmem:[%s4480_s22 + $0xf8] sm:$0xf0]  ;;  %v3655_v48 = vld [vmem:[%s4480_s22 + $0x40] sm:$0xf] }
 0x6bb   : > { %v2034_v58 = vpack.c.bf16 %v2031_v56, %v2030_v37  ;;  %v3748_v56 = vor.u32 %v3995_v55, %v3745_v40  ;;  %v3719_v37 = vld [vmem:[%s4480_s22 + $0xc0] sm:$0xf]  ;;  %v3979_v61 = vld [vmem:[%s4480_s22 + $0x6c] sm:$0xf]  ;;  %v3976_v14 = vld [vmem:[%s4480_s22 + $0x4c] sm:$0xf0] }
 0x6bc   : > { %2446 = vmatpush.bf16.msrb.mxu2 %v3740_v53  ;;  %2465 = vmatpush.bf16.msrb.mxu3 %v3744_v54  ;;  %v3684_v2 = vor.u32 %v3979_v61, %v3681_v1  ;;  %v3974_v53 = vld [vmem:[%s4480_s22 + $0x44] sm:$0xf]  ;;  %v3656_v54 = vor.u32 %v3976_v14, %v3655_v48  ;;  %v3657_v55 = vld [vmem:[%s4480_s22 + $0x50] sm:$0xf0]  ;;  %v3663_v40 = vld [vmem:[%s4480_s22 + $0x48] sm:$0xf] }
 0x6bd   : > { %2112 = vmatmul.bf16.vlgmr.msrb.gmra.mxu0 %v2034_v58  ;;  %v3992_v58 = vld [vmem:[%s4480_s22 + $0xcc] sm:$0xf0] }
 0x6be   : > { %2484 = vmatpush.bf16.msra.mxu0 %v3748_v56  ;;  %v3720_v29 = vor.u32 %v3992_v58, %v3719_v37  ;;  %v3977_v56 = vld [vmem:[%s4480_s22 + $0x54] sm:$0xf0]  ;;  %v3660_v37 = vor.u32 %v3974_v53, %v3657_v55 }
 0x6bf   : > { %v4115_v39 = vpop.permute.xlu1 %4114  ;;  %v3664_v58 = vor.u32 %v3977_v56, %v3663_v40 }
 0x6c0   : > { %v4117_v57 = vunpack.i.h.bf16 %v4115_v39  ;;  %v4116_v60 = vunpack.i.l.bf16 %v4115_v39  ;;  %v3990_v39 = vld [vmem:[%s4480_s22 + $0xc4] sm:$0xf]  ;;  %2428 = vmatpush.bf16.msrb.mxu1 %v3720_v29  ;;  %v3665_v29 = vld [vmem:[%s4480_s22 + $0x58] sm:$0xf0] }
 0x6c2   : > { %v2023_v8 = vsel %vm1218_vm8, %v4914_v16, %v4117_v57  ;;  %v2022_v62 = vsel %vm1218_vm8, %v4910_v12, %v4116_v60  ;;  %v4130_v12 = vld [vmem:[%s5342_s2] ss:$0 sm:$0xff]  ;;  %v3721_v57 = vld [vmem:[%s4480_s22 + $0xd0] sm:$0xf0]  ;;  %v3727_v60 = vld [vmem:[%s4480_s22 + $0xc8] sm:$0xf] }
 0x6c3   : > { %v2027_v4 = vsel %vm2024_vm10, %v2022_v62, %v4121_v0  ;;  %v2028_v5 = vsel %vm2024_vm10, %v2023_v8, %v4122_v63  ;;  %v3993_v8 = vld [vmem:[%s4480_s22 + $0xd4] sm:$0xf0]  ;;  %v3724_v62 = vor.u32 %v3990_v39, %v3721_v57  ;;  %v3991_v0 = vld [vmem:[%s4480_s22 + $0xcc] sm:$0xf] }
 0x6c4   : > { %v2032_v3 = vsel %vm2029_vm11, %v2027_v4, %v4126_v42  ;;  %v2033_v7 = vsel %vm2029_vm11, %v2028_v5, %v4127_v6  ;;  %v3728_v63 = vor.u32 %v3993_v8, %v3727_v60  ;;  %v3732_v4 = vor.u32 %v3991_v0, %v3729_v51  ;;  %v3703_v5 = vld [vmem:[%s4480_s22 + $0xa0] sm:$0xf]  ;;  %v3988_v6 = vld [vmem:[%s4480_s22 + $0xac] sm:$0xf0]  ;;  %v3986_v42 = vld [vmem:[%s4480_s22 + $0xa4] sm:$0xf] }
 0x6c5   : > { %v2035_v10 = vpack.c.bf16 %v2033_v7, %v2032_v3  ;;  %2447 = vmatpush.bf16.msrb.mxu2 %v3724_v62  ;;  %v3704_v3 = vor.u32 %v3988_v6, %v3703_v5  ;;  %v3705_v7 = vld [vmem:[%s4480_s22 + $0xb0] sm:$0xf0]  ;;  %v3975_v39 = vld [vmem:[%s4480_s22 + $0x4c] sm:$0xf]  ;;  %v3639_v60 = vld [vmem:[%s4480_s22 + $0x20] sm:$0xf] }
 0x6c6   : > { %2466 = vmatpush.bf16.msrb.mxu3 %v3728_v63  ;;  %2485 = vmatpush.bf16.msra.mxu0 %v3732_v4  ;;  %v3668_v57 = vor.u32 %v3975_v39, %v3665_v29  ;;  %v3972_v8 = vld [vmem:[%s4480_s22 + $0x2c] sm:$0xf0]  ;;  %v3970_v62 = vld [vmem:[%s4480_s22 + $0x24] sm:$0xf]  ;;  %v3641_v0 = vld [vmem:[%s4480_s22 + $0x30] sm:$0xf0] }
 0x6c7   : > { %2429 = vmatpush.bf16.msrb.mxu1 %v3704_v3  ;;  %v3640_v63 = vor.u32 %v3972_v8, %v3639_v60  ;;  %v3647_v51 = vld [vmem:[%s4480_s22 + $0x28] sm:$0xf]  ;;  %v3973_v4 = vld [vmem:[%s4480_s22 + $0x34] sm:$0xf0]  ;;  %v3644_v5 = vor.u32 %v3970_v62, %v3641_v0  ;;  %v3649_v3 = vld [vmem:[%s4480_s22 + $0x38] sm:$0xf0] }
 0x6c8   : > { %v3648_v6 = vor.u32 %v3973_v4, %v3647_v51 }
 0x6cd   : > { %2117 = vmatmul.bf16.gmra.mxu0 %v2035_v10  ;;  %v3711_v10 = vld [vmem:[%s4480_s22 + $0xa8] sm:$0xf] }
 0x73a   : > { %v2113_v35 = vpop.f32.mrf.mxu0 }
 0x73b   : > { %v2114_v49 = vadd.f32 %v4130_v12, %v2113_v35  ;;  %v3708_v35 = vor.u32 %v3986_v42, %v3705_v7  ;;  %v3971_v42 = vld [vmem:[%s4480_s22 + $0x2c] sm:$0xf] }
 0x73d   : > { %v4951_v16 = vadd.f32 %v4248_v15, %v2114_v49  ;;  %v3987_v15 = vld [vmem:[%s4480_s22 + $0xac] sm:$0xf]  ;;  %2448 = vmatpush.bf16.msrb.mxu2 %v3708_v35  ;;  %v3623_v35 = vld [vmem:[%s4480_s22] sm:$0xf] }
 0x73f   : > { %2129 = vadd.xlane.f32.xlu1 %v4951_v16 }
 0x742   : > { %v2115_v19 = vpop.f32.mrf.mxu0 }
 0x743   : > { %v2116_v20 = vadd.f32 %v4130_v12, %v2115_v19  ;;  %v3713_v19 = vld [vmem:[%s4480_s22 + $0xb8] sm:$0xf0] }
 0x745   : > { %v4954_v17 = vadd.f32 %v4249_v18, %v2116_v20  ;;  %v3716_v20 = vor.u32 %v3987_v15, %v3713_v19  ;;  %v3687_v18 = vld [vmem:[%s4480_s22 + $0x80] sm:$0xf]  ;;  %v3966_v15 = vld [vmem:[%s4480_s22 + $0x4] sm:$0xf] }
 0x747   : > { %2131 = vadd.xlane.f32.xlu2 %v4954_v17  ;;  %2486 = vmatpush.bf16.msra.mxu0 %v3716_v20  ;;  %v3625_v20 = vld [vmem:[%s4480_s22 + $0x10] sm:$0xf0] }
 0x74a   : > { %v2118_v21 = vpop.f32.mrf.mxu0 }
 0x74b   : > { %v2119_v11 = vadd.f32 %v4130_v12, %v2118_v21  ;;  %v3984_v21 = vld [vmem:[%s4480_s22 + $0x8c] sm:$0xf0] }
 0x74d   : > { %v4957_v24 = vadd.f32 %v4250_v22, %v2119_v11  ;;  %v3982_v11 = vld [vmem:[%s4480_s22 + $0x84] sm:$0xf]  ;;  %v3688_v22 = vor.u32 %v3984_v21, %v3687_v18  ;;  %v3631_v18 = vld [vmem:[%s4480_s22 + $0x8] sm:$0xf]  ;;  %v3969_v21 = vld [vmem:[%s4480_s22 + $0x14] sm:$0xf0] }
 0x74f   : > { %2133 = vadd.xlane.f32.xlu0 %v4957_v24  ;;  %2430 = vmatpush.bf16.msrb.mxu1 %v3688_v22  ;;  %v3628_v22 = vor.u32 %v3966_v15, %v3625_v20 }
 0x752   : > { %v2120_v25 = vpop.f32.mrf.mxu0 }
 0x753   : > { %v2121_v59 = vadd.f32 %v4130_v12, %v2120_v25  ;;  %v3989_v12 = vld [vmem:[%s4480_s22 + $0xb4] sm:$0xf0]  ;;  %v3689_v25 = vld [vmem:[%s4480_s22 + $0x90] sm:$0xf0] }
 0x754   : > { %v3712_v49 = vor.u32 %v3989_v12, %v3711_v10  ;;  %v3652_v10 = vor.u32 %v3971_v42, %v3649_v3 }
 0x755   : > { %v4960_v26 = vadd.f32 %v4251_v9, %v2121_v59  ;;  %v3695_v59 = vld [vmem:[%s4480_s22 + $0x88] sm:$0xf]  ;;  %v3985_v9 = vld [vmem:[%s4480_s22 + $0x94] sm:$0xf0] }
 0x756   : > { %2467 = vmatpush.bf16.msrb.mxu3 %v3712_v49  ;;  %v3968_v49 = vld [vmem:[%s4480_s22 + $0xc] sm:$0xf0] }
 0x757   : > { %2135 = vadd.xlane.f32.xlu1 %v4960_v26  ;;  %v3624_v19 = vor.u32 %v3968_v49, %v3623_v35 }
 0x7b2   : > { %v2130_v27 = vpop.xlane.xlu1 %2129 }
 0x7b3   : > { %v2137_v30 = vmul.f32 %v2130_v27, %v4523_v36  ;;  %v3692_v27 = vor.u32 %v3982_v11, %v3689_v25  ;;  %v3632_v25 = vor.u32 %v3969_v21, %v3631_v18 }
 0x7b5   : > { %v4965_v31 = vsub.f32 %v4951_v16, %v2137_v30  ;;  %v3696_v30 = vor.u32 %v3985_v9, %v3695_v59  ;;  %2449 = vmatpush.bf16.msrb.mxu2 %v3692_v27  ;;  %v3967_v59 = vld [vmem:[%s4480_s22 + $0xc] sm:$0xf]  ;;  %v3633_v9 = vld [vmem:[%s4480_s22 + $0x18] sm:$0xf0] }
 0x7b6   : > { %v3636_v27 = vor.u32 %v3967_v59, %v3633_v9  ;;  %v4028_v59 = vld [vmem:[%s4491_s16 + $0xf0] sm:$0xff]  ;;  %v4013_v9 = vld [vmem:[%s4491_s16 + $0x78] sm:$0xff] }
 0x7b7   : > { %v2145_v33 = vmul.f32 %v4965_v31, %v4965_v31  ;;  %2468 = vmatpush.bf16.msrb.mxu3 %v3696_v30 }
 0x7b9   : > { %2149 = vadd.xlane.f32.xlu2 %v2145_v33  ;;  %v3983_v33 = vld [vmem:[%s4480_s22 + $0x8c] sm:$0xf] }
 0x7ba   : > { %v2132_v13 = vpop.xlane.xlu2 %2131 }
 0x7bb   : > { %v2138_v34 = vmul.f32 %v2132_v13, %v4523_v36  ;;  %v3697_v13 = vld [vmem:[%s4480_s22 + $0x98] sm:$0xf0] }
 0x7bd   : > { %v4971_v38 = vsub.f32 %v4954_v17, %v2138_v34  ;;  %v3700_v34 = vor.u32 %v3983_v33, %v3697_v13 }
 0x7bf   : > { %v2146_v23 = vmul.f32 %v4971_v38, %v4971_v38  ;;  %2487 = vmatpush.bf16.msra.mxu0 %v3700_v34 }
 0x7c1   : > { %2151 = vadd.xlane.f32.xlu0 %v2146_v23  ;;  %v3671_v23 = vld [vmem:[%s4480_s22 + $0x60] sm:$0xf] }
 0x7c2   : > { %v2134_v41 = vpop.xlane.xlu0 %2133 }
 0x7c3   : > { %v2139_v43 = vmul.f32 %v2134_v41, %v4523_v36  ;;  %v3980_v41 = vld [vmem:[%s4480_s22 + $0x6c] sm:$0xf0]  ;;  %2488 = vmatpush.bf16.msra.mxu0 %v3684_v2 }
 0x7c5   : > { %v4977_v32 = vsub.f32 %v4957_v24, %v2139_v43  ;;  %v3978_v43 = vld [vmem:[%s4480_s22 + $0x64] sm:$0xf] }
 0x7c7   : > { %v2147_v44 = vmul.f32 %v4977_v32, %v4977_v32  ;;  %2489 = vmatpush.bf16.msra.mxu0 %v3668_v57 }
 0x7c9   : > { %2153 = vadd.xlane.f32.xlu1 %v2147_v44  ;;  %v3672_v44 = vor.u32 %v3980_v41, %v3671_v23 }
 0x7ca   : > { %v2136_v46 = vpop.xlane.xlu1 %2135 }
 0x7cb   : > { %v2140_v47 = vmul.f32 %v2136_v46, %v4523_v36  ;;  %v3673_v46 = vld [vmem:[%s4480_s22 + $0x70] sm:$0xf0]  ;;  %2431 = vmatpush.bf16.msrb.mxu1 %v3672_v44  ;;  %2490 = vmatpush.bf16.msra.mxu0 %v3652_v10 }
 0x7cc   : > { %v3676_v50 = vor.u32 %v3978_v43, %v3673_v46 }
 0x7cd   : > { %v4983_v28 = vsub.f32 %v4960_v26, %v2140_v47  ;;  %v3679_v47 = vld [vmem:[%s4480_s22 + $0x68] sm:$0xf] }
 0x7ce   : > { %2450 = vmatpush.bf16.msrb.mxu2 %v3676_v50 }
 0x7cf   : > { %v2148_v45 = vmul.f32 %v4983_v28, %v4983_v28  ;;  %2432 = vmatpush.bf16.msrb.mxu1 %v3656_v54  ;;  %2491 = vmatpush.bf16.msra.mxu0 %v3636_v27  ;;  %v4021_v27 = vld [vmem:[%s4491_s16 + $0xb8] sm:$0xff] }
 0x7d1   : > { %2155 = vadd.xlane.f32.xlu2 %v2148_v45  ;;  %v3981_v45 = vld [vmem:[%s4480_s22 + $0x74] sm:$0xf0] }
 0x7d2   : > { %v3680_v52 = vor.u32 %v3981_v45, %v3679_v47  ;;  %2451 = vmatpush.bf16.msrb.mxu2 %v3660_v37  ;;  %v4131_v37 = vld [vmem:[%s5343_s29] ss:$0 sm:$0xff]  ;;  %s5347_s29 = sld [smem:[#allocation17_spill]] (!%p3877_p5) }
 0x7d3   : > { %2433 = vmatpush.bf16.msrb.mxu1 %v3640_v63 }
 0x7d4   : > { %2469 = vmatpush.bf16.msrb.mxu3 %v3680_v52 }
 0x7d6   : > { %2452 = vmatpush.bf16.msrb.mxu2 %v3644_v5 }
 0x7d7   : > { %2434 = vmatpush.bf16.msrb.mxu1 %v3624_v19 }
 0x7d8   : > { %2470 = vmatpush.bf16.msrb.mxu3 %v3664_v58 }
 0x7da   : > { %2453 = vmatpush.bf16.msrb.mxu2 %v3628_v22 }
 0x7dc   : > { %2471 = vmatpush.bf16.msrb.mxu3 %v3648_v6 }
 0x7de   : > { %2934 = vmatpush.bf16.msra.mxu2 %v4013_v9 }
 0x7e0   : > { %2472 = vmatpush.bf16.msrb.mxu3 %v3632_v25  ;;  %v4029_v25 = vld [vmem:[%s4491_s16 + $0xf8] sm:$0xff] }
 0x7e1   : > { %2972 = vmatpush.bf16.msrb.mxu0 %v4029_v25 }
 0x7e4   : > { %2953 = vmatpush.bf16.msra.mxu3 %v4021_v27 }
 0x7e5   : > { %2973 = vmatpush.bf16.msrb.mxu0 %v4028_v59 }
 0x82c   : > { %v2150_v7 = vpop.xlane.xlu2 %2149 }
 0x82d   : > { %v2157_v12 = vmul.f32 %v2150_v7, %v4523_v36 }
 0x82f   : > { %v2161_v11 = vadd.f32 1e-05, %v2157_v12 }
 0x831   : > { %4208 = vrsqrt.f32 %v2161_v11  ;;  %vm2171_vm13 = vweird.f32 %v2161_v11 }
 0x834   : > { %v2152_v30 = vpop.xlane.xlu0 %2151 }
 0x835   : > { %v2158_v33 = vmul.f32 %v2152_v30, %v4523_v36  ;;  %v4003_v30 = vld [vmem:[%s4491_s16 + $0x28] sm:$0xff] }
 0x837   : > { %v4209_v13 = vpop.eup %4208  ;;  %v2162_v34 = vadd.f32 1e-05, %v2158_v33  ;;  %v4027_v33 = vld [vmem:[%s4491_s16 + $0xe8] sm:$0xff] }
 0x838   : > { %v2166_v23 = vmul.f32 %v4209_v13, %v2161_v11  ;;  %vm2172_vm12 = vweird.f32 %v4209_v13  ;;  %2974 = vmatpush.bf16.msrb.mxu0 %v4027_v33 }
 0x839   : > { %4210 = vrsqrt.f32 %v2162_v34  ;;  %vm2173_vm14 = vmor %vm2171_vm13, %vm2172_vm12  ;;  %vm2181_vm0 = vweird.f32 %v2162_v34 }
 0x83a   : > { %v2167_v41 = vmul.f32 %v4209_v13, %v2166_v23  ;;  %v4002_v23 = vld [vmem:[%s4491_s16 + $0x20] sm:$0xff] }
 0x83c   : > { %v2168_v43 = vmul.f32 0.5, %v2167_v41  ;;  %v2154_v44 = vpop.xlane.xlu1 %2153  ;;  %v4026_v41 = vld [vmem:[%s4491_s16 + $0xe0] sm:$0xff] }
 0x83d   : > { %v2159_v46 = vmul.f32 %v2154_v44, %v4523_v36  ;;  %2975 = vmatpush.bf16.msrb.mxu0 %v4026_v41  ;;  %v4019_v44 = vld [vmem:[%s4491_s16 + $0xa8] sm:$0xff] }
 0x83e   : > { %v2169_v47 = vsub.f32 1.5, %v2168_v43  ;;  %v4011_v43 = vld [vmem:[%s4491_s16 + $0x68] sm:$0xff] }
 0x83f   : > { %v4211_v45 = vpop.eup %4210  ;;  %v2163_v50 = vadd.f32 1e-05, %v2159_v46  ;;  %v4001_v46 = vld [vmem:[%s4491_s16 + $0x18] sm:$0xff] }
 0x840   : > { %v2170_v52 = vmul.f32 %v4209_v13, %v2169_v47  ;;  %v2176_v61 = vmul.f32 %v4211_v45, %v2162_v34  ;;  %vm2182_vm15 = vweird.f32 %v4211_v45  ;;  %v4020_v34 = vld [vmem:[%s4491_s16 + $0xb0] sm:$0xff]  ;;  %v4025_v47 = vld [vmem:[%s4491_s16 + $0xd8] sm:$0xff] }
 0x841   : > { %4212 = vrsqrt.f32 %v2163_v50  ;;  %vm2183_vm1 = vmor %vm2181_vm0, %vm2182_vm15  ;;  %vm2191_vm3 = vweird.f32 %v2163_v50  ;;  %2954 = vmatpush.bf16.msra.mxu3 %v4020_v34  ;;  %2976 = vmatpush.bf16.msrb.mxu0 %v4025_v47 }
 0x842   : > { %v2177_v1 = vmul.f32 %v4211_v45, %v2176_v61  ;;  %v2174_v2 = vsel %vm2173_vm14, %v4209_v13, %v2170_v52  ;;  %v4012_v13 = vld [vmem:[%s4491_s16 + $0x70] sm:$0xff] }
 0x843   : > { %v2205_v40 = vmul.f32 %v2174_v2, %v4965_v31  ;;  %v4132_v31 = vld [vmem:[%s5344_s0] ss:$0 sm:$0xff]  ;;  %2935 = vmatpush.bf16.msra.mxu2 %v4012_v13  ;;  %v4000_v52 = vld [vmem:[%s4491_s16 + $0x10] sm:$0xff]  ;;  %v4017_v2 = vld [vmem:[%s4491_s16 + $0x98] sm:$0xff]  ;;  %s5348_s0 = sld [smem:[#allocation19_spill]] (!%p3877_p5) }
 0x844   : > { %v2178_v48 = vmul.f32 0.5, %v2177_v1  ;;  %v2156_v14 = vpop.xlane.xlu2 %2155  ;;  %v4024_v61 = vld [vmem:[%s4491_s16 + $0xd0] sm:$0xff]  ;;  %v4009_v1 = vld [vmem:[%s4491_s16 + $0x58] sm:$0xff] }
 0x845   : > { %v2160_v53 = vmul.f32 %v2156_v14, %v4523_v36  ;;  %v2212_v8 = vmul.f32 %v4131_v37, %v2205_v40  ;;  %2955 = vmatpush.bf16.msra.mxu3 %v4019_v44  ;;  %2977 = vmatpush.bf16.msrb.mxu0 %v4024_v61  ;;  %v3999_v14 = vld [vmem:[%s4491_s16 + $0x8] sm:$0xff] }
 0x846   : > { %v2179_v54 = vsub.f32 1.5, %v2178_v48  ;;  %v2257_v48 = vld [vmem:[%s4486_s1] sm:$0xf] }
 0x847   : > { %v4213_v55 = vpop.eup %4212  ;;  %v2164_v56 = vadd.f32 1e-05, %v2160_v53  ;;  %v2219_v4 = vadd.f32 %v4132_v31, %v2212_v8  ;;  %2936 = vmatpush.bf16.msra.mxu2 %v4011_v43  ;;  %v4023_v53 = vld [vmem:[%s4491_s16 + $0xc8] sm:$0xff]  ;;  %v5096_v40 = vperm.slane %v2257_v48, 0 }
 0x848   : > { %v2180_v58 = vmul.f32 %v4211_v45, %v2179_v54  ;;  %v2186_v39 = vmul.f32 %v4213_v55, %v2163_v50  ;;  %vm2192_vm2 = vweird.f32 %v4213_v55  ;;  %v4018_v50 = vld [vmem:[%s4491_s16 + $0xa0] sm:$0xff]  ;;  %v4008_v54 = vld [vmem:[%s4491_s16 + $0x50] sm:$0xff] }
 0x849   : > { %4214 = vrsqrt.f32 %v2164_v56  ;;  %vm2193_vm4 = vmor %vm2191_vm3, %vm2192_vm2  ;;  %vm2201_vm6 = vweird.f32 %v2164_v56  ;;  %2956 = vmatpush.bf16.msra.mxu3 %v4018_v50  ;;  %2978 = vmatpush.bf16.msrb.mxu0 %v4023_v53 }
 0x84a   : > { %v2184_v29 = vsel %vm2183_vm1, %v4211_v45, %v2180_v58  ;;  %v2187_v57 = vmul.f32 %v4213_v55, %v2186_v39  ;;  %v4010_v45 = vld [vmem:[%s4491_s16 + $0x60] sm:$0xff] }
 0x84b   : > { %v2206_v60 = vmul.f32 %v2184_v29, %v4971_v38  ;;  %2937 = vmatpush.bf16.msra.mxu2 %v4010_v45  ;;  %v4022_v58 = vld [vmem:[%s4491_s16 + $0xc0] sm:$0xff]  ;;  %v4007_v29 = vld [vmem:[%s4491_s16 + $0x48] sm:$0xff] }
 0x84c   : > { %v2188_v62 = vmul.f32 0.5, %v2187_v57  ;;  %v4015_v57 = vld [vmem:[%s4491_s16 + $0x88] sm:$0xff] }
 0x84d   : > { %v2213_v63 = vmul.f32 %v4131_v37, %v2206_v60  ;;  %2957 = vmatpush.bf16.msra.mxu3 %v4017_v2  ;;  %2979 = vmatpush.bf16.msrb.mxu0 %v4022_v58 }
 0x84e   : > { %v2189_v0 = vsub.f32 1.5, %v2188_v62 }
 0x84f   : > { %v4215_v51 = vpop.eup %4214  ;;  %v2220_v5 = vadd.f32 %v4132_v31, %v2213_v63  ;;  %2938 = vmatpush.bf16.msra.mxu2 %v4009_v1  ;;  %v5106_v63 = vperm.slane %v2257_v48, 1 }
 0x850   : > { %v2190_v6 = vmul.f32 %v4213_v55, %v2189_v0  ;;  %v2196_v42 = vmul.f32 %v4215_v51, %v2164_v56  ;;  %vm2202_vm5 = vweird.f32 %v4215_v51  ;;  %v5098_v56 = vperm.slane %v2257_v48, 3  ;;  %v4006_v0 = vld [vmem:[%s4491_s16 + $0x40] sm:$0xff] }
 0x851   : > { %v2223_v3 = vpack.c.bf16 %v2220_v5, %v2219_v4  ;;  %vm2203_vm7 = vmor %vm2201_vm6, %vm2202_vm5  ;;  %v5110_v5 = vperm.slane %v2257_v48, 2 }
 0x852   : > { %v2197_v7 = vmul.f32 %v4215_v51, %v2196_v42  ;;  %v2194_v38 = vsel %vm2193_vm4, %v4213_v55, %v2190_v6  ;;  %v4016_v55 = vld [vmem:[%s4491_s16 + $0x90] sm:$0xff] }
 0x853   : > { %2435 = vmatmul.bf16.vlgmr.msrb.gmra.mxu1 %v2223_v3  ;;  %2454 = vmatmul.bf16.vlgmr.msrb.gmra.mxu2 %v2223_v3  ;;  %v2207_v35 = vmul.f32 %v2194_v38, %v4977_v32  ;;  %v4005_v32 = vld [vmem:[%s4491_s16 + $0x38] sm:$0xff] }
 0x854   : > { %v2198_v10 = vmul.f32 0.5, %v2197_v7  ;;  %2473 = vmatmul.bf16.vlgmr.msrb.gmra.mxu3 %v2223_v3  ;;  %2492 = vmatmul.bf16.vlgmr.msra.gmra.mxu0 %v2223_v3 }
 0x855   : > { %v2214_v20 = vmul.f32 %v4131_v37, %v2207_v35  ;;  %2915 = vmatpush.bf16.msra.mxu1 %v4005_v32  ;;  %2939 = vmatpush.bf16.msra.mxu2 %v4008_v54 }
 0x856   : > { %v2199_v12 = vsub.f32 1.5, %v2198_v10  ;;  %2958 = vmatpush.bf16.msra.mxu3 %v4016_v55 }
 0x857   : > { %v2221_v21 = vadd.f32 %v4132_v31, %v2214_v20 }
 0x858   : > { %v2200_v49 = vmul.f32 %v4215_v51, %v2199_v12 }
 0x859   : > { %2940 = vmatpush.bf16.msra.mxu2 %v4007_v29 }
 0x85a   : > { %v2204_v15 = vsel %vm2203_vm7, %v4215_v51, %v2200_v49  ;;  %2959 = vmatpush.bf16.msra.mxu3 %v4015_v57  ;;  %v4014_v51 = vld [vmem:[%s4491_s16 + $0x80] sm:$0xff] }
 0x85b   : > { %v2208_v19 = vmul.f32 %v2204_v15, %v4983_v28  ;;  %v4004_v28 = vld [vmem:[%s4491_s16 + $0x30] sm:$0xff] }
 0x85c   : > { %2916 = vmatpush.bf16.msra.mxu1 %v4004_v28 }
 0x85d   : > { %v2215_v18 = vmul.f32 %v4131_v37, %v2208_v19  ;;  %v3998_v37 = vld [vmem:[%s4491_s16] sm:$0xff]  ;;  %2941 = vmatpush.bf16.msra.mxu2 %v4006_v0  ;;  %s5345_s16 = sld [smem:[#allocation16_spill]] (!%p3877_p5) }
 0x85e   : > { %2960 = vmatpush.bf16.msra.mxu3 %v4014_v51 }
 0x85f   : > { %v2222_v11 = vadd.f32 %v4132_v31, %v2215_v18 }
 0x860   : > { %2917 = vmatpush.bf16.msra.mxu1 %v4003_v30 }
 0x861   : > { %v2224_v22 = vpack.c.bf16 %v2222_v11, %v2221_v21 }
 0x863   : > { %2440 = vmatmul.bf16.gmra.mxu1 %v2224_v22  ;;  %2459 = vmatmul.bf16.gmra.mxu2 %v2224_v22 }
 0x864   : > { %2478 = vmatmul.bf16.gmra.mxu3 %v2224_v22  ;;  %2497 = vmatmul.bf16.gmra.mxu0 %v2224_v22 }
 0x865   : > { %2918 = vmatpush.bf16.msra.mxu1 %v4002_v23 }
 0x869   : > { %2919 = vmatpush.bf16.msra.mxu1 %v4001_v46 }
 0x86d   : > { %2920 = vmatpush.bf16.msra.mxu1 %v4000_v52 }
 0x871   : > { %2921 = vmatpush.bf16.msra.mxu1 %v3999_v14 }
 0x875   : > { %2922 = vmatpush.bf16.msra.mxu1 %v3998_v37 }
 0x8d0   : > { %v2436_v39 = vpop.f32.mrf.mxu1 }
 0x8d1   : > { %v2437_v60 = vadd.f32 %v2436_v39, %v5096_v40  ;;  %v2493_v8 = vpop.f32.mrf.mxu0 }
 0x8d2   : > { %v2494_v31 = vadd.f32 %v2493_v8, %v5098_v56 }
 0x8d3   : > { %v2519_v62 = vmul.f32 0.044715, %v2437_v60  ;;  %v2503_v54 = vmul.f32 0.5, %v2437_v60 }
 0x8d4   : > { %v2522_v4 = vmul.f32 0.044715, %v2494_v31  ;;  %v2506_v55 = vmul.f32 0.5, %v2494_v31 }
 0x8d5   : > { %v2535_v6 = vmul.f32 %v2519_v62, %v2437_v60 }
 0x8d6   : > { %v2538_v42 = vmul.f32 %v2522_v4, %v2494_v31  ;;  %v2455_v3 = vpop.f32.mrf.mxu2 }
 0x8d7   : > { %v2551_v7 = vmul.f32 %v2535_v6, %v2437_v60  ;;  %v2456_v38 = vadd.f32 %v2455_v3, %v5106_v63  ;;  %v2474_v10 = vpop.f32.mrf.mxu3 }
 0x8d8   : > { %v2554_v12 = vmul.f32 %v2538_v42, %v2494_v31  ;;  %v2475_v35 = vadd.f32 %v2474_v10, %v5110_v5  ;;  %v2438_v49 = vpop.f32.mrf.mxu1 }
 0x8d9   : > { %v2567_v15 = vadd.f32 %v2551_v7, %v2437_v60  ;;  %v2520_v19 = vmul.f32 0.044715, %v2456_v38  ;;  %v2439_v20 = vadd.f32 %v2438_v49, %v5096_v40  ;;  %v2495_v18 = vpop.f32.mrf.mxu0  ;;  %v5125_v6 = vmul.f32 0.5, %v2456_v38 }
 0x8da   : > { %v2570_v21 = vadd.f32 %v2554_v12, %v2494_v31  ;;  %v2521_v11 = vmul.f32 0.044715, %v2475_v35  ;;  %v2496_v22 = vadd.f32 %v2495_v18, %v5098_v56  ;;  %v5127_v42 = vmul.f32 0.5, %v2475_v35 }
 0x8db   : > { %v2583_v32 = vmul.f32 0.7978846, %v2567_v15  ;;  %v2536_v25 = vmul.f32 %v2520_v19, %v2456_v38  ;;  %v2523_v28 = vmul.f32 0.044715, %v2439_v20  ;;  %v2507_v7 = vmul.f32 0.5, %v2439_v20 }
 0x8dc   : > { %v2586_v59 = vmul.f32 0.7978846, %v2570_v21  ;;  %v2537_v9 = vmul.f32 %v2521_v11, %v2475_v35  ;;  %v2526_v27 = vmul.f32 0.044715, %v2496_v22  ;;  %v2510_v19 = vmul.f32 0.5, %v2496_v22 }
 0x8dd   : > { %v2552_v30 = vmul.f32 %v2536_v25, %v2456_v38  ;;  %v2539_v33 = vmul.f32 %v2523_v28, %v2439_v20  ;;  %4216 = vtanh.f32 %v2583_v32 }
 0x8de   : > { %v2553_v13 = vmul.f32 %v2537_v9, %v2475_v35  ;;  %v2542_v34 = vmul.f32 %v2526_v27, %v2496_v22  ;;  %v2457_v23 = vpop.f32.mrf.mxu2  ;;  %4218 = vtanh.f32 %v2586_v59 }
 0x8df   : > { %v2568_v41 = vadd.f32 %v2552_v30, %v2456_v38  ;;  %v2555_v43 = vmul.f32 %v2539_v33, %v2439_v20  ;;  %v2458_v44 = vadd.f32 %v2457_v23, %v5106_v63  ;;  %v2476_v46 = vpop.f32.mrf.mxu3 }
 0x8e0   : > { %v2569_v47 = vadd.f32 %v2553_v13, %v2475_v35  ;;  %v2558_v45 = vmul.f32 %v2542_v34, %v2496_v22  ;;  %v2477_v50 = vadd.f32 %v2476_v46, %v5110_v5  ;;  %v2441_v52 = vpop.f32.mrf.mxu1 }
 0x8e1   : > { %v2571_v61 = vadd.f32 %v2555_v43, %v2439_v20  ;;  %v2524_v1 = vmul.f32 0.044715, %v2458_v44  ;;  %v5119_v2 = vadd.f32 %v2441_v52, %v5096_v40  ;;  %v2498_v48 = vpop.f32.mrf.mxu0  ;;  %v2584_v58 = vmul.f32 0.7978846, %v2568_v41 }
 0x8e2   : > { %v2574_v14 = vadd.f32 %v2558_v45, %v2496_v22  ;;  %v2525_v53 = vmul.f32 0.044715, %v2477_v50  ;;  %v5122_v57 = vadd.f32 %v2498_v48, %v5098_v56  ;;  %v2585_v8 = vmul.f32 0.7978846, %v2569_v47 }
 0x8e3   : > { %v4217_v37 = vpop.eup %4216  ;;  %v2587_v39 = vmul.f32 0.7978846, %v2571_v61  ;;  %v2540_v29 = vmul.f32 %v2524_v1, %v2458_v44  ;;  %v2527_v51 = vmul.f32 0.044715, %v5119_v2  ;;  %v2508_v11 = vmul.f32 0.5, %v2458_v44 }
 0x8e4   : > { %v2590_v62 = vmul.f32 0.7978846, %v2574_v14  ;;  %v2541_v0 = vmul.f32 %v2525_v53, %v2477_v50  ;;  %v4219_v60 = vpop.eup %4218  ;;  %v2615_v10 = vadd.f32 1.0, %v4217_v37  ;;  %v2530_v49 = vmul.f32 0.044715, %v5122_v57 }
 0x8e5   : > { %v2556_v4 = vmul.f32 %v2540_v29, %v2458_v44  ;;  %4220 = vtanh.f32 %v2587_v39  ;;  %v2543_v38 = vmul.f32 %v2527_v51, %v5119_v2  ;;  %v2618_v20 = vadd.f32 1.0, %v4219_v60 }
 0x8e6   : > { %v2557_v31 = vmul.f32 %v2541_v0, %v2477_v50  ;;  %v2460_v3 = vpop.f32.mrf.mxu2  ;;  %4222 = vtanh.f32 %v2590_v62  ;;  %v2509_v28 = vmul.f32 0.5, %v2477_v50  ;;  %v2631_v27 = vmul.f32 %v2615_v10, %v2503_v54 }
 0x8e7   : > { %v2572_v12 = vadd.f32 %v2556_v4, %v2458_v44  ;;  %v2479_v15 = vpop.f32.mrf.mxu3  ;;  %4224 = vtanh.f32 %v2584_v58  ;;  %v2559_v22 = vmul.f32 %v2543_v38, %v5119_v2  ;;  %v5139_v33 = vadd.f32 %v2460_v3, %v5106_v63 }
 0x8e8   : > { %v2573_v18 = vadd.f32 %v2557_v31, %v2477_v50  ;;  %v2443_v21 = vpop.f32.mrf.mxu1  ;;  %4226 = vtanh.f32 %v2585_v8  ;;  %v5146_v44 = vadd.f32 %v2479_v15, %v5110_v5  ;;  %v2634_v47 = vmul.f32 %v2618_v20, %v2506_v55 }
 0x8e9   : > { %v2588_v35 = vmul.f32 0.7978846, %v2572_v12  ;;  %v5132_v32 = vadd.f32 %v2443_v21, %v5096_v40  ;;  %v2500_v25 = vpop.f32.mrf.mxu0  ;;  %v2546_v40 = vmul.f32 %v2530_v49, %v5122_v57  ;;  %v2528_v55 = vmul.f32 0.044715, %v5139_v33 }
 0x8ea   : > { %v2589_v59 = vmul.f32 0.7978846, %v2573_v18  ;;  %v5135_v9 = vadd.f32 %v2500_v25, %v5098_v56  ;;  %v2575_v56 = vadd.f32 %v2559_v22, %v5119_v2  ;;  %v2529_v31 = vmul.f32 0.044715, %v5146_v44 }
 0x8eb   : > { %v4221_v30 = vpop.eup %4220  ;;  %v2531_v13 = vmul.f32 0.044715, %v5132_v32  ;;  %4228 = vtanh.f32 %v2588_v35  ;;  %v2562_v14 = vmul.f32 %v2546_v40, %v5122_v57  ;;  %v2544_v38 = vmul.f32 %v2528_v55, %v5139_v33 }
 0x8ec   : > { %v4223_v34 = vpop.eup %4222  ;;  %v2534_v23 = vmul.f32 0.044715, %v5135_v9  ;;  %v2619_v41 = vadd.f32 1.0, %v4221_v30  ;;  %4230 = vtanh.f32 %v2589_v59  ;;  %v2591_v1 = vmul.f32 0.7978846, %v2575_v56 }
 0x8ed   : > { %v4225_v43 = vpop.eup %4224  ;;  %v2622_v46 = vadd.f32 1.0, %v4223_v34  ;;  %v2547_v45 = vmul.f32 %v2531_v13, %v5132_v32  ;;  %v2578_v10 = vadd.f32 %v2562_v14, %v5122_v57  ;;  %v2560_v22 = vmul.f32 %v2544_v38, %v5139_v33 }
 0x8ee   : > { %v4227_v50 = vpop.eup %4226  ;;  %v2462_v52 = vpop.f32.mrf.mxu2  ;;  %v2635_v61 = vmul.f32 %v2619_v41, %v2507_v7  ;;  %v2550_v48 = vmul.f32 %v2534_v23, %v5135_v9  ;;  %v2616_v58 = vadd.f32 1.0, %v4225_v43  ;;  %4232 = vtanh.f32 %v2591_v1 }
 0x8ef   : > { %v5152_v53 = vadd.f32 %v2462_v52, %v5106_v63  ;;  %v2481_v54 = vpop.f32.mrf.mxu3  ;;  %v2638_v37 = vmul.f32 %v2622_v46, %v2510_v19  ;;  %v2563_v39 = vmul.f32 %v2547_v45, %v5132_v32  ;;  %v2617_v62 = vadd.f32 1.0, %v4227_v50 }
 0x8f0   : > { %v5157_v29 = vadd.f32 %v2481_v54, %v5110_v5  ;;  %v2647_v8 = vpack.c.bf16 %v2635_v61, %v2631_v27  ;;  %v2566_v7 = vmul.f32 %v2550_v48, %v5135_v9  ;;  %v2632_v12 = vmul.f32 %v2616_v58, %v5125_v6 }
 0x8f1   : > { %v4229_v0 = vpop.eup %4228  ;;  %v2532_v51 = vmul.f32 0.044715, %v5152_v53  ;;  %v2650_v4 = vpack.c.bf16 %v2638_v37, %v2634_v47  ;;  %v2579_v60 = vadd.f32 %v2563_v39, %v5132_v32  ;;  %v2594_v21 = vmul.f32 0.7978846, %v2578_v10 }
 0x8f2   : > { %v4231_v63 = vpop.eup %4230  ;;  %2923 = vmatmul.bf16.vlgmr.msra.gmra.mxu1 %v2647_v8  ;;  %v2620_v3 = vadd.f32 1.0, %v4229_v0  ;;  %v2533_v5 = vmul.f32 0.044715, %v5157_v29  ;;  %v2582_v18 = vadd.f32 %v2566_v7, %v5135_v9  ;;  %v2633_v35 = vmul.f32 %v2617_v62, %v5127_v42 }
 0x8f3   : > { %2980 = vmatmul.bf16.vlgmr.msrb.gmra.mxu0 %v2650_v4  ;;  %v2621_v49 = vadd.f32 1.0, %v4231_v63  ;;  %v2595_v15 = vmul.f32 0.7978846, %v2579_v60  ;;  %v2548_v20 = vmul.f32 %v2532_v51, %v5152_v53  ;;  %v2576_v13 = vadd.f32 %v2560_v22, %v5139_v33 }
 0x8f4   : > { %v2636_v19 = vmul.f32 %v2620_v3, %v2508_v11  ;;  %v2598_v27 = vmul.f32 0.7978846, %v2582_v18  ;;  %v4233_v6 = vpop.eup %4232  ;;  %v2545_v40 = vmul.f32 %v2529_v31, %v5146_v44  ;;  %v2549_v42 = vmul.f32 %v2533_v5, %v5157_v29 }
 0x8f5   : > { %v2637_v25 = vmul.f32 %v2621_v49, %v2509_v28  ;;  %4234 = vtanh.f32 %v2595_v15  ;;  %v2564_v11 = vmul.f32 %v2548_v20, %v5152_v53  ;;  %v2623_v34 = vadd.f32 1.0, %v4233_v6 }
 0x8f6   : > { %v2648_v59 = vpack.c.bf16 %v2636_v19, %v2632_v12  ;;  %4236 = vtanh.f32 %v2594_v21  ;;  %v2592_v23 = vmul.f32 0.7978846, %v2576_v13  ;;  %v2561_v41 = vmul.f32 %v2545_v40, %v5146_v44 }
 0x8f7   : > { %v2649_v30 = vpack.c.bf16 %v2637_v25, %v2633_v35  ;;  %4238 = vtanh.f32 %v2598_v27  ;;  %v2580_v28 = vadd.f32 %v2564_v11, %v5152_v53  ;;  %v2565_v56 = vmul.f32 %v2549_v42, %v5157_v29  ;;  %v4133_v35 = vld [vmem:[%s820_s27] ss:$0 sm:$0xff] }
 0x8f8   : > { %2942 = vmatmul.bf16.vlgmr.msra.gmra.mxu2 %v2648_v59  ;;  %v2511_v46 = vmul.f32 0.5, %v5119_v2  ;;  %v2515_v47 = vmul.f32 0.5, %v5132_v32  ;;  %4240 = vtanh.f32 %v2592_v23  ;;  %v2577_v61 = vadd.f32 %v2561_v41, %v5146_v44 }
 0x8f9   : > { %2961 = vmatmul.bf16.vlgmr.msra.gmra.mxu3 %v2649_v30  ;;  %v2596_v45 = vmul.f32 0.7978846, %v2580_v28  ;;  %v2581_v1 = vadd.f32 %v2565_v56, %v5157_v29  ;;  %v2514_v55 = vmul.f32 0.5, %v5122_v57  ;;  %v2518_v2 = vmul.f32 0.5, %v5135_v9 }
 0x8fa   : > { %v2639_v54 = vmul.f32 %v2623_v34, %v2511_v46  ;;  %v2593_v58 = vmul.f32 0.7978846, %v2577_v61  ;;  %v2512_v31 = vmul.f32 0.5, %v5139_v33  ;;  %v2516_v3 = vmul.f32 0.5, %v5152_v53 }
 0x8fb   : > { %v4235_v43 = vpop.eup %4234  ;;  %4242 = vtanh.f32 %v2596_v45  ;;  %v2597_v39 = vmul.f32 0.7978846, %v2581_v1  ;;  %v2513_v15 = vmul.f32 0.5, %v5146_v44  ;;  %v2517_v19 = vmul.f32 0.5, %v5157_v29 }
 0x8fc   : > { %v4237_v50 = vpop.eup %4236  ;;  %v2627_v52 = vadd.f32 1.0, %v4235_v43  ;;  %4244 = vtanh.f32 %v2593_v58 }
 0x8fd   : > { %v2626_v48 = vadd.f32 1.0, %v4237_v50  ;;  %v4239_v14 = vpop.eup %4238  ;;  %4246 = vtanh.f32 %v2597_v39 }
 0x8fe   : > { %v2643_v37 = vmul.f32 %v2627_v52, %v2515_v47  ;;  %v2630_v32 = vadd.f32 1.0, %v4239_v14  ;;  %v4241_v51 = vpop.eup %4240 }
 0x8ff   : > { %v2642_v62 = vmul.f32 %v2626_v48, %v2514_v55  ;;  %v2624_v63 = vadd.f32 1.0, %v4241_v51 }
 0x900   : > { %v2651_v8 = vpack.c.bf16 %v2643_v37, %v2639_v54  ;;  %v2646_v0 = vmul.f32 %v2630_v32, %v2518_v2 }
 0x901   : > { %v4243_v4 = vpop.eup %4242  ;;  %v2640_v9 = vmul.f32 %v2624_v63, %v2512_v31 }
 0x902   : > { %2928 = vmatmul.bf16.gmra.mxu1 %v2651_v8  ;;  %v2654_v60 = vpack.c.bf16 %v2646_v0, %v2642_v62  ;;  %v2628_v7 = vadd.f32 1.0, %v4243_v4  ;;  %v4245_v57 = vpop.eup %4244 }
 0x903   : > { %v4247_v5 = vpop.eup %4246  ;;  %v2625_v12 = vadd.f32 1.0, %v4245_v57 }
 0x904   : > { %2985 = vmatmul.bf16.gmra.mxu0 %v2654_v60  ;;  %v2644_v10 = vmul.f32 %v2628_v7, %v2516_v3  ;;  %v2629_v18 = vadd.f32 1.0, %v4247_v5 }
 0x905   : > { %v2641_v21 = vmul.f32 %v2625_v12, %v2513_v15 }
 0x906   : > { %v2652_v49 = vpack.c.bf16 %v2644_v10, %v2640_v9  ;;  %v2645_v38 = vmul.f32 %v2629_v18, %v2517_v19 }
 0x908   : > { %2947 = vmatmul.bf16.gmra.mxu2 %v2652_v49  ;;  %v2653_v33 = vpack.c.bf16 %v2645_v38, %v2641_v21 }
 0x90a   : > { %2966 = vmatmul.bf16.gmra.mxu3 %v2653_v33 }
 0x96f   : > { %v2924_v53 = vpop.f32.mrf.mxu1 }
 0x970   : > { %v2925_v25 = vadd.f32 %v4133_v35, %v2924_v53  ;;  %v2981_v59 = vpop.f32.mrf.mxu0 }
 0x977   : > { %v2926_v44 = vpop.f32.mrf.mxu1 }
 0x978   : > { %v2927_v30 = vadd.f32 %v4133_v35, %v2926_v44  ;;  %v2983_v28 = vpop.f32.mrf.mxu0 }
 0x97b   : > { %v2943_v20 = vpop.f32.mrf.mxu2 }
 0x97c   : > { %v2944_v27 = vadd.f32 %v2943_v20, %v2925_v25  ;;  %v2962_v22 = vpop.f32.mrf.mxu3 }
 0x97e   : > { %v2963_v6 = vadd.f32 %v2962_v22, %v2944_v27 }
 0x97f   : > { %v2929_v23 = vpop.f32.mrf.mxu1 }
 0x980   : > { %v2982_v29 = vadd.f32 %v2981_v59, %v2963_v6  ;;  %v2930_v43 = vadd.f32 %v4133_v35, %v2929_v23 }
 0x981   : > { %v2986_v45 = vpop.f32.mrf.mxu0 }
 0x982   : > { %v2991_v11 = vadd.f32 %v2982_v29, %v4951_v16 }
 0x983   : > { %v2945_v13 = vpop.f32.mrf.mxu2 }
 0x984   : > { %2995 = vst [vmem:[#allocation2 + $0x10] sm:$0xff] %v2991_v11  ;;  %v2946_v40 = vadd.f32 %v2945_v13, %v2927_v30  ;;  %v2964_v42 = vpop.f32.mrf.mxu3 }
 0x986   : > { %v2965_v34 = vadd.f32 %v2964_v42, %v2946_v40 }
 0x987   : > { %v2931_v50 = vpop.f32.mrf.mxu1 }
 0x988   : > { %v2984_v41 = vadd.f32 %v2983_v28, %v2965_v34  ;;  %v2932_v1 = vadd.f32 %v4133_v35, %v2931_v50 }
 0x989   : > { %v2988_v39 = vpop.f32.mrf.mxu0 }
 0x98a   : > { %v2992_v56 = vadd.f32 %v2984_v41, %v4954_v17 }
 0x98b   : > { %v2948_v46 = vpop.f32.mrf.mxu2 }
 0x98c   : > { %2996 = vst [vmem:[#allocation2] sm:$0xff] %v2992_v56  ;;  %v2949_v47 = vadd.f32 %v2948_v46, %v2930_v43 }
 0x98d   : > { %v2967_v52 = vpop.f32.mrf.mxu3 }
 0x98e   : > { %v2968_v61 = vadd.f32 %v2967_v52, %v2949_v47 }
 0x990   : > { %v2987_v16 = vadd.f32 %v2986_v45, %v2968_v61 }
 0x992   : > { %v2993_v14 = vadd.f32 %v2987_v16, %v4957_v24 }
 0x993   : > { %v2950_v48 = vpop.f32.mrf.mxu2 }
 0x994   : > { %v2951_v54 = vadd.f32 %v2950_v48, %v2932_v1  ;;  %2997 = vst [vmem:[#allocation2 + $0x18] sm:$0xff] %v2993_v14 }
 0x995   : > { %v2969_v37 = vpop.f32.mrf.mxu3 }
 0x996   : > { %v2970_v58 = vadd.f32 %v2969_v37, %v2951_v54 }
 0x998   : > { %v2989_v55 = vadd.f32 %v2988_v39, %v2970_v58  ;;  %3002 = sbr.rel (%p3877_p5) target bundleno = 3024 (0xbd0), region = 112 }
 0x99a   : > { %v2994_v17 = vadd.f32 %v2989_v55, %v4960_v26 }
 0x99c   : > { %2998 = vst [vmem:[#allocation2 + $0x8] sm:$0xff] %v2994_v17 }
 0x99d   : > { %3005 = vadd.xlane.f32.xlu1 %v2991_v11  ;;  %3007 = vadd.xlane.f32.xlu0 %v2992_v56  ;;  %v4037_v10 = vld [vmem:[%s5307_s17 + $0x38] sm:$0xff]  ;;  %v4036_v19 = vld [vmem:[%s5307_s17 + $0x30] sm:$0xff]  ;;  %v4035_v38 = vld [vmem:[%s5307_s17 + $0x28] sm:$0xff]  ;;  %v4312_v52 = vmov 9.0   ;;  %vm3099_vm15 = vcmask 1040384   ;;  %vm3151_vm7 = vcmask 1041409  }
 0x99e   : > { %3203 = vmatpush.bf16.msra.mxu0 %v4037_v10  ;;  %v4034_v33 = vld [vmem:[%s5307_s17 + $0x20] sm:$0xff]  ;;  %v4033_v44 = vld [vmem:[%s5307_s17 + $0x18] sm:$0xff]  ;;  %v4031_v41 = vld [vmem:[%s5307_s17 + $0x8] sm:$0xff] }
 0x99f   : > { %v4252_v47 = vld [vmem:[%s5305_s15] ss:$0 sm:$0xff] }
 0x9a0   : > { %v4253_v48 = vld [vmem:[%s5345_s16] ss:$0 sm:$0xff] }
 0x9a1   : > { %v4030_v37 = vld [vmem:[%s5307_s17] sm:$0xff] }
 0x9a2   : > { %3204 = vmatpush.bf16.msra.mxu0 %v4036_v19 }
 0x9a5   : > { %3009 = vadd.xlane.f32.xlu1 %v2993_v14  ;;  %3011 = vadd.xlane.f32.xlu0 %v2994_v17 }
 0x9a6   : > { %3205 = vmatpush.bf16.msra.mxu0 %v4035_v38 }
 0x9aa   : > { %3206 = vmatpush.bf16.msra.mxu0 %v4034_v33 }
 0x9ae   : > { %3207 = vmatpush.bf16.msra.mxu0 %v4033_v44 }
 0xa10   : > { %v3006_v2 = vpop.xlane.xlu1 %3005  ;;  %v3008_v32 = vpop.xlane.xlu0 %3007 }
 0xa11   : > { %v3013_v24 = vmul.f32 %v3006_v2, %v4523_v36  ;;  %v3014_v8 = vmul.f32 %v3008_v32, %v4523_v36 }
 0xa13   : > { %v5200_v62 = vsub.f32 %v2991_v11, %v3013_v24  ;;  %v5202_v0 = vsub.f32 %v2992_v56, %v3014_v8 }
 0xa15   : > { %v3021_v26 = vmul.f32 %v5200_v62, %v5200_v62  ;;  %v3022_v51 = vmul.f32 %v5202_v0, %v5202_v0 }
 0xa17   : > { %3025 = vadd.xlane.f32.xlu0 %v3021_v26  ;;  %3027 = vadd.xlane.f32.xlu2 %v3022_v51 }
 0xa18   : > { %v3010_v4 = vpop.xlane.xlu1 %3009  ;;  %v3012_v60 = vpop.xlane.xlu0 %3011 }
 0xa19   : > { %v3015_v63 = vmul.f32 %v3010_v4, %v4523_v36  ;;  %v3016_v31 = vmul.f32 %v3012_v60, %v4523_v36 }
 0xa1b   : > { %v5210_v3 = vsub.f32 %v2993_v14, %v3015_v63  ;;  %v5212_v7 = vsub.f32 %v2994_v17, %v3016_v31 }
 0xa1d   : > { %v3023_v57 = vmul.f32 %v5210_v3, %v5210_v3  ;;  %v3024_v9 = vmul.f32 %v5212_v7, %v5212_v7 }
 0xa1f   : > { %3029 = vadd.xlane.f32.xlu1 %v3023_v57  ;;  %3031 = vadd.xlane.f32.xlu2 %v3024_v9  ;;  %v4041_v57 = vld [vmem:[%s5346_s23 + $0x18] sm:$0xff] }
 0xa20   : > { %3260 = vmatpush.bf16.msra.mxu1 %v4041_v57 }
 0xa8a   : > { %v3028_v5 = vpop.xlane.xlu2 %3027  ;;  %v3026_v12 = vpop.xlane.xlu0 %3025 }
 0xa8b   : > { %v3034_v49 = vmul.f32 %v3028_v5, %v4523_v36  ;;  %v3033_v15 = vmul.f32 %v3026_v12, %v4523_v36 }
 0xa8d   : > { %v3038_v18 = vadd.f32 1e-05, %v3034_v49  ;;  %v3037_v21 = vadd.f32 1e-05, %v3033_v15  ;;  %v4040_v49 = vld [vmem:[%s5346_s23 + $0x10] sm:$0xff] }
 0xa8e   : > { %3261 = vmatpush.bf16.msra.mxu1 %v4040_v49 }
 0xa8f   : > { %4256 = vrsqrt.f32 %v3038_v18  ;;  %vm3057_vm11 = vweird.f32 %v3038_v18  ;;  %vm3047_vm13 = vweird.f32 %v3037_v21 }
 0xa90   : > { %4258 = vrsqrt.f32 %v3037_v21 }
 0xa92   : > { %v3030_v53 = vpop.xlane.xlu1 %3029  ;;  %v3032_v35 = vpop.xlane.xlu2 %3031 }
 0xa93   : > { %v3035_v25 = vmul.f32 %v3030_v53, %v4523_v36  ;;  %v3036_v20 = vmul.f32 %v3032_v35, %v4523_v36  ;;  %v4032_v36 = vld [vmem:[%s5307_s17 + $0x10] sm:$0xff] }
 0xa94   : > { %3208 = vmatpush.bf16.msra.mxu0 %v4032_v36 }
 0xa95   : > { %v4257_v59 = vpop.eup %4256  ;;  %v3039_v27 = vadd.f32 1e-05, %v3035_v25  ;;  %v5234_v22 = vadd.f32 1e-05, %v3036_v20 }
 0xa96   : > { %v4259_v6 = vpop.eup %4258  ;;  %v3052_v29 = vmul.f32 %v4257_v59, %v3038_v18  ;;  %vm3058_vm8 = vweird.f32 %v4257_v59 }
 0xa97   : > { %v3042_v30 = vmul.f32 %v4259_v6, %v3037_v21  ;;  %4260 = vrsqrt.f32 %v3039_v27  ;;  %vm3048_vm9 = vweird.f32 %v4259_v6  ;;  %vm3059_vm12 = vmor %vm3057_vm11, %vm3058_vm8  ;;  %vm3067_vm2 = vweird.f32 %v3039_v27 }
 0xa98   : > { %v3053_v11 = vmul.f32 %v4257_v59, %v3052_v29  ;;  %4262 = vrsqrt.f32 %v5234_v22  ;;  %vm3049_vm14 = vmor %vm3047_vm13, %vm3048_vm9  ;;  %3209 = vmatpush.bf16.msra.mxu0 %v4031_v41  ;;  %vm3077_vm4 = vweird.f32 %v5234_v22 }
 0xa99   : > { %v3043_v13 = vmul.f32 %v4259_v6, %v3042_v30  ;;  %4264 = vrcp.f32 %v4312_v52 }
 0xa9a   : > { %v3054_v40 = vmul.f32 0.5, %v3053_v11 }
 0xa9b   : > { %v3044_v42 = vmul.f32 0.5, %v3043_v13 }
 0xa9c   : > { %v3055_v28 = vsub.f32 1.5, %v3054_v40  ;;  %3210 = vmatpush.bf16.msra.mxu0 %v4030_v37 }
 0xa9d   : > { %v4261_v34 = vpop.eup %4260  ;;  %v3045_v23 = vsub.f32 1.5, %v3044_v42 }
 0xa9e   : > { %v4263_v56 = vpop.eup %4262  ;;  %v3056_v43 = vmul.f32 %v4257_v59, %v3055_v28  ;;  %v3062_v46 = vmul.f32 %v4261_v34, %v3039_v27  ;;  %vm3068_vm0 = vweird.f32 %v4261_v34 }
 0xa9f   : > { %v3046_v45 = vmul.f32 %v4259_v6, %v3045_v23  ;;  %v3072_v50 = vmul.f32 %v4263_v56, %v5234_v22  ;;  %v4265_v24 = vpop.eup %4264  ;;  %vm3078_vm1 = vweird.f32 %v4263_v56  ;;  %vm3069_vm3 = vmor %vm3067_vm2, %vm3068_vm0 }
 0xaa0   : > { %v3060_v61 = vsel %vm3059_vm12, %v4257_v59, %v3056_v43  ;;  %v3063_v1 = vmul.f32 %v4261_v34, %v3062_v46  ;;  %vm3079_vm5 = vmor %vm3077_vm4, %vm3078_vm1  ;;  %v3117_v31 = vmul.f32 9.0, %v4265_v24  ;;  %vm3121_vm6 = vweird.f32 %v4265_v24  ;;  %v4038_v46 = vld [vmem:[%s5346_s23] sm:$0xff] }
 0xaa1   : > { %v3082_v16 = vmul.f32 %v3060_v61, %v5202_v0  ;;  %v3050_v14 = vsel %vm3049_vm14, %v4259_v6, %v3046_v45  ;;  %v3073_v54 = vmul.f32 %v4263_v56, %v3072_v50 }
 0xaa2   : > { %v3081_v58 = vmul.f32 %v3050_v14, %v5200_v62  ;;  %v3064_v39 = vmul.f32 0.5, %v3063_v1  ;;  %v3118_v21 = vsub.f32 1.0, %v3117_v31  ;;  %v4255_v1 = vld [vmem:[%s5348_s0] ss:$0 sm:$0xff] }
 0xaa3   : > { %v3089_v55 = vmul.f32 %v4252_v47, %v3082_v16  ;;  %v3074_v17 = vmul.f32 0.5, %v3073_v54 }
 0xaa4   : > { %v3088_v2 = vmul.f32 %v4252_v47, %v3081_v58  ;;  %v3065_v32 = vsub.f32 1.5, %v3064_v39  ;;  %v3119_v25 = vmul.f32 %v4265_v24, %v3118_v21 }
 0xaa5   : > { %v3096_v8 = vadd.f32 %v4253_v48, %v3089_v55  ;;  %v3075_v0 = vsub.f32 1.5, %v3074_v17 }
 0xaa6   : > { %v3095_v26 = vadd.f32 %v4253_v48, %v3088_v2  ;;  %v3066_v51 = vmul.f32 %v4261_v34, %v3065_v32  ;;  %v3120_v22 = vadd.f32 %v4265_v24, %v3119_v25 }
 0xaa7   : > { %v3100_v4 = vsel %vm3099_vm15, %v3096_v8, 0.0  ;;  %v3076_v60 = vmul.f32 %v4263_v56, %v3075_v0 }
 0xaa8   : > { %v3101_v62 = vadd.f32 %v3100_v4, %v3095_v26  ;;  %v3070_v63 = vsel %vm3069_vm3, %v4261_v34, %v3066_v51  ;;  %v3122_v30 = vsel %vm3121_vm6, %v4265_v24, %v3120_v22 }
 0xaa9   : > { %v3083_v9 = vmul.f32 %v3070_v63, %v5210_v3  ;;  %v3080_v10 = vsel %vm3079_vm5, %v4263_v56, %v3076_v60  ;;  %v4039_v3 = vld [vmem:[%s5346_s23 + $0x8] sm:$0xff] }
 0xaaa   : > { %v3084_v5 = vmul.f32 %v3080_v10, %v5212_v7  ;;  %v3102_v12 = vrot.slane %v3101_v62, 4  ;;  %3262 = vmatpush.bf16.msra.mxu1 %v4039_v3 }
 0xaab   : > { %v3090_v15 = vmul.f32 %v4252_v47, %v3083_v9 }
 0xaac   : > { %v3091_v19 = vmul.f32 %v4252_v47, %v3084_v5  ;;  %v3103_v18 = vadd.f32 %v3102_v12, %v3101_v62  ;;  %v4254_v47 = vld [vmem:[%s5347_s29] ss:$0 sm:$0xff] }
 0xaad   : > { %v3097_v38 = vadd.f32 %v4253_v48, %v3090_v15 }
 0xaae   : > { %v3098_v33 = vadd.f32 %v4253_v48, %v3091_v19  ;;  %v3104_v53 = vrot.slane %v3103_v18, 2  ;;  %3263 = vmatpush.bf16.msra.mxu1 %v4038_v46 }
 0xab0   : > { %v3108_v7 = vsel %vm3099_vm15, %v3098_v33, 0.0  ;;  %v3105_v35 = vadd.f32 %v3104_v53, %v3103_v18 }
 0xab1   : > { %v3109_v20 = vadd.f32 %v3108_v7, %v3097_v38 }
 0xab2   : > { %v3106_v59 = vrot.slane %v3105_v35, 1 }
 0xab3   : > { %v3110_v27 = vrot.slane %v3109_v20, 4 }
 0xab4   : > { %v3107_v6 = vadd.f32 %v3106_v59, %v3105_v35 }
 0xab5   : > { %v3111_v44 = vadd.f32 %v3110_v27, %v3109_v20 }
 0xab6   : > { %v3123_v36 = vmul.f32 %v3122_v30, %v3107_v6 }
 0xab7   : > { %v3112_v29 = vrot.slane %v3111_v44, 2 }
 0xab8   : > { %v3125_v28 = vpack.c.bf16 %v3123_v36, %v3123_v36 }
 0xab9   : > { %v3113_v11 = vadd.f32 %v3112_v29, %v3111_v44 }
 0xaba   : > { %v3149_v23 = vunpack.c.l.b16 %v3125_v28 }
 0xabb   : > { %v3114_v13 = vrot.slane %v3113_v11, 1 }
 0xabd   : > { %v3115_v40 = vadd.f32 %v3114_v13, %v3113_v11 }
 0xabf   : > { %v3124_v42 = vmul.f32 %v3122_v30, %v3115_v40 }
 0xac1   : > { %v3126_v34 = vpack.c.bf16 %v3124_v42, %v3124_v42 }
 0xac3   : > { %v3150_v41 = vunpack.c.l.b16 %v3126_v34 }
 0xac5   : > { %v3152_v56 = vsel %vm3151_vm7, %v3150_v41, %v3149_v23 }
 0xac6   : > { %v3153_v43 = vpack.c.b16 %v3152_v56, %v3152_v56 }
 0xac8   : > { %3211 = vmatmul.bf16.vlgmr.msra.gmra.mxu0 %v3153_v43 }
 0xb45   : > { %v3212_v45 = vpop.f32.mrf.mxu0 }
 0xb46   : > { %v3213_v50 = vadd.f32 %v4254_v47, %v3212_v45 }
 0xb48   : > { %v3216_v52 = vpack.c.bf16 %v3213_v50, %v3213_v50 }
 0xb4a   : > { %3926 = vmatmul.msk.bf16.vlgmr.msra.gmra.mxu1 %vm2024_vm10, %v3216_v52 }
 0xb4d   : > { %v3214_v61 = vpop.f32.mrf.mxu0 }
 0xbc7   : > { %v3265_v16 = vpop.f32.mrf.mxu1 }
 0xbc8   : > { %v3266_v48 = vadd.f32 %v4255_v1, %v3265_v16 }
 0xbca   : > { %3269 = vst [vmem:[#allocation4] sm:$0x3] %v3266_v48 }
 0xbcf   : > { %v3267_v14 = vpop.f32.mrf.mxu1 }
 0xbd0 PF: > { %p4050_p6 = scmp.eq.s32.totalorder %s4430_s25, 1  ;;  %s4313_s1 = smov [#allocation4]  }
 0xbd1   : > { %s3276_s16 = sshll.u32 %s4313_s1, 4  ;;  %s5349_s4 = sld [smem:[#allocation20_spill]]  ;;  %s3277_s16 = int_to_ptr.vmem [resolvable:$true] %s3276_s16 }
 0xbd7   : > { %s3278_s5 = sshll.u32 %s5349_s4, 4  ;;  %s3279_s5 = int_to_ptr.hbm [resolvable:$true] %s3278_s5 }
 0xbd8   : > { %4047 = dma.vmem_to_hbm [thread:$0]  (%p4050_p6), %s3277_s16, 32, %s3279_s5, [#allocation5]  }
 0xbd9   : > { %4299 = dma.done.wait (%p4050_p6), [#allocation5], 32  }
 0xbda   : > { %4301 = vsyncadd (%p4050_p6), [#allocation5], 4294967264 }
 0xbdb PF: > { %s5350_s20 = sld [smem:[#allocation7_spill]] }
 0xbe1   : > { %s32_s2 = sadd.s32 1, %s5350_s20  }
 0xbe2   : > { %p29_p7 = scmp.ge.s32.totalorder %s32_s2, 4  }
 0xbe4   :  { %31 = sbr.rel (!%p29_p7) target bundleno = 15 (0xf), region = 172 }
 0xbe9   :  { %3292 = vsyncpa [#allocation5], 1 }
 0xbea   :  { %3294 = vsyncpa [#allocation5 + $0x1], 1 }

</bundles_post_ra>
